<compile_context>
chip_gen: v5e
topology: v5e:2x2
jax: 0.10.0
libtpu: 0.0.40
codegen_flags: <defaults>
</compile_context>

<pallas_src>
import jax
import jax.numpy as jnp
from jax import lax
from jax.experimental import pallas as pl
from jax.experimental.pallas import tpu as pltpu


# ----------------------------------------------------------------------------
# Fused kernel: encoder GRU stack -> decoder GRU stack -> Linear, one call.
# Sequences enter the kernel TIME-MAJOR STACKED: (T*B, feat).
# Fused weight layout per GRU layer (gate order [r, z, n]):
#   wi : (I, 3H)   wh : (H, 3H)   b : (1, 3H)  (= [b_ir+b_hr | b_iz+b_hz | b_in])
#   bhn: (1, H)    (= b_hn, kept separate because it is scaled by r)
# ----------------------------------------------------------------------------
def make_fused_kernel(B, Tp, Tf, H, O, L):
    def kernel(*refs):
        past_ref, fut_ref = refs[0], refs[1]
        w_refs = refs[2:2 + 8 * L]
        enc = [w_refs[4 * l: 4 * l + 4] for l in range(L)]
        dec = [w_refs[4 * L + 4 * l: 4 * L + 4 * l + 4] for l in range(L)]
        wlin_ref = refs[2 + 8 * L]
        blin_ref = refs[3 + 8 * L]
        out_ref = refs[4 + 8 * L]
        xbuf = refs[5 + 8 * L]            # VMEM scratch (max(Tp,Tf)*B, H)

        def gru_layer(x_all, T, h0, layer_refs):
            """x_all: (T*B, I) time-major stacked layer input.
            Writes the layer's output sequence into xbuf[0:T*B]; returns h_T."""
            wi_ref, wh_ref, b_ref, bhn_ref = layer_refs
            # Hoisted input projection: ONE matmul for all T steps.
            gi_all = jnp.dot(x_all, wi_ref[...],
                             preferred_element_type=jnp.float32) + b_ref[...]
            wh = wh_ref[...]              # (H, 3H)
            bhn = bhn_ref[...]            # (1, H)
            h = h0
            for t in range(T):            # statically unrolled (tiny T)
                gi = gi_all[t * B:(t + 1) * B, :]          # (B, 3H) static slice
                gh = jnp.dot(h, wh, preferred_element_type=jnp.float32)
                # single sigmoid on the contiguous [r|z] block
                rz = jax.nn.sigmoid(gi[:, :2 * H] + gh[:, :2 * H])
                r = rz[:, :H]
                z = rz[:, H:]
                n = jnp.tanh(gi[:, 2 * H:] + r * (gh[:, 2 * H:] + bhn))
                h = (1.0 - z) * n + z * h
                xbuf[pl.ds(t * B, B), :] = h               # stash for next layer
            return h

        h0 = jnp.zeros((B, H), jnp.float32)

        # ---------------- encoder ----------------
        x_all = past_ref[...]                              # (Tp*B, enc_in)
        enc_h = []
        for l in range(L):
            if l > 0:
                x_all = xbuf[pl.ds(0, Tp * B), :]          # previous layer's seq
            enc_h.append(gru_layer(x_all, Tp, h0, enc[l]))

        # ---------------- decoder ----------------
        x_all = fut_ref[...]                               # (Tf*B, dec_in)
        for l in range(L):
            if l > 0:
                x_all = xbuf[pl.ds(0, Tf * B), :]
            gru_layer(x_all, Tf, enc_h[l], dec[l])

        # ------------- fused output Linear: one dot, one store -------------
        y_all = xbuf[pl.ds(0, Tf * B), :]                  # (Tf*B, H)
        out_ref[...] = (jnp.dot(y_all, wlin_ref[...],
                                preferred_element_type=jnp.float32)
                        + blin_ref[...])

    return kernel


def encoder_decoder_forward(past, future, fused):
    """past: (B, Tp, enc_in), future: (B, Tf, dec_in) batch-first (like PyTorch).
    `fused` is the output of fuse_params(). Returns (B, Tf, out_features)."""
    B, Tp, _ = past.shape
    _, Tf, _ = future.shape
    enc, dec = fused["enc"], fused["dec"]
    w_lin, b_lin = fused["lin"]
    L = len(enc)
    H, O = w_lin.shape

    # Tiny host-side relayout to time-major stacked slabs (fused by XLA).
    past2 = jnp.transpose(past, (1, 0, 2)).reshape(Tp * B, -1)
    fut2 = jnp.transpose(future, (1, 0, 2)).reshape(Tf * B, -1)

    flat_w = []
    for (wi, wh, b, bhn) in enc:
        flat_w += [wi, wh, b, bhn]
    for (wi, wh, b, bhn) in dec:
        flat_w += [wi, wh, b, bhn]

    args = [past2, fut2] + flat_w + [w_lin, b_lin]
    # No grid, no pipelining: every operand sits once in VMEM (no double
    # buffering of the constant weights).
    vmem_spec = pl.BlockSpec(memory_space=pltpu.MemorySpace.VMEM)

    out2 = pl.pallas_call(
        make_fused_kernel(B=B, Tp=Tp, Tf=Tf, H=H, O=O, L=L),
        out_shape=jax.ShapeDtypeStruct((Tf * B, O), jnp.float32),
        in_specs=[vmem_spec] * len(args),
        out_specs=vmem_spec,
        scratch_shapes=[pltpu.VMEM((max(Tp, Tf) * B, H), jnp.float32)],
    )(*args)

    # (Tf*B, O) time-major -> (B, Tf, O) batch-first. Kept in the wrapper
    # (negligible at these sizes) to avoid an in-kernel major-dim transpose.
    return jnp.transpose(out2.reshape(Tf, B, O), (1, 0, 2))


# ----------------------------------------------------------------------------
# Parameter init (PyTorch layout) + host-side fusion into the kernel layout.
# ----------------------------------------------------------------------------
def init_gru_layer_raw(key, in_size, hidden):
    k = 1.0 / (hidden ** 0.5)
    k0, k1, k2, k3 = jax.random.split(key, 4)
    w_ih = jax.random.uniform(k0, (3 * hidden, in_size), jnp.float32, -k, k)
    w_hh = jax.random.uniform(k1, (3 * hidden, hidden), jnp.float32, -k, k)
    b_ih = jax.random.uniform(k2, (3 * hidden,), jnp.float32, -k, k)
    b_hh = jax.random.uniform(k3, (3 * hidden,), jnp.float32, -k, k)
    return (w_ih, w_hh, b_ih, b_hh)


def init_params(key, enc_in, dec_in, hidden, out_features, num_layers):
    keys = jax.random.split(key, 2 * num_layers + 1)
    enc = [init_gru_layer_raw(keys[l], enc_in if l == 0 else hidden, hidden)
           for l in range(num_layers)]
    dec = [init_gru_layer_raw(keys[num_layers + l], dec_in if l == 0 else hidden,
                              hidden) for l in range(num_layers)]
    k = 1.0 / (hidden ** 0.5)
    kw, kb = jax.random.split(keys[-1])
    w_lin = jax.random.uniform(kw, (out_features, hidden), jnp.float32, -k, k)
    b_lin = jax.random.uniform(kb, (out_features,), jnp.float32, -k, k)
    return {"enc": enc, "dec": dec, "lin": (w_lin, b_lin)}


def fuse_gru_layer(w_ih, w_hh, b_ih, b_hh):
    Hh = w_hh.shape[1]
    wi = jnp.transpose(w_ih)                      # (I, 3H), cols [r|z|n]
    wh = jnp.transpose(w_hh)                      # (H, 3H)
    b = jnp.concatenate([b_ih[:Hh] + b_hh[:Hh],
                         b_ih[Hh:2 * Hh] + b_hh[Hh:2 * Hh],
                         b_ih[2 * Hh:]]).reshape(1, 3 * Hh)
    bhn = b_hh[2 * Hh:].reshape(1, Hh)
    return (wi, wh, b, bhn)


def fuse_params(raw):
    W, b = raw["lin"]
    return {
        "enc": [fuse_gru_layer(*p) for p in raw["enc"]],
        "dec": [fuse_gru_layer(*p) for p in raw["dec"]],
        "lin": (jnp.transpose(W), b.reshape(1, -1)),
    }


# ----------------------------------------------------------------------------
# Pure-JAX reference using the UNFUSED PyTorch-layout params (validates both
# the GRU math and the host-side gate/bias fusion).
# ----------------------------------------------------------------------------
def gru_layer_ref(x_tm, h0, w_ih, w_hh, b_ih, b_hh):
    Hh = h0.shape[-1]
    W_ir, W_iz, W_in = w_ih[:Hh], w_ih[Hh:2 * Hh], w_ih[2 * Hh:]
    W_hr, W_hz, W_hn = w_hh[:Hh], w_hh[Hh:2 * Hh], w_hh[2 * Hh:]
    b_ir, b_iz, b_in = b_ih[:Hh], b_ih[Hh:2 * Hh], b_ih[2 * Hh:]
    b_hr, b_hz, b_hn = b_hh[:Hh], b_hh[Hh:2 * Hh], b_hh[2 * Hh:]

    def step(h, x_t):
        r = jax.nn.sigmoid(x_t @ W_ir.T + b_ir + h @ W_hr.T + b_hr)
        z = jax.nn.sigmoid(x_t @ W_iz.T + b_iz + h @ W_hz.T + b_hz)
        n = jnp.tanh(x_t @ W_in.T + b_in + r * (h @ W_hn.T + b_hn))
        h_new = (1.0 - z) * n + z * h
        return h_new, h_new

    h_T, ys = lax.scan(step, h0, x_tm)
    return ys, h_T


def encoder_decoder_ref(past, future, raw):
    B = past.shape[0]
    L = len(raw["enc"])
    H = raw["enc"][0][1].shape[1]
    x = jnp.transpose(past, (1, 0, 2))
    enc_h = []
    for l in range(L):
        x, h_T = gru_layer_ref(x, jnp.zeros((B, H), jnp.float32), *raw["enc"][l])
        enc_h.append(h_T)
    x = jnp.transpose(future, (1, 0, 2))
    for l in range(L):
        x, _ = gru_layer_ref(x, enc_h[l], *raw["dec"][l])
    out = jnp.transpose(x, (1, 0, 2))
    W, b = raw["lin"]
    return out @ W.T + b


# ----------------------------------------------------------------------------
if __name__ == "__main__":
    B = 2                 # batch
    T_PAST = 10           # encoder sequence length
    T_FUTURE = 6          # decoder sequence length
    ENC_IN = 4            # enc_in_features
    DEC_IN = 3            # dec_in_features
    HIDDEN = 32           # hidden_size
    OUT = 5               # out_features
    NUM_LAYERS = 3        # num_layers (module default 12; small here)
    # enc_dropout = dec_dropout = 0 -> no-op in forward.

    key = jax.random.PRNGKey(0)
    k_par, k_past, k_fut = jax.random.split(key, 3)
    raw_params = init_params(k_par, ENC_IN, DEC_IN, HIDDEN, OUT, NUM_LAYERS)
    fused_params = fuse_params(raw_params)

    past = jax.random.normal(k_past, (B, T_PAST, ENC_IN), jnp.float32)
    future = jax.random.normal(k_fut, (B, T_FUTURE, DEC_IN), jnp.float32)

    fwd = jax.jit(encoder_decoder_forward)
    out = jax.block_until_ready(fwd(past, future, fused_params))
    assert out.shape == (B, T_FUTURE, OUT), out.shape

    ref = jax.block_until_ready(encoder_decoder_ref(past, future, raw_params))
    assert jnp.allclose(out, ref, rtol=5e-5, atol=5e-5), (
        float(jnp.max(jnp.abs(out - ref))))

    print("KERNEL_OK")
</pallas_src>

<mosaic_0001>
module attributes {stable_mosaic.version = 11 : i64} {
  func.func @kernel(%arg0: memref<20x4xf32, #tpu.memory_space<vmem>>, %arg1: memref<12x3xf32, #tpu.memory_space<vmem>>, %arg2: memref<4x96xf32, #tpu.memory_space<vmem>>, %arg3: memref<32x96xf32, #tpu.memory_space<vmem>>, %arg4: memref<1x96xf32, #tpu.memory_space<vmem>>, %arg5: memref<1x32xf32, #tpu.memory_space<vmem>>, %arg6: memref<32x96xf32, #tpu.memory_space<vmem>>, %arg7: memref<32x96xf32, #tpu.memory_space<vmem>>, %arg8: memref<1x96xf32, #tpu.memory_space<vmem>>, %arg9: memref<1x32xf32, #tpu.memory_space<vmem>>, %arg10: memref<32x96xf32, #tpu.memory_space<vmem>>, %arg11: memref<32x96xf32, #tpu.memory_space<vmem>>, %arg12: memref<1x96xf32, #tpu.memory_space<vmem>>, %arg13: memref<1x32xf32, #tpu.memory_space<vmem>>, %arg14: memref<3x96xf32, #tpu.memory_space<vmem>>, %arg15: memref<32x96xf32, #tpu.memory_space<vmem>>, %arg16: memref<1x96xf32, #tpu.memory_space<vmem>>, %arg17: memref<1x32xf32, #tpu.memory_space<vmem>>, %arg18: memref<32x96xf32, #tpu.memory_space<vmem>>, %arg19: memref<32x96xf32, #tpu.memory_space<vmem>>, %arg20: memref<1x96xf32, #tpu.memory_space<vmem>>, %arg21: memref<1x32xf32, #tpu.memory_space<vmem>>, %arg22: memref<32x96xf32, #tpu.memory_space<vmem>>, %arg23: memref<32x96xf32, #tpu.memory_space<vmem>>, %arg24: memref<1x96xf32, #tpu.memory_space<vmem>>, %arg25: memref<1x32xf32, #tpu.memory_space<vmem>>, %arg26: memref<32x5xf32, #tpu.memory_space<vmem>>, %arg27: memref<1x5xf32, #tpu.memory_space<vmem>>, %arg28: memref<12x5xf32, #tpu.memory_space<vmem>>, %arg29: memref<20x32xf32, #tpu.memory_space<vmem>>) attributes {dimension_semantics = [], scalar_prefetch = 0 : i64, scratch_operands = 1 : i64, tpu.core_type = #tpu.core_type<tc>} {
    %cst = arith.constant 0.000000e+00 : f32
    %0 = vector.broadcast %cst : f32 to vector<2x32xf32>
    %c0 = arith.constant 0 : index
    %c0_0 = arith.constant 0 : index
    %1 = vector.load %arg0[%c0, %c0_0] : memref<20x4xf32, #tpu.memory_space<vmem>>, vector<20x4xf32>
    %c0_1 = arith.constant 0 : index
    %c0_2 = arith.constant 0 : index
    %2 = vector.load %arg2[%c0_1, %c0_2] : memref<4x96xf32, #tpu.memory_space<vmem>>, vector<4x96xf32>
    %cst_3 = arith.constant dense<0.000000e+00> : vector<20x96xf32>
    %3 = tpu.matmul %1, %2, %cst_3 {dimension_numbers = #tpu.dot_dimension_numbers<[1], [0], [0], [1], [0, 0, 1, 1], [], []>} : vector<20x4xf32>, vector<4x96xf32>, vector<20x96xf32> -> vector<20x96xf32>
    %c0_4 = arith.constant 0 : index
    %c0_5 = arith.constant 0 : index
    %4 = vector.load %arg4[%c0_4, %c0_5] : memref<1x96xf32, #tpu.memory_space<vmem>>, vector<1x96xf32>
    %5 = vector.broadcast %4 : vector<1x96xf32> to vector<20x96xf32>
    %6 = arith.addf %3, %5 : vector<20x96xf32>
    %c0_6 = arith.constant 0 : index
    %c0_7 = arith.constant 0 : index
    %7 = vector.load %arg3[%c0_6, %c0_7] : memref<32x96xf32, #tpu.memory_space<vmem>>, vector<32x96xf32>
    %c0_8 = arith.constant 0 : index
    %c0_9 = arith.constant 0 : index
    %8 = vector.load %arg5[%c0_8, %c0_9] : memref<1x32xf32, #tpu.memory_space<vmem>>, vector<1x32xf32>
    %9 = vector.extract_strided_slice %6 {offsets = [0, 0], sizes = [2, 96], strides = [1, 1]} : vector<20x96xf32> to vector<2x96xf32>
    %cst_10 = arith.constant dense<0.000000e+00> : vector<2x96xf32>
    %10 = tpu.matmul %0, %7, %cst_10 {dimension_numbers = #tpu.dot_dimension_numbers<[1], [0], [0], [1], [0, 0, 1, 1], [], []>} : vector<2x32xf32>, vector<32x96xf32>, vector<2x96xf32> -> vector<2x96xf32>
    %11 = vector.extract_strided_slice %9 {offsets = [0, 0], sizes = [2, 64], strides = [1, 1]} : vector<2x96xf32> to vector<2x64xf32>
    %12 = vector.extract_strided_slice %10 {offsets = [0, 0], sizes = [2, 64], strides = [1, 1]} : vector<2x96xf32> to vector<2x64xf32>
    %13 = arith.addf %11, %12 : vector<2x64xf32>
    %14 = arith.negf %13 : vector<2x64xf32>
    %15 = math.exp %14 : vector<2x64xf32>
    %cst_11 = arith.constant 1.000000e+00 : f32
    %16 = vector.broadcast %cst_11 : f32 to vector<2x64xf32>
    %17 = arith.addf %16, %15 : vector<2x64xf32>
    %18 = arith.divf %16, %17 : vector<2x64xf32>
    %19 = vector.extract_strided_slice %18 {offsets = [0, 0], sizes = [2, 32], strides = [1, 1]} : vector<2x64xf32> to vector<2x32xf32>
    %20 = vector.extract_strided_slice %18 {offsets = [0, 32], sizes = [2, 32], strides = [1, 1]} : vector<2x64xf32> to vector<2x32xf32>
    %21 = vector.extract_strided_slice %9 {offsets = [0, 64], sizes = [2, 32], strides = [1, 1]} : vector<2x96xf32> to vector<2x32xf32>
    %22 = vector.extract_strided_slice %10 {offsets = [0, 64], sizes = [2, 32], strides = [1, 1]} : vector<2x96xf32> to vector<2x32xf32>
    %23 = vector.broadcast %8 : vector<1x32xf32> to vector<2x32xf32>
    %24 = arith.addf %22, %23 : vector<2x32xf32>
    %25 = arith.mulf %19, %24 : vector<2x32xf32>
    %26 = arith.addf %21, %25 : vector<2x32xf32>
    %27 = math.tanh %26 : vector<2x32xf32>
    %cst_12 = arith.constant 1.000000e+00 : f32
    %28 = vector.broadcast %cst_12 : f32 to vector<2x32xf32>
    %29 = arith.subf %28, %20 : vector<2x32xf32>
    %30 = arith.mulf %29, %27 : vector<2x32xf32>
    %31 = arith.mulf %20, %0 : vector<2x32xf32>
    %32 = arith.addf %30, %31 : vector<2x32xf32>
    %c0_13 = arith.constant 0 : index
    %c0_14 = arith.constant 0 : index
    %33 = vector.load %arg29[%c0_13, %c0_14] : memref<20x32xf32, #tpu.memory_space<vmem>>, vector<2x32xf32>
    tpu.vector_store %arg29[%c0_13, %c0_14], %32 {strides = array<i32>} : memref<20x32xf32, #tpu.memory_space<vmem>>, vector<2x32xf32>,
    %34 = vector.extract_strided_slice %6 {offsets = [2, 0], sizes = [2, 96], strides = [1, 1]} : vector<20x96xf32> to vector<2x96xf32>
    %cst_15 = arith.constant dense<0.000000e+00> : vector<2x96xf32>
    %35 = tpu.matmul %32, %7, %cst_15 {dimension_numbers = #tpu.dot_dimension_numbers<[1], [0], [0], [1], [0, 0, 1, 1], [], []>} : vector<2x32xf32>, vector<32x96xf32>, vector<2x96xf32> -> vector<2x96xf32>
    %36 = vector.extract_strided_slice %34 {offsets = [0, 0], sizes = [2, 64], strides = [1, 1]} : vector<2x96xf32> to vector<2x64xf32>
    %37 = vector.extract_strided_slice %35 {offsets = [0, 0], sizes = [2, 64], strides = [1, 1]} : vector<2x96xf32> to vector<2x64xf32>
    %38 = arith.addf %36, %37 : vector<2x64xf32>
    %39 = arith.negf %38 : vector<2x64xf32>
    %40 = math.exp %39 : vector<2x64xf32>
    %cst_16 = arith.constant 1.000000e+00 : f32
    %41 = vector.broadcast %cst_16 : f32 to vector<2x64xf32>
    %42 = arith.addf %41, %40 : vector<2x64xf32>
    %43 = arith.divf %41, %42 : vector<2x64xf32>
    %44 = vector.extract_strided_slice %43 {offsets = [0, 0], sizes = [2, 32], strides = [1, 1]} : vector<2x64xf32> to vector<2x32xf32>
    %45 = vector.extract_strided_slice %43 {offsets = [0, 32], sizes = [2, 32], strides = [1, 1]} : vector<2x64xf32> to vector<2x32xf32>
    %46 = vector.extract_strided_slice %34 {offsets = [0, 64], sizes = [2, 32], strides = [1, 1]} : vector<2x96xf32> to vector<2x32xf32>
    %47 = vector.extract_strided_slice %35 {offsets = [0, 64], sizes = [2, 32], strides = [1, 1]} : vector<2x96xf32> to vector<2x32xf32>
    %48 = vector.broadcast %8 : vector<1x32xf32> to vector<2x32xf32>
    %49 = arith.addf %47, %48 : vector<2x32xf32>
    %50 = arith.mulf %44, %49 : vector<2x32xf32>
    %51 = arith.addf %46, %50 : vector<2x32xf32>
    %52 = math.tanh %51 : vector<2x32xf32>
    %cst_17 = arith.constant 1.000000e+00 : f32
    %53 = vector.broadcast %cst_17 : f32 to vector<2x32xf32>
    %54 = arith.subf %53, %45 : vector<2x32xf32>
    %55 = arith.mulf %54, %52 : vector<2x32xf32>
    %56 = arith.mulf %45, %32 : vector<2x32xf32>
    %57 = arith.addf %55, %56 : vector<2x32xf32>
    %c2 = arith.constant 2 : index
    %c0_18 = arith.constant 0 : index
    %58 = vector.load %arg29[%c2, %c0_18] : memref<20x32xf32, #tpu.memory_space<vmem>>, vector<2x32xf32>
    tpu.vector_store %arg29[%c2, %c0_18], %57 {strides = array<i32>} : memref<20x32xf32, #tpu.memory_space<vmem>>, vector<2x32xf32>,
    %59 = vector.extract_strided_slice %6 {offsets = [4, 0], sizes = [2, 96], strides = [1, 1]} : vector<20x96xf32> to vector<2x96xf32>
    %cst_19 = arith.constant dense<0.000000e+00> : vector<2x96xf32>
    %60 = tpu.matmul %57, %7, %cst_19 {dimension_numbers = #tpu.dot_dimension_numbers<[1], [0], [0], [1], [0, 0, 1, 1], [], []>} : vector<2x32xf32>, vector<32x96xf32>, vector<2x96xf32> -> vector<2x96xf32>
    %61 = vector.extract_strided_slice %59 {offsets = [0, 0], sizes = [2, 64], strides = [1, 1]} : vector<2x96xf32> to vector<2x64xf32>
    %62 = vector.extract_strided_slice %60 {offsets = [0, 0], sizes = [2, 64], strides = [1, 1]} : vector<2x96xf32> to vector<2x64xf32>
    %63 = arith.addf %61, %62 : vector<2x64xf32>
    %64 = arith.negf %63 : vector<2x64xf32>
    %65 = math.exp %64 : vector<2x64xf32>
    %cst_20 = arith.constant 1.000000e+00 : f32
    %66 = vector.broadcast %cst_20 : f32 to vector<2x64xf32>
    %67 = arith.addf %66, %65 : vector<2x64xf32>
    %68 = arith.divf %66, %67 : vector<2x64xf32>
    %69 = vector.extract_strided_slice %68 {offsets = [0, 0], sizes = [2, 32], strides = [1, 1]} : vector<2x64xf32> to vector<2x32xf32>
    %70 = vector.extract_strided_slice %68 {offsets = [0, 32], sizes = [2, 32], strides = [1, 1]} : vector<2x64xf32> to vector<2x32xf32>
    %71 = vector.extract_strided_slice %59 {offsets = [0, 64], sizes = [2, 32], strides = [1, 1]} : vector<2x96xf32> to vector<2x32xf32>
    %72 = vector.extract_strided_slice %60 {offsets = [0, 64], sizes = [2, 32], strides = [1, 1]} : vector<2x96xf32> to vector<2x32xf32>
    %73 = vector.broadcast %8 : vector<1x32xf32> to vector<2x32xf32>
    %74 = arith.addf %72, %73 : vector<2x32xf32>
    %75 = arith.mulf %69, %74 : vector<2x32xf32>
    %76 = arith.addf %71, %75 : vector<2x32xf32>
    %77 = math.tanh %76 : vector<2x32xf32>
    %cst_21 = arith.constant 1.000000e+00 : f32
    %78 = vector.broadcast %cst_21 : f32 to vector<2x32xf32>
    %79 = arith.subf %78, %70 : vector<2x32xf32>
    %80 = arith.mulf %79, %77 : vector<2x32xf32>
    %81 = arith.mulf %70, %57 : vector<2x32xf32>
    %82 = arith.addf %80, %81 : vector<2x32xf32>
    %c4 = arith.constant 4 : index
    %c0_22 = arith.constant 0 : index
    %83 = vector.load %arg29[%c4, %c0_22] : memref<20x32xf32, #tpu.memory_space<vmem>>, vector<2x32xf32>
    tpu.vector_store %arg29[%c4, %c0_22], %82 {strides = array<i32>} : memref<20x32xf32, #tpu.memory_space<vmem>>, vector<2x32xf32>,
    %84 = vector.extract_strided_slice %6 {offsets = [6, 0], sizes = [2, 96], strides = [1, 1]} : vector<20x96xf32> to vector<2x96xf32>
    %cst_23 = arith.constant dense<0.000000e+00> : vector<2x96xf32>
    %85 = tpu.matmul %82, %7, %cst_23 {dimension_numbers = #tpu.dot_dimension_numbers<[1], [0], [0], [1], [0, 0, 1, 1], [], []>} : vector<2x32xf32>, vector<32x96xf32>, vector<2x96xf32> -> vector<2x96xf32>
    %86 = vector.extract_strided_slice %84 {offsets = [0, 0], sizes = [2, 64], strides = [1, 1]} : vector<2x96xf32> to vector<2x64xf32>
    %87 = vector.extract_strided_slice %85 {offsets = [0, 0], sizes = [2, 64], strides = [1, 1]} : vector<2x96xf32> to vector<2x64xf32>
    %88 = arith.addf %86, %87 : vector<2x64xf32>
    %89 = arith.negf %88 : vector<2x64xf32>
    %90 = math.exp %89 : vector<2x64xf32>
    %cst_24 = arith.constant 1.000000e+00 : f32
    %91 = vector.broadcast %cst_24 : f32 to vector<2x64xf32>
    %92 = arith.addf %91, %90 : vector<2x64xf32>
    %93 = arith.divf %91, %92 : vector<2x64xf32>
    %94 = vector.extract_strided_slice %93 {offsets = [0, 0], sizes = [2, 32], strides = [1, 1]} : vector<2x64xf32> to vector<2x32xf32>
    %95 = vector.extract_strided_slice %93 {offsets = [0, 32], sizes = [2, 32], strides = [1, 1]} : vector<2x64xf32> to vector<2x32xf32>
    %96 = vector.extract_strided_slice %84 {offsets = [0, 64], sizes = [2, 32], strides = [1, 1]} : vector<2x96xf32> to vector<2x32xf32>
    %97 = vector.extract_strided_slice %85 {offsets = [0, 64], sizes = [2, 32], strides = [1, 1]} : vector<2x96xf32> to vector<2x32xf32>
    %98 = vector.broadcast %8 : vector<1x32xf32> to vector<2x32xf32>
    %99 = arith.addf %97, %98 : vector<2x32xf32>
    %100 = arith.mulf %94, %99 : vector<2x32xf32>
    %101 = arith.addf %96, %100 : vector<2x32xf32>
    %102 = math.tanh %101 : vector<2x32xf32>
    %cst_25 = arith.constant 1.000000e+00 : f32
    %103 = vector.broadcast %cst_25 : f32 to vector<2x32xf32>
    %104 = arith.subf %103, %95 : vector<2x32xf32>
    %105 = arith.mulf %104, %102 : vector<2x32xf32>
    %106 = arith.mulf %95, %82 : vector<2x32xf32>
    %107 = arith.addf %105, %106 : vector<2x32xf32>
    %c6 = arith.constant 6 : index
    %c0_26 = arith.constant 0 : index
    %108 = vector.load %arg29[%c6, %c0_26] : memref<20x32xf32, #tpu.memory_space<vmem>>, vector<2x32xf32>
    tpu.vector_store %arg29[%c6, %c0_26], %107 {strides = array<i32>} : memref<20x32xf32, #tpu.memory_space<vmem>>, vector<2x32xf32>,
    %109 = vector.extract_strided_slice %6 {offsets = [8, 0], sizes = [2, 96], strides = [1, 1]} : vector<20x96xf32> to vector<2x96xf32>
    %cst_27 = arith.constant dense<0.000000e+00> : vector<2x96xf32>
    %110 = tpu.matmul %107, %7, %cst_27 {dimension_numbers = #tpu.dot_dimension_numbers<[1], [0], [0], [1], [0, 0, 1, 1], [], []>} : vector<2x32xf32>, vector<32x96xf32>, vector<2x96xf32> -> vector<2x96xf32>
    %111 = vector.extract_strided_slice %109 {offsets = [0, 0], sizes = [2, 64], strides = [1, 1]} : vector<2x96xf32> to vector<2x64xf32>
    %112 = vector.extract_strided_slice %110 {offsets = [0, 0], sizes = [2, 64], strides = [1, 1]} : vector<2x96xf32> to vector<2x64xf32>
    %113 = arith.addf %111, %112 : vector<2x64xf32>
    %114 = arith.negf %113 : vector<2x64xf32>
    %115 = math.exp %114 : vector<2x64xf32>
    %cst_28 = arith.constant 1.000000e+00 : f32
    %116 = vector.broadcast %cst_28 : f32 to vector<2x64xf32>
    %117 = arith.addf %116, %115 : vector<2x64xf32>
    %118 = arith.divf %116, %117 : vector<2x64xf32>
    %119 = vector.extract_strided_slice %118 {offsets = [0, 0], sizes = [2, 32], strides = [1, 1]} : vector<2x64xf32> to vector<2x32xf32>
    %120 = vector.extract_strided_slice %118 {offsets = [0, 32], sizes = [2, 32], strides = [1, 1]} : vector<2x64xf32> to vector<2x32xf32>
    %121 = vector.extract_strided_slice %109 {offsets = [0, 64], sizes = [2, 32], strides = [1, 1]} : vector<2x96xf32> to vector<2x32xf32>
    %122 = vector.extract_strided_slice %110 {offsets = [0, 64], sizes = [2, 32], strides = [1, 1]} : vector<2x96xf32> to vector<2x32xf32>
    %123 = vector.broadcast %8 : vector<1x32xf32> to vector<2x32xf32>
    %124 = arith.addf %122, %123 : vector<2x32xf32>
    %125 = arith.mulf %119, %124 : vector<2x32xf32>
    %126 = arith.addf %121, %125 : vector<2x32xf32>
    %127 = math.tanh %126 : vector<2x32xf32>
    %cst_29 = arith.constant 1.000000e+00 : f32
    %128 = vector.broadcast %cst_29 : f32 to vector<2x32xf32>
    %129 = arith.subf %128, %120 : vector<2x32xf32>
    %130 = arith.mulf %129, %127 : vector<2x32xf32>
    %131 = arith.mulf %120, %107 : vector<2x32xf32>
    %132 = arith.addf %130, %131 : vector<2x32xf32>
    %c8 = arith.constant 8 : index
    %c0_30 = arith.constant 0 : index
    %133 = vector.load %arg29[%c8, %c0_30] : memref<20x32xf32, #tpu.memory_space<vmem>>, vector<2x32xf32>
    tpu.vector_store %arg29[%c8, %c0_30], %132 {strides = array<i32>} : memref<20x32xf32, #tpu.memory_space<vmem>>, vector<2x32xf32>,
    %134 = vector.extract_strided_slice %6 {offsets = [10, 0], sizes = [2, 96], strides = [1, 1]} : vector<20x96xf32> to vector<2x96xf32>
    %cst_31 = arith.constant dense<0.000000e+00> : vector<2x96xf32>
    %135 = tpu.matmul %132, %7, %cst_31 {dimension_numbers = #tpu.dot_dimension_numbers<[1], [0], [0], [1], [0, 0, 1, 1], [], []>} : vector<2x32xf32>, vector<32x96xf32>, vector<2x96xf32> -> vector<2x96xf32>
    %136 = vector.extract_strided_slice %134 {offsets = [0, 0], sizes = [2, 64], strides = [1, 1]} : vector<2x96xf32> to vector<2x64xf32>
    %137 = vector.extract_strided_slice %135 {offsets = [0, 0], sizes = [2, 64], strides = [1, 1]} : vector<2x96xf32> to vector<2x64xf32>
    %138 = arith.addf %136, %137 : vector<2x64xf32>
    %139 = arith.negf %138 : vector<2x64xf32>
    %140 = math.exp %139 : vector<2x64xf32>
    %cst_32 = arith.constant 1.000000e+00 : f32
    %141 = vector.broadcast %cst_32 : f32 to vector<2x64xf32>
    %142 = arith.addf %141, %140 : vector<2x64xf32>
    %143 = arith.divf %141, %142 : vector<2x64xf32>
    %144 = vector.extract_strided_slice %143 {offsets = [0, 0], sizes = [2, 32], strides = [1, 1]} : vector<2x64xf32> to vector<2x32xf32>
    %145 = vector.extract_strided_slice %143 {offsets = [0, 32], sizes = [2, 32], strides = [1, 1]} : vector<2x64xf32> to vector<2x32xf32>
    %146 = vector.extract_strided_slice %134 {offsets = [0, 64], sizes = [2, 32], strides = [1, 1]} : vector<2x96xf32> to vector<2x32xf32>
    %147 = vector.extract_strided_slice %135 {offsets = [0, 64], sizes = [2, 32], strides = [1, 1]} : vector<2x96xf32> to vector<2x32xf32>
    %148 = vector.broadcast %8 : vector<1x32xf32> to vector<2x32xf32>
    %149 = arith.addf %147, %148 : vector<2x32xf32>
    %150 = arith.mulf %144, %149 : vector<2x32xf32>
    %151 = arith.addf %146, %150 : vector<2x32xf32>
    %152 = math.tanh %151 : vector<2x32xf32>
    %cst_33 = arith.constant 1.000000e+00 : f32
    %153 = vector.broadcast %cst_33 : f32 to vector<2x32xf32>
    %154 = arith.subf %153, %145 : vector<2x32xf32>
    %155 = arith.mulf %154, %152 : vector<2x32xf32>
    %156 = arith.mulf %145, %132 : vector<2x32xf32>
    %157 = arith.addf %155, %156 : vector<2x32xf32>
    %c10 = arith.constant 10 : index
    %c0_34 = arith.constant 0 : index
    %158 = vector.load %arg29[%c10, %c0_34] : memref<20x32xf32, #tpu.memory_space<vmem>>, vector<2x32xf32>
    tpu.vector_store %arg29[%c10, %c0_34], %157 {strides = array<i32>} : memref<20x32xf32, #tpu.memory_space<vmem>>, vector<2x32xf32>,
    %159 = vector.extract_strided_slice %6 {offsets = [12, 0], sizes = [2, 96], strides = [1, 1]} : vector<20x96xf32> to vector<2x96xf32>
    %cst_35 = arith.constant dense<0.000000e+00> : vector<2x96xf32>
    %160 = tpu.matmul %157, %7, %cst_35 {dimension_numbers = #tpu.dot_dimension_numbers<[1], [0], [0], [1], [0, 0, 1, 1], [], []>} : vector<2x32xf32>, vector<32x96xf32>, vector<2x96xf32> -> vector<2x96xf32>
    %161 = vector.extract_strided_slice %159 {offsets = [0, 0], sizes = [2, 64], strides = [1, 1]} : vector<2x96xf32> to vector<2x64xf32>
    %162 = vector.extract_strided_slice %160 {offsets = [0, 0], sizes = [2, 64], strides = [1, 1]} : vector<2x96xf32> to vector<2x64xf32>
    %163 = arith.addf %161, %162 : vector<2x64xf32>
    %164 = arith.negf %163 : vector<2x64xf32>
    %165 = math.exp %164 : vector<2x64xf32>
    %cst_36 = arith.constant 1.000000e+00 : f32
    %166 = vector.broadcast %cst_36 : f32 to vector<2x64xf32>
    %167 = arith.addf %166, %165 : vector<2x64xf32>
    %168 = arith.divf %166, %167 : vector<2x64xf32>
    %169 = vector.extract_strided_slice %168 {offsets = [0, 0], sizes = [2, 32], strides = [1, 1]} : vector<2x64xf32> to vector<2x32xf32>
    %170 = vector.extract_strided_slice %168 {offsets = [0, 32], sizes = [2, 32], strides = [1, 1]} : vector<2x64xf32> to vector<2x32xf32>
    %171 = vector.extract_strided_slice %159 {offsets = [0, 64], sizes = [2, 32], strides = [1, 1]} : vector<2x96xf32> to vector<2x32xf32>
    %172 = vector.extract_strided_slice %160 {offsets = [0, 64], sizes = [2, 32], strides = [1, 1]} : vector<2x96xf32> to vector<2x32xf32>
    %173 = vector.broadcast %8 : vector<1x32xf32> to vector<2x32xf32>
    %174 = arith.addf %172, %173 : vector<2x32xf32>
    %175 = arith.mulf %169, %174 : vector<2x32xf32>
    %176 = arith.addf %171, %175 : vector<2x32xf32>
    %177 = math.tanh %176 : vector<2x32xf32>
    %cst_37 = arith.constant 1.000000e+00 : f32
    %178 = vector.broadcast %cst_37 : f32 to vector<2x32xf32>
    %179 = arith.subf %178, %170 : vector<2x32xf32>
    %180 = arith.mulf %179, %177 : vector<2x32xf32>
    %181 = arith.mulf %170, %157 : vector<2x32xf32>
    %182 = arith.addf %180, %181 : vector<2x32xf32>
    %c12 = arith.constant 12 : index
    %c0_38 = arith.constant 0 : index
    %183 = vector.load %arg29[%c12, %c0_38] : memref<20x32xf32, #tpu.memory_space<vmem>>, vector<2x32xf32>
    tpu.vector_store %arg29[%c12, %c0_38], %182 {strides = array<i32>} : memref<20x32xf32, #tpu.memory_space<vmem>>, vector<2x32xf32>,
    %184 = vector.extract_strided_slice %6 {offsets = [14, 0], sizes = [2, 96], strides = [1, 1]} : vector<20x96xf32> to vector<2x96xf32>
    %cst_39 = arith.constant dense<0.000000e+00> : vector<2x96xf32>
    %185 = tpu.matmul %182, %7, %cst_39 {dimension_numbers = #tpu.dot_dimension_numbers<[1], [0], [0], [1], [0, 0, 1, 1], [], []>} : vector<2x32xf32>, vector<32x96xf32>, vector<2x96xf32> -> vector<2x96xf32>
    %186 = vector.extract_strided_slice %184 {offsets = [0, 0], sizes = [2, 64], strides = [1, 1]} : vector<2x96xf32> to vector<2x64xf32>
    %187 = vector.extract_strided_slice %185 {offsets = [0, 0], sizes = [2, 64], strides = [1, 1]} : vector<2x96xf32> to vector<2x64xf32>
    %188 = arith.addf %186, %187 : vector<2x64xf32>
    %189 = arith.negf %188 : vector<2x64xf32>
    %190 = math.exp %189 : vector<2x64xf32>
    %cst_40 = arith.constant 1.000000e+00 : f32
    %191 = vector.broadcast %cst_40 : f32 to vector<2x64xf32>
    %192 = arith.addf %191, %190 : vector<2x64xf32>
    %193 = arith.divf %191, %192 : vector<2x64xf32>
    %194 = vector.extract_strided_slice %193 {offsets = [0, 0], sizes = [2, 32], strides = [1, 1]} : vector<2x64xf32> to vector<2x32xf32>
    %195 = vector.extract_strided_slice %193 {offsets = [0, 32], sizes = [2, 32], strides = [1, 1]} : vector<2x64xf32> to vector<2x32xf32>
    %196 = vector.extract_strided_slice %184 {offsets = [0, 64], sizes = [2, 32], strides = [1, 1]} : vector<2x96xf32> to vector<2x32xf32>
    %197 = vector.extract_strided_slice %185 {offsets = [0, 64], sizes = [2, 32], strides = [1, 1]} : vector<2x96xf32> to vector<2x32xf32>
    %198 = vector.broadcast %8 : vector<1x32xf32> to vector<2x32xf32>
    %199 = arith.addf %197, %198 : vector<2x32xf32>
    %200 = arith.mulf %194, %199 : vector<2x32xf32>
    %201 = arith.addf %196, %200 : vector<2x32xf32>
    %202 = math.tanh %201 : vector<2x32xf32>
    %cst_41 = arith.constant 1.000000e+00 : f32
    %203 = vector.broadcast %cst_41 : f32 to vector<2x32xf32>
    %204 = arith.subf %203, %195 : vector<2x32xf32>
    %205 = arith.mulf %204, %202 : vector<2x32xf32>
    %206 = arith.mulf %195, %182 : vector<2x32xf32>
    %207 = arith.addf %205, %206 : vector<2x32xf32>
    %c14 = arith.constant 14 : index
    %c0_42 = arith.constant 0 : index
    %208 = vector.load %arg29[%c14, %c0_42] : memref<20x32xf32, #tpu.memory_space<vmem>>, vector<2x32xf32>
    tpu.vector_store %arg29[%c14, %c0_42], %207 {strides = array<i32>} : memref<20x32xf32, #tpu.memory_space<vmem>>, vector<2x32xf32>,
    %209 = vector.extract_strided_slice %6 {offsets = [16, 0], sizes = [2, 96], strides = [1, 1]} : vector<20x96xf32> to vector<2x96xf32>
    %cst_43 = arith.constant dense<0.000000e+00> : vector<2x96xf32>
    %210 = tpu.matmul %207, %7, %cst_43 {dimension_numbers = #tpu.dot_dimension_numbers<[1], [0], [0], [1], [0, 0, 1, 1], [], []>} : vector<2x32xf32>, vector<32x96xf32>, vector<2x96xf32> -> vector<2x96xf32>
    %211 = vector.extract_strided_slice %209 {offsets = [0, 0], sizes = [2, 64], strides = [1, 1]} : vector<2x96xf32> to vector<2x64xf32>
    %212 = vector.extract_strided_slice %210 {offsets = [0, 0], sizes = [2, 64], strides = [1, 1]} : vector<2x96xf32> to vector<2x64xf32>
    %213 = arith.addf %211, %212 : vector<2x64xf32>
    %214 = arith.negf %213 : vector<2x64xf32>
    %215 = math.exp %214 : vector<2x64xf32>
    %cst_44 = arith.constant 1.000000e+00 : f32
    %216 = vector.broadcast %cst_44 : f32 to vector<2x64xf32>
    %217 = arith.addf %216, %215 : vector<2x64xf32>
    %218 = arith.divf %216, %217 : vector<2x64xf32>
    %219 = vector.extract_strided_slice %218 {offsets = [0, 0], sizes = [2, 32], strides = [1, 1]} : vector<2x64xf32> to vector<2x32xf32>
    %220 = vector.extract_strided_slice %218 {offsets = [0, 32], sizes = [2, 32], strides = [1, 1]} : vector<2x64xf32> to vector<2x32xf32>
    %221 = vector.extract_strided_slice %209 {offsets = [0, 64], sizes = [2, 32], strides = [1, 1]} : vector<2x96xf32> to vector<2x32xf32>
    %222 = vector.extract_strided_slice %210 {offsets = [0, 64], sizes = [2, 32], strides = [1, 1]} : vector<2x96xf32> to vector<2x32xf32>
    %223 = vector.broadcast %8 : vector<1x32xf32> to vector<2x32xf32>
    %224 = arith.addf %222, %223 : vector<2x32xf32>
    %225 = arith.mulf %219, %224 : vector<2x32xf32>
    %226 = arith.addf %221, %225 : vector<2x32xf32>
    %227 = math.tanh %226 : vector<2x32xf32>
    %cst_45 = arith.constant 1.000000e+00 : f32
    %228 = vector.broadcast %cst_45 : f32 to vector<2x32xf32>
    %229 = arith.subf %228, %220 : vector<2x32xf32>
    %230 = arith.mulf %229, %227 : vector<2x32xf32>
    %231 = arith.mulf %220, %207 : vector<2x32xf32>
    %232 = arith.addf %230, %231 : vector<2x32xf32>
    %c16 = arith.constant 16 : index
    %c0_46 = arith.constant 0 : index
    %233 = vector.load %arg29[%c16, %c0_46] : memref<20x32xf32, #tpu.memory_space<vmem>>, vector<2x32xf32>
    tpu.vector_store %arg29[%c16, %c0_46], %232 {strides = array<i32>} : memref<20x32xf32, #tpu.memory_space<vmem>>, vector<2x32xf32>,
    %234 = vector.extract_strided_slice %6 {offsets = [18, 0], sizes = [2, 96], strides = [1, 1]} : vector<20x96xf32> to vector<2x96xf32>
    %cst_47 = arith.constant dense<0.000000e+00> : vector<2x96xf32>
    %235 = tpu.matmul %232, %7, %cst_47 {dimension_numbers = #tpu.dot_dimension_numbers<[1], [0], [0], [1], [0, 0, 1, 1], [], []>} : vector<2x32xf32>, vector<32x96xf32>, vector<2x96xf32> -> vector<2x96xf32>
    %236 = vector.extract_strided_slice %234 {offsets = [0, 0], sizes = [2, 64], strides = [1, 1]} : vector<2x96xf32> to vector<2x64xf32>
    %237 = vector.extract_strided_slice %235 {offsets = [0, 0], sizes = [2, 64], strides = [1, 1]} : vector<2x96xf32> to vector<2x64xf32>
    %238 = arith.addf %236, %237 : vector<2x64xf32>
    %239 = arith.negf %238 : vector<2x64xf32>
    %240 = math.exp %239 : vector<2x64xf32>
    %cst_48 = arith.constant 1.000000e+00 : f32
    %241 = vector.broadcast %cst_48 : f32 to vector<2x64xf32>
    %242 = arith.addf %241, %240 : vector<2x64xf32>
    %243 = arith.divf %241, %242 : vector<2x64xf32>
    %244 = vector.extract_strided_slice %243 {offsets = [0, 0], sizes = [2, 32], strides = [1, 1]} : vector<2x64xf32> to vector<2x32xf32>
    %245 = vector.extract_strided_slice %243 {offsets = [0, 32], sizes = [2, 32], strides = [1, 1]} : vector<2x64xf32> to vector<2x32xf32>
    %246 = vector.extract_strided_slice %234 {offsets = [0, 64], sizes = [2, 32], strides = [1, 1]} : vector<2x96xf32> to vector<2x32xf32>
    %247 = vector.extract_strided_slice %235 {offsets = [0, 64], sizes = [2, 32], strides = [1, 1]} : vector<2x96xf32> to vector<2x32xf32>
    %248 = vector.broadcast %8 : vector<1x32xf32> to vector<2x32xf32>
    %249 = arith.addf %247, %248 : vector<2x32xf32>
    %250 = arith.mulf %244, %249 : vector<2x32xf32>
    %251 = arith.addf %246, %250 : vector<2x32xf32>
    %252 = math.tanh %251 : vector<2x32xf32>
    %cst_49 = arith.constant 1.000000e+00 : f32
    %253 = vector.broadcast %cst_49 : f32 to vector<2x32xf32>
    %254 = arith.subf %253, %245 : vector<2x32xf32>
    %255 = arith.mulf %254, %252 : vector<2x32xf32>
    %256 = arith.mulf %245, %232 : vector<2x32xf32>
    %257 = arith.addf %255, %256 : vector<2x32xf32>
    %c18 = arith.constant 18 : index
    %c0_50 = arith.constant 0 : index
    %258 = vector.load %arg29[%c18, %c0_50] : memref<20x32xf32, #tpu.memory_space<vmem>>, vector<2x32xf32>
    tpu.vector_store %arg29[%c18, %c0_50], %257 {strides = array<i32>} : memref<20x32xf32, #tpu.memory_space<vmem>>, vector<2x32xf32>,
    %c0_51 = arith.constant 0 : index
    %c0_52 = arith.constant 0 : index
    %259 = vector.load %arg29[%c0_51, %c0_52] : memref<20x32xf32, #tpu.memory_space<vmem>>, vector<20x32xf32>
    %c0_53 = arith.constant 0 : index
    %c0_54 = arith.constant 0 : index
    %260 = vector.load %arg6[%c0_53, %c0_54] : memref<32x96xf32, #tpu.memory_space<vmem>>, vector<32x96xf32>
    %cst_55 = arith.constant dense<0.000000e+00> : vector<20x96xf32>
    %261 = tpu.matmul %259, %260, %cst_55 {dimension_numbers = #tpu.dot_dimension_numbers<[1], [0], [0], [1], [0, 0, 1, 1], [], []>} : vector<20x32xf32>, vector<32x96xf32>, vector<20x96xf32> -> vector<20x96xf32>
    %c0_56 = arith.constant 0 : index
    %c0_57 = arith.constant 0 : index
    %262 = vector.load %arg8[%c0_56, %c0_57] : memref<1x96xf32, #tpu.memory_space<vmem>>, vector<1x96xf32>
    %263 = vector.broadcast %262 : vector<1x96xf32> to vector<20x96xf32>
    %264 = arith.addf %261, %263 : vector<20x96xf32>
    %c0_58 = arith.constant 0 : index
    %c0_59 = arith.constant 0 : index
    %265 = vector.load %arg7[%c0_58, %c0_59] : memref<32x96xf32, #tpu.memory_space<vmem>>, vector<32x96xf32>
    %c0_60 = arith.constant 0 : index
    %c0_61 = arith.constant 0 : index
    %266 = vector.load %arg9[%c0_60, %c0_61] : memref<1x32xf32, #tpu.memory_space<vmem>>, vector<1x32xf32>
    %267 = vector.extract_strided_slice %264 {offsets = [0, 0], sizes = [2, 96], strides = [1, 1]} : vector<20x96xf32> to vector<2x96xf32>
    %cst_62 = arith.constant dense<0.000000e+00> : vector<2x96xf32>
    %268 = tpu.matmul %0, %265, %cst_62 {dimension_numbers = #tpu.dot_dimension_numbers<[1], [0], [0], [1], [0, 0, 1, 1], [], []>} : vector<2x32xf32>, vector<32x96xf32>, vector<2x96xf32> -> vector<2x96xf32>
    %269 = vector.extract_strided_slice %267 {offsets = [0, 0], sizes = [2, 64], strides = [1, 1]} : vector<2x96xf32> to vector<2x64xf32>
    %270 = vector.extract_strided_slice %268 {offsets = [0, 0], sizes = [2, 64], strides = [1, 1]} : vector<2x96xf32> to vector<2x64xf32>
    %271 = arith.addf %269, %270 : vector<2x64xf32>
    %272 = arith.negf %271 : vector<2x64xf32>
    %273 = math.exp %272 : vector<2x64xf32>
    %cst_63 = arith.constant 1.000000e+00 : f32
    %274 = vector.broadcast %cst_63 : f32 to vector<2x64xf32>
    %275 = arith.addf %274, %273 : vector<2x64xf32>
    %276 = arith.divf %274, %275 : vector<2x64xf32>
    %277 = vector.extract_strided_slice %276 {offsets = [0, 0], sizes = [2, 32], strides = [1, 1]} : vector<2x64xf32> to vector<2x32xf32>
    %278 = vector.extract_strided_slice %276 {offsets = [0, 32], sizes = [2, 32], strides = [1, 1]} : vector<2x64xf32> to vector<2x32xf32>
    %279 = vector.extract_strided_slice %267 {offsets = [0, 64], sizes = [2, 32], strides = [1, 1]} : vector<2x96xf32> to vector<2x32xf32>
    %280 = vector.extract_strided_slice %268 {offsets = [0, 64], sizes = [2, 32], strides = [1, 1]} : vector<2x96xf32> to vector<2x32xf32>
    %281 = vector.broadcast %266 : vector<1x32xf32> to vector<2x32xf32>
    %282 = arith.addf %280, %281 : vector<2x32xf32>
    %283 = arith.mulf %277, %282 : vector<2x32xf32>
    %284 = arith.addf %279, %283 : vector<2x32xf32>
    %285 = math.tanh %284 : vector<2x32xf32>
    %cst_64 = arith.constant 1.000000e+00 : f32
    %286 = vector.broadcast %cst_64 : f32 to vector<2x32xf32>
    %287 = arith.subf %286, %278 : vector<2x32xf32>
    %288 = arith.mulf %287, %285 : vector<2x32xf32>
    %289 = arith.mulf %278, %0 : vector<2x32xf32>
    %290 = arith.addf %288, %289 : vector<2x32xf32>
    %c0_65 = arith.constant 0 : index
    %c0_66 = arith.constant 0 : index
    %291 = vector.load %arg29[%c0_65, %c0_66] : memref<20x32xf32, #tpu.memory_space<vmem>>, vector<2x32xf32>
    tpu.vector_store %arg29[%c0_65, %c0_66], %290 {strides = array<i32>} : memref<20x32xf32, #tpu.memory_space<vmem>>, vector<2x32xf32>,
    %292 = vector.extract_strided_slice %264 {offsets = [2, 0], sizes = [2, 96], strides = [1, 1]} : vector<20x96xf32> to vector<2x96xf32>
    %cst_67 = arith.constant dense<0.000000e+00> : vector<2x96xf32>
    %293 = tpu.matmul %290, %265, %cst_67 {dimension_numbers = #tpu.dot_dimension_numbers<[1], [0], [0], [1], [0, 0, 1, 1], [], []>} : vector<2x32xf32>, vector<32x96xf32>, vector<2x96xf32> -> vector<2x96xf32>
    %294 = vector.extract_strided_slice %292 {offsets = [0, 0], sizes = [2, 64], strides = [1, 1]} : vector<2x96xf32> to vector<2x64xf32>
    %295 = vector.extract_strided_slice %293 {offsets = [0, 0], sizes = [2, 64], strides = [1, 1]} : vector<2x96xf32> to vector<2x64xf32>
    %296 = arith.addf %294, %295 : vector<2x64xf32>
    %297 = arith.negf %296 : vector<2x64xf32>
    %298 = math.exp %297 : vector<2x64xf32>
    %cst_68 = arith.constant 1.000000e+00 : f32
    %299 = vector.broadcast %cst_68 : f32 to vector<2x64xf32>
    %300 = arith.addf %299, %298 : vector<2x64xf32>
    %301 = arith.divf %299, %300 : vector<2x64xf32>
    %302 = vector.extract_strided_slice %301 {offsets = [0, 0], sizes = [2, 32], strides = [1, 1]} : vector<2x64xf32> to vector<2x32xf32>
    %303 = vector.extract_strided_slice %301 {offsets = [0, 32], sizes = [2, 32], strides = [1, 1]} : vector<2x64xf32> to vector<2x32xf32>
    %304 = vector.extract_strided_slice %292 {offsets = [0, 64], sizes = [2, 32], strides = [1, 1]} : vector<2x96xf32> to vector<2x32xf32>
    %305 = vector.extract_strided_slice %293 {offsets = [0, 64], sizes = [2, 32], strides = [1, 1]} : vector<2x96xf32> to vector<2x32xf32>
    %306 = vector.broadcast %266 : vector<1x32xf32> to vector<2x32xf32>
    %307 = arith.addf %305, %306 : vector<2x32xf32>
    %308 = arith.mulf %302, %307 : vector<2x32xf32>
    %309 = arith.addf %304, %308 : vector<2x32xf32>
    %310 = math.tanh %309 : vector<2x32xf32>
    %cst_69 = arith.constant 1.000000e+00 : f32
    %311 = vector.broadcast %cst_69 : f32 to vector<2x32xf32>
    %312 = arith.subf %311, %303 : vector<2x32xf32>
    %313 = arith.mulf %312, %310 : vector<2x32xf32>
    %314 = arith.mulf %303, %290 : vector<2x32xf32>
    %315 = arith.addf %313, %314 : vector<2x32xf32>
    %c2_70 = arith.constant 2 : index
    %c0_71 = arith.constant 0 : index
    %316 = vector.load %arg29[%c2_70, %c0_71] : memref<20x32xf32, #tpu.memory_space<vmem>>, vector<2x32xf32>
    tpu.vector_store %arg29[%c2_70, %c0_71], %315 {strides = array<i32>} : memref<20x32xf32, #tpu.memory_space<vmem>>, vector<2x32xf32>,
    %317 = vector.extract_strided_slice %264 {offsets = [4, 0], sizes = [2, 96], strides = [1, 1]} : vector<20x96xf32> to vector<2x96xf32>
    %cst_72 = arith.constant dense<0.000000e+00> : vector<2x96xf32>
    %318 = tpu.matmul %315, %265, %cst_72 {dimension_numbers = #tpu.dot_dimension_numbers<[1], [0], [0], [1], [0, 0, 1, 1], [], []>} : vector<2x32xf32>, vector<32x96xf32>, vector<2x96xf32> -> vector<2x96xf32>
    %319 = vector.extract_strided_slice %317 {offsets = [0, 0], sizes = [2, 64], strides = [1, 1]} : vector<2x96xf32> to vector<2x64xf32>
    %320 = vector.extract_strided_slice %318 {offsets = [0, 0], sizes = [2, 64], strides = [1, 1]} : vector<2x96xf32> to vector<2x64xf32>
    %321 = arith.addf %319, %320 : vector<2x64xf32>
    %322 = arith.negf %321 : vector<2x64xf32>
    %323 = math.exp %322 : vector<2x64xf32>
    %cst_73 = arith.constant 1.000000e+00 : f32
    %324 = vector.broadcast %cst_73 : f32 to vector<2x64xf32>
    %325 = arith.addf %324, %323 : vector<2x64xf32>
    %326 = arith.divf %324, %325 : vector<2x64xf32>
    %327 = vector.extract_strided_slice %326 {offsets = [0, 0], sizes = [2, 32], strides = [1, 1]} : vector<2x64xf32> to vector<2x32xf32>
    %328 = vector.extract_strided_slice %326 {offsets = [0, 32], sizes = [2, 32], strides = [1, 1]} : vector<2x64xf32> to vector<2x32xf32>
    %329 = vector.extract_strided_slice %317 {offsets = [0, 64], sizes = [2, 32], strides = [1, 1]} : vector<2x96xf32> to vector<2x32xf32>
    %330 = vector.extract_strided_slice %318 {offsets = [0, 64], sizes = [2, 32], strides = [1, 1]} : vector<2x96xf32> to vector<2x32xf32>
    %331 = vector.broadcast %266 : vector<1x32xf32> to vector<2x32xf32>
    %332 = arith.addf %330, %331 : vector<2x32xf32>
    %333 = arith.mulf %327, %332 : vector<2x32xf32>
    %334 = arith.addf %329, %333 : vector<2x32xf32>
    %335 = math.tanh %334 : vector<2x32xf32>
    %cst_74 = arith.constant 1.000000e+00 : f32
    %336 = vector.broadcast %cst_74 : f32 to vector<2x32xf32>
    %337 = arith.subf %336, %328 : vector<2x32xf32>
    %338 = arith.mulf %337, %335 : vector<2x32xf32>
    %339 = arith.mulf %328, %315 : vector<2x32xf32>
    %340 = arith.addf %338, %339 : vector<2x32xf32>
    %c4_75 = arith.constant 4 : index
    %c0_76 = arith.constant 0 : index
    %341 = vector.load %arg29[%c4_75, %c0_76] : memref<20x32xf32, #tpu.memory_space<vmem>>, vector<2x32xf32>
    tpu.vector_store %arg29[%c4_75, %c0_76], %340 {strides = array<i32>} : memref<20x32xf32, #tpu.memory_space<vmem>>, vector<2x32xf32>,
    %342 = vector.extract_strided_slice %264 {offsets = [6, 0], sizes = [2, 96], strides = [1, 1]} : vector<20x96xf32> to vector<2x96xf32>
    %cst_77 = arith.constant dense<0.000000e+00> : vector<2x96xf32>
    %343 = tpu.matmul %340, %265, %cst_77 {dimension_numbers = #tpu.dot_dimension_numbers<[1], [0], [0], [1], [0, 0, 1, 1], [], []>} : vector<2x32xf32>, vector<32x96xf32>, vector<2x96xf32> -> vector<2x96xf32>
    %344 = vector.extract_strided_slice %342 {offsets = [0, 0], sizes = [2, 64], strides = [1, 1]} : vector<2x96xf32> to vector<2x64xf32>
    %345 = vector.extract_strided_slice %343 {offsets = [0, 0], sizes = [2, 64], strides = [1, 1]} : vector<2x96xf32> to vector<2x64xf32>
    %346 = arith.addf %344, %345 : vector<2x64xf32>
    %347 = arith.negf %346 : vector<2x64xf32>
    %348 = math.exp %347 : vector<2x64xf32>
    %cst_78 = arith.constant 1.000000e+00 : f32
    %349 = vector.broadcast %cst_78 : f32 to vector<2x64xf32>
    %350 = arith.addf %349, %348 : vector<2x64xf32>
    %351 = arith.divf %349, %350 : vector<2x64xf32>
    %352 = vector.extract_strided_slice %351 {offsets = [0, 0], sizes = [2, 32], strides = [1, 1]} : vector<2x64xf32> to vector<2x32xf32>
    %353 = vector.extract_strided_slice %351 {offsets = [0, 32], sizes = [2, 32], strides = [1, 1]} : vector<2x64xf32> to vector<2x32xf32>
    %354 = vector.extract_strided_slice %342 {offsets = [0, 64], sizes = [2, 32], strides = [1, 1]} : vector<2x96xf32> to vector<2x32xf32>
    %355 = vector.extract_strided_slice %343 {offsets = [0, 64], sizes = [2, 32], strides = [1, 1]} : vector<2x96xf32> to vector<2x32xf32>
    %356 = vector.broadcast %266 : vector<1x32xf32> to vector<2x32xf32>
    %357 = arith.addf %355, %356 : vector<2x32xf32>
    %358 = arith.mulf %352, %357 : vector<2x32xf32>
    %359 = arith.addf %354, %358 : vector<2x32xf32>
    %360 = math.tanh %359 : vector<2x32xf32>
    %cst_79 = arith.constant 1.000000e+00 : f32
    %361 = vector.broadcast %cst_79 : f32 to vector<2x32xf32>
    %362 = arith.subf %361, %353 : vector<2x32xf32>
    %363 = arith.mulf %362, %360 : vector<2x32xf32>
    %364 = arith.mulf %353, %340 : vector<2x32xf32>
    %365 = arith.addf %363, %364 : vector<2x32xf32>
    %c6_80 = arith.constant 6 : index
    %c0_81 = arith.constant 0 : index
    %366 = vector.load %arg29[%c6_80, %c0_81] : memref<20x32xf32, #tpu.memory_space<vmem>>, vector<2x32xf32>
    tpu.vector_store %arg29[%c6_80, %c0_81], %365 {strides = array<i32>} : memref<20x32xf32, #tpu.memory_space<vmem>>, vector<2x32xf32>,
    %367 = vector.extract_strided_slice %264 {offsets = [8, 0], sizes = [2, 96], strides = [1, 1]} : vector<20x96xf32> to vector<2x96xf32>
    %cst_82 = arith.constant dense<0.000000e+00> : vector<2x96xf32>
    %368 = tpu.matmul %365, %265, %cst_82 {dimension_numbers = #tpu.dot_dimension_numbers<[1], [0], [0], [1], [0, 0, 1, 1], [], []>} : vector<2x32xf32>, vector<32x96xf32>, vector<2x96xf32> -> vector<2x96xf32>
    %369 = vector.extract_strided_slice %367 {offsets = [0, 0], sizes = [2, 64], strides = [1, 1]} : vector<2x96xf32> to vector<2x64xf32>
    %370 = vector.extract_strided_slice %368 {offsets = [0, 0], sizes = [2, 64], strides = [1, 1]} : vector<2x96xf32> to vector<2x64xf32>
    %371 = arith.addf %369, %370 : vector<2x64xf32>
    %372 = arith.negf %371 : vector<2x64xf32>
    %373 = math.exp %372 : vector<2x64xf32>
    %cst_83 = arith.constant 1.000000e+00 : f32
    %374 = vector.broadcast %cst_83 : f32 to vector<2x64xf32>
    %375 = arith.addf %374, %373 : vector<2x64xf32>
    %376 = arith.divf %374, %375 : vector<2x64xf32>
    %377 = vector.extract_strided_slice %376 {offsets = [0, 0], sizes = [2, 32], strides = [1, 1]} : vector<2x64xf32> to vector<2x32xf32>
    %378 = vector.extract_strided_slice %376 {offsets = [0, 32], sizes = [2, 32], strides = [1, 1]} : vector<2x64xf32> to vector<2x32xf32>
    %379 = vector.extract_strided_slice %367 {offsets = [0, 64], sizes = [2, 32], strides = [1, 1]} : vector<2x96xf32> to vector<2x32xf32>
    %380 = vector.extract_strided_slice %368 {offsets = [0, 64], sizes = [2, 32], strides = [1, 1]} : vector<2x96xf32> to vector<2x32xf32>
    %381 = vector.broadcast %266 : vector<1x32xf32> to vector<2x32xf32>
    %382 = arith.addf %380, %381 : vector<2x32xf32>
    %383 = arith.mulf %377, %382 : vector<2x32xf32>
    %384 = arith.addf %379, %383 : vector<2x32xf32>
    %385 = math.tanh %384 : vector<2x32xf32>
    %cst_84 = arith.constant 1.000000e+00 : f32
    %386 = vector.broadcast %cst_84 : f32 to vector<2x32xf32>
    %387 = arith.subf %386, %378 : vector<2x32xf32>
    %388 = arith.mulf %387, %385 : vector<2x32xf32>
    %389 = arith.mulf %378, %365 : vector<2x32xf32>
    %390 = arith.addf %388, %389 : vector<2x32xf32>
    %c8_85 = arith.constant 8 : index
    %c0_86 = arith.constant 0 : index
    %391 = vector.load %arg29[%c8_85, %c0_86] : memref<20x32xf32, #tpu.memory_space<vmem>>, vector<2x32xf32>
    tpu.vector_store %arg29[%c8_85, %c0_86], %390 {strides = array<i32>} : memref<20x32xf32, #tpu.memory_space<vmem>>, vector<2x32xf32>,
    %392 = vector.extract_strided_slice %264 {offsets = [10, 0], sizes = [2, 96], strides = [1, 1]} : vector<20x96xf32> to vector<2x96xf32>
    %cst_87 = arith.constant dense<0.000000e+00> : vector<2x96xf32>
    %393 = tpu.matmul %390, %265, %cst_87 {dimension_numbers = #tpu.dot_dimension_numbers<[1], [0], [0], [1], [0, 0, 1, 1], [], []>} : vector<2x32xf32>, vector<32x96xf32>, vector<2x96xf32> -> vector<2x96xf32>
    %394 = vector.extract_strided_slice %392 {offsets = [0, 0], sizes = [2, 64], strides = [1, 1]} : vector<2x96xf32> to vector<2x64xf32>
    %395 = vector.extract_strided_slice %393 {offsets = [0, 0], sizes = [2, 64], strides = [1, 1]} : vector<2x96xf32> to vector<2x64xf32>
    %396 = arith.addf %394, %395 : vector<2x64xf32>
    %397 = arith.negf %396 : vector<2x64xf32>
    %398 = math.exp %397 : vector<2x64xf32>
    %cst_88 = arith.constant 1.000000e+00 : f32
    %399 = vector.broadcast %cst_88 : f32 to vector<2x64xf32>
    %400 = arith.addf %399, %398 : vector<2x64xf32>
    %401 = arith.divf %399, %400 : vector<2x64xf32>
    %402 = vector.extract_strided_slice %401 {offsets = [0, 0], sizes = [2, 32], strides = [1, 1]} : vector<2x64xf32> to vector<2x32xf32>
    %403 = vector.extract_strided_slice %401 {offsets = [0, 32], sizes = [2, 32], strides = [1, 1]} : vector<2x64xf32> to vector<2x32xf32>
    %404 = vector.extract_strided_slice %392 {offsets = [0, 64], sizes = [2, 32], strides = [1, 1]} : vector<2x96xf32> to vector<2x32xf32>
    %405 = vector.extract_strided_slice %393 {offsets = [0, 64], sizes = [2, 32], strides = [1, 1]} : vector<2x96xf32> to vector<2x32xf32>
    %406 = vector.broadcast %266 : vector<1x32xf32> to vector<2x32xf32>
    %407 = arith.addf %405, %406 : vector<2x32xf32>
    %408 = arith.mulf %402, %407 : vector<2x32xf32>
    %409 = arith.addf %404, %408 : vector<2x32xf32>
    %410 = math.tanh %409 : vector<2x32xf32>
    %cst_89 = arith.constant 1.000000e+00 : f32
    %411 = vector.broadcast %cst_89 : f32 to vector<2x32xf32>
    %412 = arith.subf %411, %403 : vector<2x32xf32>
    %413 = arith.mulf %412, %410 : vector<2x32xf32>
    %414 = arith.mulf %403, %390 : vector<2x32xf32>
    %415 = arith.addf %413, %414 : vector<2x32xf32>
    %c10_90 = arith.constant 10 : index
    %c0_91 = arith.constant 0 : index
    %416 = vector.load %arg29[%c10_90, %c0_91] : memref<20x32xf32, #tpu.memory_space<vmem>>, vector<2x32xf32>
    tpu.vector_store %arg29[%c10_90, %c0_91], %415 {strides = array<i32>} : memref<20x32xf32, #tpu.memory_space<vmem>>, vector<2x32xf32>,
    %417 = vector.extract_strided_slice %264 {offsets = [12, 0], sizes = [2, 96], strides = [1, 1]} : vector<20x96xf32> to vector<2x96xf32>
    %cst_92 = arith.constant dense<0.000000e+00> : vector<2x96xf32>
    %418 = tpu.matmul %415, %265, %cst_92 {dimension_numbers = #tpu.dot_dimension_numbers<[1], [0], [0], [1], [0, 0, 1, 1], [], []>} : vector<2x32xf32>, vector<32x96xf32>, vector<2x96xf32> -> vector<2x96xf32>
    %419 = vector.extract_strided_slice %417 {offsets = [0, 0], sizes = [2, 64], strides = [1, 1]} : vector<2x96xf32> to vector<2x64xf32>
    %420 = vector.extract_strided_slice %418 {offsets = [0, 0], sizes = [2, 64], strides = [1, 1]} : vector<2x96xf32> to vector<2x64xf32>
    %421 = arith.addf %419, %420 : vector<2x64xf32>
    %422 = arith.negf %421 : vector<2x64xf32>
    %423 = math.exp %422 : vector<2x64xf32>
    %cst_93 = arith.constant 1.000000e+00 : f32
    %424 = vector.broadcast %cst_93 : f32 to vector<2x64xf32>
    %425 = arith.addf %424, %423 : vector<2x64xf32>
    %426 = arith.divf %424, %425 : vector<2x64xf32>
    %427 = vector.extract_strided_slice %426 {offsets = [0, 0], sizes = [2, 32], strides = [1, 1]} : vector<2x64xf32> to vector<2x32xf32>
    %428 = vector.extract_strided_slice %426 {offsets = [0, 32], sizes = [2, 32], strides = [1, 1]} : vector<2x64xf32> to vector<2x32xf32>
    %429 = vector.extract_strided_slice %417 {offsets = [0, 64], sizes = [2, 32], strides = [1, 1]} : vector<2x96xf32> to vector<2x32xf32>
    %430 = vector.extract_strided_slice %418 {offsets = [0, 64], sizes = [2, 32], strides = [1, 1]} : vector<2x96xf32> to vector<2x32xf32>
    %431 = vector.broadcast %266 : vector<1x32xf32> to vector<2x32xf32>
    %432 = arith.addf %430, %431 : vector<2x32xf32>
    %433 = arith.mulf %427, %432 : vector<2x32xf32>
    %434 = arith.addf %429, %433 : vector<2x32xf32>
    %435 = math.tanh %434 : vector<2x32xf32>
    %cst_94 = arith.constant 1.000000e+00 : f32
    %436 = vector.broadcast %cst_94 : f32 to vector<2x32xf32>
    %437 = arith.subf %436, %428 : vector<2x32xf32>
    %438 = arith.mulf %437, %435 : vector<2x32xf32>
    %439 = arith.mulf %428, %415 : vector<2x32xf32>
    %440 = arith.addf %438, %439 : vector<2x32xf32>
    %c12_95 = arith.constant 12 : index
    %c0_96 = arith.constant 0 : index
    %441 = vector.load %arg29[%c12_95, %c0_96] : memref<20x32xf32, #tpu.memory_space<vmem>>, vector<2x32xf32>
    tpu.vector_store %arg29[%c12_95, %c0_96], %440 {strides = array<i32>} : memref<20x32xf32, #tpu.memory_space<vmem>>, vector<2x32xf32>,
    %442 = vector.extract_strided_slice %264 {offsets = [14, 0], sizes = [2, 96], strides = [1, 1]} : vector<20x96xf32> to vector<2x96xf32>
    %cst_97 = arith.constant dense<0.000000e+00> : vector<2x96xf32>
    %443 = tpu.matmul %440, %265, %cst_97 {dimension_numbers = #tpu.dot_dimension_numbers<[1], [0], [0], [1], [0, 0, 1, 1], [], []>} : vector<2x32xf32>, vector<32x96xf32>, vector<2x96xf32> -> vector<2x96xf32>
    %444 = vector.extract_strided_slice %442 {offsets = [0, 0], sizes = [2, 64], strides = [1, 1]} : vector<2x96xf32> to vector<2x64xf32>
    %445 = vector.extract_strided_slice %443 {offsets = [0, 0], sizes = [2, 64], strides = [1, 1]} : vector<2x96xf32> to vector<2x64xf32>
    %446 = arith.addf %444, %445 : vector<2x64xf32>
    %447 = arith.negf %446 : vector<2x64xf32>
    %448 = math.exp %447 : vector<2x64xf32>
    %cst_98 = arith.constant 1.000000e+00 : f32
    %449 = vector.broadcast %cst_98 : f32 to vector<2x64xf32>
    %450 = arith.addf %449, %448 : vector<2x64xf32>
    %451 = arith.divf %449, %450 : vector<2x64xf32>
    %452 = vector.extract_strided_slice %451 {offsets = [0, 0], sizes = [2, 32], strides = [1, 1]} : vector<2x64xf32> to vector<2x32xf32>
    %453 = vector.extract_strided_slice %451 {offsets = [0, 32], sizes = [2, 32], strides = [1, 1]} : vector<2x64xf32> to vector<2x32xf32>
    %454 = vector.extract_strided_slice %442 {offsets = [0, 64], sizes = [2, 32], strides = [1, 1]} : vector<2x96xf32> to vector<2x32xf32>
    %455 = vector.extract_strided_slice %443 {offsets = [0, 64], sizes = [2, 32], strides = [1, 1]} : vector<2x96xf32> to vector<2x32xf32>
    %456 = vector.broadcast %266 : vector<1x32xf32> to vector<2x32xf32>
    %457 = arith.addf %455, %456 : vector<2x32xf32>
    %458 = arith.mulf %452, %457 : vector<2x32xf32>
    %459 = arith.addf %454, %458 : vector<2x32xf32>
    %460 = math.tanh %459 : vector<2x32xf32>
    %cst_99 = arith.constant 1.000000e+00 : f32
    %461 = vector.broadcast %cst_99 : f32 to vector<2x32xf32>
    %462 = arith.subf %461, %453 : vector<2x32xf32>
    %463 = arith.mulf %462, %460 : vector<2x32xf32>
    %464 = arith.mulf %453, %440 : vector<2x32xf32>
    %465 = arith.addf %463, %464 : vector<2x32xf32>
    %c14_100 = arith.constant 14 : index
    %c0_101 = arith.constant 0 : index
    %466 = vector.load %arg29[%c14_100, %c0_101] : memref<20x32xf32, #tpu.memory_space<vmem>>, vector<2x32xf32>
    tpu.vector_store %arg29[%c14_100, %c0_101], %465 {strides = array<i32>} : memref<20x32xf32, #tpu.memory_space<vmem>>, vector<2x32xf32>,
    %467 = vector.extract_strided_slice %264 {offsets = [16, 0], sizes = [2, 96], strides = [1, 1]} : vector<20x96xf32> to vector<2x96xf32>
    %cst_102 = arith.constant dense<0.000000e+00> : vector<2x96xf32>
    %468 = tpu.matmul %465, %265, %cst_102 {dimension_numbers = #tpu.dot_dimension_numbers<[1], [0], [0], [1], [0, 0, 1, 1], [], []>} : vector<2x32xf32>, vector<32x96xf32>, vector<2x96xf32> -> vector<2x96xf32>
    %469 = vector.extract_strided_slice %467 {offsets = [0, 0], sizes = [2, 64], strides = [1, 1]} : vector<2x96xf32> to vector<2x64xf32>
    %470 = vector.extract_strided_slice %468 {offsets = [0, 0], sizes = [2, 64], strides = [1, 1]} : vector<2x96xf32> to vector<2x64xf32>
    %471 = arith.addf %469, %470 : vector<2x64xf32>
    %472 = arith.negf %471 : vector<2x64xf32>
    %473 = math.exp %472 : vector<2x64xf32>
    %cst_103 = arith.constant 1.000000e+00 : f32
    %474 = vector.broadcast %cst_103 : f32 to vector<2x64xf32>
    %475 = arith.addf %474, %473 : vector<2x64xf32>
    %476 = arith.divf %474, %475 : vector<2x64xf32>
    %477 = vector.extract_strided_slice %476 {offsets = [0, 0], sizes = [2, 32], strides = [1, 1]} : vector<2x64xf32> to vector<2x32xf32>
    %478 = vector.extract_strided_slice %476 {offsets = [0, 32], sizes = [2, 32], strides = [1, 1]} : vector<2x64xf32> to vector<2x32xf32>
    %479 = vector.extract_strided_slice %467 {offsets = [0, 64], sizes = [2, 32], strides = [1, 1]} : vector<2x96xf32> to vector<2x32xf32>
    %480 = vector.extract_strided_slice %468 {offsets = [0, 64], sizes = [2, 32], strides = [1, 1]} : vector<2x96xf32> to vector<2x32xf32>
    %481 = vector.broadcast %266 : vector<1x32xf32> to vector<2x32xf32>
    %482 = arith.addf %480, %481 : vector<2x32xf32>
    %483 = arith.mulf %477, %482 : vector<2x32xf32>
    %484 = arith.addf %479, %483 : vector<2x32xf32>
    %485 = math.tanh %484 : vector<2x32xf32>
    %cst_104 = arith.constant 1.000000e+00 : f32
    %486 = vector.broadcast %cst_104 : f32 to vector<2x32xf32>
    %487 = arith.subf %486, %478 : vector<2x32xf32>
    %488 = arith.mulf %487, %485 : vector<2x32xf32>
    %489 = arith.mulf %478, %465 : vector<2x32xf32>
    %490 = arith.addf %488, %489 : vector<2x32xf32>
    %c16_105 = arith.constant 16 : index
    %c0_106 = arith.constant 0 : index
    %491 = vector.load %arg29[%c16_105, %c0_106] : memref<20x32xf32, #tpu.memory_space<vmem>>, vector<2x32xf32>
    tpu.vector_store %arg29[%c16_105, %c0_106], %490 {strides = array<i32>} : memref<20x32xf32, #tpu.memory_space<vmem>>, vector<2x32xf32>,
    %492 = vector.extract_strided_slice %264 {offsets = [18, 0], sizes = [2, 96], strides = [1, 1]} : vector<20x96xf32> to vector<2x96xf32>
    %cst_107 = arith.constant dense<0.000000e+00> : vector<2x96xf32>
    %493 = tpu.matmul %490, %265, %cst_107 {dimension_numbers = #tpu.dot_dimension_numbers<[1], [0], [0], [1], [0, 0, 1, 1], [], []>} : vector<2x32xf32>, vector<32x96xf32>, vector<2x96xf32> -> vector<2x96xf32>
    %494 = vector.extract_strided_slice %492 {offsets = [0, 0], sizes = [2, 64], strides = [1, 1]} : vector<2x96xf32> to vector<2x64xf32>
    %495 = vector.extract_strided_slice %493 {offsets = [0, 0], sizes = [2, 64], strides = [1, 1]} : vector<2x96xf32> to vector<2x64xf32>
    %496 = arith.addf %494, %495 : vector<2x64xf32>
    %497 = arith.negf %496 : vector<2x64xf32>
    %498 = math.exp %497 : vector<2x64xf32>
    %cst_108 = arith.constant 1.000000e+00 : f32
    %499 = vector.broadcast %cst_108 : f32 to vector<2x64xf32>
    %500 = arith.addf %499, %498 : vector<2x64xf32>
    %501 = arith.divf %499, %500 : vector<2x64xf32>
    %502 = vector.extract_strided_slice %501 {offsets = [0, 0], sizes = [2, 32], strides = [1, 1]} : vector<2x64xf32> to vector<2x32xf32>
    %503 = vector.extract_strided_slice %501 {offsets = [0, 32], sizes = [2, 32], strides = [1, 1]} : vector<2x64xf32> to vector<2x32xf32>
    %504 = vector.extract_strided_slice %492 {offsets = [0, 64], sizes = [2, 32], strides = [1, 1]} : vector<2x96xf32> to vector<2x32xf32>
    %505 = vector.extract_strided_slice %493 {offsets = [0, 64], sizes = [2, 32], strides = [1, 1]} : vector<2x96xf32> to vector<2x32xf32>
    %506 = vector.broadcast %266 : vector<1x32xf32> to vector<2x32xf32>
    %507 = arith.addf %505, %506 : vector<2x32xf32>
    %508 = arith.mulf %502, %507 : vector<2x32xf32>
    %509 = arith.addf %504, %508 : vector<2x32xf32>
    %510 = math.tanh %509 : vector<2x32xf32>
    %cst_109 = arith.constant 1.000000e+00 : f32
    %511 = vector.broadcast %cst_109 : f32 to vector<2x32xf32>
    %512 = arith.subf %511, %503 : vector<2x32xf32>
    %513 = arith.mulf %512, %510 : vector<2x32xf32>
    %514 = arith.mulf %503, %490 : vector<2x32xf32>
    %515 = arith.addf %513, %514 : vector<2x32xf32>
    %c18_110 = arith.constant 18 : index
    %c0_111 = arith.constant 0 : index
    %516 = vector.load %arg29[%c18_110, %c0_111] : memref<20x32xf32, #tpu.memory_space<vmem>>, vector<2x32xf32>
    tpu.vector_store %arg29[%c18_110, %c0_111], %515 {strides = array<i32>} : memref<20x32xf32, #tpu.memory_space<vmem>>, vector<2x32xf32>,
    %c0_112 = arith.constant 0 : index
    %c0_113 = arith.constant 0 : index
    %517 = vector.load %arg29[%c0_112, %c0_113] : memref<20x32xf32, #tpu.memory_space<vmem>>, vector<20x32xf32>
    %c0_114 = arith.constant 0 : index
    %c0_115 = arith.constant 0 : index
    %518 = vector.load %arg10[%c0_114, %c0_115] : memref<32x96xf32, #tpu.memory_space<vmem>>, vector<32x96xf32>
    %cst_116 = arith.constant dense<0.000000e+00> : vector<20x96xf32>
    %519 = tpu.matmul %517, %518, %cst_116 {dimension_numbers = #tpu.dot_dimension_numbers<[1], [0], [0], [1], [0, 0, 1, 1], [], []>} : vector<20x32xf32>, vector<32x96xf32>, vector<20x96xf32> -> vector<20x96xf32>
    %c0_117 = arith.constant 0 : index
    %c0_118 = arith.constant 0 : index
    %520 = vector.load %arg12[%c0_117, %c0_118] : memref<1x96xf32, #tpu.memory_space<vmem>>, vector<1x96xf32>
    %521 = vector.broadcast %520 : vector<1x96xf32> to vector<20x96xf32>
    %522 = arith.addf %519, %521 : vector<20x96xf32>
    %c0_119 = arith.constant 0 : index
    %c0_120 = arith.constant 0 : index
    %523 = vector.load %arg11[%c0_119, %c0_120] : memref<32x96xf32, #tpu.memory_space<vmem>>, vector<32x96xf32>
    %c0_121 = arith.constant 0 : index
    %c0_122 = arith.constant 0 : index
    %524 = vector.load %arg13[%c0_121, %c0_122] : memref<1x32xf32, #tpu.memory_space<vmem>>, vector<1x32xf32>
    %525 = vector.extract_strided_slice %522 {offsets = [0, 0], sizes = [2, 96], strides = [1, 1]} : vector<20x96xf32> to vector<2x96xf32>
    %cst_123 = arith.constant dense<0.000000e+00> : vector<2x96xf32>
    %526 = tpu.matmul %0, %523, %cst_123 {dimension_numbers = #tpu.dot_dimension_numbers<[1], [0], [0], [1], [0, 0, 1, 1], [], []>} : vector<2x32xf32>, vector<32x96xf32>, vector<2x96xf32> -> vector<2x96xf32>
    %527 = vector.extract_strided_slice %525 {offsets = [0, 0], sizes = [2, 64], strides = [1, 1]} : vector<2x96xf32> to vector<2x64xf32>
    %528 = vector.extract_strided_slice %526 {offsets = [0, 0], sizes = [2, 64], strides = [1, 1]} : vector<2x96xf32> to vector<2x64xf32>
    %529 = arith.addf %527, %528 : vector<2x64xf32>
    %530 = arith.negf %529 : vector<2x64xf32>
    %531 = math.exp %530 : vector<2x64xf32>
    %cst_124 = arith.constant 1.000000e+00 : f32
    %532 = vector.broadcast %cst_124 : f32 to vector<2x64xf32>
    %533 = arith.addf %532, %531 : vector<2x64xf32>
    %534 = arith.divf %532, %533 : vector<2x64xf32>
    %535 = vector.extract_strided_slice %534 {offsets = [0, 0], sizes = [2, 32], strides = [1, 1]} : vector<2x64xf32> to vector<2x32xf32>
    %536 = vector.extract_strided_slice %534 {offsets = [0, 32], sizes = [2, 32], strides = [1, 1]} : vector<2x64xf32> to vector<2x32xf32>
    %537 = vector.extract_strided_slice %525 {offsets = [0, 64], sizes = [2, 32], strides = [1, 1]} : vector<2x96xf32> to vector<2x32xf32>
    %538 = vector.extract_strided_slice %526 {offsets = [0, 64], sizes = [2, 32], strides = [1, 1]} : vector<2x96xf32> to vector<2x32xf32>
    %539 = vector.broadcast %524 : vector<1x32xf32> to vector<2x32xf32>
    %540 = arith.addf %538, %539 : vector<2x32xf32>
    %541 = arith.mulf %535, %540 : vector<2x32xf32>
    %542 = arith.addf %537, %541 : vector<2x32xf32>
    %543 = math.tanh %542 : vector<2x32xf32>
    %cst_125 = arith.constant 1.000000e+00 : f32
    %544 = vector.broadcast %cst_125 : f32 to vector<2x32xf32>
    %545 = arith.subf %544, %536 : vector<2x32xf32>
    %546 = arith.mulf %545, %543 : vector<2x32xf32>
    %547 = arith.mulf %536, %0 : vector<2x32xf32>
    %548 = arith.addf %546, %547 : vector<2x32xf32>
    %c0_126 = arith.constant 0 : index
    %c0_127 = arith.constant 0 : index
    %549 = vector.load %arg29[%c0_126, %c0_127] : memref<20x32xf32, #tpu.memory_space<vmem>>, vector<2x32xf32>
    tpu.vector_store %arg29[%c0_126, %c0_127], %548 {strides = array<i32>} : memref<20x32xf32, #tpu.memory_space<vmem>>, vector<2x32xf32>,
    %550 = vector.extract_strided_slice %522 {offsets = [2, 0], sizes = [2, 96], strides = [1, 1]} : vector<20x96xf32> to vector<2x96xf32>
    %cst_128 = arith.constant dense<0.000000e+00> : vector<2x96xf32>
    %551 = tpu.matmul %548, %523, %cst_128 {dimension_numbers = #tpu.dot_dimension_numbers<[1], [0], [0], [1], [0, 0, 1, 1], [], []>} : vector<2x32xf32>, vector<32x96xf32>, vector<2x96xf32> -> vector<2x96xf32>
    %552 = vector.extract_strided_slice %550 {offsets = [0, 0], sizes = [2, 64], strides = [1, 1]} : vector<2x96xf32> to vector<2x64xf32>
    %553 = vector.extract_strided_slice %551 {offsets = [0, 0], sizes = [2, 64], strides = [1, 1]} : vector<2x96xf32> to vector<2x64xf32>
    %554 = arith.addf %552, %553 : vector<2x64xf32>
    %555 = arith.negf %554 : vector<2x64xf32>
    %556 = math.exp %555 : vector<2x64xf32>
    %cst_129 = arith.constant 1.000000e+00 : f32
    %557 = vector.broadcast %cst_129 : f32 to vector<2x64xf32>
    %558 = arith.addf %557, %556 : vector<2x64xf32>
    %559 = arith.divf %557, %558 : vector<2x64xf32>
    %560 = vector.extract_strided_slice %559 {offsets = [0, 0], sizes = [2, 32], strides = [1, 1]} : vector<2x64xf32> to vector<2x32xf32>
    %561 = vector.extract_strided_slice %559 {offsets = [0, 32], sizes = [2, 32], strides = [1, 1]} : vector<2x64xf32> to vector<2x32xf32>
    %562 = vector.extract_strided_slice %550 {offsets = [0, 64], sizes = [2, 32], strides = [1, 1]} : vector<2x96xf32> to vector<2x32xf32>
    %563 = vector.extract_strided_slice %551 {offsets = [0, 64], sizes = [2, 32], strides = [1, 1]} : vector<2x96xf32> to vector<2x32xf32>
    %564 = vector.broadcast %524 : vector<1x32xf32> to vector<2x32xf32>
    %565 = arith.addf %563, %564 : vector<2x32xf32>
    %566 = arith.mulf %560, %565 : vector<2x32xf32>
    %567 = arith.addf %562, %566 : vector<2x32xf32>
    %568 = math.tanh %567 : vector<2x32xf32>
    %cst_130 = arith.constant 1.000000e+00 : f32
    %569 = vector.broadcast %cst_130 : f32 to vector<2x32xf32>
    %570 = arith.subf %569, %561 : vector<2x32xf32>
    %571 = arith.mulf %570, %568 : vector<2x32xf32>
    %572 = arith.mulf %561, %548 : vector<2x32xf32>
    %573 = arith.addf %571, %572 : vector<2x32xf32>
    %c2_131 = arith.constant 2 : index
    %c0_132 = arith.constant 0 : index
    %574 = vector.load %arg29[%c2_131, %c0_132] : memref<20x32xf32, #tpu.memory_space<vmem>>, vector<2x32xf32>
    tpu.vector_store %arg29[%c2_131, %c0_132], %573 {strides = array<i32>} : memref<20x32xf32, #tpu.memory_space<vmem>>, vector<2x32xf32>,
    %575 = vector.extract_strided_slice %522 {offsets = [4, 0], sizes = [2, 96], strides = [1, 1]} : vector<20x96xf32> to vector<2x96xf32>
    %cst_133 = arith.constant dense<0.000000e+00> : vector<2x96xf32>
    %576 = tpu.matmul %573, %523, %cst_133 {dimension_numbers = #tpu.dot_dimension_numbers<[1], [0], [0], [1], [0, 0, 1, 1], [], []>} : vector<2x32xf32>, vector<32x96xf32>, vector<2x96xf32> -> vector<2x96xf32>
    %577 = vector.extract_strided_slice %575 {offsets = [0, 0], sizes = [2, 64], strides = [1, 1]} : vector<2x96xf32> to vector<2x64xf32>
    %578 = vector.extract_strided_slice %576 {offsets = [0, 0], sizes = [2, 64], strides = [1, 1]} : vector<2x96xf32> to vector<2x64xf32>
    %579 = arith.addf %577, %578 : vector<2x64xf32>
    %580 = arith.negf %579 : vector<2x64xf32>
    %581 = math.exp %580 : vector<2x64xf32>
    %cst_134 = arith.constant 1.000000e+00 : f32
    %582 = vector.broadcast %cst_134 : f32 to vector<2x64xf32>
    %583 = arith.addf %582, %581 : vector<2x64xf32>
    %584 = arith.divf %582, %583 : vector<2x64xf32>
    %585 = vector.extract_strided_slice %584 {offsets = [0, 0], sizes = [2, 32], strides = [1, 1]} : vector<2x64xf32> to vector<2x32xf32>
    %586 = vector.extract_strided_slice %584 {offsets = [0, 32], sizes = [2, 32], strides = [1, 1]} : vector<2x64xf32> to vector<2x32xf32>
    %587 = vector.extract_strided_slice %575 {offsets = [0, 64], sizes = [2, 32], strides = [1, 1]} : vector<2x96xf32> to vector<2x32xf32>
    %588 = vector.extract_strided_slice %576 {offsets = [0, 64], sizes = [2, 32], strides = [1, 1]} : vector<2x96xf32> to vector<2x32xf32>
    %589 = vector.broadcast %524 : vector<1x32xf32> to vector<2x32xf32>
    %590 = arith.addf %588, %589 : vector<2x32xf32>
    %591 = arith.mulf %585, %590 : vector<2x32xf32>
    %592 = arith.addf %587, %591 : vector<2x32xf32>
    %593 = math.tanh %592 : vector<2x32xf32>
    %cst_135 = arith.constant 1.000000e+00 : f32
    %594 = vector.broadcast %cst_135 : f32 to vector<2x32xf32>
    %595 = arith.subf %594, %586 : vector<2x32xf32>
    %596 = arith.mulf %595, %593 : vector<2x32xf32>
    %597 = arith.mulf %586, %573 : vector<2x32xf32>
    %598 = arith.addf %596, %597 : vector<2x32xf32>
    %c4_136 = arith.constant 4 : index
    %c0_137 = arith.constant 0 : index
    %599 = vector.load %arg29[%c4_136, %c0_137] : memref<20x32xf32, #tpu.memory_space<vmem>>, vector<2x32xf32>
    tpu.vector_store %arg29[%c4_136, %c0_137], %598 {strides = array<i32>} : memref<20x32xf32, #tpu.memory_space<vmem>>, vector<2x32xf32>,
    %600 = vector.extract_strided_slice %522 {offsets = [6, 0], sizes = [2, 96], strides = [1, 1]} : vector<20x96xf32> to vector<2x96xf32>
    %cst_138 = arith.constant dense<0.000000e+00> : vector<2x96xf32>
    %601 = tpu.matmul %598, %523, %cst_138 {dimension_numbers = #tpu.dot_dimension_numbers<[1], [0], [0], [1], [0, 0, 1, 1], [], []>} : vector<2x32xf32>, vector<32x96xf32>, vector<2x96xf32> -> vector<2x96xf32>
    %602 = vector.extract_strided_slice %600 {offsets = [0, 0], sizes = [2, 64], strides = [1, 1]} : vector<2x96xf32> to vector<2x64xf32>
    %603 = vector.extract_strided_slice %601 {offsets = [0, 0], sizes = [2, 64], strides = [1, 1]} : vector<2x96xf32> to vector<2x64xf32>
    %604 = arith.addf %602, %603 : vector<2x64xf32>
    %605 = arith.negf %604 : vector<2x64xf32>
    %606 = math.exp %605 : vector<2x64xf32>
    %cst_139 = arith.constant 1.000000e+00 : f32
    %607 = vector.broadcast %cst_139 : f32 to vector<2x64xf32>
    %608 = arith.addf %607, %606 : vector<2x64xf32>
    %609 = arith.divf %607, %608 : vector<2x64xf32>
    %610 = vector.extract_strided_slice %609 {offsets = [0, 0], sizes = [2, 32], strides = [1, 1]} : vector<2x64xf32> to vector<2x32xf32>
    %611 = vector.extract_strided_slice %609 {offsets = [0, 32], sizes = [2, 32], strides = [1, 1]} : vector<2x64xf32> to vector<2x32xf32>
    %612 = vector.extract_strided_slice %600 {offsets = [0, 64], sizes = [2, 32], strides = [1, 1]} : vector<2x96xf32> to vector<2x32xf32>
    %613 = vector.extract_strided_slice %601 {offsets = [0, 64], sizes = [2, 32], strides = [1, 1]} : vector<2x96xf32> to vector<2x32xf32>
    %614 = vector.broadcast %524 : vector<1x32xf32> to vector<2x32xf32>
    %615 = arith.addf %613, %614 : vector<2x32xf32>
    %616 = arith.mulf %610, %615 : vector<2x32xf32>
    %617 = arith.addf %612, %616 : vector<2x32xf32>
    %618 = math.tanh %617 : vector<2x32xf32>
    %cst_140 = arith.constant 1.000000e+00 : f32
    %619 = vector.broadcast %cst_140 : f32 to vector<2x32xf32>
    %620 = arith.subf %619, %611 : vector<2x32xf32>
    %621 = arith.mulf %620, %618 : vector<2x32xf32>
    %622 = arith.mulf %611, %598 : vector<2x32xf32>
    %623 = arith.addf %621, %622 : vector<2x32xf32>
    %c6_141 = arith.constant 6 : index
    %c0_142 = arith.constant 0 : index
    %624 = vector.load %arg29[%c6_141, %c0_142] : memref<20x32xf32, #tpu.memory_space<vmem>>, vector<2x32xf32>
    tpu.vector_store %arg29[%c6_141, %c0_142], %623 {strides = array<i32>} : memref<20x32xf32, #tpu.memory_space<vmem>>, vector<2x32xf32>,
    %625 = vector.extract_strided_slice %522 {offsets = [8, 0], sizes = [2, 96], strides = [1, 1]} : vector<20x96xf32> to vector<2x96xf32>
    %cst_143 = arith.constant dense<0.000000e+00> : vector<2x96xf32>
    %626 = tpu.matmul %623, %523, %cst_143 {dimension_numbers = #tpu.dot_dimension_numbers<[1], [0], [0], [1], [0, 0, 1, 1], [], []>} : vector<2x32xf32>, vector<32x96xf32>, vector<2x96xf32> -> vector<2x96xf32>
    %627 = vector.extract_strided_slice %625 {offsets = [0, 0], sizes = [2, 64], strides = [1, 1]} : vector<2x96xf32> to vector<2x64xf32>
    %628 = vector.extract_strided_slice %626 {offsets = [0, 0], sizes = [2, 64], strides = [1, 1]} : vector<2x96xf32> to vector<2x64xf32>
    %629 = arith.addf %627, %628 : vector<2x64xf32>
    %630 = arith.negf %629 : vector<2x64xf32>
    %631 = math.exp %630 : vector<2x64xf32>
    %cst_144 = arith.constant 1.000000e+00 : f32
    %632 = vector.broadcast %cst_144 : f32 to vector<2x64xf32>
    %633 = arith.addf %632, %631 : vector<2x64xf32>
    %634 = arith.divf %632, %633 : vector<2x64xf32>
    %635 = vector.extract_strided_slice %634 {offsets = [0, 0], sizes = [2, 32], strides = [1, 1]} : vector<2x64xf32> to vector<2x32xf32>
    %636 = vector.extract_strided_slice %634 {offsets = [0, 32], sizes = [2, 32], strides = [1, 1]} : vector<2x64xf32> to vector<2x32xf32>
    %637 = vector.extract_strided_slice %625 {offsets = [0, 64], sizes = [2, 32], strides = [1, 1]} : vector<2x96xf32> to vector<2x32xf32>
    %638 = vector.extract_strided_slice %626 {offsets = [0, 64], sizes = [2, 32], strides = [1, 1]} : vector<2x96xf32> to vector<2x32xf32>
    %639 = vector.broadcast %524 : vector<1x32xf32> to vector<2x32xf32>
    %640 = arith.addf %638, %639 : vector<2x32xf32>
    %641 = arith.mulf %635, %640 : vector<2x32xf32>
    %642 = arith.addf %637, %641 : vector<2x32xf32>
    %643 = math.tanh %642 : vector<2x32xf32>
    %cst_145 = arith.constant 1.000000e+00 : f32
    %644 = vector.broadcast %cst_145 : f32 to vector<2x32xf32>
    %645 = arith.subf %644, %636 : vector<2x32xf32>
    %646 = arith.mulf %645, %643 : vector<2x32xf32>
    %647 = arith.mulf %636, %623 : vector<2x32xf32>
    %648 = arith.addf %646, %647 : vector<2x32xf32>
    %c8_146 = arith.constant 8 : index
    %c0_147 = arith.constant 0 : index
    %649 = vector.load %arg29[%c8_146, %c0_147] : memref<20x32xf32, #tpu.memory_space<vmem>>, vector<2x32xf32>
    tpu.vector_store %arg29[%c8_146, %c0_147], %648 {strides = array<i32>} : memref<20x32xf32, #tpu.memory_space<vmem>>, vector<2x32xf32>,
    %650 = vector.extract_strided_slice %522 {offsets = [10, 0], sizes = [2, 96], strides = [1, 1]} : vector<20x96xf32> to vector<2x96xf32>
    %cst_148 = arith.constant dense<0.000000e+00> : vector<2x96xf32>
    %651 = tpu.matmul %648, %523, %cst_148 {dimension_numbers = #tpu.dot_dimension_numbers<[1], [0], [0], [1], [0, 0, 1, 1], [], []>} : vector<2x32xf32>, vector<32x96xf32>, vector<2x96xf32> -> vector<2x96xf32>
    %652 = vector.extract_strided_slice %650 {offsets = [0, 0], sizes = [2, 64], strides = [1, 1]} : vector<2x96xf32> to vector<2x64xf32>
    %653 = vector.extract_strided_slice %651 {offsets = [0, 0], sizes = [2, 64], strides = [1, 1]} : vector<2x96xf32> to vector<2x64xf32>
    %654 = arith.addf %652, %653 : vector<2x64xf32>
    %655 = arith.negf %654 : vector<2x64xf32>
    %656 = math.exp %655 : vector<2x64xf32>
    %cst_149 = arith.constant 1.000000e+00 : f32
    %657 = vector.broadcast %cst_149 : f32 to vector<2x64xf32>
    %658 = arith.addf %657, %656 : vector<2x64xf32>
    %659 = arith.divf %657, %658 : vector<2x64xf32>
    %660 = vector.extract_strided_slice %659 {offsets = [0, 0], sizes = [2, 32], strides = [1, 1]} : vector<2x64xf32> to vector<2x32xf32>
    %661 = vector.extract_strided_slice %659 {offsets = [0, 32], sizes = [2, 32], strides = [1, 1]} : vector<2x64xf32> to vector<2x32xf32>
    %662 = vector.extract_strided_slice %650 {offsets = [0, 64], sizes = [2, 32], strides = [1, 1]} : vector<2x96xf32> to vector<2x32xf32>
    %663 = vector.extract_strided_slice %651 {offsets = [0, 64], sizes = [2, 32], strides = [1, 1]} : vector<2x96xf32> to vector<2x32xf32>
    %664 = vector.broadcast %524 : vector<1x32xf32> to vector<2x32xf32>
    %665 = arith.addf %663, %664 : vector<2x32xf32>
    %666 = arith.mulf %660, %665 : vector<2x32xf32>
    %667 = arith.addf %662, %666 : vector<2x32xf32>
    %668 = math.tanh %667 : vector<2x32xf32>
    %cst_150 = arith.constant 1.000000e+00 : f32
    %669 = vector.broadcast %cst_150 : f32 to vector<2x32xf32>
    %670 = arith.subf %669, %661 : vector<2x32xf32>
    %671 = arith.mulf %670, %668 : vector<2x32xf32>
    %672 = arith.mulf %661, %648 : vector<2x32xf32>
    %673 = arith.addf %671, %672 : vector<2x32xf32>
    %c10_151 = arith.constant 10 : index
    %c0_152 = arith.constant 0 : index
    %674 = vector.load %arg29[%c10_151, %c0_152] : memref<20x32xf32, #tpu.memory_space<vmem>>, vector<2x32xf32>
    tpu.vector_store %arg29[%c10_151, %c0_152], %673 {strides = array<i32>} : memref<20x32xf32, #tpu.memory_space<vmem>>, vector<2x32xf32>,
    %675 = vector.extract_strided_slice %522 {offsets = [12, 0], sizes = [2, 96], strides = [1, 1]} : vector<20x96xf32> to vector<2x96xf32>
    %cst_153 = arith.constant dense<0.000000e+00> : vector<2x96xf32>
    %676 = tpu.matmul %673, %523, %cst_153 {dimension_numbers = #tpu.dot_dimension_numbers<[1], [0], [0], [1], [0, 0, 1, 1], [], []>} : vector<2x32xf32>, vector<32x96xf32>, vector<2x96xf32> -> vector<2x96xf32>
    %677 = vector.extract_strided_slice %675 {offsets = [0, 0], sizes = [2, 64], strides = [1, 1]} : vector<2x96xf32> to vector<2x64xf32>
    %678 = vector.extract_strided_slice %676 {offsets = [0, 0], sizes = [2, 64], strides = [1, 1]} : vector<2x96xf32> to vector<2x64xf32>
    %679 = arith.addf %677, %678 : vector<2x64xf32>
    %680 = arith.negf %679 : vector<2x64xf32>
    %681 = math.exp %680 : vector<2x64xf32>
    %cst_154 = arith.constant 1.000000e+00 : f32
    %682 = vector.broadcast %cst_154 : f32 to vector<2x64xf32>
    %683 = arith.addf %682, %681 : vector<2x64xf32>
    %684 = arith.divf %682, %683 : vector<2x64xf32>
    %685 = vector.extract_strided_slice %684 {offsets = [0, 0], sizes = [2, 32], strides = [1, 1]} : vector<2x64xf32> to vector<2x32xf32>
    %686 = vector.extract_strided_slice %684 {offsets = [0, 32], sizes = [2, 32], strides = [1, 1]} : vector<2x64xf32> to vector<2x32xf32>
    %687 = vector.extract_strided_slice %675 {offsets = [0, 64], sizes = [2, 32], strides = [1, 1]} : vector<2x96xf32> to vector<2x32xf32>
    %688 = vector.extract_strided_slice %676 {offsets = [0, 64], sizes = [2, 32], strides = [1, 1]} : vector<2x96xf32> to vector<2x32xf32>
    %689 = vector.broadcast %524 : vector<1x32xf32> to vector<2x32xf32>
    %690 = arith.addf %688, %689 : vector<2x32xf32>
    %691 = arith.mulf %685, %690 : vector<2x32xf32>
    %692 = arith.addf %687, %691 : vector<2x32xf32>
    %693 = math.tanh %692 : vector<2x32xf32>
    %cst_155 = arith.constant 1.000000e+00 : f32
    %694 = vector.broadcast %cst_155 : f32 to vector<2x32xf32>
    %695 = arith.subf %694, %686 : vector<2x32xf32>
    %696 = arith.mulf %695, %693 : vector<2x32xf32>
    %697 = arith.mulf %686, %673 : vector<2x32xf32>
    %698 = arith.addf %696, %697 : vector<2x32xf32>
    %c12_156 = arith.constant 12 : index
    %c0_157 = arith.constant 0 : index
    %699 = vector.load %arg29[%c12_156, %c0_157] : memref<20x32xf32, #tpu.memory_space<vmem>>, vector<2x32xf32>
    tpu.vector_store %arg29[%c12_156, %c0_157], %698 {strides = array<i32>} : memref<20x32xf32, #tpu.memory_space<vmem>>, vector<2x32xf32>,
    %700 = vector.extract_strided_slice %522 {offsets = [14, 0], sizes = [2, 96], strides = [1, 1]} : vector<20x96xf32> to vector<2x96xf32>
    %cst_158 = arith.constant dense<0.000000e+00> : vector<2x96xf32>
    %701 = tpu.matmul %698, %523, %cst_158 {dimension_numbers = #tpu.dot_dimension_numbers<[1], [0], [0], [1], [0, 0, 1, 1], [], []>} : vector<2x32xf32>, vector<32x96xf32>, vector<2x96xf32> -> vector<2x96xf32>
    %702 = vector.extract_strided_slice %700 {offsets = [0, 0], sizes = [2, 64], strides = [1, 1]} : vector<2x96xf32> to vector<2x64xf32>
    %703 = vector.extract_strided_slice %701 {offsets = [0, 0], sizes = [2, 64], strides = [1, 1]} : vector<2x96xf32> to vector<2x64xf32>
    %704 = arith.addf %702, %703 : vector<2x64xf32>
    %705 = arith.negf %704 : vector<2x64xf32>
    %706 = math.exp %705 : vector<2x64xf32>
    %cst_159 = arith.constant 1.000000e+00 : f32
    %707 = vector.broadcast %cst_159 : f32 to vector<2x64xf32>
    %708 = arith.addf %707, %706 : vector<2x64xf32>
    %709 = arith.divf %707, %708 : vector<2x64xf32>
    %710 = vector.extract_strided_slice %709 {offsets = [0, 0], sizes = [2, 32], strides = [1, 1]} : vector<2x64xf32> to vector<2x32xf32>
    %711 = vector.extract_strided_slice %709 {offsets = [0, 32], sizes = [2, 32], strides = [1, 1]} : vector<2x64xf32> to vector<2x32xf32>
    %712 = vector.extract_strided_slice %700 {offsets = [0, 64], sizes = [2, 32], strides = [1, 1]} : vector<2x96xf32> to vector<2x32xf32>
    %713 = vector.extract_strided_slice %701 {offsets = [0, 64], sizes = [2, 32], strides = [1, 1]} : vector<2x96xf32> to vector<2x32xf32>
    %714 = vector.broadcast %524 : vector<1x32xf32> to vector<2x32xf32>
    %715 = arith.addf %713, %714 : vector<2x32xf32>
    %716 = arith.mulf %710, %715 : vector<2x32xf32>
    %717 = arith.addf %712, %716 : vector<2x32xf32>
    %718 = math.tanh %717 : vector<2x32xf32>
    %cst_160 = arith.constant 1.000000e+00 : f32
    %719 = vector.broadcast %cst_160 : f32 to vector<2x32xf32>
    %720 = arith.subf %719, %711 : vector<2x32xf32>
    %721 = arith.mulf %720, %718 : vector<2x32xf32>
    %722 = arith.mulf %711, %698 : vector<2x32xf32>
    %723 = arith.addf %721, %722 : vector<2x32xf32>
    %c14_161 = arith.constant 14 : index
    %c0_162 = arith.constant 0 : index
    %724 = vector.load %arg29[%c14_161, %c0_162] : memref<20x32xf32, #tpu.memory_space<vmem>>, vector<2x32xf32>
    tpu.vector_store %arg29[%c14_161, %c0_162], %723 {strides = array<i32>} : memref<20x32xf32, #tpu.memory_space<vmem>>, vector<2x32xf32>,
    %725 = vector.extract_strided_slice %522 {offsets = [16, 0], sizes = [2, 96], strides = [1, 1]} : vector<20x96xf32> to vector<2x96xf32>
    %cst_163 = arith.constant dense<0.000000e+00> : vector<2x96xf32>
    %726 = tpu.matmul %723, %523, %cst_163 {dimension_numbers = #tpu.dot_dimension_numbers<[1], [0], [0], [1], [0, 0, 1, 1], [], []>} : vector<2x32xf32>, vector<32x96xf32>, vector<2x96xf32> -> vector<2x96xf32>
    %727 = vector.extract_strided_slice %725 {offsets = [0, 0], sizes = [2, 64], strides = [1, 1]} : vector<2x96xf32> to vector<2x64xf32>
    %728 = vector.extract_strided_slice %726 {offsets = [0, 0], sizes = [2, 64], strides = [1, 1]} : vector<2x96xf32> to vector<2x64xf32>
    %729 = arith.addf %727, %728 : vector<2x64xf32>
    %730 = arith.negf %729 : vector<2x64xf32>
    %731 = math.exp %730 : vector<2x64xf32>
    %cst_164 = arith.constant 1.000000e+00 : f32
    %732 = vector.broadcast %cst_164 : f32 to vector<2x64xf32>
    %733 = arith.addf %732, %731 : vector<2x64xf32>
    %734 = arith.divf %732, %733 : vector<2x64xf32>
    %735 = vector.extract_strided_slice %734 {offsets = [0, 0], sizes = [2, 32], strides = [1, 1]} : vector<2x64xf32> to vector<2x32xf32>
    %736 = vector.extract_strided_slice %734 {offsets = [0, 32], sizes = [2, 32], strides = [1, 1]} : vector<2x64xf32> to vector<2x32xf32>
    %737 = vector.extract_strided_slice %725 {offsets = [0, 64], sizes = [2, 32], strides = [1, 1]} : vector<2x96xf32> to vector<2x32xf32>
    %738 = vector.extract_strided_slice %726 {offsets = [0, 64], sizes = [2, 32], strides = [1, 1]} : vector<2x96xf32> to vector<2x32xf32>
    %739 = vector.broadcast %524 : vector<1x32xf32> to vector<2x32xf32>
    %740 = arith.addf %738, %739 : vector<2x32xf32>
    %741 = arith.mulf %735, %740 : vector<2x32xf32>
    %742 = arith.addf %737, %741 : vector<2x32xf32>
    %743 = math.tanh %742 : vector<2x32xf32>
    %cst_165 = arith.constant 1.000000e+00 : f32
    %744 = vector.broadcast %cst_165 : f32 to vector<2x32xf32>
    %745 = arith.subf %744, %736 : vector<2x32xf32>
    %746 = arith.mulf %745, %743 : vector<2x32xf32>
    %747 = arith.mulf %736, %723 : vector<2x32xf32>
    %748 = arith.addf %746, %747 : vector<2x32xf32>
    %c16_166 = arith.constant 16 : index
    %c0_167 = arith.constant 0 : index
    %749 = vector.load %arg29[%c16_166, %c0_167] : memref<20x32xf32, #tpu.memory_space<vmem>>, vector<2x32xf32>
    tpu.vector_store %arg29[%c16_166, %c0_167], %748 {strides = array<i32>} : memref<20x32xf32, #tpu.memory_space<vmem>>, vector<2x32xf32>,
    %750 = vector.extract_strided_slice %522 {offsets = [18, 0], sizes = [2, 96], strides = [1, 1]} : vector<20x96xf32> to vector<2x96xf32>
    %cst_168 = arith.constant dense<0.000000e+00> : vector<2x96xf32>
    %751 = tpu.matmul %748, %523, %cst_168 {dimension_numbers = #tpu.dot_dimension_numbers<[1], [0], [0], [1], [0, 0, 1, 1], [], []>} : vector<2x32xf32>, vector<32x96xf32>, vector<2x96xf32> -> vector<2x96xf32>
    %752 = vector.extract_strided_slice %750 {offsets = [0, 0], sizes = [2, 64], strides = [1, 1]} : vector<2x96xf32> to vector<2x64xf32>
    %753 = vector.extract_strided_slice %751 {offsets = [0, 0], sizes = [2, 64], strides = [1, 1]} : vector<2x96xf32> to vector<2x64xf32>
    %754 = arith.addf %752, %753 : vector<2x64xf32>
    %755 = arith.negf %754 : vector<2x64xf32>
    %756 = math.exp %755 : vector<2x64xf32>
    %cst_169 = arith.constant 1.000000e+00 : f32
    %757 = vector.broadcast %cst_169 : f32 to vector<2x64xf32>
    %758 = arith.addf %757, %756 : vector<2x64xf32>
    %759 = arith.divf %757, %758 : vector<2x64xf32>
    %760 = vector.extract_strided_slice %759 {offsets = [0, 0], sizes = [2, 32], strides = [1, 1]} : vector<2x64xf32> to vector<2x32xf32>
    %761 = vector.extract_strided_slice %759 {offsets = [0, 32], sizes = [2, 32], strides = [1, 1]} : vector<2x64xf32> to vector<2x32xf32>
    %762 = vector.extract_strided_slice %750 {offsets = [0, 64], sizes = [2, 32], strides = [1, 1]} : vector<2x96xf32> to vector<2x32xf32>
    %763 = vector.extract_strided_slice %751 {offsets = [0, 64], sizes = [2, 32], strides = [1, 1]} : vector<2x96xf32> to vector<2x32xf32>
    %764 = vector.broadcast %524 : vector<1x32xf32> to vector<2x32xf32>
    %765 = arith.addf %763, %764 : vector<2x32xf32>
    %766 = arith.mulf %760, %765 : vector<2x32xf32>
    %767 = arith.addf %762, %766 : vector<2x32xf32>
    %768 = math.tanh %767 : vector<2x32xf32>
    %cst_170 = arith.constant 1.000000e+00 : f32
    %769 = vector.broadcast %cst_170 : f32 to vector<2x32xf32>
    %770 = arith.subf %769, %761 : vector<2x32xf32>
    %771 = arith.mulf %770, %768 : vector<2x32xf32>
    %772 = arith.mulf %761, %748 : vector<2x32xf32>
    %773 = arith.addf %771, %772 : vector<2x32xf32>
    %c18_171 = arith.constant 18 : index
    %c0_172 = arith.constant 0 : index
    %774 = vector.load %arg29[%c18_171, %c0_172] : memref<20x32xf32, #tpu.memory_space<vmem>>, vector<2x32xf32>
    tpu.vector_store %arg29[%c18_171, %c0_172], %773 {strides = array<i32>} : memref<20x32xf32, #tpu.memory_space<vmem>>, vector<2x32xf32>,
    %c0_173 = arith.constant 0 : index
    %c0_174 = arith.constant 0 : index
    %775 = vector.load %arg1[%c0_173, %c0_174] : memref<12x3xf32, #tpu.memory_space<vmem>>, vector<12x3xf32>
    %c0_175 = arith.constant 0 : index
    %c0_176 = arith.constant 0 : index
    %776 = vector.load %arg14[%c0_175, %c0_176] : memref<3x96xf32, #tpu.memory_space<vmem>>, vector<3x96xf32>
    %cst_177 = arith.constant dense<0.000000e+00> : vector<12x96xf32>
    %777 = tpu.matmul %775, %776, %cst_177 {dimension_numbers = #tpu.dot_dimension_numbers<[1], [0], [0], [1], [0, 0, 1, 1], [], []>} : vector<12x3xf32>, vector<3x96xf32>, vector<12x96xf32> -> vector<12x96xf32>
    %c0_178 = arith.constant 0 : index
    %c0_179 = arith.constant 0 : index
    %778 = vector.load %arg16[%c0_178, %c0_179] : memref<1x96xf32, #tpu.memory_space<vmem>>, vector<1x96xf32>
    %779 = vector.broadcast %778 : vector<1x96xf32> to vector<12x96xf32>
    %780 = arith.addf %777, %779 : vector<12x96xf32>
    %c0_180 = arith.constant 0 : index
    %c0_181 = arith.constant 0 : index
    %781 = vector.load %arg15[%c0_180, %c0_181] : memref<32x96xf32, #tpu.memory_space<vmem>>, vector<32x96xf32>
    %c0_182 = arith.constant 0 : index
    %c0_183 = arith.constant 0 : index
    %782 = vector.load %arg17[%c0_182, %c0_183] : memref<1x32xf32, #tpu.memory_space<vmem>>, vector<1x32xf32>
    %783 = vector.extract_strided_slice %780 {offsets = [0, 0], sizes = [2, 96], strides = [1, 1]} : vector<12x96xf32> to vector<2x96xf32>
    %cst_184 = arith.constant dense<0.000000e+00> : vector<2x96xf32>
    %784 = tpu.matmul %257, %781, %cst_184 {dimension_numbers = #tpu.dot_dimension_numbers<[1], [0], [0], [1], [0, 0, 1, 1], [], []>} : vector<2x32xf32>, vector<32x96xf32>, vector<2x96xf32> -> vector<2x96xf32>
    %785 = vector.extract_strided_slice %783 {offsets = [0, 0], sizes = [2, 64], strides = [1, 1]} : vector<2x96xf32> to vector<2x64xf32>
    %786 = vector.extract_strided_slice %784 {offsets = [0, 0], sizes = [2, 64], strides = [1, 1]} : vector<2x96xf32> to vector<2x64xf32>
    %787 = arith.addf %785, %786 : vector<2x64xf32>
    %788 = arith.negf %787 : vector<2x64xf32>
    %789 = math.exp %788 : vector<2x64xf32>
    %cst_185 = arith.constant 1.000000e+00 : f32
    %790 = vector.broadcast %cst_185 : f32 to vector<2x64xf32>
    %791 = arith.addf %790, %789 : vector<2x64xf32>
    %792 = arith.divf %790, %791 : vector<2x64xf32>
    %793 = vector.extract_strided_slice %792 {offsets = [0, 0], sizes = [2, 32], strides = [1, 1]} : vector<2x64xf32> to vector<2x32xf32>
    %794 = vector.extract_strided_slice %792 {offsets = [0, 32], sizes = [2, 32], strides = [1, 1]} : vector<2x64xf32> to vector<2x32xf32>
    %795 = vector.extract_strided_slice %783 {offsets = [0, 64], sizes = [2, 32], strides = [1, 1]} : vector<2x96xf32> to vector<2x32xf32>
    %796 = vector.extract_strided_slice %784 {offsets = [0, 64], sizes = [2, 32], strides = [1, 1]} : vector<2x96xf32> to vector<2x32xf32>
    %797 = vector.broadcast %782 : vector<1x32xf32> to vector<2x32xf32>
    %798 = arith.addf %796, %797 : vector<2x32xf32>
    %799 = arith.mulf %793, %798 : vector<2x32xf32>
    %800 = arith.addf %795, %799 : vector<2x32xf32>
    %801 = math.tanh %800 : vector<2x32xf32>
    %cst_186 = arith.constant 1.000000e+00 : f32
    %802 = vector.broadcast %cst_186 : f32 to vector<2x32xf32>
    %803 = arith.subf %802, %794 : vector<2x32xf32>
    %804 = arith.mulf %803, %801 : vector<2x32xf32>
    %805 = arith.mulf %794, %257 : vector<2x32xf32>
    %806 = arith.addf %804, %805 : vector<2x32xf32>
    %c0_187 = arith.constant 0 : index
    %c0_188 = arith.constant 0 : index
    %807 = vector.load %arg29[%c0_187, %c0_188] : memref<20x32xf32, #tpu.memory_space<vmem>>, vector<2x32xf32>
    tpu.vector_store %arg29[%c0_187, %c0_188], %806 {strides = array<i32>} : memref<20x32xf32, #tpu.memory_space<vmem>>, vector<2x32xf32>,
    %808 = vector.extract_strided_slice %780 {offsets = [2, 0], sizes = [2, 96], strides = [1, 1]} : vector<12x96xf32> to vector<2x96xf32>
    %cst_189 = arith.constant dense<0.000000e+00> : vector<2x96xf32>
    %809 = tpu.matmul %806, %781, %cst_189 {dimension_numbers = #tpu.dot_dimension_numbers<[1], [0], [0], [1], [0, 0, 1, 1], [], []>} : vector<2x32xf32>, vector<32x96xf32>, vector<2x96xf32> -> vector<2x96xf32>
    %810 = vector.extract_strided_slice %808 {offsets = [0, 0], sizes = [2, 64], strides = [1, 1]} : vector<2x96xf32> to vector<2x64xf32>
    %811 = vector.extract_strided_slice %809 {offsets = [0, 0], sizes = [2, 64], strides = [1, 1]} : vector<2x96xf32> to vector<2x64xf32>
    %812 = arith.addf %810, %811 : vector<2x64xf32>
    %813 = arith.negf %812 : vector<2x64xf32>
    %814 = math.exp %813 : vector<2x64xf32>
    %cst_190 = arith.constant 1.000000e+00 : f32
    %815 = vector.broadcast %cst_190 : f32 to vector<2x64xf32>
    %816 = arith.addf %815, %814 : vector<2x64xf32>
    %817 = arith.divf %815, %816 : vector<2x64xf32>
    %818 = vector.extract_strided_slice %817 {offsets = [0, 0], sizes = [2, 32], strides = [1, 1]} : vector<2x64xf32> to vector<2x32xf32>
    %819 = vector.extract_strided_slice %817 {offsets = [0, 32], sizes = [2, 32], strides = [1, 1]} : vector<2x64xf32> to vector<2x32xf32>
    %820 = vector.extract_strided_slice %808 {offsets = [0, 64], sizes = [2, 32], strides = [1, 1]} : vector<2x96xf32> to vector<2x32xf32>
    %821 = vector.extract_strided_slice %809 {offsets = [0, 64], sizes = [2, 32], strides = [1, 1]} : vector<2x96xf32> to vector<2x32xf32>
    %822 = vector.broadcast %782 : vector<1x32xf32> to vector<2x32xf32>
    %823 = arith.addf %821, %822 : vector<2x32xf32>
    %824 = arith.mulf %818, %823 : vector<2x32xf32>
    %825 = arith.addf %820, %824 : vector<2x32xf32>
    %826 = math.tanh %825 : vector<2x32xf32>
    %cst_191 = arith.constant 1.000000e+00 : f32
    %827 = vector.broadcast %cst_191 : f32 to vector<2x32xf32>
    %828 = arith.subf %827, %819 : vector<2x32xf32>
    %829 = arith.mulf %828, %826 : vector<2x32xf32>
    %830 = arith.mulf %819, %806 : vector<2x32xf32>
    %831 = arith.addf %829, %830 : vector<2x32xf32>
    %c2_192 = arith.constant 2 : index
    %c0_193 = arith.constant 0 : index
    %832 = vector.load %arg29[%c2_192, %c0_193] : memref<20x32xf32, #tpu.memory_space<vmem>>, vector<2x32xf32>
    tpu.vector_store %arg29[%c2_192, %c0_193], %831 {strides = array<i32>} : memref<20x32xf32, #tpu.memory_space<vmem>>, vector<2x32xf32>,
    %833 = vector.extract_strided_slice %780 {offsets = [4, 0], sizes = [2, 96], strides = [1, 1]} : vector<12x96xf32> to vector<2x96xf32>
    %cst_194 = arith.constant dense<0.000000e+00> : vector<2x96xf32>
    %834 = tpu.matmul %831, %781, %cst_194 {dimension_numbers = #tpu.dot_dimension_numbers<[1], [0], [0], [1], [0, 0, 1, 1], [], []>} : vector<2x32xf32>, vector<32x96xf32>, vector<2x96xf32> -> vector<2x96xf32>
    %835 = vector.extract_strided_slice %833 {offsets = [0, 0], sizes = [2, 64], strides = [1, 1]} : vector<2x96xf32> to vector<2x64xf32>
    %836 = vector.extract_strided_slice %834 {offsets = [0, 0], sizes = [2, 64], strides = [1, 1]} : vector<2x96xf32> to vector<2x64xf32>
    %837 = arith.addf %835, %836 : vector<2x64xf32>
    %838 = arith.negf %837 : vector<2x64xf32>
    %839 = math.exp %838 : vector<2x64xf32>
    %cst_195 = arith.constant 1.000000e+00 : f32
    %840 = vector.broadcast %cst_195 : f32 to vector<2x64xf32>
    %841 = arith.addf %840, %839 : vector<2x64xf32>
    %842 = arith.divf %840, %841 : vector<2x64xf32>
    %843 = vector.extract_strided_slice %842 {offsets = [0, 0], sizes = [2, 32], strides = [1, 1]} : vector<2x64xf32> to vector<2x32xf32>
    %844 = vector.extract_strided_slice %842 {offsets = [0, 32], sizes = [2, 32], strides = [1, 1]} : vector<2x64xf32> to vector<2x32xf32>
    %845 = vector.extract_strided_slice %833 {offsets = [0, 64], sizes = [2, 32], strides = [1, 1]} : vector<2x96xf32> to vector<2x32xf32>
    %846 = vector.extract_strided_slice %834 {offsets = [0, 64], sizes = [2, 32], strides = [1, 1]} : vector<2x96xf32> to vector<2x32xf32>
    %847 = vector.broadcast %782 : vector<1x32xf32> to vector<2x32xf32>
    %848 = arith.addf %846, %847 : vector<2x32xf32>
    %849 = arith.mulf %843, %848 : vector<2x32xf32>
    %850 = arith.addf %845, %849 : vector<2x32xf32>
    %851 = math.tanh %850 : vector<2x32xf32>
    %cst_196 = arith.constant 1.000000e+00 : f32
    %852 = vector.broadcast %cst_196 : f32 to vector<2x32xf32>
    %853 = arith.subf %852, %844 : vector<2x32xf32>
    %854 = arith.mulf %853, %851 : vector<2x32xf32>
    %855 = arith.mulf %844, %831 : vector<2x32xf32>
    %856 = arith.addf %854, %855 : vector<2x32xf32>
    %c4_197 = arith.constant 4 : index
    %c0_198 = arith.constant 0 : index
    %857 = vector.load %arg29[%c4_197, %c0_198] : memref<20x32xf32, #tpu.memory_space<vmem>>, vector<2x32xf32>
    tpu.vector_store %arg29[%c4_197, %c0_198], %856 {strides = array<i32>} : memref<20x32xf32, #tpu.memory_space<vmem>>, vector<2x32xf32>,
    %858 = vector.extract_strided_slice %780 {offsets = [6, 0], sizes = [2, 96], strides = [1, 1]} : vector<12x96xf32> to vector<2x96xf32>
    %cst_199 = arith.constant dense<0.000000e+00> : vector<2x96xf32>
    %859 = tpu.matmul %856, %781, %cst_199 {dimension_numbers = #tpu.dot_dimension_numbers<[1], [0], [0], [1], [0, 0, 1, 1], [], []>} : vector<2x32xf32>, vector<32x96xf32>, vector<2x96xf32> -> vector<2x96xf32>
    %860 = vector.extract_strided_slice %858 {offsets = [0, 0], sizes = [2, 64], strides = [1, 1]} : vector<2x96xf32> to vector<2x64xf32>
    %861 = vector.extract_strided_slice %859 {offsets = [0, 0], sizes = [2, 64], strides = [1, 1]} : vector<2x96xf32> to vector<2x64xf32>
    %862 = arith.addf %860, %861 : vector<2x64xf32>
    %863 = arith.negf %862 : vector<2x64xf32>
    %864 = math.exp %863 : vector<2x64xf32>
    %cst_200 = arith.constant 1.000000e+00 : f32
    %865 = vector.broadcast %cst_200 : f32 to vector<2x64xf32>
    %866 = arith.addf %865, %864 : vector<2x64xf32>
    %867 = arith.divf %865, %866 : vector<2x64xf32>
    %868 = vector.extract_strided_slice %867 {offsets = [0, 0], sizes = [2, 32], strides = [1, 1]} : vector<2x64xf32> to vector<2x32xf32>
    %869 = vector.extract_strided_slice %867 {offsets = [0, 32], sizes = [2, 32], strides = [1, 1]} : vector<2x64xf32> to vector<2x32xf32>
    %870 = vector.extract_strided_slice %858 {offsets = [0, 64], sizes = [2, 32], strides = [1, 1]} : vector<2x96xf32> to vector<2x32xf32>
    %871 = vector.extract_strided_slice %859 {offsets = [0, 64], sizes = [2, 32], strides = [1, 1]} : vector<2x96xf32> to vector<2x32xf32>
    %872 = vector.broadcast %782 : vector<1x32xf32> to vector<2x32xf32>
    %873 = arith.addf %871, %872 : vector<2x32xf32>
    %874 = arith.mulf %868, %873 : vector<2x32xf32>
    %875 = arith.addf %870, %874 : vector<2x32xf32>
    %876 = math.tanh %875 : vector<2x32xf32>
    %cst_201 = arith.constant 1.000000e+00 : f32
    %877 = vector.broadcast %cst_201 : f32 to vector<2x32xf32>
    %878 = arith.subf %877, %869 : vector<2x32xf32>
    %879 = arith.mulf %878, %876 : vector<2x32xf32>
    %880 = arith.mulf %869, %856 : vector<2x32xf32>
    %881 = arith.addf %879, %880 : vector<2x32xf32>
    %c6_202 = arith.constant 6 : index
    %c0_203 = arith.constant 0 : index
    %882 = vector.load %arg29[%c6_202, %c0_203] : memref<20x32xf32, #tpu.memory_space<vmem>>, vector<2x32xf32>
    tpu.vector_store %arg29[%c6_202, %c0_203], %881 {strides = array<i32>} : memref<20x32xf32, #tpu.memory_space<vmem>>, vector<2x32xf32>,
    %883 = vector.extract_strided_slice %780 {offsets = [8, 0], sizes = [2, 96], strides = [1, 1]} : vector<12x96xf32> to vector<2x96xf32>
    %cst_204 = arith.constant dense<0.000000e+00> : vector<2x96xf32>
    %884 = tpu.matmul %881, %781, %cst_204 {dimension_numbers = #tpu.dot_dimension_numbers<[1], [0], [0], [1], [0, 0, 1, 1], [], []>} : vector<2x32xf32>, vector<32x96xf32>, vector<2x96xf32> -> vector<2x96xf32>
    %885 = vector.extract_strided_slice %883 {offsets = [0, 0], sizes = [2, 64], strides = [1, 1]} : vector<2x96xf32> to vector<2x64xf32>
    %886 = vector.extract_strided_slice %884 {offsets = [0, 0], sizes = [2, 64], strides = [1, 1]} : vector<2x96xf32> to vector<2x64xf32>
    %887 = arith.addf %885, %886 : vector<2x64xf32>
    %888 = arith.negf %887 : vector<2x64xf32>
    %889 = math.exp %888 : vector<2x64xf32>
    %cst_205 = arith.constant 1.000000e+00 : f32
    %890 = vector.broadcast %cst_205 : f32 to vector<2x64xf32>
    %891 = arith.addf %890, %889 : vector<2x64xf32>
    %892 = arith.divf %890, %891 : vector<2x64xf32>
    %893 = vector.extract_strided_slice %892 {offsets = [0, 0], sizes = [2, 32], strides = [1, 1]} : vector<2x64xf32> to vector<2x32xf32>
    %894 = vector.extract_strided_slice %892 {offsets = [0, 32], sizes = [2, 32], strides = [1, 1]} : vector<2x64xf32> to vector<2x32xf32>
    %895 = vector.extract_strided_slice %883 {offsets = [0, 64], sizes = [2, 32], strides = [1, 1]} : vector<2x96xf32> to vector<2x32xf32>
    %896 = vector.extract_strided_slice %884 {offsets = [0, 64], sizes = [2, 32], strides = [1, 1]} : vector<2x96xf32> to vector<2x32xf32>
    %897 = vector.broadcast %782 : vector<1x32xf32> to vector<2x32xf32>
    %898 = arith.addf %896, %897 : vector<2x32xf32>
    %899 = arith.mulf %893, %898 : vector<2x32xf32>
    %900 = arith.addf %895, %899 : vector<2x32xf32>
    %901 = math.tanh %900 : vector<2x32xf32>
    %cst_206 = arith.constant 1.000000e+00 : f32
    %902 = vector.broadcast %cst_206 : f32 to vector<2x32xf32>
    %903 = arith.subf %902, %894 : vector<2x32xf32>
    %904 = arith.mulf %903, %901 : vector<2x32xf32>
    %905 = arith.mulf %894, %881 : vector<2x32xf32>
    %906 = arith.addf %904, %905 : vector<2x32xf32>
    %c8_207 = arith.constant 8 : index
    %c0_208 = arith.constant 0 : index
    %907 = vector.load %arg29[%c8_207, %c0_208] : memref<20x32xf32, #tpu.memory_space<vmem>>, vector<2x32xf32>
    tpu.vector_store %arg29[%c8_207, %c0_208], %906 {strides = array<i32>} : memref<20x32xf32, #tpu.memory_space<vmem>>, vector<2x32xf32>,
    %908 = vector.extract_strided_slice %780 {offsets = [10, 0], sizes = [2, 96], strides = [1, 1]} : vector<12x96xf32> to vector<2x96xf32>
    %cst_209 = arith.constant dense<0.000000e+00> : vector<2x96xf32>
    %909 = tpu.matmul %906, %781, %cst_209 {dimension_numbers = #tpu.dot_dimension_numbers<[1], [0], [0], [1], [0, 0, 1, 1], [], []>} : vector<2x32xf32>, vector<32x96xf32>, vector<2x96xf32> -> vector<2x96xf32>
    %910 = vector.extract_strided_slice %908 {offsets = [0, 0], sizes = [2, 64], strides = [1, 1]} : vector<2x96xf32> to vector<2x64xf32>
    %911 = vector.extract_strided_slice %909 {offsets = [0, 0], sizes = [2, 64], strides = [1, 1]} : vector<2x96xf32> to vector<2x64xf32>
    %912 = arith.addf %910, %911 : vector<2x64xf32>
    %913 = arith.negf %912 : vector<2x64xf32>
    %914 = math.exp %913 : vector<2x64xf32>
    %cst_210 = arith.constant 1.000000e+00 : f32
    %915 = vector.broadcast %cst_210 : f32 to vector<2x64xf32>
    %916 = arith.addf %915, %914 : vector<2x64xf32>
    %917 = arith.divf %915, %916 : vector<2x64xf32>
    %918 = vector.extract_strided_slice %917 {offsets = [0, 0], sizes = [2, 32], strides = [1, 1]} : vector<2x64xf32> to vector<2x32xf32>
    %919 = vector.extract_strided_slice %917 {offsets = [0, 32], sizes = [2, 32], strides = [1, 1]} : vector<2x64xf32> to vector<2x32xf32>
    %920 = vector.extract_strided_slice %908 {offsets = [0, 64], sizes = [2, 32], strides = [1, 1]} : vector<2x96xf32> to vector<2x32xf32>
    %921 = vector.extract_strided_slice %909 {offsets = [0, 64], sizes = [2, 32], strides = [1, 1]} : vector<2x96xf32> to vector<2x32xf32>
    %922 = vector.broadcast %782 : vector<1x32xf32> to vector<2x32xf32>
    %923 = arith.addf %921, %922 : vector<2x32xf32>
    %924 = arith.mulf %918, %923 : vector<2x32xf32>
    %925 = arith.addf %920, %924 : vector<2x32xf32>
    %926 = math.tanh %925 : vector<2x32xf32>
    %cst_211 = arith.constant 1.000000e+00 : f32
    %927 = vector.broadcast %cst_211 : f32 to vector<2x32xf32>
    %928 = arith.subf %927, %919 : vector<2x32xf32>
    %929 = arith.mulf %928, %926 : vector<2x32xf32>
    %930 = arith.mulf %919, %906 : vector<2x32xf32>
    %931 = arith.addf %929, %930 : vector<2x32xf32>
    %c10_212 = arith.constant 10 : index
    %c0_213 = arith.constant 0 : index
    %932 = vector.load %arg29[%c10_212, %c0_213] : memref<20x32xf32, #tpu.memory_space<vmem>>, vector<2x32xf32>
    tpu.vector_store %arg29[%c10_212, %c0_213], %931 {strides = array<i32>} : memref<20x32xf32, #tpu.memory_space<vmem>>, vector<2x32xf32>,
    %c0_214 = arith.constant 0 : index
    %c0_215 = arith.constant 0 : index
    %933 = vector.load %arg29[%c0_214, %c0_215] : memref<20x32xf32, #tpu.memory_space<vmem>>, vector<12x32xf32>
    %c0_216 = arith.constant 0 : index
    %c0_217 = arith.constant 0 : index
    %934 = vector.load %arg18[%c0_216, %c0_217] : memref<32x96xf32, #tpu.memory_space<vmem>>, vector<32x96xf32>
    %cst_218 = arith.constant dense<0.000000e+00> : vector<12x96xf32>
    %935 = tpu.matmul %933, %934, %cst_218 {dimension_numbers = #tpu.dot_dimension_numbers<[1], [0], [0], [1], [0, 0, 1, 1], [], []>} : vector<12x32xf32>, vector<32x96xf32>, vector<12x96xf32> -> vector<12x96xf32>
    %c0_219 = arith.constant 0 : index
    %c0_220 = arith.constant 0 : index
    %936 = vector.load %arg20[%c0_219, %c0_220] : memref<1x96xf32, #tpu.memory_space<vmem>>, vector<1x96xf32>
    %937 = vector.broadcast %936 : vector<1x96xf32> to vector<12x96xf32>
    %938 = arith.addf %935, %937 : vector<12x96xf32>
    %c0_221 = arith.constant 0 : index
    %c0_222 = arith.constant 0 : index
    %939 = vector.load %arg19[%c0_221, %c0_222] : memref<32x96xf32, #tpu.memory_space<vmem>>, vector<32x96xf32>
    %c0_223 = arith.constant 0 : index
    %c0_224 = arith.constant 0 : index
    %940 = vector.load %arg21[%c0_223, %c0_224] : memref<1x32xf32, #tpu.memory_space<vmem>>, vector<1x32xf32>
    %941 = vector.extract_strided_slice %938 {offsets = [0, 0], sizes = [2, 96], strides = [1, 1]} : vector<12x96xf32> to vector<2x96xf32>
    %cst_225 = arith.constant dense<0.000000e+00> : vector<2x96xf32>
    %942 = tpu.matmul %515, %939, %cst_225 {dimension_numbers = #tpu.dot_dimension_numbers<[1], [0], [0], [1], [0, 0, 1, 1], [], []>} : vector<2x32xf32>, vector<32x96xf32>, vector<2x96xf32> -> vector<2x96xf32>
    %943 = vector.extract_strided_slice %941 {offsets = [0, 0], sizes = [2, 64], strides = [1, 1]} : vector<2x96xf32> to vector<2x64xf32>
    %944 = vector.extract_strided_slice %942 {offsets = [0, 0], sizes = [2, 64], strides = [1, 1]} : vector<2x96xf32> to vector<2x64xf32>
    %945 = arith.addf %943, %944 : vector<2x64xf32>
    %946 = arith.negf %945 : vector<2x64xf32>
    %947 = math.exp %946 : vector<2x64xf32>
    %cst_226 = arith.constant 1.000000e+00 : f32
    %948 = vector.broadcast %cst_226 : f32 to vector<2x64xf32>
    %949 = arith.addf %948, %947 : vector<2x64xf32>
    %950 = arith.divf %948, %949 : vector<2x64xf32>
    %951 = vector.extract_strided_slice %950 {offsets = [0, 0], sizes = [2, 32], strides = [1, 1]} : vector<2x64xf32> to vector<2x32xf32>
    %952 = vector.extract_strided_slice %950 {offsets = [0, 32], sizes = [2, 32], strides = [1, 1]} : vector<2x64xf32> to vector<2x32xf32>
    %953 = vector.extract_strided_slice %941 {offsets = [0, 64], sizes = [2, 32], strides = [1, 1]} : vector<2x96xf32> to vector<2x32xf32>
    %954 = vector.extract_strided_slice %942 {offsets = [0, 64], sizes = [2, 32], strides = [1, 1]} : vector<2x96xf32> to vector<2x32xf32>
    %955 = vector.broadcast %940 : vector<1x32xf32> to vector<2x32xf32>
    %956 = arith.addf %954, %955 : vector<2x32xf32>
    %957 = arith.mulf %951, %956 : vector<2x32xf32>
    %958 = arith.addf %953, %957 : vector<2x32xf32>
    %959 = math.tanh %958 : vector<2x32xf32>
    %cst_227 = arith.constant 1.000000e+00 : f32
    %960 = vector.broadcast %cst_227 : f32 to vector<2x32xf32>
    %961 = arith.subf %960, %952 : vector<2x32xf32>
    %962 = arith.mulf %961, %959 : vector<2x32xf32>
    %963 = arith.mulf %952, %515 : vector<2x32xf32>
    %964 = arith.addf %962, %963 : vector<2x32xf32>
    %c0_228 = arith.constant 0 : index
    %c0_229 = arith.constant 0 : index
    %965 = vector.load %arg29[%c0_228, %c0_229] : memref<20x32xf32, #tpu.memory_space<vmem>>, vector<2x32xf32>
    tpu.vector_store %arg29[%c0_228, %c0_229], %964 {strides = array<i32>} : memref<20x32xf32, #tpu.memory_space<vmem>>, vector<2x32xf32>,
    %966 = vector.extract_strided_slice %938 {offsets = [2, 0], sizes = [2, 96], strides = [1, 1]} : vector<12x96xf32> to vector<2x96xf32>
    %cst_230 = arith.constant dense<0.000000e+00> : vector<2x96xf32>
    %967 = tpu.matmul %964, %939, %cst_230 {dimension_numbers = #tpu.dot_dimension_numbers<[1], [0], [0], [1], [0, 0, 1, 1], [], []>} : vector<2x32xf32>, vector<32x96xf32>, vector<2x96xf32> -> vector<2x96xf32>
    %968 = vector.extract_strided_slice %966 {offsets = [0, 0], sizes = [2, 64], strides = [1, 1]} : vector<2x96xf32> to vector<2x64xf32>
    %969 = vector.extract_strided_slice %967 {offsets = [0, 0], sizes = [2, 64], strides = [1, 1]} : vector<2x96xf32> to vector<2x64xf32>
    %970 = arith.addf %968, %969 : vector<2x64xf32>
    %971 = arith.negf %970 : vector<2x64xf32>
    %972 = math.exp %971 : vector<2x64xf32>
    %cst_231 = arith.constant 1.000000e+00 : f32
    %973 = vector.broadcast %cst_231 : f32 to vector<2x64xf32>
    %974 = arith.addf %973, %972 : vector<2x64xf32>
    %975 = arith.divf %973, %974 : vector<2x64xf32>
    %976 = vector.extract_strided_slice %975 {offsets = [0, 0], sizes = [2, 32], strides = [1, 1]} : vector<2x64xf32> to vector<2x32xf32>
    %977 = vector.extract_strided_slice %975 {offsets = [0, 32], sizes = [2, 32], strides = [1, 1]} : vector<2x64xf32> to vector<2x32xf32>
    %978 = vector.extract_strided_slice %966 {offsets = [0, 64], sizes = [2, 32], strides = [1, 1]} : vector<2x96xf32> to vector<2x32xf32>
    %979 = vector.extract_strided_slice %967 {offsets = [0, 64], sizes = [2, 32], strides = [1, 1]} : vector<2x96xf32> to vector<2x32xf32>
    %980 = vector.broadcast %940 : vector<1x32xf32> to vector<2x32xf32>
    %981 = arith.addf %979, %980 : vector<2x32xf32>
    %982 = arith.mulf %976, %981 : vector<2x32xf32>
    %983 = arith.addf %978, %982 : vector<2x32xf32>
    %984 = math.tanh %983 : vector<2x32xf32>
    %cst_232 = arith.constant 1.000000e+00 : f32
    %985 = vector.broadcast %cst_232 : f32 to vector<2x32xf32>
    %986 = arith.subf %985, %977 : vector<2x32xf32>
    %987 = arith.mulf %986, %984 : vector<2x32xf32>
    %988 = arith.mulf %977, %964 : vector<2x32xf32>
    %989 = arith.addf %987, %988 : vector<2x32xf32>
    %c2_233 = arith.constant 2 : index
    %c0_234 = arith.constant 0 : index
    %990 = vector.load %arg29[%c2_233, %c0_234] : memref<20x32xf32, #tpu.memory_space<vmem>>, vector<2x32xf32>
    tpu.vector_store %arg29[%c2_233, %c0_234], %989 {strides = array<i32>} : memref<20x32xf32, #tpu.memory_space<vmem>>, vector<2x32xf32>,
    %991 = vector.extract_strided_slice %938 {offsets = [4, 0], sizes = [2, 96], strides = [1, 1]} : vector<12x96xf32> to vector<2x96xf32>
    %cst_235 = arith.constant dense<0.000000e+00> : vector<2x96xf32>
    %992 = tpu.matmul %989, %939, %cst_235 {dimension_numbers = #tpu.dot_dimension_numbers<[1], [0], [0], [1], [0, 0, 1, 1], [], []>} : vector<2x32xf32>, vector<32x96xf32>, vector<2x96xf32> -> vector<2x96xf32>
    %993 = vector.extract_strided_slice %991 {offsets = [0, 0], sizes = [2, 64], strides = [1, 1]} : vector<2x96xf32> to vector<2x64xf32>
    %994 = vector.extract_strided_slice %992 {offsets = [0, 0], sizes = [2, 64], strides = [1, 1]} : vector<2x96xf32> to vector<2x64xf32>
    %995 = arith.addf %993, %994 : vector<2x64xf32>
    %996 = arith.negf %995 : vector<2x64xf32>
    %997 = math.exp %996 : vector<2x64xf32>
    %cst_236 = arith.constant 1.000000e+00 : f32
    %998 = vector.broadcast %cst_236 : f32 to vector<2x64xf32>
    %999 = arith.addf %998, %997 : vector<2x64xf32>
    %1000 = arith.divf %998, %999 : vector<2x64xf32>
    %1001 = vector.extract_strided_slice %1000 {offsets = [0, 0], sizes = [2, 32], strides = [1, 1]} : vector<2x64xf32> to vector<2x32xf32>
    %1002 = vector.extract_strided_slice %1000 {offsets = [0, 32], sizes = [2, 32], strides = [1, 1]} : vector<2x64xf32> to vector<2x32xf32>
    %1003 = vector.extract_strided_slice %991 {offsets = [0, 64], sizes = [2, 32], strides = [1, 1]} : vector<2x96xf32> to vector<2x32xf32>
    %1004 = vector.extract_strided_slice %992 {offsets = [0, 64], sizes = [2, 32], strides = [1, 1]} : vector<2x96xf32> to vector<2x32xf32>
    %1005 = vector.broadcast %940 : vector<1x32xf32> to vector<2x32xf32>
    %1006 = arith.addf %1004, %1005 : vector<2x32xf32>
    %1007 = arith.mulf %1001, %1006 : vector<2x32xf32>
    %1008 = arith.addf %1003, %1007 : vector<2x32xf32>
    %1009 = math.tanh %1008 : vector<2x32xf32>
    %cst_237 = arith.constant 1.000000e+00 : f32
    %1010 = vector.broadcast %cst_237 : f32 to vector<2x32xf32>
    %1011 = arith.subf %1010, %1002 : vector<2x32xf32>
    %1012 = arith.mulf %1011, %1009 : vector<2x32xf32>
    %1013 = arith.mulf %1002, %989 : vector<2x32xf32>
    %1014 = arith.addf %1012, %1013 : vector<2x32xf32>
    %c4_238 = arith.constant 4 : index
    %c0_239 = arith.constant 0 : index
    %1015 = vector.load %arg29[%c4_238, %c0_239] : memref<20x32xf32, #tpu.memory_space<vmem>>, vector<2x32xf32>
    tpu.vector_store %arg29[%c4_238, %c0_239], %1014 {strides = array<i32>} : memref<20x32xf32, #tpu.memory_space<vmem>>, vector<2x32xf32>,
    %1016 = vector.extract_strided_slice %938 {offsets = [6, 0], sizes = [2, 96], strides = [1, 1]} : vector<12x96xf32> to vector<2x96xf32>
    %cst_240 = arith.constant dense<0.000000e+00> : vector<2x96xf32>
    %1017 = tpu.matmul %1014, %939, %cst_240 {dimension_numbers = #tpu.dot_dimension_numbers<[1], [0], [0], [1], [0, 0, 1, 1], [], []>} : vector<2x32xf32>, vector<32x96xf32>, vector<2x96xf32> -> vector<2x96xf32>
    %1018 = vector.extract_strided_slice %1016 {offsets = [0, 0], sizes = [2, 64], strides = [1, 1]} : vector<2x96xf32> to vector<2x64xf32>
    %1019 = vector.extract_strided_slice %1017 {offsets = [0, 0], sizes = [2, 64], strides = [1, 1]} : vector<2x96xf32> to vector<2x64xf32>
    %1020 = arith.addf %1018, %1019 : vector<2x64xf32>
    %1021 = arith.negf %1020 : vector<2x64xf32>
    %1022 = math.exp %1021 : vector<2x64xf32>
    %cst_241 = arith.constant 1.000000e+00 : f32
    %1023 = vector.broadcast %cst_241 : f32 to vector<2x64xf32>
    %1024 = arith.addf %1023, %1022 : vector<2x64xf32>
    %1025 = arith.divf %1023, %1024 : vector<2x64xf32>
    %1026 = vector.extract_strided_slice %1025 {offsets = [0, 0], sizes = [2, 32], strides = [1, 1]} : vector<2x64xf32> to vector<2x32xf32>
    %1027 = vector.extract_strided_slice %1025 {offsets = [0, 32], sizes = [2, 32], strides = [1, 1]} : vector<2x64xf32> to vector<2x32xf32>
    %1028 = vector.extract_strided_slice %1016 {offsets = [0, 64], sizes = [2, 32], strides = [1, 1]} : vector<2x96xf32> to vector<2x32xf32>
    %1029 = vector.extract_strided_slice %1017 {offsets = [0, 64], sizes = [2, 32], strides = [1, 1]} : vector<2x96xf32> to vector<2x32xf32>
    %1030 = vector.broadcast %940 : vector<1x32xf32> to vector<2x32xf32>
    %1031 = arith.addf %1029, %1030 : vector<2x32xf32>
    %1032 = arith.mulf %1026, %1031 : vector<2x32xf32>
    %1033 = arith.addf %1028, %1032 : vector<2x32xf32>
    %1034 = math.tanh %1033 : vector<2x32xf32>
    %cst_242 = arith.constant 1.000000e+00 : f32
    %1035 = vector.broadcast %cst_242 : f32 to vector<2x32xf32>
    %1036 = arith.subf %1035, %1027 : vector<2x32xf32>
    %1037 = arith.mulf %1036, %1034 : vector<2x32xf32>
    %1038 = arith.mulf %1027, %1014 : vector<2x32xf32>
    %1039 = arith.addf %1037, %1038 : vector<2x32xf32>
    %c6_243 = arith.constant 6 : index
    %c0_244 = arith.constant 0 : index
    %1040 = vector.load %arg29[%c6_243, %c0_244] : memref<20x32xf32, #tpu.memory_space<vmem>>, vector<2x32xf32>
    tpu.vector_store %arg29[%c6_243, %c0_244], %1039 {strides = array<i32>} : memref<20x32xf32, #tpu.memory_space<vmem>>, vector<2x32xf32>,
    %1041 = vector.extract_strided_slice %938 {offsets = [8, 0], sizes = [2, 96], strides = [1, 1]} : vector<12x96xf32> to vector<2x96xf32>
    %cst_245 = arith.constant dense<0.000000e+00> : vector<2x96xf32>
    %1042 = tpu.matmul %1039, %939, %cst_245 {dimension_numbers = #tpu.dot_dimension_numbers<[1], [0], [0], [1], [0, 0, 1, 1], [], []>} : vector<2x32xf32>, vector<32x96xf32>, vector<2x96xf32> -> vector<2x96xf32>
    %1043 = vector.extract_strided_slice %1041 {offsets = [0, 0], sizes = [2, 64], strides = [1, 1]} : vector<2x96xf32> to vector<2x64xf32>
    %1044 = vector.extract_strided_slice %1042 {offsets = [0, 0], sizes = [2, 64], strides = [1, 1]} : vector<2x96xf32> to vector<2x64xf32>
    %1045 = arith.addf %1043, %1044 : vector<2x64xf32>
    %1046 = arith.negf %1045 : vector<2x64xf32>
    %1047 = math.exp %1046 : vector<2x64xf32>
    %cst_246 = arith.constant 1.000000e+00 : f32
    %1048 = vector.broadcast %cst_246 : f32 to vector<2x64xf32>
    %1049 = arith.addf %1048, %1047 : vector<2x64xf32>
    %1050 = arith.divf %1048, %1049 : vector<2x64xf32>
    %1051 = vector.extract_strided_slice %1050 {offsets = [0, 0], sizes = [2, 32], strides = [1, 1]} : vector<2x64xf32> to vector<2x32xf32>
    %1052 = vector.extract_strided_slice %1050 {offsets = [0, 32], sizes = [2, 32], strides = [1, 1]} : vector<2x64xf32> to vector<2x32xf32>
    %1053 = vector.extract_strided_slice %1041 {offsets = [0, 64], sizes = [2, 32], strides = [1, 1]} : vector<2x96xf32> to vector<2x32xf32>
    %1054 = vector.extract_strided_slice %1042 {offsets = [0, 64], sizes = [2, 32], strides = [1, 1]} : vector<2x96xf32> to vector<2x32xf32>
    %1055 = vector.broadcast %940 : vector<1x32xf32> to vector<2x32xf32>
    %1056 = arith.addf %1054, %1055 : vector<2x32xf32>
    %1057 = arith.mulf %1051, %1056 : vector<2x32xf32>
    %1058 = arith.addf %1053, %1057 : vector<2x32xf32>
    %1059 = math.tanh %1058 : vector<2x32xf32>
    %cst_247 = arith.constant 1.000000e+00 : f32
    %1060 = vector.broadcast %cst_247 : f32 to vector<2x32xf32>
    %1061 = arith.subf %1060, %1052 : vector<2x32xf32>
    %1062 = arith.mulf %1061, %1059 : vector<2x32xf32>
    %1063 = arith.mulf %1052, %1039 : vector<2x32xf32>
    %1064 = arith.addf %1062, %1063 : vector<2x32xf32>
    %c8_248 = arith.constant 8 : index
    %c0_249 = arith.constant 0 : index
    %1065 = vector.load %arg29[%c8_248, %c0_249] : memref<20x32xf32, #tpu.memory_space<vmem>>, vector<2x32xf32>
    tpu.vector_store %arg29[%c8_248, %c0_249], %1064 {strides = array<i32>} : memref<20x32xf32, #tpu.memory_space<vmem>>, vector<2x32xf32>,
    %1066 = vector.extract_strided_slice %938 {offsets = [10, 0], sizes = [2, 96], strides = [1, 1]} : vector<12x96xf32> to vector<2x96xf32>
    %cst_250 = arith.constant dense<0.000000e+00> : vector<2x96xf32>
    %1067 = tpu.matmul %1064, %939, %cst_250 {dimension_numbers = #tpu.dot_dimension_numbers<[1], [0], [0], [1], [0, 0, 1, 1], [], []>} : vector<2x32xf32>, vector<32x96xf32>, vector<2x96xf32> -> vector<2x96xf32>
    %1068 = vector.extract_strided_slice %1066 {offsets = [0, 0], sizes = [2, 64], strides = [1, 1]} : vector<2x96xf32> to vector<2x64xf32>
    %1069 = vector.extract_strided_slice %1067 {offsets = [0, 0], sizes = [2, 64], strides = [1, 1]} : vector<2x96xf32> to vector<2x64xf32>
    %1070 = arith.addf %1068, %1069 : vector<2x64xf32>
    %1071 = arith.negf %1070 : vector<2x64xf32>
    %1072 = math.exp %1071 : vector<2x64xf32>
    %cst_251 = arith.constant 1.000000e+00 : f32
    %1073 = vector.broadcast %cst_251 : f32 to vector<2x64xf32>
    %1074 = arith.addf %1073, %1072 : vector<2x64xf32>
    %1075 = arith.divf %1073, %1074 : vector<2x64xf32>
    %1076 = vector.extract_strided_slice %1075 {offsets = [0, 0], sizes = [2, 32], strides = [1, 1]} : vector<2x64xf32> to vector<2x32xf32>
    %1077 = vector.extract_strided_slice %1075 {offsets = [0, 32], sizes = [2, 32], strides = [1, 1]} : vector<2x64xf32> to vector<2x32xf32>
    %1078 = vector.extract_strided_slice %1066 {offsets = [0, 64], sizes = [2, 32], strides = [1, 1]} : vector<2x96xf32> to vector<2x32xf32>
    %1079 = vector.extract_strided_slice %1067 {offsets = [0, 64], sizes = [2, 32], strides = [1, 1]} : vector<2x96xf32> to vector<2x32xf32>
    %1080 = vector.broadcast %940 : vector<1x32xf32> to vector<2x32xf32>
    %1081 = arith.addf %1079, %1080 : vector<2x32xf32>
    %1082 = arith.mulf %1076, %1081 : vector<2x32xf32>
    %1083 = arith.addf %1078, %1082 : vector<2x32xf32>
    %1084 = math.tanh %1083 : vector<2x32xf32>
    %cst_252 = arith.constant 1.000000e+00 : f32
    %1085 = vector.broadcast %cst_252 : f32 to vector<2x32xf32>
    %1086 = arith.subf %1085, %1077 : vector<2x32xf32>
    %1087 = arith.mulf %1086, %1084 : vector<2x32xf32>
    %1088 = arith.mulf %1077, %1064 : vector<2x32xf32>
    %1089 = arith.addf %1087, %1088 : vector<2x32xf32>
    %c10_253 = arith.constant 10 : index
    %c0_254 = arith.constant 0 : index
    %1090 = vector.load %arg29[%c10_253, %c0_254] : memref<20x32xf32, #tpu.memory_space<vmem>>, vector<2x32xf32>
    tpu.vector_store %arg29[%c10_253, %c0_254], %1089 {strides = array<i32>} : memref<20x32xf32, #tpu.memory_space<vmem>>, vector<2x32xf32>,
    %c0_255 = arith.constant 0 : index
    %c0_256 = arith.constant 0 : index
    %1091 = vector.load %arg29[%c0_255, %c0_256] : memref<20x32xf32, #tpu.memory_space<vmem>>, vector<12x32xf32>
    %c0_257 = arith.constant 0 : index
    %c0_258 = arith.constant 0 : index
    %1092 = vector.load %arg22[%c0_257, %c0_258] : memref<32x96xf32, #tpu.memory_space<vmem>>, vector<32x96xf32>
    %cst_259 = arith.constant dense<0.000000e+00> : vector<12x96xf32>
    %1093 = tpu.matmul %1091, %1092, %cst_259 {dimension_numbers = #tpu.dot_dimension_numbers<[1], [0], [0], [1], [0, 0, 1, 1], [], []>} : vector<12x32xf32>, vector<32x96xf32>, vector<12x96xf32> -> vector<12x96xf32>
    %c0_260 = arith.constant 0 : index
    %c0_261 = arith.constant 0 : index
    %1094 = vector.load %arg24[%c0_260, %c0_261] : memref<1x96xf32, #tpu.memory_space<vmem>>, vector<1x96xf32>
    %1095 = vector.broadcast %1094 : vector<1x96xf32> to vector<12x96xf32>
    %1096 = arith.addf %1093, %1095 : vector<12x96xf32>
    %c0_262 = arith.constant 0 : index
    %c0_263 = arith.constant 0 : index
    %1097 = vector.load %arg23[%c0_262, %c0_263] : memref<32x96xf32, #tpu.memory_space<vmem>>, vector<32x96xf32>
    %c0_264 = arith.constant 0 : index
    %c0_265 = arith.constant 0 : index
    %1098 = vector.load %arg25[%c0_264, %c0_265] : memref<1x32xf32, #tpu.memory_space<vmem>>, vector<1x32xf32>
    %1099 = vector.extract_strided_slice %1096 {offsets = [0, 0], sizes = [2, 96], strides = [1, 1]} : vector<12x96xf32> to vector<2x96xf32>
    %cst_266 = arith.constant dense<0.000000e+00> : vector<2x96xf32>
    %1100 = tpu.matmul %773, %1097, %cst_266 {dimension_numbers = #tpu.dot_dimension_numbers<[1], [0], [0], [1], [0, 0, 1, 1], [], []>} : vector<2x32xf32>, vector<32x96xf32>, vector<2x96xf32> -> vector<2x96xf32>
    %1101 = vector.extract_strided_slice %1099 {offsets = [0, 0], sizes = [2, 64], strides = [1, 1]} : vector<2x96xf32> to vector<2x64xf32>
    %1102 = vector.extract_strided_slice %1100 {offsets = [0, 0], sizes = [2, 64], strides = [1, 1]} : vector<2x96xf32> to vector<2x64xf32>
    %1103 = arith.addf %1101, %1102 : vector<2x64xf32>
    %1104 = arith.negf %1103 : vector<2x64xf32>
    %1105 = math.exp %1104 : vector<2x64xf32>
    %cst_267 = arith.constant 1.000000e+00 : f32
    %1106 = vector.broadcast %cst_267 : f32 to vector<2x64xf32>
    %1107 = arith.addf %1106, %1105 : vector<2x64xf32>
    %1108 = arith.divf %1106, %1107 : vector<2x64xf32>
    %1109 = vector.extract_strided_slice %1108 {offsets = [0, 0], sizes = [2, 32], strides = [1, 1]} : vector<2x64xf32> to vector<2x32xf32>
    %1110 = vector.extract_strided_slice %1108 {offsets = [0, 32], sizes = [2, 32], strides = [1, 1]} : vector<2x64xf32> to vector<2x32xf32>
    %1111 = vector.extract_strided_slice %1099 {offsets = [0, 64], sizes = [2, 32], strides = [1, 1]} : vector<2x96xf32> to vector<2x32xf32>
    %1112 = vector.extract_strided_slice %1100 {offsets = [0, 64], sizes = [2, 32], strides = [1, 1]} : vector<2x96xf32> to vector<2x32xf32>
    %1113 = vector.broadcast %1098 : vector<1x32xf32> to vector<2x32xf32>
    %1114 = arith.addf %1112, %1113 : vector<2x32xf32>
    %1115 = arith.mulf %1109, %1114 : vector<2x32xf32>
    %1116 = arith.addf %1111, %1115 : vector<2x32xf32>
    %1117 = math.tanh %1116 : vector<2x32xf32>
    %cst_268 = arith.constant 1.000000e+00 : f32
    %1118 = vector.broadcast %cst_268 : f32 to vector<2x32xf32>
    %1119 = arith.subf %1118, %1110 : vector<2x32xf32>
    %1120 = arith.mulf %1119, %1117 : vector<2x32xf32>
    %1121 = arith.mulf %1110, %773 : vector<2x32xf32>
    %1122 = arith.addf %1120, %1121 : vector<2x32xf32>
    %c0_269 = arith.constant 0 : index
    %c0_270 = arith.constant 0 : index
    %1123 = vector.load %arg29[%c0_269, %c0_270] : memref<20x32xf32, #tpu.memory_space<vmem>>, vector<2x32xf32>
    tpu.vector_store %arg29[%c0_269, %c0_270], %1122 {strides = array<i32>} : memref<20x32xf32, #tpu.memory_space<vmem>>, vector<2x32xf32>,
    %1124 = vector.extract_strided_slice %1096 {offsets = [2, 0], sizes = [2, 96], strides = [1, 1]} : vector<12x96xf32> to vector<2x96xf32>
    %cst_271 = arith.constant dense<0.000000e+00> : vector<2x96xf32>
    %1125 = tpu.matmul %1122, %1097, %cst_271 {dimension_numbers = #tpu.dot_dimension_numbers<[1], [0], [0], [1], [0, 0, 1, 1], [], []>} : vector<2x32xf32>, vector<32x96xf32>, vector<2x96xf32> -> vector<2x96xf32>
    %1126 = vector.extract_strided_slice %1124 {offsets = [0, 0], sizes = [2, 64], strides = [1, 1]} : vector<2x96xf32> to vector<2x64xf32>
    %1127 = vector.extract_strided_slice %1125 {offsets = [0, 0], sizes = [2, 64], strides = [1, 1]} : vector<2x96xf32> to vector<2x64xf32>
    %1128 = arith.addf %1126, %1127 : vector<2x64xf32>
    %1129 = arith.negf %1128 : vector<2x64xf32>
    %1130 = math.exp %1129 : vector<2x64xf32>
    %cst_272 = arith.constant 1.000000e+00 : f32
    %1131 = vector.broadcast %cst_272 : f32 to vector<2x64xf32>
    %1132 = arith.addf %1131, %1130 : vector<2x64xf32>
    %1133 = arith.divf %1131, %1132 : vector<2x64xf32>
    %1134 = vector.extract_strided_slice %1133 {offsets = [0, 0], sizes = [2, 32], strides = [1, 1]} : vector<2x64xf32> to vector<2x32xf32>
    %1135 = vector.extract_strided_slice %1133 {offsets = [0, 32], sizes = [2, 32], strides = [1, 1]} : vector<2x64xf32> to vector<2x32xf32>
    %1136 = vector.extract_strided_slice %1124 {offsets = [0, 64], sizes = [2, 32], strides = [1, 1]} : vector<2x96xf32> to vector<2x32xf32>
    %1137 = vector.extract_strided_slice %1125 {offsets = [0, 64], sizes = [2, 32], strides = [1, 1]} : vector<2x96xf32> to vector<2x32xf32>
    %1138 = vector.broadcast %1098 : vector<1x32xf32> to vector<2x32xf32>
    %1139 = arith.addf %1137, %1138 : vector<2x32xf32>
    %1140 = arith.mulf %1134, %1139 : vector<2x32xf32>
    %1141 = arith.addf %1136, %1140 : vector<2x32xf32>
    %1142 = math.tanh %1141 : vector<2x32xf32>
    %cst_273 = arith.constant 1.000000e+00 : f32
    %1143 = vector.broadcast %cst_273 : f32 to vector<2x32xf32>
    %1144 = arith.subf %1143, %1135 : vector<2x32xf32>
    %1145 = arith.mulf %1144, %1142 : vector<2x32xf32>
    %1146 = arith.mulf %1135, %1122 : vector<2x32xf32>
    %1147 = arith.addf %1145, %1146 : vector<2x32xf32>
    %c2_274 = arith.constant 2 : index
    %c0_275 = arith.constant 0 : index
    %1148 = vector.load %arg29[%c2_274, %c0_275] : memref<20x32xf32, #tpu.memory_space<vmem>>, vector<2x32xf32>
    tpu.vector_store %arg29[%c2_274, %c0_275], %1147 {strides = array<i32>} : memref<20x32xf32, #tpu.memory_space<vmem>>, vector<2x32xf32>,
    %1149 = vector.extract_strided_slice %1096 {offsets = [4, 0], sizes = [2, 96], strides = [1, 1]} : vector<12x96xf32> to vector<2x96xf32>
    %cst_276 = arith.constant dense<0.000000e+00> : vector<2x96xf32>
    %1150 = tpu.matmul %1147, %1097, %cst_276 {dimension_numbers = #tpu.dot_dimension_numbers<[1], [0], [0], [1], [0, 0, 1, 1], [], []>} : vector<2x32xf32>, vector<32x96xf32>, vector<2x96xf32> -> vector<2x96xf32>
    %1151 = vector.extract_strided_slice %1149 {offsets = [0, 0], sizes = [2, 64], strides = [1, 1]} : vector<2x96xf32> to vector<2x64xf32>
    %1152 = vector.extract_strided_slice %1150 {offsets = [0, 0], sizes = [2, 64], strides = [1, 1]} : vector<2x96xf32> to vector<2x64xf32>
    %1153 = arith.addf %1151, %1152 : vector<2x64xf32>
    %1154 = arith.negf %1153 : vector<2x64xf32>
    %1155 = math.exp %1154 : vector<2x64xf32>
    %cst_277 = arith.constant 1.000000e+00 : f32
    %1156 = vector.broadcast %cst_277 : f32 to vector<2x64xf32>
    %1157 = arith.addf %1156, %1155 : vector<2x64xf32>
    %1158 = arith.divf %1156, %1157 : vector<2x64xf32>
    %1159 = vector.extract_strided_slice %1158 {offsets = [0, 0], sizes = [2, 32], strides = [1, 1]} : vector<2x64xf32> to vector<2x32xf32>
    %1160 = vector.extract_strided_slice %1158 {offsets = [0, 32], sizes = [2, 32], strides = [1, 1]} : vector<2x64xf32> to vector<2x32xf32>
    %1161 = vector.extract_strided_slice %1149 {offsets = [0, 64], sizes = [2, 32], strides = [1, 1]} : vector<2x96xf32> to vector<2x32xf32>
    %1162 = vector.extract_strided_slice %1150 {offsets = [0, 64], sizes = [2, 32], strides = [1, 1]} : vector<2x96xf32> to vector<2x32xf32>
    %1163 = vector.broadcast %1098 : vector<1x32xf32> to vector<2x32xf32>
    %1164 = arith.addf %1162, %1163 : vector<2x32xf32>
    %1165 = arith.mulf %1159, %1164 : vector<2x32xf32>
    %1166 = arith.addf %1161, %1165 : vector<2x32xf32>
    %1167 = math.tanh %1166 : vector<2x32xf32>
    %cst_278 = arith.constant 1.000000e+00 : f32
    %1168 = vector.broadcast %cst_278 : f32 to vector<2x32xf32>
    %1169 = arith.subf %1168, %1160 : vector<2x32xf32>
    %1170 = arith.mulf %1169, %1167 : vector<2x32xf32>
    %1171 = arith.mulf %1160, %1147 : vector<2x32xf32>
    %1172 = arith.addf %1170, %1171 : vector<2x32xf32>
    %c4_279 = arith.constant 4 : index
    %c0_280 = arith.constant 0 : index
    %1173 = vector.load %arg29[%c4_279, %c0_280] : memref<20x32xf32, #tpu.memory_space<vmem>>, vector<2x32xf32>
    tpu.vector_store %arg29[%c4_279, %c0_280], %1172 {strides = array<i32>} : memref<20x32xf32, #tpu.memory_space<vmem>>, vector<2x32xf32>,
    %1174 = vector.extract_strided_slice %1096 {offsets = [6, 0], sizes = [2, 96], strides = [1, 1]} : vector<12x96xf32> to vector<2x96xf32>
    %cst_281 = arith.constant dense<0.000000e+00> : vector<2x96xf32>
    %1175 = tpu.matmul %1172, %1097, %cst_281 {dimension_numbers = #tpu.dot_dimension_numbers<[1], [0], [0], [1], [0, 0, 1, 1], [], []>} : vector<2x32xf32>, vector<32x96xf32>, vector<2x96xf32> -> vector<2x96xf32>
    %1176 = vector.extract_strided_slice %1174 {offsets = [0, 0], sizes = [2, 64], strides = [1, 1]} : vector<2x96xf32> to vector<2x64xf32>
    %1177 = vector.extract_strided_slice %1175 {offsets = [0, 0], sizes = [2, 64], strides = [1, 1]} : vector<2x96xf32> to vector<2x64xf32>
    %1178 = arith.addf %1176, %1177 : vector<2x64xf32>
    %1179 = arith.negf %1178 : vector<2x64xf32>
    %1180 = math.exp %1179 : vector<2x64xf32>
    %cst_282 = arith.constant 1.000000e+00 : f32
    %1181 = vector.broadcast %cst_282 : f32 to vector<2x64xf32>
    %1182 = arith.addf %1181, %1180 : vector<2x64xf32>
    %1183 = arith.divf %1181, %1182 : vector<2x64xf32>
    %1184 = vector.extract_strided_slice %1183 {offsets = [0, 0], sizes = [2, 32], strides = [1, 1]} : vector<2x64xf32> to vector<2x32xf32>
    %1185 = vector.extract_strided_slice %1183 {offsets = [0, 32], sizes = [2, 32], strides = [1, 1]} : vector<2x64xf32> to vector<2x32xf32>
    %1186 = vector.extract_strided_slice %1174 {offsets = [0, 64], sizes = [2, 32], strides = [1, 1]} : vector<2x96xf32> to vector<2x32xf32>
    %1187 = vector.extract_strided_slice %1175 {offsets = [0, 64], sizes = [2, 32], strides = [1, 1]} : vector<2x96xf32> to vector<2x32xf32>
    %1188 = vector.broadcast %1098 : vector<1x32xf32> to vector<2x32xf32>
    %1189 = arith.addf %1187, %1188 : vector<2x32xf32>
    %1190 = arith.mulf %1184, %1189 : vector<2x32xf32>
    %1191 = arith.addf %1186, %1190 : vector<2x32xf32>
    %1192 = math.tanh %1191 : vector<2x32xf32>
    %cst_283 = arith.constant 1.000000e+00 : f32
    %1193 = vector.broadcast %cst_283 : f32 to vector<2x32xf32>
    %1194 = arith.subf %1193, %1185 : vector<2x32xf32>
    %1195 = arith.mulf %1194, %1192 : vector<2x32xf32>
    %1196 = arith.mulf %1185, %1172 : vector<2x32xf32>
    %1197 = arith.addf %1195, %1196 : vector<2x32xf32>
    %c6_284 = arith.constant 6 : index
    %c0_285 = arith.constant 0 : index
    %1198 = vector.load %arg29[%c6_284, %c0_285] : memref<20x32xf32, #tpu.memory_space<vmem>>, vector<2x32xf32>
    tpu.vector_store %arg29[%c6_284, %c0_285], %1197 {strides = array<i32>} : memref<20x32xf32, #tpu.memory_space<vmem>>, vector<2x32xf32>,
    %1199 = vector.extract_strided_slice %1096 {offsets = [8, 0], sizes = [2, 96], strides = [1, 1]} : vector<12x96xf32> to vector<2x96xf32>
    %cst_286 = arith.constant dense<0.000000e+00> : vector<2x96xf32>
    %1200 = tpu.matmul %1197, %1097, %cst_286 {dimension_numbers = #tpu.dot_dimension_numbers<[1], [0], [0], [1], [0, 0, 1, 1], [], []>} : vector<2x32xf32>, vector<32x96xf32>, vector<2x96xf32> -> vector<2x96xf32>
    %1201 = vector.extract_strided_slice %1199 {offsets = [0, 0], sizes = [2, 64], strides = [1, 1]} : vector<2x96xf32> to vector<2x64xf32>
    %1202 = vector.extract_strided_slice %1200 {offsets = [0, 0], sizes = [2, 64], strides = [1, 1]} : vector<2x96xf32> to vector<2x64xf32>
    %1203 = arith.addf %1201, %1202 : vector<2x64xf32>
    %1204 = arith.negf %1203 : vector<2x64xf32>
    %1205 = math.exp %1204 : vector<2x64xf32>
    %cst_287 = arith.constant 1.000000e+00 : f32
    %1206 = vector.broadcast %cst_287 : f32 to vector<2x64xf32>
    %1207 = arith.addf %1206, %1205 : vector<2x64xf32>
    %1208 = arith.divf %1206, %1207 : vector<2x64xf32>
    %1209 = vector.extract_strided_slice %1208 {offsets = [0, 0], sizes = [2, 32], strides = [1, 1]} : vector<2x64xf32> to vector<2x32xf32>
    %1210 = vector.extract_strided_slice %1208 {offsets = [0, 32], sizes = [2, 32], strides = [1, 1]} : vector<2x64xf32> to vector<2x32xf32>
    %1211 = vector.extract_strided_slice %1199 {offsets = [0, 64], sizes = [2, 32], strides = [1, 1]} : vector<2x96xf32> to vector<2x32xf32>
    %1212 = vector.extract_strided_slice %1200 {offsets = [0, 64], sizes = [2, 32], strides = [1, 1]} : vector<2x96xf32> to vector<2x32xf32>
    %1213 = vector.broadcast %1098 : vector<1x32xf32> to vector<2x32xf32>
    %1214 = arith.addf %1212, %1213 : vector<2x32xf32>
    %1215 = arith.mulf %1209, %1214 : vector<2x32xf32>
    %1216 = arith.addf %1211, %1215 : vector<2x32xf32>
    %1217 = math.tanh %1216 : vector<2x32xf32>
    %cst_288 = arith.constant 1.000000e+00 : f32
    %1218 = vector.broadcast %cst_288 : f32 to vector<2x32xf32>
    %1219 = arith.subf %1218, %1210 : vector<2x32xf32>
    %1220 = arith.mulf %1219, %1217 : vector<2x32xf32>
    %1221 = arith.mulf %1210, %1197 : vector<2x32xf32>
    %1222 = arith.addf %1220, %1221 : vector<2x32xf32>
    %c8_289 = arith.constant 8 : index
    %c0_290 = arith.constant 0 : index
    %1223 = vector.load %arg29[%c8_289, %c0_290] : memref<20x32xf32, #tpu.memory_space<vmem>>, vector<2x32xf32>
    tpu.vector_store %arg29[%c8_289, %c0_290], %1222 {strides = array<i32>} : memref<20x32xf32, #tpu.memory_space<vmem>>, vector<2x32xf32>,
    %1224 = vector.extract_strided_slice %1096 {offsets = [10, 0], sizes = [2, 96], strides = [1, 1]} : vector<12x96xf32> to vector<2x96xf32>
    %cst_291 = arith.constant dense<0.000000e+00> : vector<2x96xf32>
    %1225 = tpu.matmul %1222, %1097, %cst_291 {dimension_numbers = #tpu.dot_dimension_numbers<[1], [0], [0], [1], [0, 0, 1, 1], [], []>} : vector<2x32xf32>, vector<32x96xf32>, vector<2x96xf32> -> vector<2x96xf32>
    %1226 = vector.extract_strided_slice %1224 {offsets = [0, 0], sizes = [2, 64], strides = [1, 1]} : vector<2x96xf32> to vector<2x64xf32>
    %1227 = vector.extract_strided_slice %1225 {offsets = [0, 0], sizes = [2, 64], strides = [1, 1]} : vector<2x96xf32> to vector<2x64xf32>
    %1228 = arith.addf %1226, %1227 : vector<2x64xf32>
    %1229 = arith.negf %1228 : vector<2x64xf32>
    %1230 = math.exp %1229 : vector<2x64xf32>
    %cst_292 = arith.constant 1.000000e+00 : f32
    %1231 = vector.broadcast %cst_292 : f32 to vector<2x64xf32>
    %1232 = arith.addf %1231, %1230 : vector<2x64xf32>
    %1233 = arith.divf %1231, %1232 : vector<2x64xf32>
    %1234 = vector.extract_strided_slice %1233 {offsets = [0, 0], sizes = [2, 32], strides = [1, 1]} : vector<2x64xf32> to vector<2x32xf32>
    %1235 = vector.extract_strided_slice %1233 {offsets = [0, 32], sizes = [2, 32], strides = [1, 1]} : vector<2x64xf32> to vector<2x32xf32>
    %1236 = vector.extract_strided_slice %1224 {offsets = [0, 64], sizes = [2, 32], strides = [1, 1]} : vector<2x96xf32> to vector<2x32xf32>
    %1237 = vector.extract_strided_slice %1225 {offsets = [0, 64], sizes = [2, 32], strides = [1, 1]} : vector<2x96xf32> to vector<2x32xf32>
    %1238 = vector.broadcast %1098 : vector<1x32xf32> to vector<2x32xf32>
    %1239 = arith.addf %1237, %1238 : vector<2x32xf32>
    %1240 = arith.mulf %1234, %1239 : vector<2x32xf32>
    %1241 = arith.addf %1236, %1240 : vector<2x32xf32>
    %1242 = math.tanh %1241 : vector<2x32xf32>
    %cst_293 = arith.constant 1.000000e+00 : f32
    %1243 = vector.broadcast %cst_293 : f32 to vector<2x32xf32>
    %1244 = arith.subf %1243, %1235 : vector<2x32xf32>
    %1245 = arith.mulf %1244, %1242 : vector<2x32xf32>
    %1246 = arith.mulf %1235, %1222 : vector<2x32xf32>
    %1247 = arith.addf %1245, %1246 : vector<2x32xf32>
    %c10_294 = arith.constant 10 : index
    %c0_295 = arith.constant 0 : index
    %1248 = vector.load %arg29[%c10_294, %c0_295] : memref<20x32xf32, #tpu.memory_space<vmem>>, vector<2x32xf32>
    tpu.vector_store %arg29[%c10_294, %c0_295], %1247 {strides = array<i32>} : memref<20x32xf32, #tpu.memory_space<vmem>>, vector<2x32xf32>,
    %c0_296 = arith.constant 0 : index
    %c0_297 = arith.constant 0 : index
    %1249 = vector.load %arg29[%c0_296, %c0_297] : memref<20x32xf32, #tpu.memory_space<vmem>>, vector<12x32xf32>
    %c0_298 = arith.constant 0 : index
    %c0_299 = arith.constant 0 : index
    %1250 = vector.load %arg26[%c0_298, %c0_299] : memref<32x5xf32, #tpu.memory_space<vmem>>, vector<32x5xf32>
    %cst_300 = arith.constant dense<0.000000e+00> : vector<12x5xf32>
    %1251 = tpu.matmul %1249, %1250, %cst_300 {dimension_numbers = #tpu.dot_dimension_numbers<[1], [0], [0], [1], [0, 0, 1, 1], [], []>} : vector<12x32xf32>, vector<32x5xf32>, vector<12x5xf32> -> vector<12x5xf32>
    %c0_301 = arith.constant 0 : index
    %c0_302 = arith.constant 0 : index
    %1252 = vector.load %arg27[%c0_301, %c0_302] : memref<1x5xf32, #tpu.memory_space<vmem>>, vector<1x5xf32>
    %1253 = vector.broadcast %1252 : vector<1x5xf32> to vector<12x5xf32>
    %1254 = arith.addf %1251, %1253 : vector<12x5xf32>
    %c0_303 = arith.constant 0 : index
    %c0_304 = arith.constant 0 : index
    %1255 = vector.load %arg28[%c0_303, %c0_304] : memref<12x5xf32, #tpu.memory_space<vmem>>, vector<12x5xf32>
    tpu.vector_store %arg28[%c0_303, %c0_304], %1254 {strides = array<i32>} : memref<12x5xf32, #tpu.memory_space<vmem>>, vector<12x5xf32>,
    return
  }
}

</mosaic_0001>

<bundles_post_ra>
// kernel: encoder_decoder_forward.1
= control target key start
LH: loop header
LB: loop body
LE: loop exit
PB: predicated region body
PF: predicated region fallthrough
CT: control target
= control target key end

     0   :  { %s5988_s0 = inlined_call_operand.vmem [shape: f32[20,4], index: 0, kind: input, shape index: {}]   ;;  %s5989_s1 = inlined_call_operand.vmem [shape: f32[12,3], index: 1, kind: input, shape index: {}]   ;;  %s5990_s2 = inlined_call_operand.vmem [shape: f32[4,96], index: 2, kind: input, shape index: {}]   ;;  %s5991_s3 = inlined_call_operand.vmem [shape: f32[32,96], index: 3, kind: input, shape index: {}]   ;;  %s5992_s4 = inlined_call_operand.vmem [shape: f32[1,96], index: 4, kind: input, shape index: {}]   ;;  %s5993_s5 = inlined_call_operand.vmem [shape: f32[1,32], index: 5, kind: input, shape index: {}]   ;;  %s5994_s6 = inlined_call_operand.vmem [shape: f32[32,96], index: 6, kind: input, shape index: {}]   ;;  %s5995_s7 = inlined_call_operand.vmem [shape: f32[32,96], index: 7, kind: input, shape index: {}]   ;;  %s5996_s8 = inlined_call_operand.vmem [shape: f32[1,96], index: 8, kind: input, shape index: {}]   ;;  %s5997_s9 = inlined_call_operand.vmem [shape: f32[1,32], index: 9, kind: input, shape index: {}]   ;;  %s5998_s10 = inlined_call_operand.vmem [shape: f32[32,96], index: 10, kind: input, shape index: {}]   ;;  %s5999_s11 = inlined_call_operand.hbm [shape: f32[32,96], index: 11, kind: input, shape index: {}]   ;;  %s6000_s12 = inlined_call_operand.vmem [shape: f32[1,96], index: 12, kind: input, shape index: {}]   ;;  %s6001_s13 = inlined_call_operand.vmem [shape: f32[1,32], index: 13, kind: input, shape index: {}]   ;;  %s6002_s14 = inlined_call_operand.vmem [shape: f32[3,96], index: 14, kind: input, shape index: {}]   ;;  %s6003_s15 = inlined_call_operand.hbm [shape: f32[32,96], index: 15, kind: input, shape index: {}]   ;;  %s6004_s16 = inlined_call_operand.vmem [shape: f32[1,96], index: 16, kind: input, shape index: {}]   ;;  %s6005_s17 = inlined_call_operand.vmem [shape: f32[1,32], index: 17, kind: input, shape index: {}]   ;;  %s6006_s18 = inlined_call_operand.hbm [shape: f32[32,96], index: 18, kind: input, shape index: {}]   ;;  %s6007_s19 = inlined_call_operand.hbm [shape: f32[32,96], index: 19, kind: input, shape index: {}]   ;;  %s6008_s20 = inlined_call_operand.vmem [shape: f32[1,96], index: 20, kind: input, shape index: {}]   ;;  %s6009_s21 = inlined_call_operand.vmem [shape: f32[1,32], index: 21, kind: input, shape index: {}]   ;;  %s6010_s22 = inlined_call_operand.hbm [shape: f32[32,96], index: 22, kind: input, shape index: {}]   ;;  %s6011_s23 = inlined_call_operand.hbm [shape: f32[32,96], index: 23, kind: input, shape index: {}]   ;;  %s6012_s24 = inlined_call_operand.vmem [shape: f32[1,96], index: 24, kind: input, shape index: {}]   ;;  %s6013_s25 = inlined_call_operand.vmem [shape: f32[1,32], index: 25, kind: input, shape index: {}]   ;;  %s6014_s26 = inlined_call_operand.vmem [shape: f32[32,5], index: 26, kind: input, shape index: {}]   ;;  %s6015_s27 = inlined_call_operand.vmem [shape: f32[1,5], index: 27, kind: input, shape index: {}]   ;;  %s6016_s28 = inlined_call_operand.vmem [shape: f32[12,5], index: 28, kind: output, shape index: {}]  }
   0x1   :  { %6025 = sst [smem:[#allocation17_spill]] %s5988_s0 }
   0x2   :  { %6026 = sst [smem:[#allocation18_spill]] %s5989_s1 }
   0x3   :  { %6027 = sst [smem:[#allocation19_spill]] %s5990_s2 }
   0x4   :  { %6028 = sst [smem:[#allocation20_spill]] %s5991_s3 }
   0x5   :  { %6029 = sst [smem:[#allocation21_spill]] %s5992_s4 }
   0x6   :  { %6030 = sst [smem:[#allocation22_spill]] %s5993_s5 }
   0x7   :  { %6031 = sst [smem:[#allocation23_spill]] %s5994_s6 }
   0x8   :  { %6032 = sst [smem:[#allocation24_spill]] %s5995_s7 }
   0x9   :  { %6033 = sst [smem:[#allocation25_spill]] %s5996_s8 }
   0xa   :  { %6034 = sst [smem:[#allocation26_spill]] %s5997_s9 }
   0xb   :  { %6035 = sst [smem:[#allocation27_spill]] %s5998_s10 }
   0xc   :  { %6036 = sst [smem:[#allocation28_spill]] %s5999_s11 }
   0xd   :  { %6037 = sst [smem:[#allocation29_spill]] %s6000_s12 }
   0xe   :  { %33 = vsyncpa [#allocation4], 0 }
   0xf   :  { %34 = vsyncpa [#allocation6], 0 }
  0x10   :  { %35 = vsyncpa [#allocation9], 0 }
  0x11   :  { %36 = vsyncpa [#allocation12], 0  ;;  %s82_s9 = sshll.u32 %s6003_s15, 4  ;;  %s4649_s30 = smov [#allocation5]   ;;  %s83_s9 = int_to_ptr.hbm [resolvable:$true] %s82_s9 }
  0x12   :  { %s84_s3 = sshll.u32 %s4649_s30, 4  ;;  %s112_s0 = sshll.u32 %s6007_s19, 4  ;;  %s85_s3 = int_to_ptr.vmem [resolvable:$true] %s84_s3  ;;  %s113_s0 = int_to_ptr.hbm [resolvable:$true] %s112_s0 }
  0x13   :  { %s4650_s11 = smov 128   ;;  %s4651_s29 = smov 8  }
  0x14   :  { %90 = dma.hbm_to_vmem [thread:$0]  %s83_s9, 512, %s85_s3, [#allocation6], %s4650_s11, %s4650_s11, %s4651_s29  }
  0x15   :  { %s4652_s2 = smov [#allocation8]   ;;  %s6038_s15 = sld [smem:[#allocation28_spill]] }
  0x16   :  { %s114_s7 = sshll.u32 %s4652_s2, 4  ;;  %s99_s5 = sshll.u32 %s6006_s18, 4  ;;  %s115_s7 = int_to_ptr.vmem [resolvable:$true] %s114_s7  ;;  %s100_s5 = int_to_ptr.hbm [resolvable:$true] %s99_s5 }
  0x17   :  { %120 = dma.hbm_to_vmem [thread:$0]  %s113_s0, 512, %s115_s7, [#allocation9], %s4650_s11, %s4650_s11, %s4651_s29  }
  0x18   :  { %s4653_s30 = smov [#allocation3]   ;;  %s4654_s9 = smov [#allocation7]  }
  0x19   :  { %s65_s6 = sshll.u32 %s4653_s30, 4  ;;  %s101_s3 = sshll.u32 %s4654_s9, 4  ;;  %s66_s6 = int_to_ptr.vmem [resolvable:$true] %s65_s6  ;;  %s102_s3 = int_to_ptr.vmem [resolvable:$true] %s101_s3 }
  0x1a   :  { %s129_s12 = sshll.u32 %s6010_s22, 4  ;;  %s142_s7 = sshll.u32 %s6011_s23, 4  ;;  %s130_s12 = int_to_ptr.hbm [resolvable:$true] %s129_s12  ;;  %s143_s7 = int_to_ptr.hbm [resolvable:$true] %s142_s7 }
  0x1b   :  { %s63_s4 = sshll.u32 %s6038_s15, 4  ;;  %s4655_s1 = smov [#allocation10]   ;;  %s64_s4 = int_to_ptr.hbm [resolvable:$true] %s63_s4 }
  0x1c   :  { %71 = dma.hbm_to_vmem [thread:$0]  %s64_s4, 512, %s66_s6, [#allocation4], %s4650_s11, %s4650_s11, %s4651_s29  }
  0x1d   :  { %107 = dma.hbm_to_vmem [thread:$0]  %s100_s5, 512, %s102_s3, [#allocation6], %s4650_s11, %s4650_s11, %s4651_s29  }
  0x1e   :  { %s131_s15 = sshll.u32 %s4655_s1, 4  ;;  %s4656_s4 = smov [#allocation11]   ;;  %s132_s15 = int_to_ptr.vmem [resolvable:$true] %s131_s15 }
  0x1f   :  { %137 = dma.hbm_to_vmem [thread:$0]  %s130_s12, 512, %s132_s15, [#allocation9], %s4650_s11, %s4650_s11, %s4651_s29  }
  0x20   :  { %s144_s22 = sshll.u32 %s4656_s4, 4  ;;  %s145_s22 = int_to_ptr.vmem [resolvable:$true] %s144_s22 }
  0x21   :  { %150 = dma.hbm_to_vmem [thread:$0]  %s143_s7, 512, %s145_s22, [#allocation12], %s4650_s11, %s4650_s11, %s4651_s29  }
  0x22   :  { %4641 = dma.done.wait [#allocation4], 512  }
  0x23   :  { %4642 = vsyncadd [#allocation4], 4294966784 }
  0x24   :  { %4643 = dma.done.wait [#allocation6], 1024  }
  0x25   :  { %4644 = vsyncadd [#allocation6], 4294966272 }
  0x26   :  { %4645 = dma.done.wait [#allocation9], 1024  }
  0x27   :  { %4646 = vsyncadd [#allocation9], 4294966272 }
  0x28   :  { %4647 = dma.done.wait [#allocation12], 512  }
  0x29   :  { %4648 = vsyncadd [#allocation12], 4294966784  ;;  %vm201_vm0 = vcmask 1043456   ;;  %vm191_vm1 = vcmask 31744   ;;  %s6039_s8 = sld [smem:[#allocation20_spill]]  ;;  %s4657_s4 = smov 64  }
  0x2a   :  { %s6040_s6 = sld [smem:[#allocation19_spill]]  ;;  %v4658_v7 = vmov 0.0   ;;  %vm309_vm6 = vcmask 254976   ;;  %vm236_vm7 = vcmask 261120  }
  0x2b   :  { %s6041_s12 = sld [smem:[#allocation17_spill]] }
  0x2c   :  { %s6042_s7 = sld [smem:[#allocation22_spill]] }
  0x2d   :  { %s6043_s19 = sld [smem:[#allocation21_spill]] }
  0x2e   :  { %s6044_s3 = sld [smem:[#allocation24_spill]] }
  0x2f   :  { %v4844_v0 = vld [vmem:[%s6039_s8 + $0x18] sm:$0xff]  ;;  %v4849_v1 = vld [vmem:[%s6039_s8 + $0x10] sm:$0xff]  ;;  %v4858_v3 = vld [vmem:[%s6039_s8 + $0x8] sm:$0xff]  ;;  %s6045_s22 = sld [smem:[#allocation23_spill]] }
  0x30   :  { %v186_v2 = vld [vmem:[%s6040_s6] sm:$0xf]  ;;  %252 = vmatpush.msra.mxu1 %v4844_v0  ;;  %325 = vmatpush.msra.mxu2 %v4844_v0  ;;  %s6049_s6 = sld [smem:[#allocation29_spill]] }
  0x31   :  { %4071 = vmatpush.msk.msra.mxu0 %vm201_vm0, %v186_v2  ;;  %v183_v4 = vld [vmem:[%s6041_s12] sm:$0xff]  ;;  %624 = vmatpush.msra.mxu3 %v4844_v0  ;;  %s6050_s0 = sld [smem:[#allocation18_spill]] }
  0x32   :  { %4072 = vmatmul.msk.f32.vlgmr.msra.gmra.mxu0 %vm191_vm1, %v183_v4  ;;  %v4194_v5 = vld [vmem:[%s6042_s7] ss:$0 sm:$0xff]  ;;  %253 = vmatpush.msra.mxu1 %v4849_v1  ;;  %s6048_s7 = sld [smem:[#allocation27_spill]] }
  0x33   :  { %v4872_v6 = vld [vmem:[%s6039_s8] sm:$0xff]  ;;  %402 = vmatpush.msrb.mxu0 %v4844_v0  ;;  %282 = vrot.lane.b32.xlu0 %v4194_v5, %s4657_s4  ;;  %s4659_s8 = smov 96  }
  0x34   :  { %326 = vmatpush.msra.mxu2 %v4849_v1  ;;  %254 = vmatpush.msra.mxu1 %v4858_v3  ;;  %v4916_v11 = vld [vmem:[%s6043_s19] ss:$0 sm:$0xff] }
  0x35   :  { %403 = vmatpush.msrb.mxu0 %v4849_v1  ;;  %625 = vmatpush.msra.mxu3 %v4849_v1 }
  0x36   :  { %327 = vmatpush.msra.mxu2 %v4858_v3  ;;  %255 = vmatpush.msra.mxu1 %v4872_v6 }
  0x37   :  { %404 = vmatpush.msrb.mxu0 %v4858_v3  ;;  %256 = vmatmul.f32.vlgmr.msra.gmra.mxu1 %v4658_v7 }
  0x38   :  { %328 = vmatpush.msra.mxu2 %v4872_v6  ;;  %479 = vmatpush.msrb.mxu1 %v4844_v0 }
  0x39   :  { %405 = vmatpush.msrb.mxu0 %v4872_v6  ;;  %626 = vmatpush.msra.mxu3 %v4858_v3 }
  0x3a   :  { %556 = vmatpush.msrb.mxu2 %v4844_v0  ;;  %480 = vmatpush.msrb.mxu1 %v4849_v1 }
  0x3b   :  { %920 = vmatpush.msra.mxu0 %v4844_v0  ;;  %627 = vmatpush.msra.mxu3 %v4872_v6 }
  0x3c   :  { %557 = vmatpush.msrb.mxu2 %v4849_v1  ;;  %481 = vmatpush.msrb.mxu1 %v4858_v3 }
  0x3d   :  { %921 = vmatpush.msra.mxu0 %v4849_v1  ;;  %852 = vmatpush.msrb.mxu3 %v4844_v0 }
  0x3e   :  { %558 = vmatpush.msrb.mxu2 %v4858_v3  ;;  %482 = vmatpush.msrb.mxu1 %v4872_v6 }
  0x3f   :  { %853 = vmatpush.msrb.mxu3 %v4849_v1  ;;  %922 = vmatpush.msra.mxu0 %v4858_v3 }
  0x40   :  { %559 = vmatpush.msrb.mxu2 %v4872_v6  ;;  %700 = vmatpush.msra.mxu1 %v4844_v0 }
  0x41   :  { %854 = vmatpush.msrb.mxu3 %v4858_v3  ;;  %923 = vmatpush.msra.mxu0 %v4872_v6 }
  0x42   :  { %701 = vmatpush.msra.mxu1 %v4849_v1 }
  0x43   :  { %855 = vmatpush.msrb.mxu3 %v4872_v6 }
  0x44   :  { %702 = vmatpush.msra.mxu1 %v4858_v3 }
  0x46   :  { %703 = vmatpush.msra.mxu1 %v4872_v6 }
  0xa5   :  { %v4909_v8 = vpop.permute.xlu0 %282 }
  0xaf   :  { %v222_v12 = vpop.f32.mrf.mxu0 }
  0xb0   :  { %v4919_v13 = vadd.f32 %v4916_v11, %v222_v12 }
  0xb4   :  { %v257_v9 = vpop.f32.mrf.mxu1 }
  0xb5   :  { %v285_v10 = vadd.f32 %v4909_v8, %v257_v9  ;;  %v260_v14 = vadd.f32 %v257_v9, %v4919_v13 }
  0xb7   :  { %287 = vrot.lane.b32.xlu0 %v285_v10, %s4657_s4  ;;  %v4075_v15 = vmul.f32 -1.442695, %v260_v14 }
  0xb9   :  { %4207 = vpow2.f32 %v4075_v15 }
  0xbf   :  { %v4208_v16 = vpop.eup %4207 }
  0xc0   :  { %v264_v17 = vadd.f32 1.0, %v4208_v16 }
  0xc2   :  { %4209 = vrcp.f32 %v264_v17  ;;  %v276_v23 = vand.u32 2147483648, %v264_v17  ;;  %vm270_vm3 = vweird.f32 %v264_v17  ;;  %v274_v24 = vand.u32 2147483647, %v264_v17 }
  0xc4   :  { %v277_v26 = vor.u32 1.1754944e-38, %v276_v23  ;;  %vm275_vm5 = vcmp.eq.f32.partialorder %v274_v24, 8.507059e+37 }
  0xc8   :  { %v4210_v18 = vpop.eup %4209 }
  0xc9   :  { %v266_v19 = vmul.f32 %v4210_v18, %v264_v17  ;;  %vm271_vm2 = vweird.f32 %v4210_v18 }
  0xca   :  { %vm272_vm4 = vmor %vm270_vm3, %vm271_vm2 }
  0xcb   :  { %v267_v20 = vsub.f32 1.0, %v266_v19 }
  0xcd   :  { %v268_v21 = vmul.f32 %v4210_v18, %v267_v20 }
  0xcf   :  { %v269_v22 = vadd.f32 %v4210_v18, %v268_v21 }
  0xd1   :  { %v273_v25 = vsel %vm272_vm4, %v4210_v18, %v269_v22 }
  0xd2   :  { %v278_v28 = vsel %vm275_vm5, %v277_v26, %v273_v25 }
  0xd3   :  { %v297_v33 = vsub.f32 1.0, %v278_v28  ;;  %v303_v36 = vmul.f32 0.0, %v278_v28 }
 0x129   :  { %v288_v27 = vpop.permute.xlu0 %287 }
 0x12a   :  { %v290_v29 = vmul.f32 %v288_v27, %v278_v28 }
 0x12c   :  { %292 = vrot.lane.b32.xlu1 %v290_v29, %s4657_s4 }
 0x19e   :  { %v293_v30 = vpop.permute.xlu1 %292 }
 0x19f   :  { %v295_v31 = vadd.f32 %v293_v30, %v4919_v13 }
 0x1a1   :  { %4211 = vtanh.f32 %v295_v31 }
 0x1a7   :  { %v4212_v32 = vpop.eup %4211 }
 0x1a8   :  { %299 = vrot.lane.b32.xlu1 %v4212_v32, %s4659_s8 }
 0x21a   :  { %v300_v34 = vpop.permute.xlu1 %299 }
 0x21b   :  { %v302_v35 = vmul.f32 %v300_v34, %v297_v33 }
 0x21d   :  { %v304_v37 = vadd.f32 %v303_v36, %v302_v35 }
 0x21f   :  { %306 = vrot.lane.b32.xlu2 %v304_v37, %s4659_s8  ;;  %v375_v55 = vrot.slane %v304_v37, 6 }
 0x279   :  { %v307_v38 = vpop.permute.xlu2 %306 }
 0x27a   :  { %310 = vst.msk [vmem:[#allocation2] sm:$0x3] %vm309_vm6, %v307_v38  ;;  %4076 = vmatmul.msk.f32.vlgmr.msra.gmra.mxu2 %vm236_vm7, %v307_v38 }
 0x27b   :  { %776 = vmatpush.msra.mxu2 %v4844_v0  ;;  %v184_v0 = vld [vmem:[%s6041_s12 + $0x8] sm:$0xff] }
 0x27c   :  { %4073 = vmatmul.msk.f32.gmra.mxu0 %vm191_vm1, %v184_v0 }
 0x27d   :  { %777 = vmatpush.msra.mxu2 %v4849_v1  ;;  %v185_v1 = vld [vmem:[%s6041_s12 + $0x10] sm:$0xf]  ;;  %s6047_s12 = sld [smem:[#allocation25_spill]] }
 0x27f   :  { %778 = vmatpush.msra.mxu2 %v4858_v3 }
 0x281   :  { %779 = vmatpush.msra.mxu2 %v4872_v6 }
 0x284   :  { %4074 = vmatmul.msk.f32.gmra.mxu0 %vm191_vm1, %v185_v1 }
 0x2f9   :  { %v4951_v10 = vpop.f32.mrf.mxu0 }
 0x2fd   :  { %v330_v39 = vpop.f32.mrf.mxu2 }
 0x2fe   :  { %v334_v40 = vrot.slane %v330_v39, 6  ;;  %v356_v41 = vadd.f32 %v330_v39, %v4909_v8 }
 0x300   :  { %v336_v42 = vadd.f32 %v334_v40, %v4919_v13  ;;  %v358_v43 = vrot.slane %v356_v41, 6 }
 0x301   :  { %v4953_v12 = vpop.f32.mrf.mxu0 }
 0x302   :  { %v4077_v44 = vmul.f32 -1.442695, %v336_v42  ;;  %359 = vrot.lane.b32.xlu2 %v358_v43, %s4657_s4 }
 0x304   :  { %4213 = vpow2.f32 %v4077_v44 }
 0x30a   :  { %v4214_v45 = vpop.eup %4213 }
 0x30b   :  { %v340_v46 = vadd.f32 1.0, %v4214_v45 }
 0x30d   :  { %4215 = vrcp.f32 %v340_v46  ;;  %v352_v50 = vand.u32 2147483648, %v340_v46  ;;  %v350_v52 = vand.u32 2147483647, %v340_v46  ;;  %vm346_vm9 = vweird.f32 %v340_v46 }
 0x30f   :  { %v353_v54 = vor.u32 1.1754944e-38, %v352_v50  ;;  %vm351_vm11 = vcmp.eq.f32.partialorder %v350_v52, 8.507059e+37 }
 0x313   :  { %v4216_v47 = vpop.eup %4215 }
 0x314   :  { %v342_v48 = vmul.f32 %v4216_v47, %v340_v46  ;;  %vm347_vm8 = vweird.f32 %v4216_v47 }
 0x315   :  { %vm348_vm10 = vmor %vm346_vm9, %vm347_vm8 }
 0x316   :  { %v343_v49 = vsub.f32 1.0, %v342_v48 }
 0x318   :  { %v344_v51 = vmul.f32 %v4216_v47, %v343_v49 }
 0x31a   :  { %v345_v53 = vadd.f32 %v4216_v47, %v344_v51 }
 0x31c   :  { %v349_v56 = vsel %vm348_vm10, %v4216_v47, %v345_v53 }
 0x31d   :  { %v354_v57 = vsel %vm351_vm11, %v353_v54, %v349_v56 }
 0x31e   :  { %v377_v58 = vmul.f32 %v375_v55, %v354_v57  ;;  %v369_v2 = vsub.f32 1.0, %v354_v57 }
 0x35c   :  { %v360_v59 = vpop.permute.xlu2 %359 }
 0x35d   :  { %v362_v60 = vmul.f32 %v360_v59, %v354_v57 }
 0x35f   :  { %364 = vrot.lane.b32.xlu0 %v362_v60, %s4657_s4 }
 0x3d1   :  { %v365_v61 = vpop.permute.xlu0 %364 }
 0x3d2   :  { %v367_v62 = vadd.f32 %v365_v61, %v4919_v13 }
 0x3d4   :  { %4217 = vtanh.f32 %v367_v62 }
 0x3da   :  { %v4218_v63 = vpop.eup %4217 }
 0x3db   :  { %371 = vrot.lane.b32.xlu1 %v4218_v63, %s4659_s8 }
 0x44d   :  { %v372_v3 = vpop.permute.xlu1 %371 }
 0x44e   :  { %v374_v4 = vmul.f32 %v372_v3, %v369_v2 }
 0x450   :  { %v4946_v5 = vadd.f32 %v377_v58, %v374_v4 }
 0x452   :  { %v385_v6 = vrot.slane %v4946_v5, 2  ;;  %v452_v38 = vrot.slane %v4946_v5, 6 }
 0x454   :  { %386 = vrot.lane.b32.xlu2 %v385_v6, %s4659_s8 }
 0x4ae   :  { %v387_v9 = vpop.permute.xlu2 %386 }
 0x4af   :  { %4078 = vmatmul.msk.f32.vlgmr.msrb.gmra.mxu0 %vm236_vm7, %v387_v9 }
 0x52c   :  { %v407_v14 = vpop.f32.mrf.mxu0 }
 0x52d   :  { %v433_v15 = vadd.f32 %v407_v14, %v4909_v8  ;;  %v411_v17 = vrot.slane %v407_v14, 4 }
 0x52f   :  { %v435_v16 = vrot.slane %v433_v15, 4  ;;  %v413_v18 = vadd.f32 %v411_v17, %v4919_v13 }
 0x531   :  { %436 = vrot.lane.b32.xlu0 %v435_v16, %s4657_s4  ;;  %v4079_v19 = vmul.f32 -1.442695, %v413_v18 }
 0x533   :  { %4219 = vpow2.f32 %v4079_v19 }
 0x539   :  { %v4220_v20 = vpop.eup %4219 }
 0x53a   :  { %v417_v21 = vadd.f32 1.0, %v4220_v20  ;;  %v4983_v20 = vadd.f32 %v4916_v11, %v4951_v10 }
 0x53c   :  { %4221 = vrcp.f32 %v417_v21  ;;  %v429_v27 = vand.u32 2147483648, %v417_v21  ;;  %vm423_vm13 = vweird.f32 %v417_v21  ;;  %v427_v28 = vand.u32 2147483647, %v417_v21 }
 0x53e   :  { %v430_v30 = vor.u32 1.1754944e-38, %v429_v27  ;;  %vm428_vm15 = vcmp.eq.f32.partialorder %v427_v28, 8.507059e+37 }
 0x542   :  { %v4222_v22 = vpop.eup %4221 }
 0x543   :  { %v419_v23 = vmul.f32 %v4222_v22, %v417_v21  ;;  %vm424_vm12 = vweird.f32 %v4222_v22 }
 0x544   :  { %vm425_vm14 = vmor %vm423_vm13, %vm424_vm12 }
 0x545   :  { %v420_v24 = vsub.f32 1.0, %v419_v23 }
 0x547   :  { %v421_v25 = vmul.f32 %v4222_v22, %v420_v24 }
 0x549   :  { %v422_v26 = vadd.f32 %v4222_v22, %v421_v25 }
 0x54b   :  { %v426_v29 = vsel %vm425_vm14, %v4222_v22, %v422_v26 }
 0x54c   :  { %v431_v32 = vsel %vm428_vm15, %v430_v30, %v426_v29 }
 0x54d   :  { %v446_v37 = vsub.f32 1.0, %v431_v32  ;;  %v454_v40 = vmul.f32 %v452_v38, %v431_v32 }
 0x5a3   :  { %v437_v31 = vpop.permute.xlu0 %436 }
 0x5a4   :  { %v439_v33 = vmul.f32 %v437_v31, %v431_v32 }
 0x5a6   :  { %441 = vrot.lane.b32.xlu1 %v439_v33, %s4657_s4 }
 0x618   :  { %v442_v34 = vpop.permute.xlu1 %441 }
 0x619   :  { %v444_v35 = vadd.f32 %v442_v34, %v4919_v13 }
 0x61b   :  { %4223 = vtanh.f32 %v444_v35 }
 0x621   :  { %v4224_v36 = vpop.eup %4223 }
 0x622   :  { %448 = vrot.lane.b32.xlu2 %v4224_v36, %s4659_s8 }
 0x67c   :  { %v449_v39 = vpop.permute.xlu2 %448 }
 0x67d   :  { %v451_v41 = vmul.f32 %v449_v39, %v446_v37 }
 0x67f   :  { %v4962_v42 = vadd.f32 %v454_v40, %v451_v41 }
 0x681   :  { %v462_v43 = vrot.slane %v4962_v42, 4  ;;  %v529_v6 = vrot.slane %v4962_v42, 6 }
 0x683   :  { %463 = vrot.lane.b32.xlu0 %v462_v43, %s4659_s8 }
 0x6f5   :  { %v464_v44 = vpop.permute.xlu0 %463 }
 0x6f6   :  { %4080 = vmatmul.msk.f32.vlgmr.msrb.gmra.mxu1 %vm236_vm7, %v464_v44 }
 0x773   :  { %v484_v45 = vpop.f32.mrf.mxu1 }
 0x774   :  { %v510_v46 = vadd.f32 %v484_v45, %v4909_v8  ;;  %v488_v48 = vrot.slane %v484_v45, 2 }
 0x776   :  { %v512_v47 = vrot.slane %v510_v46, 2  ;;  %v490_v49 = vadd.f32 %v488_v48, %v4919_v13 }
 0x778   :  { %513 = vrot.lane.b32.xlu1 %v512_v47, %s4657_s4  ;;  %v4081_v50 = vmul.f32 -1.442695, %v490_v49 }
 0x77a   :  { %4225 = vpow2.f32 %v4081_v50 }
 0x780   :  { %v4226_v51 = vpop.eup %4225 }
 0x781   :  { %v494_v52 = vadd.f32 1.0, %v4226_v51 }
 0x783   :  { %4227 = vrcp.f32 %v494_v52  ;;  %v506_v58 = vand.u32 2147483648, %v494_v52  ;;  %vm500_vm1 = vweird.f32 %v494_v52  ;;  %v504_v59 = vand.u32 2147483647, %v494_v52 }
 0x785   :  { %v507_v61 = vor.u32 1.1754944e-38, %v506_v58  ;;  %vm505_vm3 = vcmp.eq.f32.partialorder %v504_v59, 8.507059e+37 }
 0x789   :  { %v4228_v53 = vpop.eup %4227 }
 0x78a   :  { %v496_v54 = vmul.f32 %v4228_v53, %v494_v52  ;;  %vm501_vm0 = vweird.f32 %v4228_v53 }
 0x78b   :  { %vm502_vm2 = vmor %vm500_vm1, %vm501_vm0 }
 0x78c   :  { %v497_v55 = vsub.f32 1.0, %v496_v54 }
 0x78e   :  { %v498_v56 = vmul.f32 %v4228_v53, %v497_v55 }
 0x790   :  { %v499_v57 = vadd.f32 %v4228_v53, %v498_v56 }
 0x792   :  { %v503_v60 = vsel %vm502_vm2, %v4228_v53, %v499_v57  ;;  %vm383_vm2 = vcmask 257026  }
 0x793   :  { %v508_v63 = vsel %vm505_vm3, %v507_v61, %v503_v60  ;;  %vm460_vm3 = vcmask 259076  }
 0x794   :  { %v523_v4 = vsub.f32 1.0, %v508_v63  ;;  %v531_v14 = vmul.f32 %v529_v6, %v508_v63 }
 0x7ea   :  { %v514_v62 = vpop.permute.xlu1 %513 }
 0x7eb   :  { %v516_v0 = vmul.f32 %v514_v62, %v508_v63 }
 0x7ed   :  { %518 = vrot.lane.b32.xlu2 %v516_v0, %s4657_s4 }
 0x847   :  { %v519_v1 = vpop.permute.xlu2 %518 }
 0x848   :  { %v521_v2 = vadd.f32 %v519_v1, %v4919_v13 }
 0x84a   :  { %4229 = vtanh.f32 %v521_v2 }
 0x850   :  { %v4230_v3 = vpop.eup %4229 }
 0x851   :  { %525 = vrot.lane.b32.xlu0 %v4230_v3, %s4659_s8 }
 0x8c3   :  { %v526_v9 = vpop.permute.xlu0 %525 }
 0x8c4   :  { %v528_v15 = vmul.f32 %v526_v9, %v523_v4 }
 0x8c6   :  { %v4974_v16 = vadd.f32 %v531_v14, %v528_v15 }
 0x8c8   :  { %v539_v17 = vrot.slane %v4974_v16, 6 }
 0x8ca   :  { %540 = vrot.lane.b32.xlu1 %v539_v17, %s4659_s8 }
 0x93c   :  { %v541_v18 = vpop.permute.xlu1 %540 }
 0x93d   :  { %4082 = vmatmul.msk.f32.vlgmr.msrb.gmra.mxu2 %vm236_vm7, %v541_v18 }
 0x9c0   :  { %v561_v13 = vpop.f32.mrf.mxu2 }
 0x9c1   :  { %v584_v19 = vadd.f32 %v561_v13, %v4909_v8  ;;  %v564_v21 = vadd.f32 %v561_v13, %v4983_v20 }
 0x9c3   :  { %586 = vrot.lane.b32.xlu2 %v584_v19, %s4657_s4  ;;  %v4083_v22 = vmul.f32 -1.442695, %v564_v21 }
 0x9c5   :  { %4231 = vpow2.f32 %v4083_v22 }
 0x9cb   :  { %v4232_v23 = vpop.eup %4231 }
 0x9cc   :  { %v568_v24 = vadd.f32 1.0, %v4232_v23 }
 0x9ce   :  { %4233 = vrcp.f32 %v568_v24  ;;  %v580_v30 = vand.u32 2147483648, %v568_v24  ;;  %vm574_vm5 = vweird.f32 %v568_v24  ;;  %v578_v31 = vand.u32 2147483647, %v568_v24 }
 0x9d0   :  { %v581_v10 = vor.u32 1.1754944e-38, %v580_v30  ;;  %vm579_vm9 = vcmp.eq.f32.partialorder %v578_v31, 8.507059e+37 }
 0x9d4   :  { %v4234_v25 = vpop.eup %4233 }
 0x9d5   :  { %v570_v26 = vmul.f32 %v4234_v25, %v568_v24  ;;  %vm575_vm4 = vweird.f32 %v4234_v25 }
 0x9d6   :  { %vm576_vm8 = vmor %vm574_vm5, %vm575_vm4  ;;  %vm537_vm4 = vcmask 261126  }
 0x9d7   :  { %v571_v27 = vsub.f32 1.0, %v570_v26 }
 0x9d9   :  { %v572_v28 = vmul.f32 %v4234_v25, %v571_v27 }
 0x9db   :  { %v573_v29 = vadd.f32 %v4234_v25, %v572_v28 }
 0x9dd   :  { %v577_v32 = vsel %vm576_vm8, %v4234_v25, %v573_v29 }
 0x9de   :  { %v582_v34 = vsel %vm579_vm9, %v581_v10, %v577_v32 }
 0x9df   :  { %v596_v39 = vsub.f32 1.0, %v582_v34  ;;  %v603_v41 = vmul.f32 %v582_v34, %v539_v17 }
 0xa1d   :  { %v587_v33 = vpop.permute.xlu2 %586 }
 0xa1e   :  { %v589_v35 = vmul.f32 %v587_v33, %v582_v34 }
 0xa20   :  { %591 = vrot.lane.b32.xlu0 %v589_v35, %s4657_s4 }
 0xa92   :  { %v592_v36 = vpop.permute.xlu0 %591 }
 0xa93   :  { %v594_v37 = vadd.f32 %v592_v36, %v4983_v20 }
 0xa95   :  { %4235 = vtanh.f32 %v594_v37 }
 0xa9b   :  { %v4236_v38 = vpop.eup %4235 }
 0xa9c   :  { %598 = vrot.lane.b32.xlu1 %v4236_v38, %s4659_s8 }
 0xb0e   :  { %v599_v40 = vpop.permute.xlu1 %598 }
 0xb0f   :  { %v601_v43 = vmul.f32 %v599_v40, %v596_v39 }
 0xb11   :  { %v604_v44 = vadd.f32 %v603_v41, %v601_v43 }
 0xb13   :  { %606 = vrot.lane.b32.xlu2 %v604_v44, %s4659_s8  ;;  %v674_v6 = vrot.slane %v604_v44, 6 }
 0xb6d   :  { %v607_v45 = vpop.permute.xlu2 %606 }
 0xb6e   :  { %609 = vst.msk [vmem:[#allocation2 + $0x8] sm:$0x3] %vm309_vm6, %v607_v45  ;;  %4084 = vmatmul.msk.f32.vlgmr.msra.gmra.mxu3 %vm236_vm7, %v607_v45 }
 0xbf1   :  { %v629_v46 = vpop.f32.mrf.mxu3 }
 0xbf2   :  { %v655_v47 = vadd.f32 %v629_v46, %v4909_v8  ;;  %v633_v49 = vrot.slane %v629_v46, 6 }
 0xbf4   :  { %v657_v48 = vrot.slane %v655_v47, 6  ;;  %v635_v50 = vadd.f32 %v633_v49, %v4983_v20 }
 0xbf6   :  { %658 = vrot.lane.b32.xlu0 %v657_v48, %s4657_s4  ;;  %v4085_v51 = vmul.f32 -1.442695, %v635_v50 }
 0xbf8   :  { %4237 = vpow2.f32 %v4085_v51 }
 0xbfe   :  { %v4238_v52 = vpop.eup %4237 }
 0xbff   :  { %v639_v53 = vadd.f32 1.0, %v4238_v52  ;;  %v5030_v52 = vld [vmem:[%s6044_s3 + $0x10] sm:$0xff] }
 0xc01   :  { %4239 = vrcp.f32 %v639_v53  ;;  %v651_v59 = vand.u32 2147483648, %v639_v53  ;;  %vm645_vm11 = vweird.f32 %v639_v53  ;;  %v649_v60 = vand.u32 2147483647, %v639_v53 }
 0xc03   :  { %v652_v62 = vor.u32 1.1754944e-38, %v651_v59  ;;  %vm650_vm13 = vcmp.eq.f32.partialorder %v649_v60, 8.507059e+37 }
 0xc07   :  { %v4240_v54 = vpop.eup %4239 }
 0xc08   :  { %v641_v55 = vmul.f32 %v4240_v54, %v639_v53  ;;  %vm646_vm10 = vweird.f32 %v4240_v54  ;;  %v5037_v53 = vld [vmem:[%s6044_s3 + $0x8] sm:$0xff] }
 0xc09   :  { %vm647_vm12 = vmor %vm645_vm11, %vm646_vm10 }
 0xc0a   :  { %v642_v56 = vsub.f32 1.0, %v641_v55  ;;  %v984_v55 = vld [vmem:[%s6045_s22 + $0x10] sm:$0xff] }
 0xc0c   :  { %v643_v57 = vmul.f32 %v4240_v54, %v642_v56  ;;  %v983_v56 = vld [vmem:[%s6045_s22 + $0x8] sm:$0xff] }
 0xc0e   :  { %v644_v58 = vadd.f32 %v4240_v54, %v643_v57  ;;  %v982_v57 = vld [vmem:[%s6045_s22] sm:$0xff] }
 0xc10   :  { %v648_v61 = vsel %vm647_vm12, %v4240_v54, %v644_v58  ;;  %v985_v54 = vld [vmem:[%s6045_s22 + $0x18] sm:$0xff] }
 0xc11   :  { %v653_v0 = vsel %vm650_vm13, %v652_v62, %v648_v61  ;;  %1011 = vmatpush.msrb.mxu1 %v985_v54 }
 0xc12   :  { %v668_v9 = vsub.f32 1.0, %v653_v0  ;;  %v676_v17 = vmul.f32 %v674_v6, %v653_v0  ;;  %v5095_v6 = vld [vmem:[%s6047_s12] ss:$0 sm:$0xff] }
 0xc13   :  { %1012 = vmatpush.msrb.mxu1 %v984_v55 }
 0xc15   :  { %1013 = vmatpush.msrb.mxu1 %v983_v56 }
 0xc17   :  { %1014 = vmatpush.msrb.mxu1 %v982_v57 }
 0xc68   :  { %v659_v63 = vpop.permute.xlu0 %658 }
 0xc69   :  { %v661_v1 = vmul.f32 %v659_v63, %v653_v0 }
 0xc6b   :  { %663 = vrot.lane.b32.xlu1 %v661_v1, %s4657_s4 }
 0xcdd   :  { %v664_v2 = vpop.permute.xlu1 %663 }
 0xcde   :  { %v666_v3 = vadd.f32 %v664_v2, %v4983_v20 }
 0xce0   :  { %4241 = vtanh.f32 %v666_v3 }
 0xce6   :  { %v4242_v4 = vpop.eup %4241 }
 0xce7   :  { %670 = vrot.lane.b32.xlu2 %v4242_v4, %s4659_s8 }
 0xd41   :  { %v671_v14 = vpop.permute.xlu2 %670 }
 0xd42   :  { %v673_v15 = vmul.f32 %v671_v14, %v668_v9 }
 0xd44   :  { %v4998_v18 = vadd.f32 %v676_v17, %v673_v15 }
 0xd46   :  { %v683_v13 = vrot.slane %v4998_v18, 2  ;;  %v750_v46 = vrot.slane %v4998_v18, 6 }
 0xd48   :  { %684 = vrot.lane.b32.xlu0 %v683_v13, %s4659_s8 }
 0xdba   :  { %v685_v19 = vpop.permute.xlu0 %684 }
 0xdbb   :  { %4086 = vmatmul.msk.f32.vlgmr.msra.gmra.mxu1 %vm236_vm7, %v685_v19 }
 0xe38   :  { %v705_v21 = vpop.f32.mrf.mxu1 }
 0xe39   :  { %v731_v22 = vadd.f32 %v705_v21, %v4909_v8  ;;  %v709_v24 = vrot.slane %v705_v21, 4 }
 0xe3b   :  { %v733_v23 = vrot.slane %v731_v22, 4  ;;  %v711_v25 = vadd.f32 %v709_v24, %v4983_v20 }
 0xe3d   :  { %734 = vrot.lane.b32.xlu1 %v733_v23, %s4657_s4  ;;  %v4087_v26 = vmul.f32 -1.442695, %v711_v25 }
 0xe3f   :  { %4243 = vpow2.f32 %v4087_v26 }
 0xe45   :  { %v4244_v27 = vpop.eup %4243 }
 0xe46   :  { %v715_v28 = vadd.f32 1.0, %v4244_v27 }
 0xe48   :  { %4245 = vrcp.f32 %v715_v28  ;;  %v727_v33 = vand.u32 2147483648, %v715_v28  ;;  %vm721_vm15 = vweird.f32 %v715_v28  ;;  %v725_v34 = vand.u32 2147483647, %v715_v28 }
 0xe4a   :  { %v728_v36 = vor.u32 1.1754944e-38, %v727_v33  ;;  %vm726_vm1 = vcmp.eq.f32.partialorder %v725_v34, 8.507059e+37 }
 0xe4e   :  { %v4246_v29 = vpop.eup %4245 }
 0xe4f   :  { %v717_v30 = vmul.f32 %v4246_v29, %v715_v28  ;;  %vm722_vm14 = vweird.f32 %v4246_v29 }
 0xe50   :  { %vm723_vm0 = vmor %vm721_vm15, %vm722_vm14 }
 0xe51   :  { %v718_v31 = vsub.f32 1.0, %v717_v30 }
 0xe53   :  { %v719_v32 = vmul.f32 %v4246_v29, %v718_v31 }
 0xe55   :  { %v720_v10 = vadd.f32 %v4246_v29, %v719_v32 }
 0xe57   :  { %v724_v35 = vsel %vm723_vm0, %v4246_v29, %v720_v10 }
 0xe58   :  { %v729_v38 = vsel %vm726_vm1, %v728_v36, %v724_v35 }
 0xe59   :  { %v744_v45 = vsub.f32 1.0, %v729_v38  ;;  %v752_v48 = vmul.f32 %v750_v46, %v729_v38 }
 0xeaf   :  { %v735_v37 = vpop.permute.xlu1 %734 }
 0xeb0   :  { %v737_v39 = vmul.f32 %v735_v37, %v729_v38 }
 0xeb2   :  { %739 = vrot.lane.b32.xlu2 %v737_v39, %s4657_s4 }
 0xeba   :  { %380 = vrot.lane.b32.xlu2 %v4946_v5, %s4659_s8 }
 0xf0c   :  { %v740_v40 = vpop.permute.xlu2 %739 }
 0xf0d   :  { %v742_v41 = vadd.f32 %v740_v40, %v4983_v20 }
 0xf0f   :  { %4247 = vtanh.f32 %v742_v41 }
 0xf14   :  { %v381_v43 = vpop.permute.xlu2 %380 }
 0xf15   :  { %v4248_v44 = vpop.eup %4247  ;;  %384 = vst.msk [vmem:[#allocation2] sm:$0xc] %vm383_vm2, %v381_v43 }
 0xf16   :  { %746 = vrot.lane.b32.xlu0 %v4248_v44, %s4659_s8 }
 0xf1e   :  { %457 = vrot.lane.b32.xlu0 %v4962_v42, %s4659_s8  ;;  %v5025_v42 = vld [vmem:[%s6044_s3 + $0x18] sm:$0xff] }
 0xf1f   :  { %1042 = vmatpush.msrb.mxu2 %v5025_v42  ;;  %1114 = vmatpush.msra.mxu3 %v5025_v42 }
 0xf20   :  { %1190 = vmatpush.msrb.mxu0 %v5025_v42  ;;  %1706 = vmatpush.msra.mxu1 %v5025_v42 }
 0xf21   :  { %1043 = vmatpush.msrb.mxu2 %v5030_v52  ;;  %1115 = vmatpush.msra.mxu3 %v5030_v52 }
 0xf22   :  { %1191 = vmatpush.msrb.mxu0 %v5030_v52  ;;  %1707 = vmatpush.msra.mxu1 %v5030_v52 }
 0xf23   :  { %1044 = vmatpush.msrb.mxu2 %v5037_v53  ;;  %1116 = vmatpush.msra.mxu3 %v5037_v53 }
 0xf24   :  { %1192 = vmatpush.msrb.mxu0 %v5037_v53  ;;  %1708 = vmatpush.msra.mxu1 %v5037_v53 }
 0xf88   :  { %v747_v47 = vpop.permute.xlu0 %746 }
 0xf89   :  { %v749_v5 = vmul.f32 %v747_v47, %v744_v45 }
 0xf8b   :  { %v5015_v49 = vadd.f32 %v752_v48, %v749_v5 }
 0xf8d   :  { %v759_v50 = vrot.slane %v5015_v49, 4 }
 0xf8f   :  { %760 = vrot.lane.b32.xlu1 %v759_v50, %s4659_s8 }
 0xf90   :  { %v458_v51 = vpop.permute.xlu0 %457 }
 0xf91   :  { %461 = vst.msk [vmem:[#allocation2] sm:$0x30] %vm460_vm3, %v458_v51 }
 0xf97   :  { %534 = vrot.lane.b32.xlu1 %v4974_v16, %s4659_s8  ;;  %v5045_v16 = vld [vmem:[%s6044_s3] sm:$0xff]  ;;  %s6046_s3 = sld [smem:[#allocation26_spill]] }
 0xf98   :  { %1045 = vmatpush.msrb.mxu2 %v5045_v16  ;;  %1117 = vmatpush.msra.mxu3 %v5045_v16 }
 0xf99   :  { %1193 = vmatpush.msrb.mxu0 %v5045_v16  ;;  %1709 = vmatpush.msra.mxu1 %v5045_v16 }
 0xf9d   :  { %v4196_v58 = vld [vmem:[%s6046_s3] ss:$0 sm:$0xff] }
 0xf9e   :  { %1072 = vrot.lane.b32.xlu2 %v4196_v58, %s4657_s4  ;;  %v826_v58 = vrot.slane %v5015_v49, 6 }
 0xff8   :  { %v5088_v1 = vpop.permute.xlu2 %1072 }
0x1001   :  { %v761_v59 = vpop.permute.xlu1 %760 }
0x1002   :  { %4088 = vmatmul.msk.f32.vlgmr.msra.gmra.mxu2 %vm236_vm7, %v761_v59 }
0x1003   :  { %1266 = vmatpush.msra.mxu2 %v5025_v42 }
0x1005   :  { %1267 = vmatpush.msra.mxu2 %v5030_v52 }
0x1007   :  { %1268 = vmatpush.msra.mxu2 %v5037_v53 }
0x1009   :  { %v535_v60 = vpop.permute.xlu1 %534  ;;  %1269 = vmatpush.msra.mxu2 %v5045_v16 }
0x100a   :  { %538 = vst.msk [vmem:[#allocation2] sm:$0xc0] %vm537_vm4, %v535_v60  ;;  %1046 = vmatmul.f32.vlgmr.msrb.gmra.mxu2 %v4658_v7 }
0x100b   :  { %1486 = vmatpush.msrb.mxu2 %v5025_v42 }
0x100d   :  { %1487 = vmatpush.msrb.mxu2 %v5030_v52 }
0x100f   :  { %1488 = vmatpush.msrb.mxu2 %v5037_v53 }
0x1011   :  { %v979_v61 = vld [vmem:[#allocation2] sm:$0xff]  ;;  %1489 = vmatpush.msrb.mxu2 %v5045_v16 }
0x1012   :  { %4094 = vmatmul.msk.f32.vlgmr.msrb.gmra.mxu1 %vm236_vm7, %v979_v61 }
0x1085   :  { %v781_v62 = vpop.f32.mrf.mxu2 }
0x1086   :  { %v807_v63 = vadd.f32 %v781_v62, %v4909_v8  ;;  %v785_v4 = vrot.slane %v781_v62, 2 }
0x1088   :  { %v809_v0 = vrot.slane %v807_v63, 2  ;;  %v787_v14 = vadd.f32 %v785_v4, %v4983_v20 }
0x108a   :  { %810 = vrot.lane.b32.xlu0 %v809_v0, %s4657_s4  ;;  %v4089_v17 = vmul.f32 -1.442695, %v787_v14 }
0x108c   :  { %4249 = vpow2.f32 %v4089_v17 }
0x108d   :  { %v1047_v2 = vpop.f32.mrf.mxu2 }
0x108e   :  { %v1075_v3 = vadd.f32 %v5088_v1, %v1047_v2 }
0x108f   :  { %v1016_v9 = vpop.f32.mrf.mxu1 }
0x1090   :  { %1077 = vrot.lane.b32.xlu1 %v1075_v3, %s4657_s4  ;;  %v5099_v15 = vadd.f32 %v5095_v6, %v1016_v9 }
0x1092   :  { %v1050_v13 = vadd.f32 %v1047_v2, %v5099_v15  ;;  %v4250_v21 = vpop.eup %4249 }
0x1093   :  { %v791_v22 = vadd.f32 1.0, %v4250_v21 }
0x1094   :  { %v4097_v19 = vmul.f32 -1.442695, %v1050_v13 }
0x1095   :  { %v803_v10 = vand.u32 2147483648, %v791_v22  ;;  %vm797_vm8 = vweird.f32 %v791_v22  ;;  %v801_v33 = vand.u32 2147483647, %v791_v22 }
0x1096   :  { %4251 = vpow2.f32 %v4097_v19 }
0x1097   :  { %4253 = vrcp.f32 %v791_v22  ;;  %v804_v36 = vor.u32 1.1754944e-38, %v803_v10  ;;  %vm802_vm10 = vcmp.eq.f32.partialorder %v801_v33, 8.507059e+37 }
0x109c   :  { %v4252_v23 = vpop.eup %4251 }
0x109d   :  { %v1054_v24 = vadd.f32 1.0, %v4252_v23  ;;  %v4254_v25 = vpop.eup %4253  ;;  %v5136_v23 = vadd.f32 %v4916_v11, %v4953_v12 }
0x109e   :  { %v793_v26 = vmul.f32 %v4254_v25, %v791_v22  ;;  %vm798_vm5 = vweird.f32 %v4254_v25 }
0x109f   :  { %4255 = vrcp.f32 %v1054_v24  ;;  %vm799_vm9 = vmor %vm797_vm8, %vm798_vm5  ;;  %v1066_v40 = vand.u32 2147483648, %v1054_v24  ;;  %vm1060_vm12 = vweird.f32 %v1054_v24  ;;  %v1064_v43 = vand.u32 2147483647, %v1054_v24 }
0x10a0   :  { %v794_v28 = vsub.f32 1.0, %v793_v26 }
0x10a1   :  { %v1067_v45 = vor.u32 1.1754944e-38, %v1066_v40  ;;  %vm1065_vm14 = vcmp.eq.f32.partialorder %v1064_v43, 8.507059e+37 }
0x10a2   :  { %v795_v30 = vmul.f32 %v4254_v25, %v794_v28 }
0x10a4   :  { %v796_v32 = vadd.f32 %v4254_v25, %v795_v30 }
0x10a5   :  { %v4256_v27 = vpop.eup %4255 }
0x10a6   :  { %v1056_v29 = vmul.f32 %v4256_v27, %v1054_v24  ;;  %v800_v35 = vsel %vm799_vm9, %v4254_v25, %v796_v32  ;;  %vm1061_vm11 = vweird.f32 %v4256_v27 }
0x10a7   :  { %v805_v38 = vsel %vm802_vm10, %v804_v36, %v800_v35  ;;  %vm1062_vm13 = vmor %vm1060_vm12, %vm1061_vm11 }
0x10a8   :  { %v1057_v31 = vsub.f32 1.0, %v1056_v29  ;;  %v820_v57 = vsub.f32 1.0, %v805_v38  ;;  %v828_v60 = vmul.f32 %v826_v58, %v805_v38 }
0x10aa   :  { %v1058_v34 = vmul.f32 %v4256_v27, %v1057_v31 }
0x10ac   :  { %v1059_v37 = vadd.f32 %v4256_v27, %v1058_v34 }
0x10ae   :  { %v1063_v44 = vsel %vm1062_vm13, %v4256_v27, %v1059_v37 }
0x10af   :  { %v1068_v46 = vsel %vm1065_vm14, %v1067_v45, %v1063_v44 }
0x10b0   :  { %v1093_v2 = vmul.f32 0.0, %v1068_v46 }
0x10fc   :  { %v811_v39 = vpop.permute.xlu0 %810 }
0x10fd   :  { %v813_v41 = vmul.f32 %v811_v39, %v805_v38 }
0x10ff   :  { %815 = vrot.lane.b32.xlu2 %v813_v41, %s4657_s4 }
0x1102   :  { %v1078_v47 = vpop.permute.xlu1 %1077 }
0x1103   :  { %v1080_v48 = vmul.f32 %v1078_v47, %v1068_v46 }
0x1105   :  { %1082 = vrot.lane.b32.xlu0 %v1080_v48, %s4657_s4 }
0x1159   :  { %v816_v5 = vpop.permute.xlu2 %815 }
0x115a   :  { %v818_v50 = vadd.f32 %v816_v5, %v4983_v20  ;;  %v1087_v20 = vsub.f32 1.0, %v1068_v46 }
0x115c   :  { %4257 = vtanh.f32 %v818_v50 }
0x1162   :  { %v4258_v51 = vpop.eup %4257 }
0x1163   :  { %822 = vrot.lane.b32.xlu1 %v4258_v51, %s4659_s8 }
0x1177   :  { %v1083_v54 = vpop.permute.xlu0 %1082 }
0x1178   :  { %v1085_v55 = vadd.f32 %v1083_v54, %v5099_v15 }
0x117a   :  { %4259 = vtanh.f32 %v1085_v55 }
0x1180   :  { %v4260_v56 = vpop.eup %4259 }
0x1181   :  { %1089 = vrot.lane.b32.xlu2 %v4260_v56, %s4659_s8 }
0x11d5   :  { %v823_v59 = vpop.permute.xlu1 %822 }
0x11d6   :  { %v825_v61 = vmul.f32 %v823_v59, %v820_v57 }
0x11d8   :  { %v5109_v62 = vadd.f32 %v828_v60, %v825_v61 }
0x11da   :  { %v835_v63 = vrot.slane %v5109_v62, 6 }
0x11db   :  { %v1090_v0 = vpop.permute.xlu2 %1089 }
0x11dc   :  { %v1092_v3 = vmul.f32 %v1090_v0, %v1087_v20  ;;  %836 = vrot.lane.b32.xlu0 %v835_v63, %s4659_s8 }
0x11de   :  { %v5115_v4 = vadd.f32 %v1093_v2, %v1092_v3 }
0x11e0   :  { %1096 = vrot.lane.b32.xlu1 %v5115_v4, %s4659_s8 }
0x124e   :  { %v837_v9 = vpop.permute.xlu0 %836 }
0x124f   :  { %4090 = vmatmul.msk.f32.vlgmr.msrb.gmra.mxu3 %vm236_vm7, %v837_v9 }
0x1250   :  { %1342 = vmatpush.msrb.mxu3 %v5025_v42 }
0x1252   :  { %v1097_v14 = vpop.permute.xlu1 %1096  ;;  %1343 = vmatpush.msrb.mxu3 %v5030_v52 }
0x1253   :  { %1099 = vst.msk [vmem:[#allocation2] sm:$0x3] %vm309_vm6, %v1097_v14 }
0x1254   :  { %1344 = vmatpush.msrb.mxu3 %v5037_v53 }
0x1256   :  { %1345 = vmatpush.msrb.mxu3 %v5045_v16 }
0x1257   :  { %4098 = vmatmul.msk.f32.vlgmr.msra.gmra.mxu3 %vm236_vm7, %v1097_v14 }
0x1258   :  { %1562 = vmatpush.msra.mxu3 %v5025_v42 }
0x125a   :  { %1563 = vmatpush.msra.mxu3 %v5030_v52 }
0x125c   :  { %1564 = vmatpush.msra.mxu3 %v5037_v53 }
0x125e   :  { %1565 = vmatpush.msra.mxu3 %v5045_v16 }
0x12d2   :  { %v857_v17 = vpop.f32.mrf.mxu3 }
0x12d3   :  { %v880_v13 = vadd.f32 %v857_v17, %v4909_v8  ;;  %v860_v24 = vadd.f32 %v857_v17, %v5136_v23  ;;  %v1164_v17 = vrot.slane %v5115_v4, 6 }
0x12d5   :  { %882 = vrot.lane.b32.xlu2 %v880_v13, %s4657_s4  ;;  %v4091_v25 = vmul.f32 -1.442695, %v860_v24 }
0x12d7   :  { %4261 = vpow2.f32 %v4091_v25 }
0x12da   :  { %v1119_v19 = vpop.f32.mrf.mxu3 }
0x12db   :  { %v1145_v21 = vadd.f32 %v1119_v19, %v5088_v1  ;;  %v1123_v29 = vrot.slane %v1119_v19, 6 }
0x12dd   :  { %v1147_v22 = vrot.slane %v1145_v21, 6  ;;  %v4262_v26 = vpop.eup %4261  ;;  %v1125_v31 = vadd.f32 %v1123_v29, %v5099_v15 }
0x12de   :  { %v864_v27 = vadd.f32 1.0, %v4262_v26 }
0x12df   :  { %1148 = vrot.lane.b32.xlu0 %v1147_v22, %s4657_s4  ;;  %v4099_v10 = vmul.f32 -1.442695, %v1125_v31 }
0x12e0   :  { %4263 = vrcp.f32 %v864_v27  ;;  %v876_v11 = vand.u32 2147483648, %v864_v27  ;;  %vm870_vm0 = vweird.f32 %v864_v27  ;;  %v874_v12 = vand.u32 2147483647, %v864_v27 }
0x12e1   :  { %4265 = vpow2.f32 %v4099_v10 }
0x12e2   :  { %v877_v36 = vor.u32 1.1754944e-38, %v876_v11  ;;  %vm875_vm5 = vcmp.eq.f32.partialorder %v874_v12, 8.507059e+37 }
0x12e6   :  { %v4264_v28 = vpop.eup %4263 }
0x12e7   :  { %v866_v30 = vmul.f32 %v4264_v28, %v864_v27  ;;  %vm871_vm15 = vweird.f32 %v4264_v28  ;;  %v4266_v37 = vpop.eup %4265 }
0x12e8   :  { %vm872_vm1 = vmor %vm870_vm0, %vm871_vm15  ;;  %v1129_v41 = vadd.f32 1.0, %v4266_v37 }
0x12e9   :  { %v867_v32 = vsub.f32 1.0, %v866_v30 }
0x12ea   :  { %4267 = vrcp.f32 %v1129_v41  ;;  %v1141_v48 = vand.u32 2147483648, %v1129_v41  ;;  %vm1135_vm9 = vweird.f32 %v1129_v41  ;;  %v1139_v5 = vand.u32 2147483647, %v1129_v41 }
0x12eb   :  { %v868_v33 = vmul.f32 %v4264_v28, %v867_v32 }
0x12ec   :  { %v1142_v51 = vor.u32 1.1754944e-38, %v1141_v48  ;;  %vm1140_vm11 = vcmp.eq.f32.partialorder %v1139_v5, 8.507059e+37 }
0x12ed   :  { %v869_v34 = vadd.f32 %v4264_v28, %v868_v33 }
0x12ef   :  { %v873_v35 = vsel %vm872_vm1, %v4264_v28, %v869_v34 }
0x12f0   :  { %v878_v38 = vsel %vm875_vm5, %v877_v36, %v873_v35  ;;  %v4268_v43 = vpop.eup %4267 }
0x12f1   :  { %v1131_v44 = vmul.f32 %v4268_v43, %v1129_v41  ;;  %vm1136_vm8 = vweird.f32 %v4268_v43  ;;  %v892_v0 = vsub.f32 1.0, %v878_v38  ;;  %v899_v3 = vmul.f32 %v878_v38, %v835_v63 }
0x12f2   :  { %vm1137_vm10 = vmor %vm1135_vm9, %vm1136_vm8 }
0x12f3   :  { %v1132_v45 = vsub.f32 1.0, %v1131_v44 }
0x12f5   :  { %v1133_v46 = vmul.f32 %v4268_v43, %v1132_v45 }
0x12f7   :  { %v1134_v47 = vadd.f32 %v4268_v43, %v1133_v46 }
0x12f9   :  { %v1138_v50 = vsel %vm1137_vm10, %v4268_v43, %v1134_v47 }
0x12fa   :  { %v1143_v55 = vsel %vm1140_vm11, %v1142_v51, %v1138_v50 }
0x12fb   :  { %v1158_v13 = vsub.f32 1.0, %v1143_v55  ;;  %v1166_v21 = vmul.f32 %v1164_v17, %v1143_v55 }
0x132f   :  { %v883_v39 = vpop.permute.xlu2 %882 }
0x1330   :  { %v885_v40 = vmul.f32 %v883_v39, %v878_v38 }
0x1332   :  { %887 = vrot.lane.b32.xlu1 %v885_v40, %s4657_s4 }
0x1351   :  { %v1149_v54 = vpop.permute.xlu0 %1148 }
0x1352   :  { %v1151_v56 = vmul.f32 %v1149_v54, %v1143_v55 }
0x1354   :  { %1153 = vrot.lane.b32.xlu2 %v1151_v56, %s4657_s4 }
0x13a4   :  { %v888_v57 = vpop.permute.xlu1 %887 }
0x13a5   :  { %v890_v58 = vadd.f32 %v888_v57, %v5136_v23 }
0x13a7   :  { %4269 = vtanh.f32 %v890_v58 }
0x13ad   :  { %v4270_v59 = vpop.eup %4269 }
0x13ae   :  { %894 = vrot.lane.b32.xlu0 %v4270_v59, %s4659_s8  ;;  %v1154_v60 = vpop.permute.xlu2 %1153 }
0x13af   :  { %v1156_v61 = vadd.f32 %v1154_v60, %v5099_v15 }
0x13b1   :  { %4271 = vtanh.f32 %v1156_v61 }
0x13b7   :  { %v4272_v20 = vpop.eup %4271 }
0x13b8   :  { %1160 = vrot.lane.b32.xlu1 %v4272_v20, %s4659_s8 }
0x1420   :  { %v895_v2 = vpop.permute.xlu0 %894 }
0x1421   :  { %v897_v9 = vmul.f32 %v895_v2, %v892_v0 }
0x1423   :  { %v5148_v14 = vadd.f32 %v899_v3, %v897_v9 }
0x1425   :  { %902 = vrot.lane.b32.xlu2 %v5148_v14, %s4659_s8 }
0x142a   :  { %v1161_v19 = vpop.permute.xlu1 %1160 }
0x142b   :  { %v1163_v22 = vmul.f32 %v1161_v19, %v1158_v13 }
0x142d   :  { %v5153_v24 = vadd.f32 %v1166_v21, %v1163_v22 }
0x142f   :  { %v1173_v25 = vrot.slane %v5153_v24, 2  ;;  %v1240_v45 = vrot.slane %v5153_v24, 6 }
0x1431   :  { %1174 = vrot.lane.b32.xlu0 %v1173_v25, %s4659_s8 }
0x147f   :  { %v903_v26 = vpop.permute.xlu2 %902 }
0x1480   :  { %905 = vst.msk [vmem:[#allocation2 + $0x10] sm:$0x3] %vm309_vm6, %v903_v26  ;;  %4092 = vmatmul.msk.f32.vlgmr.msra.gmra.mxu0 %vm236_vm7, %v903_v26 }
0x1481   :  { %1410 = vmatpush.msra.mxu0 %v5025_v42 }
0x1483   :  { %1411 = vmatpush.msra.mxu0 %v5030_v52 }
0x1485   :  { %1412 = vmatpush.msra.mxu0 %v5037_v53 }
0x1487   :  { %1413 = vmatpush.msra.mxu0 %v5045_v16 }
0x14a3   :  { %v1175_v63 = vpop.permute.xlu0 %1174 }
0x14a4   :  { %4100 = vmatmul.msk.f32.vlgmr.msrb.gmra.mxu0 %vm236_vm7, %v1175_v63 }
0x14a5   :  { %1638 = vmatpush.msrb.mxu0 %v5025_v42 }
0x14a7   :  { %1639 = vmatpush.msrb.mxu0 %v5030_v52 }
0x14a9   :  { %1640 = vmatpush.msrb.mxu0 %v5037_v53 }
0x14ab   :  { %1641 = vmatpush.msrb.mxu0 %v5045_v16 }
0x14fd   :  { %v5168_v4 = vpop.f32.mrf.mxu0 }
0x1521   :  { %v1195_v27 = vpop.f32.mrf.mxu0 }
0x1522   :  { %v1221_v28 = vadd.f32 %v1195_v27, %v5088_v1  ;;  %v1199_v30 = vrot.slane %v1195_v27, 4 }
0x1524   :  { %v1223_v29 = vrot.slane %v1221_v28, 4  ;;  %v1201_v31 = vadd.f32 %v1199_v30, %v5099_v15 }
0x1526   :  { %1224 = vrot.lane.b32.xlu1 %v1223_v29, %s4657_s4  ;;  %v4101_v32 = vmul.f32 -1.442695, %v1201_v31 }
0x1528   :  { %4273 = vpow2.f32 %v4101_v32 }
0x152e   :  { %v4274_v42 = vpop.eup %4273 }
0x152f   :  { %v1205_v10 = vadd.f32 1.0, %v4274_v42 }
0x1531   :  { %4275 = vrcp.f32 %v1205_v10  ;;  %v1217_v11 = vand.u32 2147483648, %v1205_v10  ;;  %vm1211_vm13 = vweird.f32 %v1205_v10  ;;  %v1215_v12 = vand.u32 2147483647, %v1205_v10 }
0x1533   :  { %v1218_v36 = vor.u32 1.1754944e-38, %v1217_v11  ;;  %vm1216_vm15 = vcmp.eq.f32.partialorder %v1215_v12, 8.507059e+37 }
0x1537   :  { %v4276_v52 = vpop.eup %4275 }
0x1538   :  { %v1207_v53 = vmul.f32 %v4276_v52, %v1205_v10  ;;  %vm1212_vm12 = vweird.f32 %v4276_v52 }
0x1539   :  { %vm1213_vm14 = vmor %vm1211_vm13, %vm1212_vm12 }
0x153a   :  { %v1208_v33 = vsub.f32 1.0, %v1207_v53 }
0x153c   :  { %v1209_v16 = vmul.f32 %v4276_v52, %v1208_v33 }
0x153e   :  { %v1210_v34 = vadd.f32 %v4276_v52, %v1209_v16 }
0x1540   :  { %v1214_v35 = vsel %vm1213_vm14, %v4276_v52, %v1210_v34 }
0x1541   :  { %v1219_v38 = vsel %vm1216_vm15, %v1218_v36, %v1214_v35 }
0x1542   :  { %v1234_v44 = vsub.f32 1.0, %v1219_v38  ;;  %v1242_v47 = vmul.f32 %v1240_v45, %v1219_v38 }
0x1598   :  { %v1225_v37 = vpop.permute.xlu1 %1224 }
0x1599   :  { %v1227_v39 = vmul.f32 %v1225_v37, %v1219_v38 }
0x159b   :  { %1229 = vrot.lane.b32.xlu2 %v1227_v39, %s4657_s4 }
0x15f5   :  { %v1230_v40 = vpop.permute.xlu2 %1229 }
0x15f6   :  { %v1232_v41 = vadd.f32 %v1230_v40, %v5099_v15 }
0x15f8   :  { %4277 = vtanh.f32 %v1232_v41 }
0x15fe   :  { %v4278_v43 = vpop.eup %4277 }
0x15ff   :  { %1236 = vrot.lane.b32.xlu0 %v4278_v43, %s4659_s8 }
0x1671   :  { %v1237_v46 = vpop.permute.xlu0 %1236 }
0x1672   :  { %v1239_v48 = vmul.f32 %v1237_v46, %v1234_v44 }
0x1674   :  { %v5177_v5 = vadd.f32 %v1242_v47, %v1239_v48 }
0x1676   :  { %v1249_v50 = vrot.slane %v5177_v5, 4  ;;  %v1316_v31 = vrot.slane %v5177_v5, 6 }
0x1678   :  { %1250 = vrot.lane.b32.xlu1 %v1249_v50, %s4659_s8 }
0x16ea   :  { %v1251_v51 = vpop.permute.xlu1 %1250 }
0x16eb   :  { %4102 = vmatmul.msk.f32.vlgmr.msra.gmra.mxu2 %vm236_vm7, %v1251_v51 }
0x176e   :  { %v1271_v54 = vpop.f32.mrf.mxu2 }
0x176f   :  { %v1297_v55 = vadd.f32 %v1271_v54, %v5088_v1  ;;  %v1275_v57 = vrot.slane %v1271_v54, 2 }
0x1771   :  { %v1299_v56 = vrot.slane %v1297_v55, 2  ;;  %v1277_v58 = vadd.f32 %v1275_v57, %v5099_v15 }
0x1773   :  { %1300 = vrot.lane.b32.xlu2 %v1299_v56, %s4657_s4  ;;  %v4103_v59 = vmul.f32 -1.442695, %v1277_v58 }
0x1775   :  { %4279 = vpow2.f32 %v4103_v59 }
0x177b   :  { %v4280_v60 = vpop.eup %4279 }
0x177c   :  { %v1281_v61 = vadd.f32 1.0, %v4280_v60 }
0x177e   :  { %4281 = vrcp.f32 %v1281_v61  ;;  %v1293_v17 = vand.u32 2147483648, %v1281_v61  ;;  %vm1287_vm1 = vweird.f32 %v1281_v61  ;;  %v1291_v13 = vand.u32 2147483647, %v1281_v61 }
0x1780   :  { %v1294_v21 = vor.u32 1.1754944e-38, %v1293_v17  ;;  %vm1292_vm8 = vcmp.eq.f32.partialorder %v1291_v13, 8.507059e+37 }
0x1784   :  { %v4282_v20 = vpop.eup %4281 }
0x1785   :  { %v1283_v0 = vmul.f32 %v4282_v20, %v1281_v61  ;;  %vm1288_vm0 = vweird.f32 %v4282_v20 }
0x1786   :  { %vm1289_vm5 = vmor %vm1287_vm1, %vm1288_vm0 }
0x1787   :  { %v1284_v2 = vsub.f32 1.0, %v1283_v0 }
0x1789   :  { %v1285_v3 = vmul.f32 %v4282_v20, %v1284_v2 }
0x178b   :  { %v1286_v9 = vadd.f32 %v4282_v20, %v1285_v3 }
0x178d   :  { %v1290_v19 = vsel %vm1289_vm5, %v4282_v20, %v1286_v9 }
0x178e   :  { %v1295_v25 = vsel %vm1292_vm8, %v1294_v21, %v1290_v19 }
0x178f   :  { %v1310_v30 = vsub.f32 1.0, %v1295_v25  ;;  %v1318_v42 = vmul.f32 %v1316_v31, %v1295_v25 }
0x17cd   :  { %v1301_v22 = vpop.permute.xlu2 %1300 }
0x17ce   :  { %v1303_v26 = vmul.f32 %v1301_v22, %v1295_v25 }
0x17d0   :  { %1305 = vrot.lane.b32.xlu0 %v1303_v26, %s4657_s4 }
0x17d8   :  { %679 = vrot.lane.b32.xlu0 %v4998_v18, %s4659_s8 }
0x1842   :  { %v1306_v63 = vpop.permute.xlu0 %1305 }
0x1843   :  { %v1308_v27 = vadd.f32 %v1306_v63, %v5099_v15 }
0x1845   :  { %4283 = vtanh.f32 %v1308_v27 }
0x184a   :  { %v680_v28 = vpop.permute.xlu0 %679 }
0x184b   :  { %v4284_v29 = vpop.eup %4283  ;;  %682 = vst.msk [vmem:[#allocation2 + $0x8] sm:$0xc] %vm383_vm2, %v680_v28 }
0x184c   :  { %1312 = vrot.lane.b32.xlu1 %v4284_v29, %s4659_s8 }
0x1854   :  { %755 = vrot.lane.b32.xlu1 %v5015_v49, %s4659_s8 }
0x18be   :  { %v1313_v32 = vpop.permute.xlu1 %1312 }
0x18bf   :  { %v1315_v10 = vmul.f32 %v1313_v32, %v1310_v30 }
0x18c1   :  { %v5194_v18 = vadd.f32 %v1318_v42, %v1315_v10 }
0x18c3   :  { %v1325_v15 = vrot.slane %v5194_v18, 6 }
0x18c5   :  { %1326 = vrot.lane.b32.xlu2 %v1325_v15, %s4659_s8 }
0x18c6   :  { %v756_v52 = vpop.permute.xlu1 %755 }
0x18c7   :  { %758 = vst.msk [vmem:[#allocation2 + $0x8] sm:$0x30] %vm460_vm3, %v756_v52 }
0x18cd   :  { %831 = vrot.lane.b32.xlu2 %v5109_v62, %s4659_s8 }
0x191f   :  { %v1327_v53 = vpop.permute.xlu2 %1326 }
0x1920   :  { %4104 = vmatmul.msk.f32.vlgmr.msrb.gmra.mxu3 %vm236_vm7, %v1327_v53 }
0x1927   :  { %v832_v49 = vpop.permute.xlu2 %831 }
0x1928   :  { %834 = vst.msk [vmem:[#allocation2 + $0x8] sm:$0xc0] %vm537_vm4, %v832_v49 }
0x192f   :  { %v980_v33 = vld [vmem:[#allocation2 + $0x8] sm:$0xff] }
0x1930   :  { %4095 = vmatmul.msk.f32.gmra.mxu1 %vm236_vm7, %v980_v33 }
0x19a3   :  { %v1347_v16 = vpop.f32.mrf.mxu3 }
0x19a4   :  { %v1370_v34 = vadd.f32 %v1347_v16, %v5088_v1 }
0x19a6   :  { %1372 = vrot.lane.b32.xlu0 %v1370_v34, %s4657_s4 }
0x19ad   :  { %v1019_v11 = vpop.f32.mrf.mxu1 }
0x19ae   :  { %v5207_v12 = vadd.f32 %v5095_v6, %v1019_v11 }
0x19b0   :  { %v1350_v62 = vadd.f32 %v1347_v16, %v5207_v12 }
0x19b2   :  { %v4105_v35 = vmul.f32 -1.442695, %v1350_v62 }
0x19b4   :  { %4285 = vpow2.f32 %v4105_v35 }
0x19ba   :  { %v4286_v36 = vpop.eup %4285 }
0x19bb   :  { %v1354_v37 = vadd.f32 1.0, %v4286_v36 }
0x19bd   :  { %4287 = vrcp.f32 %v1354_v37  ;;  %v1366_v44 = vand.u32 2147483648, %v1354_v37  ;;  %vm1360_vm10 = vweird.f32 %v1354_v37  ;;  %v1364_v45 = vand.u32 2147483647, %v1354_v37 }
0x19bf   :  { %v1367_v6 = vor.u32 1.1754944e-38, %v1366_v44  ;;  %vm1365_vm12 = vcmp.eq.f32.partialorder %v1364_v45, 8.507059e+37 }
0x19c3   :  { %v4288_v38 = vpop.eup %4287 }
0x19c4   :  { %v1356_v39 = vmul.f32 %v4288_v38, %v1354_v37  ;;  %vm1361_vm9 = vweird.f32 %v4288_v38 }
0x19c5   :  { %vm1362_vm11 = vmor %vm1360_vm10, %vm1361_vm9 }
0x19c6   :  { %v1357_v40 = vsub.f32 1.0, %v1356_v39 }
0x19c8   :  { %v1358_v41 = vmul.f32 %v4288_v38, %v1357_v40 }
0x19ca   :  { %v1359_v43 = vadd.f32 %v4288_v38, %v1358_v41 }
0x19cc   :  { %v1363_v46 = vsel %vm1362_vm11, %v4288_v38, %v1359_v43 }
0x19cd   :  { %v1368_v47 = vsel %vm1365_vm12, %v1367_v6, %v1363_v46 }
0x19ce   :  { %v1382_v56 = vsub.f32 1.0, %v1368_v47  ;;  %v1389_v58 = vmul.f32 %v1368_v47, %v1325_v15 }
0x1a18   :  { %v1373_v48 = vpop.permute.xlu0 %1372 }
0x1a19   :  { %v1375_v50 = vmul.f32 %v1373_v48, %v1368_v47 }
0x1a1b   :  { %1377 = vrot.lane.b32.xlu1 %v1375_v50, %s4657_s4 }
0x1a8d   :  { %v1378_v51 = vpop.permute.xlu1 %1377 }
0x1a8e   :  { %v1380_v54 = vadd.f32 %v1378_v51, %v5207_v12 }
0x1a90   :  { %4289 = vtanh.f32 %v1380_v54 }
0x1a96   :  { %v4290_v55 = vpop.eup %4289 }
0x1a97   :  { %1384 = vrot.lane.b32.xlu2 %v4290_v55, %s4659_s8 }
0x1af1   :  { %v1385_v57 = vpop.permute.xlu2 %1384 }
0x1af2   :  { %v1387_v59 = vmul.f32 %v1385_v57, %v1382_v56 }
0x1af4   :  { %v1390_v60 = vadd.f32 %v1389_v58, %v1387_v59 }
0x1af6   :  { %1392 = vrot.lane.b32.xlu0 %v1390_v60, %s4659_s8  ;;  %v1460_v53 = vrot.slane %v1390_v60, 6 }
0x1b68   :  { %v1393_v61 = vpop.permute.xlu0 %1392 }
0x1b69   :  { %1395 = vst.msk [vmem:[#allocation2 + $0x8] sm:$0x3] %vm309_vm6, %v1393_v61  ;;  %4106 = vmatmul.msk.f32.vlgmr.msra.gmra.mxu0 %vm236_vm7, %v1393_v61 }
0x1be6   :  { %v1415_v20 = vpop.f32.mrf.mxu0 }
0x1be7   :  { %v1441_v0 = vadd.f32 %v1415_v20, %v5088_v1  ;;  %v1419_v3 = vrot.slane %v1415_v20, 6 }
0x1be9   :  { %v1443_v2 = vrot.slane %v1441_v0, 6  ;;  %v1421_v9 = vadd.f32 %v1419_v3, %v5207_v12 }
0x1beb   :  { %1444 = vrot.lane.b32.xlu1 %v1443_v2, %s4657_s4  ;;  %v4107_v17 = vmul.f32 -1.442695, %v1421_v9 }
0x1bed   :  { %4291 = vpow2.f32 %v4107_v17 }
0x1bf3   :  { %v4292_v13 = vpop.eup %4291 }
0x1bf4   :  { %v1425_v19 = vadd.f32 1.0, %v4292_v13 }
0x1bf6   :  { %4293 = vrcp.f32 %v1425_v19  ;;  %v1437_v27 = vand.u32 2147483648, %v1425_v19  ;;  %vm1431_vm14 = vweird.f32 %v1425_v19  ;;  %v1435_v28 = vand.u32 2147483647, %v1425_v19 }
0x1bf8   :  { %v1438_v30 = vor.u32 1.1754944e-38, %v1437_v27  ;;  %vm1436_vm0 = vcmp.eq.f32.partialorder %v1435_v28, 8.507059e+37  ;;  %v1770_v28 = vld [vmem:[%s6048_s7 + $0x10] sm:$0xff] }
0x1bfc   :  { %v4294_v21 = vpop.eup %4293 }
0x1bfd   :  { %v1427_v22 = vmul.f32 %v4294_v21, %v1425_v19  ;;  %vm1432_vm13 = vweird.f32 %v4294_v21 }
0x1bfe   :  { %vm1433_vm15 = vmor %vm1431_vm14, %vm1432_vm13 }
0x1bff   :  { %v1428_v25 = vsub.f32 1.0, %v1427_v22  ;;  %v929_v22 = vrot.slane %v5168_v4, 6 }
0x1c01   :  { %v1429_v26 = vmul.f32 %v4294_v21, %v1428_v25  ;;  %v931_v25 = vadd.f32 %v929_v22, %v5136_v23 }
0x1c03   :  { %v1430_v63 = vadd.f32 %v4294_v21, %v1429_v26  ;;  %v5251_v26 = vld [vmem:[#allocation3 + $0x18] sm:$0xff]  ;;  %v4093_v27 = vmul.f32 -1.442695, %v931_v25 }
0x1c04   :  { %1828 = vmatpush.msrb.mxu3 %v5251_v26  ;;  %1900 = vmatpush.msra.mxu0 %v5251_v26 }
0x1c05   :  { %v1434_v29 = vsel %vm1433_vm15, %v4294_v21, %v1430_v63  ;;  %v5253_v63 = vld [vmem:[#allocation3 + $0x10] sm:$0xff]  ;;  %1976 = vmatpush.msrb.mxu1 %v5251_v26 }
0x1c06   :  { %v1439_v32 = vsel %vm1436_vm0, %v1438_v30, %v1434_v29  ;;  %1829 = vmatpush.msrb.mxu3 %v5253_v63  ;;  %1901 = vmatpush.msra.mxu0 %v5253_v63  ;;  %v1769_v30 = vld [vmem:[%s6048_s7 + $0x8] sm:$0xff] }
0x1c07   :  { %v1454_v49 = vsub.f32 1.0, %v1439_v32  ;;  %v1462_v34 = vmul.f32 %v1460_v53, %v1439_v32  ;;  %1977 = vmatpush.msrb.mxu1 %v5253_v63 }
0x1c5d   :  { %v1445_v31 = vpop.permute.xlu1 %1444 }
0x1c5e   :  { %v1447_v42 = vmul.f32 %v1445_v31, %v1439_v32  ;;  %v1768_v31 = vld [vmem:[%s6048_s7] sm:$0xff] }
0x1c60   :  { %1449 = vrot.lane.b32.xlu2 %v1447_v42, %s4657_s4  ;;  %v4198_v42 = vld [vmem:[%s6001_s13] ss:$0 sm:$0xff] }
0x1cba   :  { %v1450_v10 = vpop.permute.xlu2 %1449 }
0x1cbb   :  { %v1452_v15 = vadd.f32 %v1450_v10, %v5207_v12 }
0x1cbd   :  { %4295 = vtanh.f32 %v1452_v15 }
0x1cc3   :  { %v4296_v52 = vpop.eup %4295 }
0x1cc4   :  { %1456 = vrot.lane.b32.xlu0 %v4296_v52, %s4659_s8 }
0x1d36   :  { %v1457_v33 = vpop.permute.xlu0 %1456 }
0x1d37   :  { %v1459_v16 = vmul.f32 %v1457_v33, %v1454_v49 }
0x1d39   :  { %v5222_v11 = vadd.f32 %v1462_v34, %v1459_v16 }
0x1d3b   :  { %v1469_v62 = vrot.slane %v5222_v11, 2  ;;  %v1536_v2 = vrot.slane %v5222_v11, 6 }
0x1d3d   :  { %1470 = vrot.lane.b32.xlu1 %v1469_v62, %s4659_s8 }
0x1daf   :  { %v1471_v35 = vpop.permute.xlu1 %1470 }
0x1db0   :  { %4108 = vmatmul.msk.f32.vlgmr.msrb.gmra.mxu2 %vm236_vm7, %v1471_v35 }
0x1e33   :  { %v1491_v36 = vpop.f32.mrf.mxu2 }
0x1e34   :  { %v1517_v37 = vadd.f32 %v1491_v36, %v5088_v1  ;;  %v1495_v39 = vrot.slane %v1491_v36, 4 }
0x1e36   :  { %v1519_v38 = vrot.slane %v1517_v37, 4  ;;  %v1497_v40 = vadd.f32 %v1495_v39, %v5207_v12 }
0x1e38   :  { %1520 = vrot.lane.b32.xlu2 %v1519_v38, %s4657_s4  ;;  %v4109_v41 = vmul.f32 -1.442695, %v1497_v40 }
0x1e3a   :  { %4297 = vpow2.f32 %v4109_v41 }
0x1e40   :  { %v4298_v43 = vpop.eup %4297 }
0x1e41   :  { %v1501_v44 = vadd.f32 1.0, %v4298_v43 }
0x1e43   :  { %4299 = vrcp.f32 %v1501_v44  ;;  %v1513_v50 = vand.u32 2147483648, %v1501_v44  ;;  %vm1507_vm5 = vweird.f32 %v1501_v44  ;;  %v1511_v51 = vand.u32 2147483647, %v1501_v44 }
0x1e45   :  { %v1514_v55 = vor.u32 1.1754944e-38, %v1513_v50  ;;  %vm1512_vm9 = vcmp.eq.f32.partialorder %v1511_v51, 8.507059e+37 }
0x1e49   :  { %v4300_v45 = vpop.eup %4299 }
0x1e4a   :  { %v1503_v46 = vmul.f32 %v4300_v45, %v1501_v44  ;;  %vm1508_vm1 = vweird.f32 %v4300_v45 }
0x1e4b   :  { %vm1509_vm8 = vmor %vm1507_vm5, %vm1508_vm1 }
0x1e4c   :  { %v1504_v6 = vsub.f32 1.0, %v1503_v46 }
0x1e4e   :  { %v1505_v47 = vmul.f32 %v4300_v45, %v1504_v6 }
0x1e50   :  { %v1506_v48 = vadd.f32 %v4300_v45, %v1505_v47 }
0x1e52   :  { %v1510_v54 = vsel %vm1509_vm8, %v4300_v45, %v1506_v48 }
0x1e53   :  { %v1515_v57 = vsel %vm1512_vm9, %v1514_v55, %v1510_v54 }
0x1e54   :  { %v1530_v0 = vsub.f32 1.0, %v1515_v57  ;;  %v1538_v9 = vmul.f32 %v1536_v2, %v1515_v57 }
0x1e92   :  { %v1521_v56 = vpop.permute.xlu2 %1520 }
0x1e93   :  { %v1523_v58 = vmul.f32 %v1521_v56, %v1515_v57  ;;  %v970_v57 = vrot.slane %v5148_v14, 6 }
0x1e95   :  { %1525 = vrot.lane.b32.xlu0 %v1523_v58, %s4657_s4 }
0x1e9d   :  { %1169 = vrot.lane.b32.xlu0 %v5153_v24, %s4659_s8 }
0x1ea5   :  { %1858 = vrot.lane.b32.xlu0 %v4198_v42, %s4657_s4 }
0x1f07   :  { %v1526_v59 = vpop.permute.xlu0 %1525 }
0x1f08   :  { %v1528_v60 = vadd.f32 %v1526_v59, %v5207_v12 }
0x1f0a   :  { %4301 = vtanh.f32 %v1528_v60 }
0x1f0b   :  { %4303 = vpow2.f32 %v4093_v27 }
0x1f0f   :  { %v1170_v61 = vpop.permute.xlu0 %1169 }
0x1f10   :  { %v4302_v20 = vpop.eup %4301  ;;  %1172 = vst.msk [vmem:[#allocation2] sm:$0xc] %vm383_vm2, %v1170_v61 }
0x1f11   :  { %1532 = vrot.lane.b32.xlu1 %v4302_v20, %s4659_s8  ;;  %v4304_v29 = vpop.eup %4303 }
0x1f12   :  { %v935_v32 = vadd.f32 1.0, %v4304_v29 }
0x1f14   :  { %4305 = vrcp.f32 %v935_v32  ;;  %v947_v34 = vand.u32 2147483648, %v935_v32  ;;  %vm941_vm11 = vweird.f32 %v935_v32  ;;  %v945_v62 = vand.u32 2147483647, %v935_v32 }
0x1f16   :  { %v948_v36 = vor.u32 1.1754944e-38, %v947_v34  ;;  %vm946_vm13 = vcmp.eq.f32.partialorder %v945_v62, 8.507059e+37 }
0x1f17   :  { %v5308_v6 = vpop.permute.xlu0 %1858 }
0x1f19   :  { %1245 = vrot.lane.b32.xlu1 %v5177_v5, %s4659_s8  ;;  %v951_v5 = vadd.f32 %v5168_v4, %v4909_v8  ;;  %v5262_v8 = vld [vmem:[#allocation3] sm:$0xff] }
0x1f1a   :  { %v1771_v4 = vld [vmem:[%s6048_s7 + $0x18] sm:$0xff]  ;;  %v4306_v10 = vpop.eup %4305 }
0x1f1b   :  { %v953_v21 = vrot.slane %v951_v5, 6  ;;  %1797 = vmatpush.msra.mxu2 %v1771_v4  ;;  %v937_v15 = vmul.f32 %v4306_v10, %v935_v32  ;;  %vm942_vm10 = vweird.f32 %v4306_v10 }
0x1f1c   :  { %vm943_vm12 = vmor %vm941_vm11, %vm942_vm10 }
0x1f1d   :  { %1798 = vmatpush.msra.mxu2 %v1770_v28  ;;  %v938_v53 = vsub.f32 1.0, %v937_v15 }
0x1f1f   :  { %1799 = vmatpush.msra.mxu2 %v1769_v30  ;;  %v939_v49 = vmul.f32 %v4306_v10, %v938_v53 }
0x1f21   :  { %1800 = vmatpush.msra.mxu2 %v1768_v31  ;;  %v940_v16 = vadd.f32 %v4306_v10, %v939_v49 }
0x1f23   :  { %2492 = vmatpush.msrb.mxu2 %v5251_v26  ;;  %v944_v35 = vsel %vm943_vm12, %v4306_v10, %v940_v16 }
0x1f24   :  { %v949_v39 = vsel %vm946_vm13, %v948_v36, %v944_v35 }
0x1f25   :  { %2493 = vmatpush.msrb.mxu2 %v5253_v63  ;;  %v964_v58 = vsub.f32 1.0, %v949_v39  ;;  %v972_v61 = vmul.f32 %v970_v57, %v949_v39 }
0x1f83   :  { %v1533_v3 = vpop.permute.xlu1 %1532 }
0x1f84   :  { %v1535_v17 = vmul.f32 %v1533_v3, %v1530_v0 }
0x1f86   :  { %v5239_v24 = vadd.f32 %v1538_v9, %v1535_v17 }
0x1f88   :  { %v1545_v13 = vrot.slane %v5239_v24, 4 }
0x1f8a   :  { %1546 = vrot.lane.b32.xlu2 %v1545_v13, %s4659_s8 }
0x1f8b   :  { %v1246_v19 = vpop.permute.xlu1 %1245 }
0x1f8c   :  { %1248 = vst.msk [vmem:[#allocation2] sm:$0x30] %vm460_vm3, %v1246_v19 }
0x1f92   :  { %1321 = vrot.lane.b32.xlu2 %v5194_v18, %s4659_s8  ;;  %v5257_v18 = vld [vmem:[#allocation3 + $0x8] sm:$0xff] }
0x1f93   :  { %1830 = vmatpush.msrb.mxu3 %v5257_v18  ;;  %1902 = vmatpush.msra.mxu0 %v5257_v18 }
0x1f94   :  { %1978 = vmatpush.msrb.mxu1 %v5257_v18  ;;  %2494 = vmatpush.msrb.mxu2 %v5257_v18 }
0x1f95   :  { %1831 = vmatpush.msrb.mxu3 %v5262_v8  ;;  %1903 = vmatpush.msra.mxu0 %v5262_v8 }
0x1f96   :  { %1979 = vmatpush.msrb.mxu1 %v5262_v8  ;;  %2495 = vmatpush.msrb.mxu2 %v5262_v8 }
0x1f9a   :  { %954 = vrot.lane.b32.xlu2 %v953_v21, %s4657_s4 }
0x1fe4   :  { %v1547_v52 = vpop.permute.xlu2 %1546 }
0x1fe5   :  { %4110 = vmatmul.msk.f32.vlgmr.msra.gmra.mxu3 %vm236_vm7, %v1547_v52 }
0x1fe6   :  { %2052 = vmatpush.msra.mxu3 %v5251_v26 }
0x1fe8   :  { %2053 = vmatpush.msra.mxu3 %v5253_v63 }
0x1fea   :  { %2054 = vmatpush.msra.mxu3 %v5257_v18 }
0x1fec   :  { %v1322_v33 = vpop.permute.xlu2 %1321  ;;  %2055 = vmatpush.msra.mxu3 %v5262_v8 }
0x1fed   :  { %1324 = vst.msk [vmem:[#allocation2] sm:$0xc0] %vm537_vm4, %v1322_v33  ;;  %1832 = vmatmul.f32.vlgmr.msrb.gmra.mxu3 %v4658_v7 }
0x1fee   :  { %2272 = vmatpush.msrb.mxu3 %v5251_v26 }
0x1ff0   :  { %2273 = vmatpush.msrb.mxu3 %v5253_v63 }
0x1ff2   :  { %2274 = vmatpush.msrb.mxu3 %v5257_v18 }
0x1ff4   :  { %v1765_v37 = vld [vmem:[#allocation2] sm:$0xff]  ;;  %v955_v38 = vpop.permute.xlu2 %954  ;;  %2275 = vmatpush.msrb.mxu3 %v5262_v8 }
0x1ff5   :  { %v957_v7 = vmul.f32 %v955_v38, %v949_v39  ;;  %4116 = vmatmul.msk.f32.vlgmr.msra.gmra.mxu2 %vm236_vm7, %v1765_v37 }
0x1ff7   :  { %959 = vrot.lane.b32.xlu2 %v957_v7, %s4657_s4 }
0x2051   :  { %v960_v40 = vpop.permute.xlu2 %959 }
0x2052   :  { %v962_v41 = vadd.f32 %v960_v40, %v5136_v23  ;;  %v5315_v23 = vld [vmem:[%s6049_s6] ss:$0 sm:$0xff] }
0x2054   :  { %4307 = vtanh.f32 %v962_v41 }
0x205a   :  { %v4308_v43 = vpop.eup %4307 }
0x205b   :  { %966 = vrot.lane.b32.xlu2 %v4308_v43, %s4659_s8 }
0x2068   :  { %v1567_v44 = vpop.f32.mrf.mxu3 }
0x2069   :  { %v1593_v45 = vadd.f32 %v1567_v44, %v5088_v1  ;;  %v1571_v50 = vrot.slane %v1567_v44, 2 }
0x206b   :  { %v1595_v46 = vrot.slane %v1593_v45, 2  ;;  %v1573_v54 = vadd.f32 %v1571_v50, %v5207_v12  ;;  %v1612_v45 = vrot.slane %v5239_v24, 6 }
0x206d   :  { %1596 = vrot.lane.b32.xlu1 %v1595_v46, %s4657_s4  ;;  %v4111_v56 = vmul.f32 -1.442695, %v1573_v54 }
0x206f   :  { %4309 = vpow2.f32 %v4111_v56 }
0x2070   :  { %v1833_v47 = vpop.f32.mrf.mxu3 }
0x2071   :  { %v1861_v48 = vadd.f32 %v5308_v6, %v1833_v47 }
0x2073   :  { %1863 = vrot.lane.b32.xlu0 %v1861_v48, %s4657_s4 }
0x2075   :  { %v4310_v3 = vpop.eup %4309 }
0x2076   :  { %v1577_v9 = vadd.f32 1.0, %v4310_v3 }
0x2078   :  { %v1802_v51 = vpop.f32.mrf.mxu2  ;;  %v1589_v28 = vand.u32 2147483648, %v1577_v9  ;;  %vm1583_vm15 = vweird.f32 %v1577_v9  ;;  %v1587_v29 = vand.u32 2147483647, %v1577_v9 }
0x2079   :  { %v5319_v55 = vadd.f32 %v5315_v23, %v1802_v51 }
0x207a   :  { %v1590_v32 = vor.u32 1.1754944e-38, %v1589_v28  ;;  %vm1588_vm1 = vcmp.eq.f32.partialorder %v1587_v29, 8.507059e+37 }
0x207b   :  { %v1836_v59 = vadd.f32 %v1833_v47, %v5319_v55 }
0x207d   :  { %v4119_v2 = vmul.f32 -1.442695, %v1836_v59 }
0x207f   :  { %4311 = vpow2.f32 %v4119_v2 }
0x2080   :  { %4313 = vrcp.f32 %v1577_v9 }
0x2085   :  { %v4312_v17 = vpop.eup %4311 }
0x2086   :  { %v1840_v13 = vadd.f32 1.0, %v4312_v17  ;;  %v4314_v14 = vpop.eup %4313 }
0x2087   :  { %v1579_v19 = vmul.f32 %v4314_v14, %v1577_v9  ;;  %vm1584_vm14 = vweird.f32 %v4314_v14 }
0x2088   :  { %4315 = vrcp.f32 %v1840_v13  ;;  %vm1585_vm0 = vmor %vm1583_vm15, %vm1584_vm14  ;;  %v1852_v52 = vand.u32 2147483648, %v1840_v13  ;;  %vm1846_vm8 = vweird.f32 %v1840_v13  ;;  %v1850_v49 = vand.u32 2147483647, %v1840_v13 }
0x2089   :  { %v1580_v21 = vsub.f32 1.0, %v1579_v19 }
0x208a   :  { %v1853_v16 = vor.u32 1.1754944e-38, %v1852_v52  ;;  %vm1851_vm10 = vcmp.eq.f32.partialorder %v1850_v49, 8.507059e+37  ;;  %v4495_v52 = vld [vmem:[%s6047_s12] ss:$0 sm:$0xff] }
0x208b   :  { %v1581_v25 = vmul.f32 %v4314_v14, %v1580_v21 }
0x208d   :  { %v1582_v4 = vadd.f32 %v4314_v14, %v1581_v25 }
0x208e   :  { %v4316_v5 = vpop.eup %4315 }
0x208f   :  { %v1842_v22 = vmul.f32 %v4316_v5, %v1840_v13  ;;  %v1586_v31 = vsel %vm1585_vm0, %v4314_v14, %v1582_v4  ;;  %vm1847_vm5 = vweird.f32 %v4316_v5 }
0x2090   :  { %v1591_v10 = vsel %vm1588_vm1, %v1590_v32, %v1586_v31  ;;  %vm1848_vm9 = vmor %vm1846_vm8, %vm1847_vm5 }
0x2091   :  { %v1843_v27 = vsub.f32 1.0, %v1842_v22  ;;  %v1606_v44 = vsub.f32 1.0, %v1591_v10  ;;  %v1614_v47 = vmul.f32 %v1612_v45, %v1591_v10 }
0x2093   :  { %v1844_v30 = vmul.f32 %v4316_v5, %v1843_v27 }
0x2095   :  { %v1845_v42 = vadd.f32 %v4316_v5, %v1844_v30 }
0x2097   :  { %v1849_v33 = vsel %vm1848_vm9, %v4316_v5, %v1845_v42 }
0x2098   :  { %v1854_v34 = vsel %vm1851_vm10, %v1853_v16, %v1849_v33 }
0x2099   :  { %v1879_v56 = vmul.f32 0.0, %v1854_v34 }
0x20b5   :  { %v967_v60 = vpop.permute.xlu2 %966 }
0x20b6   :  { %v969_v20 = vmul.f32 %v967_v60, %v964_v58 }
0x20b8   :  { %v5323_v0 = vadd.f32 %v972_v61, %v969_v20 }
0x20ba   :  { %975 = vrot.lane.b32.xlu2 %v5323_v0, %s4659_s8 }
0x20df   :  { %v1597_v15 = vpop.permute.xlu1 %1596 }
0x20e0   :  { %v1599_v53 = vmul.f32 %v1597_v15, %v1591_v10 }
0x20e2   :  { %1601 = vrot.lane.b32.xlu1 %v1599_v53, %s4657_s4 }
0x20e5   :  { %v1864_v62 = vpop.permute.xlu0 %1863 }
0x20e6   :  { %v1866_v35 = vmul.f32 %v1864_v62, %v1854_v34 }
0x20e8   :  { %1868 = vrot.lane.b32.xlu0 %v1866_v35, %s4657_s4 }
0x2114   :  { %v976_v36 = vpop.permute.xlu2 %975 }
0x2115   :  { %978 = vst.msk [vmem:[#allocation2 + $0x10] sm:$0xc] %vm383_vm2, %v976_v36 }
0x211c   :  { %v981_v37 = vld [vmem:[#allocation2 + $0x10] sm:$0xf] }
0x211d   :  { %4096 = vmatmul.msk.f32.gmra.mxu1 %vm236_vm7, %v981_v37 }
0x2154   :  { %v1602_v38 = vpop.permute.xlu1 %1601 }
0x2155   :  { %v1604_v39 = vadd.f32 %v1602_v38, %v5207_v12  ;;  %v1873_v12 = vsub.f32 1.0, %v1854_v34 }
0x2157   :  { %4317 = vtanh.f32 %v1604_v39 }
0x215a   :  { %v1869_v7 = vpop.permute.xlu0 %1868 }
0x215b   :  { %v1871_v40 = vadd.f32 %v1869_v7, %v5319_v55 }
0x215d   :  { %v4318_v41 = vpop.eup %4317  ;;  %4319 = vtanh.f32 %v1871_v40 }
0x215e   :  { %1608 = vrot.lane.b32.xlu1 %v4318_v41, %s4659_s8 }
0x2163   :  { %v4320_v43 = vpop.eup %4319 }
0x2164   :  { %1875 = vrot.lane.b32.xlu0 %v4320_v43, %s4659_s8 }
0x219a   :  { %v1022_v15 = vpop.f32.mrf.mxu1 }
0x219b   :  { %v5362_v53 = vadd.f32 %v4495_v52, %v1022_v15 }
0x21d0   :  { %v1609_v46 = vpop.permute.xlu1 %1608 }
0x21d1   :  { %v1611_v48 = vmul.f32 %v1609_v46, %v1606_v44 }
0x21d3   :  { %v5336_v50 = vadd.f32 %v1614_v47, %v1611_v48 }
0x21d5   :  { %v1621_v51 = vrot.slane %v5336_v50, 6 }
0x21d6   :  { %v1876_v54 = vpop.permute.xlu0 %1875 }
0x21d7   :  { %v1878_v57 = vmul.f32 %v1876_v54, %v1873_v12  ;;  %1622 = vrot.lane.b32.xlu1 %v1621_v51, %s4659_s8 }
0x21d9   :  { %v1880_v58 = vadd.f32 %v1879_v56, %v1878_v57 }
0x21db   :  { %1882 = vrot.lane.b32.xlu0 %v1880_v58, %s4659_s8  ;;  %v1950_v31 = vrot.slane %v1880_v58, 6 }
0x2249   :  { %v1623_v59 = vpop.permute.xlu1 %1622 }
0x224a   :  { %4112 = vmatmul.msk.f32.vlgmr.msrb.gmra.mxu0 %vm236_vm7, %v1623_v59 }
0x224b   :  { %2128 = vmatpush.msrb.mxu0 %v5251_v26 }
0x224d   :  { %v1883_v60 = vpop.permute.xlu0 %1882  ;;  %2129 = vmatpush.msrb.mxu0 %v5253_v63 }
0x224e   :  { %1885 = vst.msk [vmem:[#allocation2] sm:$0x3] %vm309_vm6, %v1883_v60 }
0x224f   :  { %2130 = vmatpush.msrb.mxu0 %v5257_v18 }
0x2251   :  { %2131 = vmatpush.msrb.mxu0 %v5262_v8 }
0x2252   :  { %4120 = vmatmul.msk.f32.vlgmr.msra.gmra.mxu0 %vm236_vm7, %v1883_v60 }
0x2253   :  { %2348 = vmatpush.msra.mxu0 %v5251_v26 }
0x2255   :  { %2349 = vmatpush.msra.mxu0 %v5253_v63 }
0x2257   :  { %2350 = vmatpush.msra.mxu0 %v5257_v18 }
0x2259   :  { %2351 = vmatpush.msra.mxu0 %v5262_v8 }
0x22c7   :  { %v1643_v61 = vpop.f32.mrf.mxu0 }
0x22c8   :  { %v1666_v20 = vadd.f32 %v1643_v61, %v5088_v1  ;;  %v1646_v49 = vadd.f32 %v1643_v61, %v5362_v53 }
0x22ca   :  { %1668 = vrot.lane.b32.xlu1 %v1666_v20, %s4657_s4  ;;  %v4113_v33 = vmul.f32 -1.442695, %v1646_v49 }
0x22cf   :  { %v1905_v2 = vpop.f32.mrf.mxu0 }
0x22d0   :  { %v1909_v3 = vrot.slane %v1905_v2, 6  ;;  %v1931_v9 = vadd.f32 %v1905_v2, %v5308_v6 }
0x22d2   :  { %v1911_v17 = vadd.f32 %v1909_v3, %v5319_v55  ;;  %v1933_v13 = vrot.slane %v1931_v9, 6 }
0x22d4   :  { %v4121_v14 = vmul.f32 -1.442695, %v1911_v17  ;;  %1934 = vrot.lane.b32.xlu2 %v1933_v13, %s4657_s4 }
0x22d6   :  { %4321 = vpow2.f32 %v4121_v14 }
0x22dc   :  { %v4322_v19 = vpop.eup %4321 }
0x22dd   :  { %v1915_v5 = vadd.f32 1.0, %v4322_v19 }
0x22df   :  { %4323 = vrcp.f32 %v1915_v5  ;;  %v1927_v27 = vand.u32 2147483648, %v1915_v5  ;;  %v1925_v28 = vand.u32 2147483647, %v1915_v5  ;;  %vm1921_vm12 = vweird.f32 %v1915_v5 }
0x22e0   :  { %4325 = vpow2.f32 %v4113_v33 }
0x22e1   :  { %v1928_v30 = vor.u32 1.1754944e-38, %v1927_v27  ;;  %vm1926_vm14 = vcmp.eq.f32.partialorder %v1925_v28, 8.507059e+37 }
0x22e5   :  { %v4324_v21 = vpop.eup %4323 }
0x22e6   :  { %v1917_v22 = vmul.f32 %v4324_v21, %v1915_v5  ;;  %vm1922_vm11 = vweird.f32 %v4324_v21  ;;  %v4326_v16 = vpop.eup %4325 }
0x22e7   :  { %vm1923_vm13 = vmor %vm1921_vm12, %vm1922_vm11  ;;  %v1650_v34 = vadd.f32 1.0, %v4326_v16 }
0x22e8   :  { %v1918_v25 = vsub.f32 1.0, %v1917_v22 }
0x22e9   :  { %4327 = vrcp.f32 %v1650_v34  ;;  %v1662_v40 = vand.u32 2147483648, %v1650_v34  ;;  %vm1656_vm0 = vweird.f32 %v1650_v34  ;;  %v1660_v41 = vand.u32 2147483647, %v1650_v34 }
0x22ea   :  { %v1919_v4 = vmul.f32 %v4324_v21, %v1918_v25 }
0x22eb   :  { %v1663_v44 = vor.u32 1.1754944e-38, %v1662_v40  ;;  %vm1661_vm5 = vcmp.eq.f32.partialorder %v1660_v41, 8.507059e+37 }
0x22ec   :  { %v1920_v29 = vadd.f32 %v4324_v21, %v1919_v4 }
0x22ee   :  { %v1924_v32 = vsel %vm1923_vm13, %v4324_v21, %v1920_v29 }
0x22ef   :  { %v1929_v42 = vsel %vm1926_vm14, %v1928_v30, %v1924_v32  ;;  %v4328_v62 = vpop.eup %4327 }
0x22f0   :  { %v1952_v10 = vmul.f32 %v1950_v31, %v1929_v42  ;;  %v1652_v35 = vmul.f32 %v4328_v62, %v1650_v34  ;;  %vm1657_vm15 = vweird.f32 %v4328_v62  ;;  %v1944_v3 = vsub.f32 1.0, %v1929_v42 }
0x22f1   :  { %vm1658_vm1 = vmor %vm1656_vm0, %vm1657_vm15 }
0x22f2   :  { %v1653_v36 = vsub.f32 1.0, %v1652_v35 }
0x22f4   :  { %v1654_v39 = vmul.f32 %v4328_v62, %v1653_v36 }
0x22f6   :  { %v1655_v7 = vadd.f32 %v4328_v62, %v1654_v39 }
0x22f8   :  { %v1659_v43 = vsel %vm1658_vm1, %v4328_v62, %v1655_v7 }
0x22f9   :  { %v1664_v46 = vsel %vm1661_vm5, %v1663_v44, %v1659_v43 }
0x22fa   :  { %v1678_v59 = vsub.f32 1.0, %v1664_v46  ;;  %v1685_v61 = vmul.f32 %v1664_v46, %v1621_v51 }
0x232e   :  { %v1935_v37 = vpop.permute.xlu2 %1934 }
0x232f   :  { %v1937_v38 = vmul.f32 %v1935_v37, %v1929_v42 }
0x2331   :  { %1939 = vrot.lane.b32.xlu1 %v1937_v38, %s4657_s4 }
0x233c   :  { %v1669_v45 = vpop.permute.xlu1 %1668 }
0x233d   :  { %v1671_v47 = vmul.f32 %v1669_v45, %v1664_v46 }
0x233f   :  { %1673 = vrot.lane.b32.xlu0 %v1671_v47, %s4657_s4 }
0x23a3   :  { %v1940_v48 = vpop.permute.xlu1 %1939 }
0x23a4   :  { %v1942_v12 = vadd.f32 %v1940_v48, %v5319_v55 }
0x23a6   :  { %4329 = vtanh.f32 %v1942_v12 }
0x23ac   :  { %v4330_v54 = vpop.eup %4329 }
0x23ad   :  { %1946 = vrot.lane.b32.xlu0 %v4330_v54, %s4659_s8 }
0x23b1   :  { %v1674_v56 = vpop.permute.xlu0 %1673 }
0x23b2   :  { %v1676_v57 = vadd.f32 %v1674_v56, %v5362_v53 }
0x23b4   :  { %4331 = vtanh.f32 %v1676_v57 }
0x23ba   :  { %v4332_v58 = vpop.eup %4331 }
0x23bb   :  { %1680 = vrot.lane.b32.xlu2 %v4332_v58, %s4659_s8 }
0x2415   :  { %v1681_v60 = vpop.permute.xlu2 %1680 }
0x2416   :  { %v1683_v20 = vmul.f32 %v1681_v60, %v1678_v59 }
0x2418   :  { %v5373_v2 = vadd.f32 %v1685_v61, %v1683_v20 }
0x241a   :  { %1688 = vrot.lane.b32.xlu1 %v5373_v2, %s4659_s8 }
0x241f   :  { %v1947_v9 = vpop.permute.xlu0 %1946 }
0x2420   :  { %v1949_v17 = vmul.f32 %v1947_v9, %v1944_v3 }
0x2422   :  { %v5377_v13 = vadd.f32 %v1952_v10, %v1949_v17 }
0x2424   :  { %v1959_v14 = vrot.slane %v5377_v13, 2  ;;  %v2026_v36 = vrot.slane %v5377_v13, 6 }
0x2426   :  { %1960 = vrot.lane.b32.xlu2 %v1959_v14, %s4659_s8 }
0x2480   :  { %v1961_v51 = vpop.permute.xlu2 %1960 }
0x248c   :  { %v1689_v19 = vpop.permute.xlu1 %1688 }
0x248d   :  { %1691 = vst.msk [vmem:[#allocation2 + $0x10] sm:$0x3] %vm309_vm6, %v1689_v19  ;;  %4114 = vmatmul.msk.f32.vlgmr.msra.gmra.mxu1 %vm236_vm7, %v1689_v19 }
0x248e   :  { %2196 = vmatpush.msra.mxu1 %v5251_v26 }
0x2490   :  { %2197 = vmatpush.msra.mxu1 %v5253_v63 }
0x2492   :  { %2198 = vmatpush.msra.mxu1 %v5257_v18 }
0x2494   :  { %2199 = vmatpush.msra.mxu1 %v5262_v8 }
0x2495   :  { %4122 = vmatmul.msk.f32.vlgmr.msrb.gmra.mxu1 %vm236_vm7, %v1961_v51 }
0x2496   :  { %2424 = vmatpush.msrb.mxu1 %v5251_v26 }
0x2498   :  { %2425 = vmatpush.msrb.mxu1 %v5253_v63 }
0x249a   :  { %2426 = vmatpush.msrb.mxu1 %v5257_v18 }
0x249c   :  { %2427 = vmatpush.msrb.mxu1 %v5262_v8 }
0x250a   :  { %v5392_v5 = vpop.f32.mrf.mxu1 }
0x2512   :  { %v1981_v21 = vpop.f32.mrf.mxu1 }
0x2513   :  { %v2007_v22 = vadd.f32 %v1981_v21, %v5308_v6  ;;  %v1985_v27 = vrot.slane %v1981_v21, 4 }
0x2515   :  { %v2009_v25 = vrot.slane %v2007_v22, 4  ;;  %v1987_v4 = vadd.f32 %v1985_v27, %v5319_v55 }
0x2517   :  { %2010 = vrot.lane.b32.xlu0 %v2009_v25, %s4657_s4  ;;  %v4123_v28 = vmul.f32 -1.442695, %v1987_v4 }
0x2519   :  { %4333 = vpow2.f32 %v4123_v28 }
0x251f   :  { %v4334_v26 = vpop.eup %4333 }
0x2520   :  { %v1991_v29 = vadd.f32 1.0, %v4334_v26 }
0x2522   :  { %4335 = vrcp.f32 %v1991_v29  ;;  %v2003_v32 = vand.u32 2147483648, %v1991_v29  ;;  %vm1997_vm9 = vweird.f32 %v1991_v29  ;;  %v2001_v42 = vand.u32 2147483647, %v1991_v29 }
0x2524   :  { %v2004_v15 = vor.u32 1.1754944e-38, %v2003_v32  ;;  %vm2002_vm11 = vcmp.eq.f32.partialorder %v2001_v42, 8.507059e+37 }
0x2528   :  { %v4336_v63 = vpop.eup %4335 }
0x2529   :  { %v1993_v18 = vmul.f32 %v4336_v63, %v1991_v29  ;;  %vm1998_vm8 = vweird.f32 %v4336_v63 }
0x252a   :  { %vm1999_vm10 = vmor %vm1997_vm9, %vm1998_vm8 }
0x252b   :  { %v1994_v30 = vsub.f32 1.0, %v1993_v18 }
0x252d   :  { %v1995_v8 = vmul.f32 %v4336_v63, %v1994_v30 }
0x252f   :  { %v1996_v31 = vadd.f32 %v4336_v63, %v1995_v8 }
0x2531   :  { %v2000_v10 = vsel %vm1999_vm10, %v4336_v63, %v1996_v31 }
0x2532   :  { %v2005_v49 = vsel %vm2002_vm11, %v2004_v15, %v2000_v10 }
0x2533   :  { %v2020_v35 = vsub.f32 1.0, %v2005_v49  ;;  %v2028_v38 = vmul.f32 %v2026_v36, %v2005_v49 }
0x2589   :  { %v2011_v52 = vpop.permute.xlu0 %2010 }
0x258a   :  { %v2013_v33 = vmul.f32 %v2011_v52, %v2005_v49 }
0x258c   :  { %2015 = vrot.lane.b32.xlu1 %v2013_v33, %s4657_s4 }
0x25fe   :  { %v2016_v16 = vpop.permute.xlu1 %2015 }
0x25ff   :  { %v2018_v34 = vadd.f32 %v2016_v16, %v5319_v55 }
0x2601   :  { %4337 = vtanh.f32 %v2018_v34 }
0x2607   :  { %v4338_v62 = vpop.eup %4337 }
0x2608   :  { %2022 = vrot.lane.b32.xlu2 %v4338_v62, %s4659_s8 }
0x2662   :  { %v2023_v37 = vpop.permute.xlu2 %2022 }
0x2663   :  { %v2025_v39 = vmul.f32 %v2023_v37, %v2020_v35 }
0x2665   :  { %v5401_v7 = vadd.f32 %v2028_v38, %v2025_v39 }
0x2667   :  { %v2035_v40 = vrot.slane %v5401_v7, 4  ;;  %v2102_v4 = vrot.slane %v5401_v7, 6 }
0x2669   :  { %2036 = vrot.lane.b32.xlu0 %v2035_v40, %s4659_s8 }
0x26db   :  { %v2037_v41 = vpop.permute.xlu0 %2036 }
0x26dc   :  { %4124 = vmatmul.msk.f32.vlgmr.msra.gmra.mxu3 %vm236_vm7, %v2037_v41 }
0x275f   :  { %v2057_v43 = vpop.f32.mrf.mxu3 }
0x2760   :  { %v2083_v44 = vadd.f32 %v2057_v43, %v5308_v6  ;;  %v2061_v46 = vrot.slane %v2057_v43, 2 }
0x2762   :  { %v2085_v45 = vrot.slane %v2083_v44, 2  ;;  %v2063_v47 = vadd.f32 %v2061_v46, %v5319_v55 }
0x2764   :  { %2086 = vrot.lane.b32.xlu1 %v2085_v45, %s4657_s4  ;;  %v4125_v48 = vmul.f32 -1.442695, %v2063_v47 }
0x2766   :  { %4339 = vpow2.f32 %v4125_v48 }
0x276c   :  { %1465 = vrot.lane.b32.xlu1 %v5222_v11, %s4659_s8  ;;  %v4340_v12 = vpop.eup %4339 }
0x276d   :  { %v2067_v54 = vadd.f32 1.0, %v4340_v12 }
0x276f   :  { %4341 = vrcp.f32 %v2067_v54  ;;  %v2079_v61 = vand.u32 2147483648, %v2067_v54  ;;  %vm2073_vm13 = vweird.f32 %v2067_v54  ;;  %v2077_v20 = vand.u32 2147483647, %v2067_v54 }
0x2771   :  { %v2080_v11 = vor.u32 1.1754944e-38, %v2079_v61  ;;  %vm2078_vm15 = vcmp.eq.f32.partialorder %v2077_v20, 8.507059e+37 }
0x2775   :  { %v4342_v56 = vpop.eup %4341 }
0x2776   :  { %v2069_v57 = vmul.f32 %v4342_v56, %v2067_v54  ;;  %vm2074_vm12 = vweird.f32 %v4342_v56 }
0x2777   :  { %vm2075_vm14 = vmor %vm2073_vm13, %vm2074_vm12 }
0x2778   :  { %v2070_v58 = vsub.f32 1.0, %v2069_v57 }
0x277a   :  { %v2071_v59 = vmul.f32 %v4342_v56, %v2070_v58 }
0x277c   :  { %v2072_v60 = vadd.f32 %v4342_v56, %v2071_v59 }
0x277e   :  { %v2076_v3 = vsel %vm2075_vm14, %v4342_v56, %v2072_v60 }
0x277f   :  { %v2081_v17 = vsel %vm2078_vm15, %v2080_v11, %v2076_v3 }
0x2780   :  { %v2096_v27 = vsub.f32 1.0, %v2081_v17  ;;  %v2104_v26 = vmul.f32 %v2102_v4, %v2081_v17 }
0x27d6   :  { %v2087_v9 = vpop.permute.xlu1 %2086 }
0x27d7   :  { %v2089_v14 = vmul.f32 %v2087_v9, %v2081_v17 }
0x27d9   :  { %2091 = vrot.lane.b32.xlu2 %v2089_v14, %s4657_s4 }
0x27de   :  { %v1466_v19 = vpop.permute.xlu1 %1465 }
0x27df   :  { %1468 = vst.msk [vmem:[#allocation2 + $0x8] sm:$0xc] %vm383_vm2, %v1466_v19 }
0x27e1   :  { %1541 = vrot.lane.b32.xlu2 %v5239_v24, %s4659_s8 }
0x2833   :  { %v2092_v51 = vpop.permute.xlu2 %2091 }
0x2834   :  { %v2094_v21 = vadd.f32 %v2092_v51, %v5319_v55 }
0x2836   :  { %4343 = vtanh.f32 %v2094_v21 }
0x283b   :  { %v1542_v22 = vpop.permute.xlu2 %1541 }
0x283c   :  { %v4344_v25 = vpop.eup %4343  ;;  %1544 = vst.msk [vmem:[#allocation2 + $0x8] sm:$0x30] %vm460_vm3, %v1542_v22 }
0x283d   :  { %2098 = vrot.lane.b32.xlu0 %v4344_v25, %s4659_s8 }
0x2845   :  { %1617 = vrot.lane.b32.xlu0 %v5336_v50, %s4659_s8 }
0x28af   :  { %v2099_v28 = vpop.permute.xlu0 %2098 }
0x28b0   :  { %v2101_v29 = vmul.f32 %v2099_v28, %v2096_v27 }
0x28b2   :  { %v5421_v24 = vadd.f32 %v2104_v26, %v2101_v29 }
0x28b4   :  { %v2111_v55 = vrot.slane %v5421_v24, 6 }
0x28b6   :  { %2112 = vrot.lane.b32.xlu1 %v2111_v55, %s4659_s8 }
0x28b7   :  { %v1618_v63 = vpop.permute.xlu0 %1617 }
0x28b8   :  { %1620 = vst.msk [vmem:[#allocation2 + $0x8] sm:$0xc0] %vm537_vm4, %v1618_v63 }
0x28bf   :  { %v1766_v18 = vld [vmem:[#allocation2 + $0x8] sm:$0xff] }
0x28c0   :  { %4117 = vmatmul.msk.f32.gmra.mxu2 %vm236_vm7, %v1766_v18 }
0x2928   :  { %v2113_v30 = vpop.permute.xlu1 %2112 }
0x2929   :  { %4126 = vmatmul.msk.f32.vlgmr.msrb.gmra.mxu0 %vm236_vm7, %v2113_v30 }
0x2943   :  { %v1805_v31 = vpop.f32.mrf.mxu2 }
0x2944   :  { %v5431_v32 = vadd.f32 %v5315_v23, %v1805_v31 }
0x29a6   :  { %v2133_v50 = vpop.f32.mrf.mxu0 }
0x29a7   :  { %v2156_v8 = vadd.f32 %v2133_v50, %v5308_v6  ;;  %v2136_v42 = vadd.f32 %v2133_v50, %v5431_v32 }
0x29a9   :  { %2158 = vrot.lane.b32.xlu2 %v2156_v8, %s4657_s4  ;;  %v4127_v10 = vmul.f32 -1.442695, %v2136_v42 }
0x29ab   :  { %4345 = vpow2.f32 %v4127_v10 }
0x29b1   :  { %v4346_v15 = vpop.eup %4345 }
0x29b2   :  { %v2140_v52 = vadd.f32 1.0, %v4346_v15 }
0x29b4   :  { %4347 = vrcp.f32 %v2140_v52  ;;  %v2152_v35 = vand.u32 2147483648, %v2140_v52  ;;  %vm2146_vm1 = vweird.f32 %v2140_v52  ;;  %v2150_v36 = vand.u32 2147483647, %v2140_v52 }
0x29b6   :  { %v2153_v23 = vor.u32 1.1754944e-38, %v2152_v35  ;;  %vm2151_vm8 = vcmp.eq.f32.partialorder %v2150_v36, 8.507059e+37 }
0x29ba   :  { %v4348_v49 = vpop.eup %4347 }
0x29bb   :  { %v2142_v33 = vmul.f32 %v4348_v49, %v2140_v52  ;;  %vm2147_vm0 = vweird.f32 %v4348_v49 }
0x29bc   :  { %vm2148_vm5 = vmor %vm2146_vm1, %vm2147_vm0 }
0x29bd   :  { %v2143_v16 = vsub.f32 1.0, %v2142_v33 }
0x29bf   :  { %v2144_v34 = vmul.f32 %v4348_v49, %v2143_v16 }
0x29c1   :  { %v2145_v62 = vadd.f32 %v4348_v49, %v2144_v34 }
0x29c3   :  { %v2149_v37 = vsel %vm2148_vm5, %v4348_v49, %v2145_v62 }
0x29c4   :  { %v2154_v38 = vsel %vm2151_vm8, %v2153_v23, %v2149_v37 }
0x29c5   :  { %v2168_v45 = vsub.f32 1.0, %v2154_v38  ;;  %v2175_v47 = vmul.f32 %v2154_v38, %v2111_v55 }
0x2a03   :  { %v2159_v39 = vpop.permute.xlu2 %2158 }
0x2a04   :  { %v2161_v40 = vmul.f32 %v2159_v39, %v2154_v38 }
0x2a06   :  { %2163 = vrot.lane.b32.xlu0 %v2161_v40, %s4657_s4 }
0x2a78   :  { %v2164_v41 = vpop.permute.xlu0 %2163 }
0x2a79   :  { %v2166_v43 = vadd.f32 %v2164_v41, %v5431_v32 }
0x2a7b   :  { %4349 = vtanh.f32 %v2166_v43 }
0x2a81   :  { %v4350_v44 = vpop.eup %4349 }
0x2a82   :  { %2170 = vrot.lane.b32.xlu1 %v4350_v44, %s4659_s8 }
0x2af4   :  { %v2171_v46 = vpop.permute.xlu1 %2170 }
0x2af5   :  { %v2173_v48 = vmul.f32 %v2171_v46, %v2168_v45 }
0x2af7   :  { %v2176_v12 = vadd.f32 %v2175_v47, %v2173_v48  ;;  %v2597_v48 = vrot.slane %v5323_v0, 2 }
0x2af9   :  { %2178 = vrot.lane.b32.xlu2 %v2176_v12, %s4659_s8  ;;  %v2246_v63 = vrot.slane %v2176_v12, 6  ;;  %v1737_v12 = vadd.f32 %v5392_v5, %v5088_v1 }
0x2b53   :  { %v2179_v54 = vpop.permute.xlu2 %2178 }
0x2b54   :  { %2181 = vst.msk [vmem:[#allocation2 + $0x8] sm:$0x3] %vm309_vm6, %v2179_v54  ;;  %4128 = vmatmul.msk.f32.vlgmr.msra.gmra.mxu1 %vm236_vm7, %v2179_v54  ;;  %v1739_v54 = vrot.slane %v1737_v12, 6 }
0x2bd1   :  { %v2201_v56 = vpop.f32.mrf.mxu1 }
0x2bd2   :  { %v2227_v57 = vadd.f32 %v2201_v56, %v5308_v6  ;;  %v2205_v59 = vrot.slane %v2201_v56, 6  ;;  %v1715_v56 = vrot.slane %v5392_v5, 6 }
0x2bd4   :  { %v2229_v58 = vrot.slane %v2227_v57, 6  ;;  %v2207_v60 = vadd.f32 %v2205_v59, %v5431_v32  ;;  %v1717_v57 = vadd.f32 %v1715_v56, %v5362_v53 }
0x2bd6   :  { %2230 = vrot.lane.b32.xlu0 %v2229_v58, %s4657_s4  ;;  %v4129_v61 = vmul.f32 -1.442695, %v2207_v60  ;;  %v4115_v58 = vmul.f32 -1.442695, %v1717_v57 }
0x2bd8   :  { %4351 = vpow2.f32 %v4129_v61 }
0x2bde   :  { %v4352_v20 = vpop.eup %4351 }
0x2bdf   :  { %v2211_v3 = vadd.f32 1.0, %v4352_v20 }
0x2be1   :  { %4353 = vrcp.f32 %v2211_v3  ;;  %v2223_v51 = vand.u32 2147483648, %v2211_v3  ;;  %vm2217_vm10 = vweird.f32 %v2211_v3  ;;  %v2221_v21 = vand.u32 2147483647, %v2211_v3 }
0x2be3   :  { %v2224_v25 = vor.u32 1.1754944e-38, %v2223_v51  ;;  %vm2222_vm12 = vcmp.eq.f32.partialorder %v2221_v21, 8.507059e+37 }
0x2be7   :  { %v4354_v11 = vpop.eup %4353 }
0x2be8   :  { %v2213_v9 = vmul.f32 %v4354_v11, %v2211_v3  ;;  %vm2218_vm9 = vweird.f32 %v4354_v11 }
0x2be9   :  { %vm2219_vm11 = vmor %vm2217_vm10, %vm2218_vm9  ;;  %vm2565_vm10 = vcmask 1042432  }
0x2bea   :  { %v2214_v17 = vsub.f32 1.0, %v2213_v9 }
0x2bec   :  { %v2215_v14 = vmul.f32 %v4354_v11, %v2214_v17 }
0x2bee   :  { %v2216_v19 = vadd.f32 %v4354_v11, %v2215_v14 }
0x2bf0   :  { %v2220_v22 = vsel %vm2219_vm11, %v4354_v11, %v2216_v19  ;;  %vm2558_vm11 = vcmask 23552  }
0x2bf1   :  { %v2225_v4 = vsel %vm2222_vm12, %v2224_v25, %v2220_v22 }
0x2bf2   :  { %v2240_v18 = vsub.f32 1.0, %v2225_v4  ;;  %v2248_v8 = vmul.f32 %v2246_v63, %v2225_v4 }
0x2c48   :  { %v2231_v27 = vpop.permute.xlu0 %2230 }
0x2c49   :  { %v2233_v28 = vmul.f32 %v2231_v27, %v2225_v4 }
0x2c4b   :  { %2235 = vrot.lane.b32.xlu1 %v2233_v28, %s4657_s4 }
0x2cbd   :  { %v2236_v26 = vpop.permute.xlu1 %2235 }
0x2cbe   :  { %v2238_v29 = vadd.f32 %v2236_v26, %v5431_v32 }
0x2cc0   :  { %4355 = vtanh.f32 %v2238_v29 }
0x2cc6   :  { %v4356_v55 = vpop.eup %4355 }
0x2cc7   :  { %2242 = vrot.lane.b32.xlu2 %v4356_v55, %s4659_s8 }
0x2d21   :  { %v2243_v30 = vpop.permute.xlu2 %2242 }
0x2d22   :  { %v2245_v50 = vmul.f32 %v2243_v30, %v2240_v18 }
0x2d24   :  { %v5446_v31 = vadd.f32 %v2248_v8, %v2245_v50 }
0x2d26   :  { %v2255_v42 = vrot.slane %v5446_v31, 2  ;;  %v2322_v63 = vrot.slane %v5446_v31, 6 }
0x2d28   :  { %2256 = vrot.lane.b32.xlu0 %v2255_v42, %s4659_s8 }
0x2d9a   :  { %v2257_v10 = vpop.permute.xlu0 %2256 }
0x2d9b   :  { %4130 = vmatmul.msk.f32.vlgmr.msrb.gmra.mxu3 %vm236_vm7, %v2257_v10  ;;  %v2551_v10 = vld [vmem:[%s6050_s0] sm:$0xff] }
0x2e1e   :  { %v2277_v15 = vpop.f32.mrf.mxu3 }
0x2e1f   :  { %v2303_v52 = vadd.f32 %v2277_v15, %v5308_v6  ;;  %v2281_v33 = vrot.slane %v2277_v15, 4  ;;  %v5483_v15 = vld [vmem:[#allocation5 + $0x18] sm:$0xff] }
0x2e20   :  { %2614 = vmatpush.msrb.mxu0 %v5483_v15  ;;  %2687 = vmatpush.msra.mxu1 %v5483_v15 }
0x2e21   :  { %v2305_v49 = vrot.slane %v2303_v52, 4  ;;  %v2283_v16 = vadd.f32 %v2281_v33, %v5431_v32  ;;  %v5485_v52 = vld [vmem:[#allocation5 + $0x10] sm:$0xff]  ;;  %2763 = vmatpush.msra.mxu2 %v5483_v15  ;;  %v5494_v33 = vld [vmem:[#allocation5] sm:$0xff] }
0x2e22   :  { %2615 = vmatpush.msrb.mxu0 %v5485_v52  ;;  %2688 = vmatpush.msra.mxu1 %v5485_v52 }
0x2e23   :  { %2306 = vrot.lane.b32.xlu1 %v2305_v49, %s4657_s4  ;;  %v4131_v34 = vmul.f32 -1.442695, %v2283_v16  ;;  %v5489_v49 = vld [vmem:[#allocation5 + $0x8] sm:$0xff]  ;;  %2764 = vmatpush.msra.mxu2 %v5485_v52 }
0x2e24   :  { %2616 = vmatpush.msrb.mxu0 %v5489_v49  ;;  %2689 = vmatpush.msra.mxu1 %v5489_v49  ;;  %v4200_v16 = vld [vmem:[%s6005_s17] ss:$0 sm:$0xff] }
0x2e25   :  { %4357 = vpow2.f32 %v4131_v34  ;;  %2765 = vmatpush.msra.mxu2 %v5489_v49 }
0x2e26   :  { %2617 = vmatpush.msrb.mxu0 %v5494_v33  ;;  %2690 = vmatpush.msra.mxu1 %v5494_v33 }
0x2e27   :  { %2766 = vmatpush.msra.mxu2 %v5494_v33 }
0x2e2b   :  { %v4358_v62 = vpop.eup %4357 }
0x2e2c   :  { %v2287_v35 = vadd.f32 1.0, %v4358_v62 }
0x2e2e   :  { %4359 = vrcp.f32 %v2287_v35  ;;  %v2299_v40 = vand.u32 2147483648, %v2287_v35  ;;  %vm2293_vm14 = vweird.f32 %v2287_v35  ;;  %v2297_v41 = vand.u32 2147483647, %v2287_v35 }
0x2e2f   :  { %4361 = vpow2.f32 %v4115_v58 }
0x2e30   :  { %v2300_v44 = vor.u32 1.1754944e-38, %v2299_v40  ;;  %vm2298_vm0 = vcmp.eq.f32.partialorder %v2297_v41, 8.507059e+37  ;;  %v5523_v40 = vld [vmem:[%s6004_s16] ss:$0 sm:$0xff] }
0x2e34   :  { %v4360_v36 = vpop.eup %4359 }
0x2e35   :  { %v2289_v37 = vmul.f32 %v4360_v36, %v2287_v35  ;;  %vm2294_vm13 = vweird.f32 %v4360_v36  ;;  %v4362_v59 = vpop.eup %4361 }
0x2e36   :  { %vm2295_vm15 = vmor %vm2293_vm14, %vm2294_vm13  ;;  %v1721_v60 = vadd.f32 1.0, %v4362_v59 }
0x2e37   :  { %v2290_v23 = vsub.f32 1.0, %v2289_v37 }
0x2e38   :  { %4363 = vrcp.f32 %v1721_v60  ;;  %v1733_v5 = vand.u32 2147483648, %v1721_v60  ;;  %vm1727_vm5 = vweird.f32 %v1721_v60  ;;  %v1731_v51 = vand.u32 2147483647, %v1721_v60 }
0x2e39   :  { %v2291_v38 = vmul.f32 %v4360_v36, %v2290_v23 }
0x2e3a   :  { %v1734_v22 = vor.u32 1.1754944e-38, %v1733_v5  ;;  %vm1732_vm9 = vcmp.eq.f32.partialorder %v1731_v51, 8.507059e+37 }
0x2e3b   :  { %v2292_v39 = vadd.f32 %v4360_v36, %v2291_v38 }
0x2e3d   :  { %v2296_v43 = vsel %vm2295_vm15, %v4360_v36, %v2292_v39 }
0x2e3e   :  { %v2301_v46 = vsel %vm2298_vm0, %v2300_v44, %v2296_v43  ;;  %v4364_v61 = vpop.eup %4363 }
0x2e3f   :  { %v1723_v20 = vmul.f32 %v4364_v61, %v1721_v60  ;;  %vm1728_vm1 = vweird.f32 %v4364_v61  ;;  %v2316_v55 = vsub.f32 1.0, %v2301_v46  ;;  %v2324_v30 = vmul.f32 %v2322_v63, %v2301_v46 }
0x2e40   :  { %vm1729_vm8 = vmor %vm1727_vm5, %vm1728_vm1 }
0x2e41   :  { %v1724_v9 = vsub.f32 1.0, %v1723_v20 }
0x2e43   :  { %v1725_v1 = vmul.f32 %v4364_v61, %v1724_v9 }
0x2e45   :  { %v1726_v19 = vadd.f32 %v4364_v61, %v1725_v1 }
0x2e47   :  { %v1730_v21 = vsel %vm1729_vm8, %v4364_v61, %v1726_v19 }
0x2e48   :  { %v5466_v25 = vsel %vm1732_vm9, %v1734_v22, %v1730_v21 }
0x2e95   :  { %v2307_v45 = vpop.permute.xlu1 %2306 }
0x2e96   :  { %v2309_v47 = vmul.f32 %v2307_v45, %v2301_v46 }
0x2e98   :  { %2311 = vrot.lane.b32.xlu2 %v2309_v47, %s4657_s4 }
0x2ea0   :  { %2598 = vrot.lane.b32.xlu2 %v2597_v48, %s4659_s8 }
0x2ea8   :  { %1740 = vrot.lane.b32.xlu2 %v1739_v54, %s4657_s4 }
0x2ef2   :  { %v2312_v3 = vpop.permute.xlu2 %2311 }
0x2ef3   :  { %v2314_v11 = vadd.f32 %v2312_v3, %v5431_v32 }
0x2ef5   :  { %4365 = vtanh.f32 %v2314_v11 }
0x2efa   :  { %v2599_v17 = vpop.permute.xlu2 %2598 }
0x2efb   :  { %v4366_v14 = vpop.eup %4365 }
0x2efc   :  { %2318 = vrot.lane.b32.xlu0 %v4366_v14, %s4659_s8 }
0x2f02   :  { %v1741_v27 = vpop.permute.xlu2 %1740 }
0x2f03   :  { %v1743_v4 = vmul.f32 %v1741_v27, %v5466_v25 }
0x2f04   :  { %2644 = vrot.lane.b32.xlu0 %v4200_v16, %s4657_s4 }
0x2f05   :  { %1745 = vrot.lane.b32.xlu2 %v1743_v4, %s4657_s4 }
0x2f5f   :  { %v1746_v28 = vpop.permute.xlu2 %1745 }
0x2f60   :  { %v1748_v26 = vadd.f32 %v1746_v28, %v5362_v53  ;;  %v2553_v53 = vld [vmem:[%s6002_s14] sm:$0x7] }
0x2f61   :  { %4138 = vmatpush.msk.msra.mxu3 %vm2565_vm10, %v2553_v53 }
0x2f62   :  { %4367 = vtanh.f32 %v1748_v26  ;;  %4139 = vmatmul.msk.f32.vlgmr.msra.gmra.mxu3 %vm2558_vm11, %v2551_v10 }
0x2f68   :  { %v4368_v29 = vpop.eup %4367 }
0x2f69   :  { %1752 = vrot.lane.b32.xlu2 %v4368_v29, %s4659_s8 }
0x2f6e   :  { %v2319_v18 = vpop.permute.xlu0 %2318 }
0x2f6f   :  { %v2321_v50 = vmul.f32 %v2319_v18, %v2316_v55 }
0x2f71   :  { %v5473_v8 = vadd.f32 %v2324_v30, %v2321_v50 }
0x2f73   :  { %v2331_v42 = vrot.slane %v5473_v8, 4 }
0x2f75   :  { %2332 = vrot.lane.b32.xlu1 %v2331_v42, %s4659_s8 }
0x2f76   :  { %v5516_v37 = vpop.permute.xlu0 %2644 }
0x2fc3   :  { %v1753_v16 = vpop.permute.xlu2 %1752 }
0x2fe5   :  { %v2586_v41 = vpop.f32.mrf.mxu3 }
0x2fe6   :  { %v5527_v44 = vadd.f32 %v5523_v40, %v2586_v41 }
0x2fe7   :  { %v2333_v34 = vpop.permute.xlu1 %2332 }
0x2fe8   :  { %4132 = vmatmul.msk.f32.vlgmr.msra.gmra.mxu0 %vm236_vm7, %v2333_v34  ;;  %v1750_v34 = vsub.f32 1.0, %v5466_v25 }
0x2fe9   :  { %2839 = vmatpush.msra.mxu0 %v5483_v15 }
0x2feb   :  { %2840 = vmatpush.msra.mxu0 %v5485_v52 }
0x2fed   :  { %2841 = vmatpush.msra.mxu0 %v5489_v49 }
0x2fef   :  { %2842 = vmatpush.msra.mxu0 %v5494_v33 }
0x2ff0   :  { %4141 = vmatmul.msk.f32.vlgmr.msrb.gmra.mxu0 %vm236_vm7, %v2599_v17 }
0x3065   :  { %v2353_v62 = vpop.f32.mrf.mxu0 }
0x3066   :  { %v2379_v35 = vadd.f32 %v2353_v62, %v5308_v6  ;;  %v2357_v39 = vrot.slane %v2353_v62, 2  ;;  %v1756_v62 = vrot.slane %v5373_v2, 6 }
0x3068   :  { %v2381_v36 = vrot.slane %v2379_v35, 2  ;;  %v2359_v43 = vadd.f32 %v2357_v39, %v5431_v32  ;;  %v1755_v35 = vmul.f32 %v1753_v16, %v1750_v34  ;;  %v2398_v39 = vrot.slane %v5473_v8, 6 }
0x306a   :  { %2382 = vrot.lane.b32.xlu1 %v2381_v36, %s4657_s4  ;;  %v4133_v45 = vmul.f32 -1.442695, %v2359_v43  ;;  %v1758_v36 = vmul.f32 %v1756_v62, %v5466_v25 }
0x306c   :  { %4369 = vpow2.f32 %v4133_v45 }
0x306d   :  { %v2619_v23 = vpop.f32.mrf.mxu0 }
0x306e   :  { %v2647_v38 = vadd.f32 %v5516_v37, %v2619_v23  ;;  %v2622_v46 = vadd.f32 %v2619_v23, %v5527_v44 }
0x3070   :  { %2649 = vrot.lane.b32.xlu0 %v2647_v38, %s4657_s4  ;;  %v4142_v47 = vmul.f32 -1.442695, %v2622_v46  ;;  %v5538_v38 = vadd.f32 %v1758_v36, %v1755_v35 }
0x3072   :  { %v4370_v12 = vpop.eup %4369  ;;  %4371 = vpow2.f32 %v4142_v47 }
0x3073   :  { %v2363_v54 = vadd.f32 1.0, %v4370_v12 }
0x3075   :  { %4373 = vrcp.f32 %v2363_v54  ;;  %v2375_v1 = vand.u32 2147483648, %v2363_v54  ;;  %vm2369_vm13 = vweird.f32 %v2363_v54  ;;  %v2373_v17 = vand.u32 2147483647, %v2363_v54 }
0x3077   :  { %v2376_v5 = vor.u32 1.1754944e-38, %v2375_v1  ;;  %vm2374_vm15 = vcmp.eq.f32.partialorder %v2373_v17, 8.507059e+37 }
0x3078   :  { %v4372_v56 = vpop.eup %4371 }
0x3079   :  { %v2626_v57 = vadd.f32 1.0, %v4372_v56 }
0x307b   :  { %v4374_v58 = vpop.eup %4373  ;;  %4375 = vrcp.f32 %v2626_v57  ;;  %v2638_v27 = vand.u32 2147483648, %v2626_v57  ;;  %vm2632_vm1 = vweird.f32 %v2626_v57  ;;  %v2636_v28 = vand.u32 2147483647, %v2626_v57 }
0x307c   :  { %v2365_v59 = vmul.f32 %v4374_v58, %v2363_v54  ;;  %vm2370_vm12 = vweird.f32 %v4374_v58 }
0x307d   :  { %vm2371_vm14 = vmor %vm2369_vm13, %vm2370_vm12  ;;  %v2639_v29 = vor.u32 1.1754944e-38, %v2638_v27  ;;  %vm2637_vm8 = vcmp.eq.f32.partialorder %v2636_v28, 8.507059e+37 }
0x307e   :  { %v2366_v61 = vsub.f32 1.0, %v2365_v59 }
0x3080   :  { %v2367_v3 = vmul.f32 %v4374_v58, %v2366_v61 }
0x3081   :  { %v4376_v60 = vpop.eup %4375 }
0x3082   :  { %v2628_v20 = vmul.f32 %v4376_v60, %v2626_v57  ;;  %v2368_v9 = vadd.f32 %v4374_v58, %v2367_v3  ;;  %vm2633_vm0 = vweird.f32 %v4376_v60 }
0x3083   :  { %vm2634_vm5 = vmor %vm2632_vm1, %vm2633_vm0 }
0x3084   :  { %v2629_v11 = vsub.f32 1.0, %v2628_v20  ;;  %v2372_v19 = vsel %vm2371_vm14, %v4374_v58, %v2368_v9 }
0x3085   :  { %v2377_v22 = vsel %vm2374_vm15, %v2376_v5, %v2372_v19 }
0x3086   :  { %v2630_v14 = vmul.f32 %v4376_v60, %v2629_v11  ;;  %v2400_v43 = vmul.f32 %v2398_v39, %v2377_v22 }
0x3088   :  { %v2631_v51 = vadd.f32 %v4376_v60, %v2630_v14 }
0x308a   :  { %v2635_v26 = vsel %vm2634_vm5, %v4376_v60, %v2631_v51 }
0x308b   :  { %v2640_v63 = vsel %vm2637_vm8, %v2639_v29, %v2635_v26 }
0x308c   :  { %v2659_v2 = vsub.f32 1.0, %v2640_v63  ;;  %v2666_v12 = vmul.f32 %v2640_v63, %v2597_v48 }
0x30dc   :  { %v2383_v21 = vpop.permute.xlu1 %2382 }
0x30dd   :  { %v2385_v4 = vmul.f32 %v2383_v21, %v2377_v22 }
0x30df   :  { %2387 = vrot.lane.b32.xlu1 %v2385_v4, %s4657_s4 }
0x30e2   :  { %v2650_v55 = vpop.permute.xlu0 %2649 }
0x30e3   :  { %v2652_v18 = vmul.f32 %v2650_v55, %v2640_v63 }
0x30e5   :  { %2654 = vrot.lane.b32.xlu0 %v2652_v18, %s4657_s4 }
0x3151   :  { %v2388_v30 = vpop.permute.xlu1 %2387 }
0x3152   :  { %v2390_v50 = vadd.f32 %v2388_v30, %v5431_v32  ;;  %v2392_v32 = vsub.f32 1.0, %v2377_v22  ;;  %v4496_v30 = vld [vmem:[%s6049_s6] ss:$0 sm:$0xff] }
0x3154   :  { %4377 = vtanh.f32 %v2390_v50 }
0x3157   :  { %v2655_v42 = vpop.permute.xlu0 %2654 }
0x3158   :  { %v2657_v53 = vadd.f32 %v2655_v42, %v5527_v44 }
0x315a   :  { %v4378_v10 = vpop.eup %4377  ;;  %4379 = vtanh.f32 %v2657_v53 }
0x315b   :  { %2394 = vrot.lane.b32.xlu1 %v4378_v10, %s4659_s8 }
0x3160   :  { %v4380_v23 = vpop.eup %4379 }
0x3161   :  { %2661 = vrot.lane.b32.xlu0 %v4380_v23, %s4659_s8 }
0x3163   :  { %1761 = vrot.lane.b32.xlu1 %v5538_v38, %s4659_s8 }
0x31cd   :  { %v2395_v41 = vpop.permute.xlu1 %2394 }
0x31ce   :  { %v2397_v45 = vmul.f32 %v2395_v41, %v2392_v32 }
0x31d0   :  { %v5544_v46 = vadd.f32 %v2400_v43, %v2397_v45 }
0x31d2   :  { %v2407_v47 = vrot.slane %v5544_v46, 6 }
0x31d3   :  { %v2662_v25 = vpop.permute.xlu0 %2661 }
0x31d4   :  { %v2664_v54 = vmul.f32 %v2662_v25, %v2659_v2  ;;  %2408 = vrot.lane.b32.xlu2 %v2407_v47, %s4659_s8 }
0x31d5   :  { %v1762_v56 = vpop.permute.xlu1 %1761 }
0x31d6   :  { %v2667_v57 = vadd.f32 %v2666_v12, %v2664_v54  ;;  %1764 = vst.msk [vmem:[#allocation2 + $0x10] sm:$0xc] %vm383_vm2, %v1762_v56 }
0x31d8   :  { %2669 = vrot.lane.b32.xlu0 %v2667_v57, %s4659_s8  ;;  %v2737_v26 = vrot.slane %v2667_v57, 6 }
0x31dd   :  { %v1767_v58 = vld [vmem:[#allocation2 + $0x10] sm:$0xf] }
0x31de   :  { %4118 = vmatmul.msk.f32.gmra.mxu2 %vm236_vm7, %v1767_v58 }
0x322e   :  { %v2409_v59 = vpop.permute.xlu2 %2408 }
0x322f   :  { %4134 = vmatmul.msk.f32.vlgmr.msrb.gmra.mxu1 %vm236_vm7, %v2409_v59 }
0x3230   :  { %2915 = vmatpush.msrb.mxu1 %v5483_v15 }
0x3232   :  { %2916 = vmatpush.msrb.mxu1 %v5485_v52 }
0x3234   :  { %2917 = vmatpush.msrb.mxu1 %v5489_v49 }
0x3236   :  { %2918 = vmatpush.msrb.mxu1 %v5494_v33 }
0x324a   :  { %v2670_v0 = vpop.permute.xlu0 %2669 }
0x324b   :  { %2672 = vst.msk [vmem:[#allocation2] sm:$0x3] %vm309_vm6, %v2670_v0  ;;  %4143 = vmatmul.msk.f32.vlgmr.msra.gmra.mxu1 %vm236_vm7, %v2670_v0 }
0x3261   :  { %v1808_v18 = vpop.f32.mrf.mxu2 }
0x3262   :  { %v5570_v50 = vadd.f32 %v4496_v30, %v1808_v18 }
0x32ac   :  { %v2429_v48 = vpop.f32.mrf.mxu1 }
0x32ad   :  { %v2452_v60 = vadd.f32 %v2429_v48, %v5308_v6  ;;  %v2432_v42 = vadd.f32 %v2429_v48, %v5570_v50 }
0x32af   :  { %2454 = vrot.lane.b32.xlu1 %v2452_v60, %s4657_s4  ;;  %v4135_v53 = vmul.f32 -1.442695, %v2432_v42 }
0x32c8   :  { %v2692_v61 = vpop.f32.mrf.mxu1 }
0x32c9   :  { %v2696_v20 = vrot.slane %v2692_v61, 6  ;;  %v2718_v3 = vadd.f32 %v2692_v61, %v5516_v37 }
0x32cb   :  { %v2698_v11 = vadd.f32 %v2696_v20, %v5527_v44  ;;  %v2720_v9 = vrot.slane %v2718_v3, 6 }
0x32cd   :  { %v4144_v1 = vmul.f32 -1.442695, %v2698_v11  ;;  %2721 = vrot.lane.b32.xlu2 %v2720_v9, %s4657_s4 }
0x32cf   :  { %4381 = vpow2.f32 %v4144_v1 }
0x32d5   :  { %v4382_v17 = vpop.eup %4381 }
0x32d6   :  { %v2702_v14 = vadd.f32 1.0, %v4382_v17 }
0x32d8   :  { %4383 = vrcp.f32 %v2702_v14  ;;  %v2714_v21 = vand.u32 2147483648, %v2702_v14  ;;  %v2712_v27 = vand.u32 2147483647, %v2702_v14  ;;  %vm2708_vm10 = vweird.f32 %v2702_v14 }
0x32d9   :  { %4385 = vpow2.f32 %v4135_v53 }
0x32da   :  { %v2715_v28 = vor.u32 1.1754944e-38, %v2714_v21  ;;  %vm2713_vm13 = vcmp.eq.f32.partialorder %v2712_v27, 8.507059e+37 }
0x32de   :  { %v4384_v19 = vpop.eup %4383 }
0x32df   :  { %v2704_v5 = vmul.f32 %v4384_v19, %v2702_v14  ;;  %vm2709_vm9 = vweird.f32 %v4384_v19  ;;  %v4386_v10 = vpop.eup %4385 }
0x32e0   :  { %vm2710_vm12 = vmor %vm2708_vm10, %vm2709_vm9  ;;  %v2436_v16 = vadd.f32 1.0, %v4386_v10 }
0x32e1   :  { %v2705_v51 = vsub.f32 1.0, %v2704_v5 }
0x32e2   :  { %4387 = vrcp.f32 %v2436_v16  ;;  %v2448_v32 = vand.u32 2147483648, %v2436_v16  ;;  %vm2442_vm15 = vweird.f32 %v2436_v16  ;;  %v2446_v39 = vand.u32 2147483647, %v2436_v16 }
0x32e3   :  { %v2706_v22 = vmul.f32 %v4384_v19, %v2705_v51 }
0x32e4   :  { %v2449_v43 = vor.u32 1.1754944e-38, %v2448_v32  ;;  %vm2447_vm1 = vcmp.eq.f32.partialorder %v2446_v39, 8.507059e+37 }
0x32e5   :  { %v2707_v4 = vadd.f32 %v4384_v19, %v2706_v22 }
0x32e7   :  { %v2711_v29 = vsel %vm2710_vm12, %v4384_v19, %v2707_v4 }
0x32e8   :  { %v2716_v55 = vsel %vm2713_vm13, %v2715_v28, %v2711_v29  ;;  %v4388_v34 = vpop.eup %4387 }
0x32e9   :  { %v2739_v63 = vmul.f32 %v2737_v26, %v2716_v55  ;;  %v2438_v62 = vmul.f32 %v4388_v34, %v2436_v16  ;;  %vm2443_vm14 = vweird.f32 %v4388_v34  ;;  %v2731_v9 = vsub.f32 1.0, %v2716_v55 }
0x32ea   :  { %vm2444_vm0 = vmor %vm2442_vm15, %vm2443_vm14 }
0x32eb   :  { %v2439_v35 = vsub.f32 1.0, %v2438_v62 }
0x32ed   :  { %v2440_v36 = vmul.f32 %v4388_v34, %v2439_v35 }
0x32ef   :  { %v2441_v23 = vadd.f32 %v4388_v34, %v2440_v36 }
0x32f1   :  { %v2445_v41 = vsel %vm2444_vm0, %v4388_v34, %v2441_v23 }
0x32f2   :  { %v2450_v2 = vsel %vm2447_vm1, %v2449_v43, %v2445_v41 }
0x32f3   :  { %v2464_v60 = vsub.f32 1.0, %v2450_v2  ;;  %v2471_v20 = vmul.f32 %v2450_v2, %v2407_v47 }
0x3321   :  { %v2455_v45 = vpop.permute.xlu1 %2454 }
0x3322   :  { %v2457_v25 = vmul.f32 %v2455_v45, %v2450_v2 }
0x3324   :  { %2459 = vrot.lane.b32.xlu0 %v2457_v25, %s4657_s4 }
0x3327   :  { %v2722_v12 = vpop.permute.xlu2 %2721 }
0x3328   :  { %v2724_v54 = vmul.f32 %v2722_v12, %v2716_v55 }
0x332a   :  { %2726 = vrot.lane.b32.xlu1 %v2724_v54, %s4657_s4 }
0x3396   :  { %v2460_v56 = vpop.permute.xlu0 %2459 }
0x3397   :  { %v2462_v57 = vadd.f32 %v2460_v56, %v5570_v50 }
0x3399   :  { %4389 = vtanh.f32 %v2462_v57  ;;  %v3086_v57 = vrot.slane %v5538_v38, 2 }
0x339c   :  { %v2727_v58 = vpop.permute.xlu1 %2726 }
0x339d   :  { %v2729_v59 = vadd.f32 %v2727_v58, %v5527_v44 }
0x339f   :  { %v4390_v0 = vpop.eup %4389  ;;  %4391 = vtanh.f32 %v2729_v59 }
0x33a0   :  { %2466 = vrot.lane.b32.xlu2 %v4390_v0, %s4659_s8 }
0x33a5   :  { %v4392_v48 = vpop.eup %4391 }
0x33a6   :  { %2733 = vrot.lane.b32.xlu0 %v4392_v48, %s4659_s8 }
0x33fa   :  { %v2467_v61 = vpop.permute.xlu2 %2466 }
0x33fb   :  { %v2469_v3 = vmul.f32 %v2467_v61, %v2464_v60 }
0x33fd   :  { %v5581_v11 = vadd.f32 %v2471_v20, %v2469_v3 }
0x33ff   :  { %2474 = vrot.lane.b32.xlu1 %v5581_v11, %s4659_s8 }
0x3418   :  { %v2734_v1 = vpop.permute.xlu0 %2733 }
0x3419   :  { %v2736_v17 = vmul.f32 %v2734_v1, %v2731_v9  ;;  %v5620_v9 = vld [vmem:[#allocation8 + $0x10] sm:$0xff]  ;;  %v5622_v1 = vld [vmem:[#allocation8 + $0x8] sm:$0xff] }
0x341b   :  { %v2740_v14 = vadd.f32 %v2739_v63, %v2736_v17 }
0x341d   :  { %v2746_v19 = vrot.slane %v2740_v14, 2  ;;  %v2813_v32 = vrot.slane %v2740_v14, 6 }
0x341f   :  { %2747 = vrot.lane.b32.xlu2 %v2746_v19, %s4659_s8 }
0x3471   :  { %v2475_v5 = vpop.permute.xlu1 %2474 }
0x3472   :  { %2477 = vst.msk [vmem:[#allocation2 + $0x10] sm:$0x3] %vm309_vm6, %v2475_v5  ;;  %4136 = vmatmul.msk.f32.vlgmr.msrb.gmra.mxu2 %vm236_vm7, %v2475_v5 }
0x3473   :  { %2983 = vmatpush.msrb.mxu2 %v5483_v15 }
0x3475   :  { %2984 = vmatpush.msrb.mxu2 %v5485_v52 }
0x3477   :  { %2985 = vmatpush.msrb.mxu2 %v5489_v49 }
0x3479   :  { %v2748_v47 = vpop.permute.xlu2 %2747  ;;  %2986 = vmatpush.msrb.mxu2 %v5494_v33 }
0x347a   :  { %4145 = vmatmul.msk.f32.vlgmr.msra.gmra.mxu2 %vm236_vm7, %v2748_v47 }
0x34f5   :  { %v5593_v51 = vpop.f32.mrf.mxu2 }
0x34fd   :  { %v2768_v21 = vpop.f32.mrf.mxu2 }
0x34fe   :  { %v2794_v22 = vadd.f32 %v2768_v21, %v5516_v37  ;;  %v2772_v4 = vrot.slane %v2768_v21, 4 }
0x3500   :  { %v2796_v27 = vrot.slane %v2794_v22, 4  ;;  %v2774_v15 = vadd.f32 %v2772_v4, %v5527_v44 }
0x3502   :  { %2797 = vrot.lane.b32.xlu0 %v2796_v27, %s4657_s4  ;;  %v4146_v28 = vmul.f32 -1.442695, %v2774_v15 }
0x3504   :  { %4393 = vpow2.f32 %v4146_v28 }
0x350a   :  { %v4394_v52 = vpop.eup %4393 }
0x350b   :  { %v2778_v49 = vadd.f32 1.0, %v4394_v52 }
0x350d   :  { %4395 = vrcp.f32 %v2778_v49  ;;  %v2790_v18 = vand.u32 2147483648, %v2778_v49  ;;  %vm2784_vm8 = vweird.f32 %v2778_v49  ;;  %v2788_v30 = vand.u32 2147483647, %v2778_v49 }
0x350f   :  { %v2791_v53 = vor.u32 1.1754944e-38, %v2790_v18  ;;  %vm2789_vm10 = vcmp.eq.f32.partialorder %v2788_v30, 8.507059e+37  ;;  %v3047_v18 = vld [vmem:[#allocation7 + $0x18] sm:$0xff]  ;;  %v3046_v30 = vld [vmem:[#allocation7 + $0x10] sm:$0xff] }
0x3510   :  { %3070 = vmatpush.msrb.mxu3 %v3047_v18 }
0x3512   :  { %3071 = vmatpush.msrb.mxu3 %v3046_v30 }
0x3513   :  { %v4396_v26 = vpop.eup %4395 }
0x3514   :  { %v2780_v33 = vmul.f32 %v4396_v26, %v2778_v49  ;;  %vm2785_vm5 = vweird.f32 %v4396_v26  ;;  %v4202_v49 = vld [vmem:[%s6009_s21] ss:$0 sm:$0xff] }
0x3515   :  { %vm2786_vm9 = vmor %vm2784_vm8, %vm2785_vm5 }
0x3516   :  { %v2781_v29 = vsub.f32 1.0, %v2780_v33 }
0x3518   :  { %v2782_v55 = vmul.f32 %v4396_v26, %v2781_v29 }
0x351a   :  { %v2783_v63 = vadd.f32 %v4396_v26, %v2782_v55 }
0x351c   :  { %v2787_v42 = vsel %vm2786_vm9, %v4396_v26, %v2783_v63 }
0x351d   :  { %v2792_v16 = vsel %vm2789_vm10, %v2791_v53, %v2787_v42 }
0x351e   :  { %v2807_v23 = vsub.f32 1.0, %v2792_v16  ;;  %v2815_v41 = vmul.f32 %v2813_v32, %v2792_v16  ;;  %v2552_v32 = vld [vmem:[%s6050_s0 + $0x8] sm:$0xf] }
0x351f   :  { %4140 = vmatmul.msk.f32.gmra.mxu3 %vm2558_vm11, %v2552_v32 }
0x3574   :  { %v2798_v10 = vpop.permute.xlu0 %2797 }
0x3575   :  { %v2800_v34 = vmul.f32 %v2798_v10, %v2792_v16 }
0x3577   :  { %2802 = vrot.lane.b32.xlu1 %v2800_v34, %s4657_s4 }
0x35e9   :  { %v2803_v62 = vpop.permute.xlu1 %2802 }
0x35ea   :  { %v2805_v35 = vadd.f32 %v2803_v62, %v5527_v44 }
0x35ec   :  { %4397 = vtanh.f32 %v2805_v35 }
0x35f2   :  { %v4398_v36 = vpop.eup %4397 }
0x35f3   :  { %2809 = vrot.lane.b32.xlu2 %v4398_v36, %s4659_s8 }
0x364d   :  { %v2810_v39 = vpop.permute.xlu2 %2809 }
0x364e   :  { %v2812_v43 = vmul.f32 %v2810_v39, %v2807_v23  ;;  %v3045_v39 = vld [vmem:[#allocation7 + $0x8] sm:$0xff] }
0x364f   :  { %3072 = vmatpush.msrb.mxu3 %v3045_v39 }
0x3650   :  { %v5601_v45 = vadd.f32 %v2815_v41, %v2812_v43  ;;  %v3044_v41 = vld [vmem:[#allocation7] sm:$0xff] }
0x3651   :  { %3073 = vmatpush.msrb.mxu3 %v3044_v41 }
0x3652   :  { %v2822_v2 = vrot.slane %v5601_v45, 4 }
0x3654   :  { %2823 = vrot.lane.b32.xlu0 %v2822_v2, %s4659_s8 }
0x36c6   :  { %v2824_v25 = vpop.permute.xlu0 %2823 }
0x36c7   :  { %4147 = vmatmul.msk.f32.vlgmr.msra.gmra.mxu0 %vm236_vm7, %v2824_v25 }
0x3744   :  { %v2844_v12 = vpop.f32.mrf.mxu0 }
0x3745   :  { %v2870_v54 = vadd.f32 %v2844_v12, %v5516_v37  ;;  %v2848_v58 = vrot.slane %v2844_v12, 2  ;;  %v2589_v12 = vpop.f32.mrf.mxu3 }
0x3747   :  { %v2872_v56 = vrot.slane %v2870_v54, 2  ;;  %v2850_v59 = vadd.f32 %v2848_v58, %v5527_v44  ;;  %v5686_v54 = vld [vmem:[%s6008_s20] ss:$0 sm:$0xff] }
0x3749   :  { %2873 = vrot.lane.b32.xlu1 %v2872_v56, %s4657_s4  ;;  %v4148_v0 = vmul.f32 -1.442695, %v2850_v59 }
0x374b   :  { %4399 = vpow2.f32 %v4148_v0 }
0x3751   :  { %1955 = vrot.lane.b32.xlu1 %v5377_v13, %s4659_s8  ;;  %v4400_v48 = vpop.eup %4399  ;;  %v5616_v13 = vld [vmem:[#allocation8 + $0x18] sm:$0xff] }
0x3752   :  { %v2854_v60 = vadd.f32 1.0, %v4400_v48  ;;  %3103 = vmatpush.msrb.mxu0 %v5616_v13  ;;  %3176 = vmatpush.msra.mxu1 %v5616_v13 }
0x3753   :  { %3252 = vmatpush.msra.mxu2 %v5616_v13 }
0x3754   :  { %4401 = vrcp.f32 %v2854_v60  ;;  %3104 = vmatpush.msrb.mxu0 %v5620_v9  ;;  %3177 = vmatpush.msra.mxu1 %v5620_v9  ;;  %v2866_v5 = vand.u32 2147483648, %v2854_v60  ;;  %vm2860_vm13 = vweird.f32 %v2854_v60  ;;  %v2864_v47 = vand.u32 2147483647, %v2854_v60 }
0x3755   :  { %3253 = vmatpush.msra.mxu2 %v5620_v9 }
0x3756   :  { %3105 = vmatpush.msrb.mxu0 %v5622_v1  ;;  %3178 = vmatpush.msra.mxu1 %v5622_v1  ;;  %v2867_v22 = vor.u32 1.1754944e-38, %v2866_v5  ;;  %vm2865_vm15 = vcmp.eq.f32.partialorder %v2864_v47, 8.507059e+37 }
0x3757   :  { %3254 = vmatpush.msra.mxu2 %v5622_v1 }
0x3759   :  { %2742 = vrot.lane.b32.xlu1 %v2740_v14, %s4659_s8  ;;  %v5627_v14 = vld [vmem:[#allocation8] sm:$0xff] }
0x375a   :  { %v4402_v61 = vpop.eup %4401  ;;  %3106 = vmatpush.msrb.mxu0 %v5627_v14  ;;  %3179 = vmatpush.msra.mxu1 %v5627_v14 }
0x375b   :  { %v2856_v20 = vmul.f32 %v4402_v61, %v2854_v60  ;;  %vm2861_vm12 = vweird.f32 %v4402_v61  ;;  %3255 = vmatpush.msra.mxu2 %v5627_v14 }
0x375c   :  { %3328 = vmatpush.msra.mxu0 %v5616_v13  ;;  %vm2862_vm14 = vmor %vm2860_vm13, %vm2861_vm12 }
0x375d   :  { %v2857_v3 = vsub.f32 1.0, %v2856_v20 }
0x375e   :  { %3329 = vmatpush.msra.mxu0 %v5620_v9 }
0x375f   :  { %v2858_v17 = vmul.f32 %v4402_v61, %v2857_v3 }
0x3760   :  { %3330 = vmatpush.msra.mxu0 %v5622_v1 }
0x3761   :  { %3087 = vrot.lane.b32.xlu1 %v3086_v57, %s4659_s8  ;;  %v2859_v19 = vadd.f32 %v4402_v61, %v2858_v17 }
0x3762   :  { %3331 = vmatpush.msra.mxu0 %v5627_v14 }
0x3763   :  { %v2863_v21 = vsel %vm2862_vm14, %v4402_v61, %v2859_v19 }
0x3764   :  { %v2868_v4 = vsel %vm2865_vm15, %v2867_v22, %v2863_v21 }
0x3765   :  { %v2883_v42 = vsub.f32 1.0, %v2868_v4 }
0x37bb   :  { %v2874_v27 = vpop.permute.xlu1 %2873 }
0x37bc   :  { %v2876_v15 = vmul.f32 %v2874_v27, %v2868_v4 }
0x37be   :  { %2878 = vrot.lane.b32.xlu2 %v2876_v15, %s4657_s4 }
0x37c3   :  { %v1956_v28 = vpop.permute.xlu1 %1955 }
0x37c4   :  { %1958 = vst.msk [vmem:[#allocation2] sm:$0xc] %vm383_vm2, %v1956_v28 }
0x37c6   :  { %2031 = vrot.lane.b32.xlu2 %v5401_v7, %s4659_s8 }
0x37cb   :  { %v2743_v52 = vpop.permute.xlu1 %2742 }
0x37cc   :  { %2745 = vst.msk [vmem:[#allocation2] sm:$0xc] %vm383_vm2, %v2743_v52 }
0x37ce   :  { %2818 = vrot.lane.b32.xlu2 %v5601_v45, %s4659_s8 }
0x37d3   :  { %v3088_v26 = vpop.permute.xlu1 %3087 }
0x37d4   :  { %4155 = vmatmul.msk.f32.vlgmr.msrb.gmra.mxu0 %vm236_vm7, %v3088_v26 }
0x37d6   :  { %3133 = vrot.lane.b32.xlu2 %v4202_v49, %s4657_s4 }
0x3818   :  { %v2879_v33 = vpop.permute.xlu2 %2878 }
0x3819   :  { %v2881_v29 = vadd.f32 %v2879_v33, %v5527_v44  ;;  %v2889_v44 = vrot.slane %v5601_v45, 6  ;;  %v5698_v33 = vadd.f32 %v5523_v40, %v2589_v12 }
0x381b   :  { %4403 = vtanh.f32 %v2881_v29  ;;  %v2891_v10 = vmul.f32 %v2889_v44, %v2868_v4 }
0x3820   :  { %v2032_v7 = vpop.permute.xlu2 %2031 }
0x3821   :  { %v4404_v55 = vpop.eup %4403  ;;  %2034 = vst.msk [vmem:[#allocation2] sm:$0x30] %vm460_vm3, %v2032_v7 }
0x3822   :  { %2885 = vrot.lane.b32.xlu0 %v4404_v55, %s4659_s8 }
0x3828   :  { %v2819_v63 = vpop.permute.xlu2 %2818 }
0x3829   :  { %2821 = vst.msk [vmem:[#allocation2] sm:$0x30] %vm460_vm3, %v2819_v63 }
0x382a   :  { %2107 = vrot.lane.b32.xlu0 %v5421_v24, %s4659_s8 }
0x3830   :  { %v5663_v62 = vpop.permute.xlu2 %3133 }
0x3851   :  { %v3108_v35 = vpop.f32.mrf.mxu0 }
0x3852   :  { %v3136_v24 = vadd.f32 %v5663_v62, %v3108_v35 }
0x3894   :  { %v2886_v53 = vpop.permute.xlu0 %2885 }
0x3895   :  { %v2888_v16 = vmul.f32 %v2886_v53, %v2883_v42 }
0x3897   :  { %v5659_v34 = vadd.f32 %v2891_v10, %v2888_v16 }
0x3899   :  { %2894 = vrot.lane.b32.xlu0 %v5659_v34, %s4659_s8  ;;  %v2898_v23 = vrot.slane %v5659_v34, 6 }
0x389c   :  { %v2108_v36 = vpop.permute.xlu0 %2107 }
0x389d   :  { %2110 = vst.msk [vmem:[#allocation2] sm:$0xc0] %vm537_vm4, %v2108_v36 }
0x38a1   :  { %3138 = vrot.lane.b32.xlu0 %v3136_v24, %s4657_s4 }
0x38a9   :  { %2899 = vrot.lane.b32.xlu0 %v2898_v23, %s4659_s8 }
0x390b   :  { %v2895_v43 = vpop.permute.xlu0 %2894 }
0x390c   :  { %2897 = vst.msk [vmem:[#allocation2] sm:$0xc0] %vm537_vm4, %v2895_v43 }
0x3913   :  { %v3139_v45 = vpop.permute.xlu0 %3138  ;;  %v3042_v2 = vld [vmem:[#allocation2] sm:$0xff] }
0x3914   :  { %4153 = vmatmul.msk.f32.vlgmr.msrb.gmra.mxu3 %vm236_vm7, %v3042_v2 }
0x391b   :  { %v2900_v25 = vpop.permute.xlu0 %2899 }
0x391c   :  { %4149 = vmatmul.msk.f32.vlgmr.msrb.gmra.mxu1 %vm236_vm7, %v2900_v25 }
0x391d   :  { %3404 = vmatpush.msrb.mxu1 %v5616_v13 }
0x391f   :  { %3405 = vmatpush.msrb.mxu1 %v5620_v9 }
0x3921   :  { %3406 = vmatpush.msrb.mxu1 %v5622_v1 }
0x3923   :  { %3407 = vmatpush.msrb.mxu1 %v5627_v14 }
0x3997   :  { %v3075_v56 = vpop.f32.mrf.mxu3 }
0x3998   :  { %v5689_v58 = vadd.f32 %v5686_v54, %v3075_v56 }
0x3999   :  { %v2920_v49 = vpop.f32.mrf.mxu1 }
0x399a   :  { %v3111_v59 = vadd.f32 %v3108_v35, %v5689_v58  ;;  %v2943_v26 = vadd.f32 %v2920_v49, %v5516_v37  ;;  %v2923_v29 = vadd.f32 %v2920_v49, %v5698_v33 }
0x399c   :  { %v4156_v0 = vmul.f32 -1.442695, %v3111_v59  ;;  %v4150_v7 = vmul.f32 -1.442695, %v2923_v29 }
0x399e   :  { %4405 = vpow2.f32 %v4156_v0 }
0x39a4   :  { %v4406_v48 = vpop.eup %4405 }
0x39a5   :  { %v3115_v60 = vadd.f32 1.0, %v4406_v48 }
0x39a7   :  { %4407 = vrcp.f32 %v3115_v60  ;;  %v3127_v17 = vand.u32 2147483648, %v3115_v60  ;;  %v3125_v5 = vand.u32 2147483647, %v3115_v60  ;;  %vm3121_vm0 = vweird.f32 %v3115_v60 }
0x39a9   :  { %v3128_v21 = vor.u32 1.1754944e-38, %v3127_v17  ;;  %vm3126_vm5 = vcmp.eq.f32.partialorder %v3125_v5, 8.507059e+37 }
0x39ad   :  { %v4408_v61 = vpop.eup %4407 }
0x39ae   :  { %v3117_v20 = vmul.f32 %v4408_v61, %v3115_v60  ;;  %vm3122_vm11 = vweird.f32 %v4408_v61 }
0x39af   :  { %vm3123_vm1 = vmor %vm3121_vm0, %vm3122_vm11 }
0x39b0   :  { %v3118_v3 = vsub.f32 1.0, %v3117_v20 }
0x39b2   :  { %v3119_v19 = vmul.f32 %v4408_v61, %v3118_v3 }
0x39b4   :  { %v3120_v47 = vadd.f32 %v4408_v61, %v3119_v19 }
0x39b6   :  { %v3124_v22 = vsel %vm3123_vm1, %v4408_v61, %v3120_v47 }
0x39b7   :  { %v3129_v27 = vsel %vm3126_vm5, %v3128_v21, %v3124_v22 }
0x39b8   :  { %v3141_v4 = vmul.f32 %v3139_v45, %v3129_v27  ;;  %v3148_v44 = vsub.f32 1.0, %v3129_v27  ;;  %v3155_v16 = vmul.f32 %v3129_v27, %v3086_v57 }
0x39ba   :  { %3143 = vrot.lane.b32.xlu1 %v3141_v4, %s4657_s4 }
0x3a2c   :  { %v3144_v15 = vpop.permute.xlu1 %3143 }
0x3a2d   :  { %v3146_v28 = vadd.f32 %v3144_v15, %v5689_v58 }
0x3a2f   :  { %4409 = vtanh.f32 %v3146_v28 }
0x3a30   :  { %4411 = vpow2.f32 %v4150_v7 }
0x3a35   :  { %v4410_v52 = vpop.eup %4409 }
0x3a36   :  { %3150 = vrot.lane.b32.xlu2 %v4410_v52, %s4659_s8  ;;  %v4412_v55 = vpop.eup %4411 }
0x3a37   :  { %v2927_v63 = vadd.f32 1.0, %v4412_v55 }
0x3a39   :  { %4413 = vrcp.f32 %v2927_v63  ;;  %v2939_v24 = vand.u32 2147483648, %v2927_v63  ;;  %vm2933_vm9 = vweird.f32 %v2927_v63  ;;  %v2937_v32 = vand.u32 2147483647, %v2927_v63 }
0x3a3b   :  { %v2940_v43 = vor.u32 1.1754944e-38, %v2939_v24  ;;  %vm2938_vm12 = vcmp.eq.f32.partialorder %v2937_v32, 8.507059e+37 }
0x3a3e   :  { %2945 = vrot.lane.b32.xlu2 %v2943_v26, %s4657_s4 }
0x3a3f   :  { %v4414_v18 = vpop.eup %4413 }
0x3a40   :  { %v2929_v30 = vmul.f32 %v4414_v18, %v2927_v63  ;;  %vm2934_vm8 = vweird.f32 %v4414_v18 }
0x3a41   :  { %vm2935_vm10 = vmor %vm2933_vm9, %vm2934_vm8 }
0x3a42   :  { %v2930_v42 = vsub.f32 1.0, %v2929_v30 }
0x3a44   :  { %v2931_v53 = vmul.f32 %v4414_v18, %v2930_v42 }
0x3a46   :  { %v2932_v40 = vadd.f32 %v4414_v18, %v2931_v53 }
0x3a48   :  { %v2936_v39 = vsel %vm2935_vm10, %v4414_v18, %v2932_v40 }
0x3a49   :  { %v2941_v45 = vsel %vm2938_vm12, %v2940_v43, %v2936_v39 }
0x3a4a   :  { %v2955_v26 = vsub.f32 1.0, %v2941_v45  ;;  %v2962_v7 = vmul.f32 %v2941_v45, %v2898_v23 }
0x3a90   :  { %v3151_v10 = vpop.permute.xlu2 %3150 }
0x3a91   :  { %v3153_v35 = vmul.f32 %v3151_v10, %v3148_v44 }
0x3a93   :  { %v5703_v36 = vadd.f32 %v3155_v16, %v3153_v35 }
0x3a95   :  { %3158 = vrot.lane.b32.xlu1 %v5703_v36, %s4659_s8  ;;  %v3226_v34 = vrot.slane %v5703_v36, 6 }
0x3a98   :  { %v2946_v41 = vpop.permute.xlu2 %2945 }
0x3a99   :  { %v2948_v2 = vmul.f32 %v2946_v41, %v2941_v45 }
0x3a9d   :  { %2950 = vrot.lane.b32.xlu1 %v2948_v2, %s4657_s4 }
0x3b07   :  { %v3159_v38 = vpop.permute.xlu1 %3158 }
0x3b08   :  { %3161 = vst.msk [vmem:[#allocation2] sm:$0x3] %vm309_vm6, %v3159_v38  ;;  %4157 = vmatmul.msk.f32.vlgmr.msra.gmra.mxu1 %vm236_vm7, %v3159_v38 }
0x3b0f   :  { %v2951_v57 = vpop.permute.xlu1 %2950 }
0x3b10   :  { %v2953_v56 = vadd.f32 %v2951_v57, %v5698_v33 }
0x3b12   :  { %4415 = vtanh.f32 %v2953_v56 }
0x3b18   :  { %v4416_v0 = vpop.eup %4415 }
0x3b85   :  { %v3181_v25 = vpop.f32.mrf.mxu1 }
0x3b86   :  { %v3207_v12 = vadd.f32 %v3181_v25, %v5663_v62  ;;  %v3185_v48 = vrot.slane %v3181_v25, 6 }
0x3b88   :  { %v3209_v59 = vrot.slane %v3207_v12, 6  ;;  %v3187_v60 = vadd.f32 %v3185_v48, %v5689_v58 }
0x3b8a   :  { %3210 = vrot.lane.b32.xlu0 %v3209_v59, %s4657_s4  ;;  %v4158_v61 = vmul.f32 -1.442695, %v3187_v60 }
0x3b8c   :  { %4417 = vpow2.f32 %v4158_v61 }
0x3b92   :  { %2957 = vrot.lane.b32.xlu0 %v4416_v0, %s4659_s8  ;;  %v4418_v20 = vpop.eup %4417 }
0x3b93   :  { %v3191_v3 = vadd.f32 1.0, %v4418_v20 }
0x3b95   :  { %4419 = vrcp.f32 %v3191_v3  ;;  %v3203_v22 = vand.u32 2147483648, %v3191_v3  ;;  %vm3197_vm14 = vweird.f32 %v3191_v3  ;;  %v3201_v27 = vand.u32 2147483647, %v3191_v3 }
0x3b97   :  { %v3204_v15 = vor.u32 1.1754944e-38, %v3203_v22  ;;  %vm3202_vm11 = vcmp.eq.f32.partialorder %v3201_v27, 8.507059e+37 }
0x3b9b   :  { %v4420_v17 = vpop.eup %4419 }
0x3b9c   :  { %v3193_v19 = vmul.f32 %v4420_v17, %v3191_v3  ;;  %vm3198_vm13 = vweird.f32 %v4420_v17 }
0x3b9d   :  { %vm3199_vm15 = vmor %vm3197_vm14, %vm3198_vm13 }
0x3b9e   :  { %v3194_v5 = vsub.f32 1.0, %v3193_v19 }
0x3ba0   :  { %v3195_v47 = vmul.f32 %v4420_v17, %v3194_v5 }
0x3ba2   :  { %v3196_v21 = vadd.f32 %v4420_v17, %v3195_v47 }
0x3ba4   :  { %v3200_v4 = vsel %vm3199_vm15, %v4420_v17, %v3196_v21 }
0x3ba5   :  { %v3205_v52 = vsel %vm3202_vm11, %v3204_v15, %v3200_v4 }
0x3ba6   :  { %v3220_v23 = vsub.f32 1.0, %v3205_v52  ;;  %v3228_v10 = vmul.f32 %v3226_v34, %v3205_v52 }
0x3bfc   :  { %v3211_v28 = vpop.permute.xlu0 %3210 }
0x3bfd   :  { %v3213_v49 = vmul.f32 %v3211_v28, %v3205_v52 }
0x3bff   :  { %3215 = vrot.lane.b32.xlu2 %v3213_v49, %s4657_s4 }
0x3c04   :  { %v2958_v29 = vpop.permute.xlu0 %2957 }
0x3c05   :  { %v2960_v55 = vmul.f32 %v2958_v29, %v2955_v26 }
0x3c07   :  { %v5718_v63 = vadd.f32 %v2962_v7, %v2960_v55 }
0x3c09   :  { %2965 = vrot.lane.b32.xlu2 %v5718_v63, %s4659_s8 }
0x3c59   :  { %v3216_v18 = vpop.permute.xlu2 %3215 }
0x3c5a   :  { %v3218_v30 = vadd.f32 %v3216_v18, %v5689_v58 }
0x3c5c   :  { %4421 = vtanh.f32 %v3218_v30 }
0x3c62   :  { %v4422_v42 = vpop.eup %4421 }
0x3c63   :  { %3222 = vrot.lane.b32.xlu1 %v4422_v42, %s4659_s8  ;;  %v2966_v44 = vpop.permute.xlu2 %2965 }
0x3c64   :  { %2968 = vst.msk [vmem:[#allocation2 + $0x8] sm:$0x3] %vm309_vm6, %v2966_v44  ;;  %4151 = vmatmul.msk.f32.vlgmr.msrb.gmra.mxu2 %vm236_vm7, %v2966_v44 }
0x3c65   :  { %3472 = vmatpush.msrb.mxu2 %v5616_v13 }
0x3c67   :  { %3473 = vmatpush.msrb.mxu2 %v5620_v9 }
0x3c69   :  { %3474 = vmatpush.msrb.mxu2 %v5622_v1 }
0x3c6b   :  { %3475 = vmatpush.msrb.mxu2 %v5627_v14 }
0x3cd5   :  { %v3223_v53 = vpop.permute.xlu1 %3222 }
0x3cd6   :  { %v3225_v16 = vmul.f32 %v3223_v53, %v3220_v23 }
0x3cd8   :  { %v5731_v35 = vadd.f32 %v3228_v10, %v3225_v16 }
0x3cda   :  { %v3235_v40 = vrot.slane %v5731_v35, 2  ;;  %v3302_v10 = vrot.slane %v5731_v35, 6 }
0x3cdc   :  { %3236 = vrot.lane.b32.xlu0 %v3235_v40, %s4659_s8 }
0x3ce7   :  { %v2988_v13 = vpop.f32.mrf.mxu2 }
0x3ce8   :  { %v3014_v20 = vadd.f32 %v2988_v13, %v5516_v37  ;;  %v2992_v17 = vrot.slane %v2988_v13, 6 }
0x3cea   :  { %v3016_v3 = vrot.slane %v3014_v20, 6  ;;  %v2994_v19 = vadd.f32 %v2992_v17, %v5698_v33 }
0x3cec   :  { %v4152_v5 = vmul.f32 -1.442695, %v2994_v19 }
0x3d4e   :  { %v3237_v24 = vpop.permute.xlu0 %3236 }
0x3d4f   :  { %4159 = vmatmul.msk.f32.vlgmr.msra.gmra.mxu2 %vm236_vm7, %v3237_v24 }
0x3dd2   :  { %v3257_v9 = vpop.f32.mrf.mxu2 }
0x3dd3   :  { %v3283_v1 = vadd.f32 %v3257_v9, %v5663_v62  ;;  %v3261_v36 = vrot.slane %v3257_v9, 4 }
0x3dd5   :  { %v3285_v14 = vrot.slane %v3283_v1, 4  ;;  %v3263_v32 = vadd.f32 %v3261_v36, %v5689_v58 }
0x3dd7   :  { %3286 = vrot.lane.b32.xlu1 %v3285_v14, %s4657_s4  ;;  %v4160_v39 = vmul.f32 -1.442695, %v3263_v32  ;;  %v3033_v14 = vrot.slane %v5718_v63, 6 }
0x3dd9   :  { %4423 = vpow2.f32 %v4160_v39 }
0x3ddf   :  { %v4424_v41 = vpop.eup %4423 }
0x3de0   :  { %v3267_v43 = vadd.f32 1.0, %v4424_v41 }
0x3de2   :  { %4425 = vrcp.f32 %v3267_v43  ;;  %v3279_v12 = vand.u32 2147483648, %v3267_v43  ;;  %vm3273_vm1 = vweird.f32 %v3267_v43  ;;  %v3277_v56 = vand.u32 2147483647, %v3267_v43 }
0x3de3   :  { %4427 = vpow2.f32 %v4152_v5 }
0x3de4   :  { %v3280_v0 = vor.u32 1.1754944e-38, %v3279_v12  ;;  %vm3278_vm8 = vcmp.eq.f32.partialorder %v3277_v56, 8.507059e+37 }
0x3de8   :  { %v4426_v45 = vpop.eup %4425 }
0x3de9   :  { %v3269_v2 = vmul.f32 %v4426_v45, %v3267_v43  ;;  %vm3274_vm0 = vweird.f32 %v4426_v45  ;;  %v4428_v47 = vpop.eup %4427 }
0x3dea   :  { %vm3275_vm5 = vmor %vm3273_vm1, %vm3274_vm0  ;;  %v2998_v21 = vadd.f32 1.0, %v4428_v47 }
0x3deb   :  { %v3270_v38 = vsub.f32 1.0, %v3269_v2 }
0x3dec   :  { %4429 = vrcp.f32 %v2998_v21  ;;  %v3010_v37 = vand.u32 2147483648, %v2998_v21  ;;  %vm3004_vm10 = vweird.f32 %v2998_v21  ;;  %v3008_v26 = vand.u32 2147483647, %v2998_v21 }
0x3ded   :  { %v3271_v57 = vmul.f32 %v4426_v45, %v3270_v38 }
0x3dee   :  { %v3011_v7 = vor.u32 1.1754944e-38, %v3010_v37  ;;  %vm3009_vm13 = vcmp.eq.f32.partialorder %v3008_v26, 8.507059e+37 }
0x3def   :  { %v3272_v25 = vadd.f32 %v4426_v45, %v3271_v57 }
0x3df1   :  { %v3276_v59 = vsel %vm3275_vm5, %v4426_v45, %v3272_v25 }
0x3df2   :  { %v3281_v60 = vsel %vm3278_vm8, %v3280_v0, %v3276_v59  ;;  %v4430_v22 = vpop.eup %4429 }
0x3df3   :  { %v3000_v27 = vmul.f32 %v4430_v22, %v2998_v21  ;;  %vm3005_vm9 = vweird.f32 %v4430_v22  ;;  %v3296_v53 = vsub.f32 1.0, %v3281_v60  ;;  %v3304_v40 = vmul.f32 %v3302_v10, %v3281_v60 }
0x3df4   :  { %vm3006_vm12 = vmor %vm3004_vm10, %vm3005_vm9 }
0x3df5   :  { %v3001_v4 = vsub.f32 1.0, %v3000_v27 }
0x3df7   :  { %v3002_v15 = vmul.f32 %v4430_v22, %v3001_v4 }
0x3df9   :  { %v3003_v49 = vadd.f32 %v4430_v22, %v3002_v15 }
0x3dfb   :  { %v3007_v29 = vsel %vm3006_vm12, %v4430_v22, %v3003_v49 }
0x3dfc   :  { %v3012_v55 = vsel %vm3009_vm13, %v3011_v7, %v3007_v29 }
0x3dfd   :  { %v3027_v36 = vsub.f32 1.0, %v3012_v55  ;;  %v3035_v39 = vmul.f32 %v3033_v14, %v3012_v55  ;;  %v5791_v14 = vld [vmem:[#allocation11 + $0x8] sm:$0xff] }
0x3e49   :  { %v3287_v48 = vpop.permute.xlu1 %3286 }
0x3e4a   :  { %v3289_v61 = vmul.f32 %v3287_v48, %v3281_v60 }
0x3e4c   :  { %3291 = vrot.lane.b32.xlu2 %v3289_v61, %s4657_s4 }
0x3e54   :  { %3017 = vrot.lane.b32.xlu2 %v3016_v3, %s4657_s4 }
0x3ea6   :  { %v3292_v28 = vpop.permute.xlu2 %3291 }
0x3ea7   :  { %v3294_v52 = vadd.f32 %v3292_v28, %v5689_v58 }
0x3ea9   :  { %4431 = vtanh.f32 %v3294_v52 }
0x3eae   :  { %v3018_v18 = vpop.permute.xlu2 %3017 }
0x3eaf   :  { %v4432_v30 = vpop.eup %4431  ;;  %v3020_v42 = vmul.f32 %v3018_v18, %v3012_v55 }
0x3eb0   :  { %3298 = vrot.lane.b32.xlu0 %v4432_v30, %s4659_s8 }
0x3eb1   :  { %3022 = vrot.lane.b32.xlu2 %v3020_v42, %s4657_s4 }
0x3f0b   :  { %v3023_v44 = vpop.permute.xlu2 %3022 }
0x3f0c   :  { %v3025_v34 = vadd.f32 %v3023_v44, %v5698_v33  ;;  %v2523_v33 = vadd.f32 %v5593_v51, %v5308_v6 }
0x3f0e   :  { %4433 = vtanh.f32 %v3025_v34  ;;  %v2525_v1 = vrot.slane %v2523_v33, 6 }
0x3f14   :  { %v4434_v23 = vpop.eup %4433 }
0x3f15   :  { %3029 = vrot.lane.b32.xlu2 %v4434_v23, %s4659_s8 }
0x3f1d   :  { %2251 = vrot.lane.b32.xlu2 %v5446_v31, %s4659_s8  ;;  %v2501_v31 = vrot.slane %v5593_v51, 6 }
0x3f1f   :  { %v2503_v43 = vadd.f32 %v2501_v31, %v5570_v50  ;;  %v5785_v31 = vld [vmem:[#allocation11 + $0x18] sm:$0xff] }
0x3f20   :  { %3592 = vmatpush.msrb.mxu0 %v5785_v31  ;;  %3665 = vmatpush.msra.mxu1 %v5785_v31 }
0x3f21   :  { %v4137_v2 = vmul.f32 -1.442695, %v2503_v43  ;;  %3741 = vmatpush.msra.mxu2 %v5785_v31 }
0x3f22   :  { %v3299_v16 = vpop.permute.xlu0 %3298 }
0x3f23   :  { %v3301_v24 = vmul.f32 %v3299_v16, %v3296_v53  ;;  %4435 = vpow2.f32 %v4137_v2  ;;  %v2542_v53 = vrot.slane %v5581_v11, 6  ;;  %v5789_v11 = vld [vmem:[#allocation11 + $0x10] sm:$0xff] }
0x3f24   :  { %3593 = vmatpush.msrb.mxu0 %v5789_v11  ;;  %3666 = vmatpush.msra.mxu1 %v5789_v11 }
0x3f25   :  { %v5751_v13 = vadd.f32 %v3304_v40, %v3301_v24  ;;  %3742 = vmatpush.msra.mxu2 %v5789_v11 }
0x3f26   :  { %3594 = vmatpush.msrb.mxu0 %v5791_v14  ;;  %3667 = vmatpush.msra.mxu1 %v5791_v14 }
0x3f27   :  { %v3311_v9 = vrot.slane %v5751_v13, 4  ;;  %3307 = vrot.lane.b32.xlu2 %v5751_v13, %s4659_s8  ;;  %3743 = vmatpush.msra.mxu2 %v5791_v14 }
0x3f29   :  { %3312 = vrot.lane.b32.xlu1 %v3311_v9, %s4659_s8  ;;  %v4436_v6 = vpop.eup %4435 }
0x3f2a   :  { %v2507_v51 = vadd.f32 1.0, %v4436_v6  ;;  %v3535_v6 = vld [vmem:[#allocation10 + $0x10] sm:$0xff] }
0x3f2c   :  { %4437 = vrcp.f32 %v2507_v51  ;;  %v2519_v48 = vand.u32 2147483648, %v2507_v51  ;;  %vm2513_vm15 = vweird.f32 %v2507_v51  ;;  %v2517_v60 = vand.u32 2147483647, %v2507_v51 }
0x3f2e   :  { %v2520_v20 = vor.u32 1.1754944e-38, %v2519_v48  ;;  %vm2518_vm0 = vcmp.eq.f32.partialorder %v2517_v60, 8.507059e+37  ;;  %v3534_v60 = vld [vmem:[#allocation10 + $0x8] sm:$0xff] }
0x3f31   :  { %2526 = vrot.lane.b32.xlu1 %v2525_v1, %s4657_s4 }
0x3f32   :  { %v4438_v63 = vpop.eup %4437 }
0x3f33   :  { %v2509_v25 = vmul.f32 %v4438_v63, %v2507_v51  ;;  %vm2514_vm14 = vweird.f32 %v4438_v63  ;;  %v3378_v51 = vrot.slane %v5751_v13, 6 }
0x3f34   :  { %vm2515_vm11 = vmor %vm2513_vm15, %vm2514_vm14 }
0x3f35   :  { %v2510_v12 = vsub.f32 1.0, %v2509_v25 }
0x3f37   :  { %v2511_v56 = vmul.f32 %v4438_v63, %v2510_v12 }
0x3f39   :  { %v2512_v0 = vadd.f32 %v4438_v63, %v2511_v56 }
0x3f3b   :  { %v2516_v61 = vsel %vm2515_vm11, %v4438_v63, %v2512_v0 }
0x3f3c   :  { %v2521_v3 = vsel %vm2518_vm0, %v2520_v20, %v2516_v61  ;;  %v3533_v61 = vld [vmem:[#allocation10] sm:$0xff] }
0x3f3d   :  { %v2536_v10 = vsub.f32 1.0, %v2521_v3  ;;  %v2544_v40 = vmul.f32 %v2542_v53, %v2521_v3 }
0x3f6f   :  { %v3030_v32 = vpop.permute.xlu2 %3029 }
0x3f70   :  { %v3032_v41 = vmul.f32 %v3030_v32, %v3027_v36  ;;  %v5796_v36 = vld [vmem:[#allocation11] sm:$0xff]  ;;  %v4204_v32 = vld [vmem:[%s6013_s25] ss:$0 sm:$0xff] }
0x3f71   :  { %3595 = vmatpush.msrb.mxu0 %v5796_v36  ;;  %3668 = vmatpush.msra.mxu1 %v5796_v36 }
0x3f72   :  { %v5763_v45 = vadd.f32 %v3035_v39, %v3032_v41  ;;  %3744 = vmatpush.msra.mxu2 %v5796_v36  ;;  %3622 = vrot.lane.b32.xlu2 %v4204_v32, %s4657_s4 }
0x3f77   :  { %v2252_v38 = vpop.permute.xlu2 %2251 }
0x3f78   :  { %2254 = vst.msk [vmem:[#allocation2 + $0x8] sm:$0xc] %vm383_vm2, %v2252_v38  ;;  %v3536_v38 = vld [vmem:[#allocation10 + $0x18] sm:$0xff] }
0x3f79   :  { %3559 = vmatpush.msra.mxu3 %v3536_v38 }
0x3f7b   :  { %3560 = vmatpush.msra.mxu3 %v3535_v6 }
0x3f7d   :  { %3561 = vmatpush.msra.mxu3 %v3534_v60 }
0x3f7f   :  { %3562 = vmatpush.msra.mxu3 %v3533_v61 }
0x3f81   :  { %v3308_v57 = vpop.permute.xlu2 %3307 }
0x3f82   :  { %3310 = vst.msk [vmem:[#allocation2] sm:$0x30] %vm460_vm3, %v3308_v57 }
0x3f9b   :  { %v3313_v59 = vpop.permute.xlu1 %3312 }
0x3f9c   :  { %4161 = vmatmul.msk.f32.vlgmr.msra.gmra.mxu0 %vm236_vm7, %v3313_v59 }
0x3f9d   :  { %3817 = vmatpush.msra.mxu0 %v5785_v31 }
0x3f9f   :  { %3818 = vmatpush.msra.mxu0 %v5789_v11 }
0x3fa1   :  { %3819 = vmatpush.msra.mxu0 %v5791_v14 }
0x3fa3   :  { %v2527_v17 = vpop.permute.xlu1 %2526  ;;  %3820 = vmatpush.msra.mxu0 %v5796_v36 }
0x3fa4   :  { %v2529_v19 = vmul.f32 %v2527_v17, %v2521_v3 }
0x3fa6   :  { %2531 = vrot.lane.b32.xlu1 %v2529_v19, %s4657_s4 }
0x3fcc   :  { %v5823_v59 = vpop.permute.xlu2 %3622 }
0x4018   :  { %v2532_v5 = vpop.permute.xlu1 %2531 }
0x4019   :  { %v2534_v47 = vadd.f32 %v2532_v5, %v5570_v50  ;;  %v3333_v21 = vpop.f32.mrf.mxu0 }
0x401a   :  { %v3359_v22 = vadd.f32 %v3333_v21, %v5663_v62  ;;  %v3337_v15 = vrot.slane %v3333_v21, 2 }
0x401b   :  { %4439 = vtanh.f32 %v2534_v47  ;;  %v5843_v47 = vld [vmem:[%s6012_s24] ss:$0 sm:$0xff] }
0x401c   :  { %v3361_v27 = vrot.slane %v3359_v22, 2  ;;  %v3339_v28 = vadd.f32 %v3337_v15, %v5689_v58 }
0x401e   :  { %3362 = vrot.lane.b32.xlu0 %v3361_v27, %s4657_s4  ;;  %v4162_v52 = vmul.f32 -1.442695, %v3339_v28 }
0x4020   :  { %4441 = vpow2.f32 %v4162_v52 }
0x4021   :  { %v4440_v4 = vpop.eup %4439 }
0x4022   :  { %2538 = vrot.lane.b32.xlu1 %v4440_v4, %s4659_s8 }
0x4026   :  { %v4442_v49 = vpop.eup %4441 }
0x4027   :  { %v3343_v50 = vadd.f32 1.0, %v4442_v49 }
0x4029   :  { %4443 = vrcp.f32 %v3343_v50  ;;  %v3355_v18 = vand.u32 2147483648, %v3343_v50  ;;  %vm3349_vm5 = vweird.f32 %v3343_v50  ;;  %v3353_v30 = vand.u32 2147483647, %v3343_v50 }
0x402a   :  { %3231 = vrot.lane.b32.xlu1 %v5731_v35, %s4659_s8 }
0x402b   :  { %v3356_v35 = vor.u32 1.1754944e-38, %v3355_v18  ;;  %vm3354_vm9 = vcmp.eq.f32.partialorder %v3353_v30, 8.507059e+37 }
0x402f   :  { %v4444_v37 = vpop.eup %4443 }
0x4030   :  { %v3345_v26 = vmul.f32 %v4444_v37, %v3343_v50  ;;  %vm3350_vm1 = vweird.f32 %v4444_v37 }
0x4031   :  { %vm3351_vm8 = vmor %vm3349_vm5, %vm3350_vm1 }
0x4032   :  { %v3346_v29 = vsub.f32 1.0, %v3345_v26 }
0x4034   :  { %v3347_v7 = vmul.f32 %v4444_v37, %v3346_v29 }
0x4036   :  { %v3348_v55 = vadd.f32 %v4444_v37, %v3347_v7 }
0x4038   :  { %v3352_v42 = vsel %vm3351_vm8, %v4444_v37, %v3348_v55 }
0x4039   :  { %v3357_v34 = vsel %vm3354_vm9, %v3356_v35, %v3352_v42 }
0x403a   :  { %v3372_v57 = vsub.f32 1.0, %v3357_v34  ;;  %v3380_v25 = vmul.f32 %v3378_v51, %v3357_v34 }
0x4090   :  { %v3363_v44 = vpop.permute.xlu0 %3362 }
0x4091   :  { %v3365_v23 = vmul.f32 %v3363_v44, %v3357_v34 }
0x4093   :  { %3367 = vrot.lane.b32.xlu0 %v3365_v23, %s4657_s4 }
0x4094   :  { %v2539_v16 = vpop.permute.xlu1 %2538 }
0x4095   :  { %v2541_v24 = vmul.f32 %v2539_v16, %v2536_v10 }
0x4097   :  { %v5778_v9 = vadd.f32 %v2544_v40, %v2541_v24 }
0x4099   :  { %v3575_v33 = vrot.slane %v5778_v9, 2 }
0x409b   :  { %3576 = vrot.lane.b32.xlu1 %v3575_v33, %s4659_s8 }
0x409c   :  { %v3232_v1 = vpop.permute.xlu1 %3231 }
0x409d   :  { %3234 = vst.msk [vmem:[#allocation2] sm:$0xc] %vm383_vm2, %v3232_v1 }
0x4105   :  { %v3368_v39 = vpop.permute.xlu0 %3367 }
0x4106   :  { %v3370_v41 = vadd.f32 %v3368_v39, %v5689_v58 }
0x4108   :  { %4445 = vtanh.f32 %v3370_v41 }
0x410d   :  { %v3577_v43 = vpop.permute.xlu1 %3576 }
0x410e   :  { %v4446_v2 = vpop.eup %4445  ;;  %4169 = vmatmul.msk.f32.vlgmr.msrb.gmra.mxu0 %vm236_vm7, %v3577_v43 }
0x410f   :  { %3374 = vrot.lane.b32.xlu0 %v4446_v2, %s4659_s8 }
0x4117   :  { %3038 = vrot.lane.b32.xlu0 %v5763_v45, %s4659_s8 }
0x4181   :  { %v3375_v63 = vpop.permute.xlu0 %3374 }
0x4182   :  { %v3377_v58 = vmul.f32 %v3375_v63, %v3372_v57 }
0x4184   :  { %v5819_v12 = vadd.f32 %v3380_v25, %v3377_v58 }
0x4186   :  { %3383 = vrot.lane.b32.xlu0 %v5819_v12, %s4659_s8  ;;  %v3387_v13 = vrot.slane %v5819_v12, 6 }
0x4189   :  { %v3039_v56 = vpop.permute.xlu0 %3038 }
0x418a   :  { %3041 = vst.msk [vmem:[#allocation2 + $0x8] sm:$0xc] %vm383_vm2, %v3039_v56 }
0x418b   :  { %v3597_v45 = vpop.f32.mrf.mxu0 }
0x418c   :  { %v3625_v0 = vadd.f32 %v5823_v59, %v3597_v45 }
0x418e   :  { %3627 = vrot.lane.b32.xlu0 %v3625_v0, %s4657_s4 }
0x4191   :  { %v3043_v48 = vld [vmem:[#allocation2 + $0x8] sm:$0xf] }
0x4192   :  { %4154 = vmatmul.msk.f32.gmra.mxu3 %vm236_vm7, %v3043_v48 }
0x4196   :  { %3388 = vrot.lane.b32.xlu0 %v3387_v13, %s4659_s8 }
0x41f8   :  { %v3384_v20 = vpop.permute.xlu0 %3383 }
0x41f9   :  { %3386 = vst.msk [vmem:[#allocation2] sm:$0xc0] %vm537_vm4, %v3384_v20 }
0x4200   :  { %v3628_v3 = vpop.permute.xlu0 %3627  ;;  %v3531_v17 = vld [vmem:[#allocation2] sm:$0xff] }
0x4201   :  { %4167 = vmatmul.msk.f32.vlgmr.msra.gmra.mxu3 %vm236_vm7, %v3531_v17 }
0x4208   :  { %v3389_v19 = vpop.permute.xlu0 %3388 }
0x4209   :  { %4163 = vmatmul.msk.f32.vlgmr.msrb.gmra.mxu1 %vm236_vm7, %v3389_v19 }
0x420a   :  { %3893 = vmatpush.msrb.mxu1 %v5785_v31 }
0x420c   :  { %3894 = vmatpush.msrb.mxu1 %v5789_v11 }
0x420e   :  { %3895 = vmatpush.msrb.mxu1 %v5791_v14 }
0x4210   :  { %3896 = vmatpush.msrb.mxu1 %v5796_v36 }
0x4215   :  { %v3078_v5 = vpop.f32.mrf.mxu3 }
0x4216   :  { %v5855_v10 = vadd.f32 %v5686_v54, %v3078_v5 }
0x4284   :  { %v3564_v21 = vpop.f32.mrf.mxu3 }
0x4285   :  { %v5846_v22 = vadd.f32 %v5843_v47, %v3564_v21 }
0x4286   :  { %v3409_v23 = vpop.f32.mrf.mxu1 }
0x4287   :  { %v3600_v27 = vadd.f32 %v3597_v45, %v5846_v22  ;;  %v3432_v53 = vadd.f32 %v3409_v23, %v5663_v62  ;;  %v3412_v16 = vadd.f32 %v3409_v23, %v5855_v10 }
0x4289   :  { %v4170_v4 = vmul.f32 -1.442695, %v3600_v27  ;;  %v4164_v40 = vmul.f32 -1.442695, %v3412_v16 }
0x428b   :  { %4447 = vpow2.f32 %v4170_v4 }
0x4291   :  { %v4448_v15 = vpop.eup %4447 }
0x4292   :  { %v3604_v28 = vadd.f32 1.0, %v4448_v15 }
0x4294   :  { %4449 = vrcp.f32 %v3604_v28  ;;  %v3616_v37 = vand.u32 2147483648, %v3604_v28  ;;  %v3614_v29 = vand.u32 2147483647, %v3604_v28  ;;  %vm3610_vm12 = vweird.f32 %v3604_v28 }
0x4296   :  { %v3617_v55 = vor.u32 1.1754944e-38, %v3616_v37  ;;  %vm3615_vm14 = vcmp.eq.f32.partialorder %v3614_v29, 8.507059e+37 }
0x429a   :  { %v4450_v52 = vpop.eup %4449 }
0x429b   :  { %v3606_v49 = vmul.f32 %v4450_v52, %v3604_v28  ;;  %vm3611_vm10 = vweird.f32 %v4450_v52 }
0x429c   :  { %vm3612_vm13 = vmor %vm3610_vm12, %vm3611_vm10 }
0x429d   :  { %v3607_v50 = vsub.f32 1.0, %v3606_v49 }
0x429f   :  { %v3608_v26 = vmul.f32 %v4450_v52, %v3607_v50 }
0x42a1   :  { %v3609_v7 = vadd.f32 %v4450_v52, %v3608_v26 }
0x42a3   :  { %v3613_v18 = vsel %vm3612_vm13, %v4450_v52, %v3609_v7 }
0x42a4   :  { %v3618_v30 = vsel %vm3615_vm14, %v3617_v55, %v3613_v18 }
0x42a5   :  { %v3630_v42 = vmul.f32 %v3628_v3, %v3618_v30  ;;  %v3637_v43 = vsub.f32 1.0, %v3618_v30  ;;  %v3644_v6 = vmul.f32 %v3618_v30, %v3575_v33 }
0x42a7   :  { %3632 = vrot.lane.b32.xlu1 %v3630_v42, %s4657_s4 }
0x4319   :  { %v3633_v35 = vpop.permute.xlu1 %3632 }
0x431a   :  { %v3635_v44 = vadd.f32 %v3633_v35, %v5846_v22 }
0x431c   :  { %4451 = vtanh.f32 %v3635_v44 }
0x431d   :  { %4453 = vpow2.f32 %v4164_v40 }
0x4322   :  { %v4452_v34 = vpop.eup %4451 }
0x4323   :  { %3639 = vrot.lane.b32.xlu2 %v4452_v34, %s4659_s8  ;;  %v4454_v24 = vpop.eup %4453 }
0x4324   :  { %v3416_v1 = vadd.f32 1.0, %v4454_v24 }
0x4326   :  { %4455 = vrcp.f32 %v3416_v1  ;;  %v3428_v63 = vand.u32 2147483648, %v3416_v1  ;;  %vm3422_vm11 = vweird.f32 %v3416_v1  ;;  %v3426_v25 = vand.u32 2147483647, %v3416_v1 }
0x4328   :  { %v3429_v45 = vor.u32 1.1754944e-38, %v3428_v63  ;;  %vm3427_vm1 = vcmp.eq.f32.partialorder %v3426_v25, 8.507059e+37 }
0x432b   :  { %3434 = vrot.lane.b32.xlu2 %v3432_v53, %s4657_s4 }
0x432c   :  { %v4456_v32 = vpop.eup %4455 }
0x432d   :  { %v3418_v39 = vmul.f32 %v4456_v32, %v3416_v1  ;;  %vm3423_vm15 = vweird.f32 %v4456_v32 }
0x432e   :  { %vm3424_vm0 = vmor %vm3422_vm11, %vm3423_vm15 }
0x432f   :  { %v3419_v41 = vsub.f32 1.0, %v3418_v39 }
0x4331   :  { %v3420_v2 = vmul.f32 %v4456_v32, %v3419_v41 }
0x4333   :  { %v3421_v54 = vadd.f32 %v4456_v32, %v3420_v2 }
0x4335   :  { %v3425_v58 = vsel %vm3424_vm0, %v4456_v32, %v3421_v54 }
0x4336   :  { %v3430_v0 = vsel %vm3427_vm1, %v3429_v45, %v3425_v58 }
0x4337   :  { %v3444_v35 = vsub.f32 1.0, %v3430_v0  ;;  %v3451_v34 = vmul.f32 %v3430_v0, %v3387_v13 }
0x437d   :  { %v3640_v38 = vpop.permute.xlu2 %3639 }
0x437e   :  { %v3642_v57 = vmul.f32 %v3640_v38, %v3637_v43 }
0x4380   :  { %v5860_v51 = vadd.f32 %v3644_v6, %v3642_v57 }
0x4382   :  { %3647 = vrot.lane.b32.xlu1 %v5860_v51, %s4659_s8  ;;  %v3715_v12 = vrot.slane %v5860_v51, 6 }
0x4385   :  { %v3435_v56 = vpop.permute.xlu2 %3434 }
0x4386   :  { %v3437_v48 = vmul.f32 %v3435_v56, %v3430_v0 }
0x438a   :  { %3439 = vrot.lane.b32.xlu1 %v3437_v48, %s4657_s4 }
0x43f4   :  { %v3648_v33 = vpop.permute.xlu1 %3647 }
0x43f5   :  { %3650 = vst.msk [vmem:[#allocation2] sm:$0x3] %vm309_vm6, %v3648_v33  ;;  %4171 = vmatmul.msk.f32.vlgmr.msra.gmra.mxu1 %vm236_vm7, %v3648_v33 }
0x43fc   :  { %v3440_v60 = vpop.permute.xlu1 %3439 }
0x43fd   :  { %v3442_v3 = vadd.f32 %v3440_v60, %v5855_v10 }
0x43ff   :  { %4457 = vtanh.f32 %v3442_v3 }
0x4405   :  { %v4458_v19 = vpop.eup %4457 }
0x4472   :  { %v3670_v61 = vpop.f32.mrf.mxu1 }
0x4473   :  { %v3696_v20 = vadd.f32 %v3670_v61, %v5823_v59  ;;  %v3674_v5 = vrot.slane %v3670_v61, 6 }
0x4475   :  { %v3698_v17 = vrot.slane %v3696_v20, 6  ;;  %v3676_v21 = vadd.f32 %v3674_v5, %v5846_v22 }
0x4477   :  { %3699 = vrot.lane.b32.xlu0 %v3698_v17, %s4657_s4  ;;  %v4172_v27 = vmul.f32 -1.442695, %v3676_v21 }
0x4479   :  { %4459 = vpow2.f32 %v4172_v27 }
0x447f   :  { %3446 = vrot.lane.b32.xlu0 %v4458_v19, %s4659_s8  ;;  %v4460_v4 = vpop.eup %4459 }
0x4480   :  { %v3680_v15 = vadd.f32 1.0, %v4460_v4 }
0x4482   :  { %4461 = vrcp.f32 %v3680_v15  ;;  %v3692_v26 = vand.u32 2147483648, %v3680_v15  ;;  %vm3686_vm8 = vweird.f32 %v3680_v15  ;;  %v3690_v29 = vand.u32 2147483647, %v3680_v15 }
0x4484   :  { %v3693_v55 = vor.u32 1.1754944e-38, %v3692_v26  ;;  %vm3691_vm10 = vcmp.eq.f32.partialorder %v3690_v29, 8.507059e+37 }
0x4488   :  { %v4462_v28 = vpop.eup %4461 }
0x4489   :  { %v3682_v52 = vmul.f32 %v4462_v28, %v3680_v15  ;;  %vm3687_vm5 = vweird.f32 %v4462_v28 }
0x448a   :  { %vm3688_vm9 = vmor %vm3686_vm8, %vm3687_vm5 }
0x448b   :  { %v3683_v49 = vsub.f32 1.0, %v3682_v52 }
0x448d   :  { %v3684_v50 = vmul.f32 %v4462_v28, %v3683_v49 }
0x448f   :  { %v3685_v37 = vadd.f32 %v4462_v28, %v3684_v50 }
0x4491   :  { %v3689_v7 = vsel %vm3688_vm9, %v4462_v28, %v3685_v37 }
0x4492   :  { %v3694_v30 = vsel %vm3691_vm10, %v3693_v55, %v3689_v7 }
0x4493   :  { %v3709_v13 = vsub.f32 1.0, %v3694_v30  ;;  %v3717_v39 = vmul.f32 %v3715_v12, %v3694_v30 }
0x44e9   :  { %v3700_v18 = vpop.permute.xlu0 %3699 }
0x44ea   :  { %v3702_v42 = vmul.f32 %v3700_v18, %v3694_v30 }
0x44ec   :  { %3704 = vrot.lane.b32.xlu2 %v3702_v42, %s4657_s4 }
0x44f1   :  { %v3447_v44 = vpop.permute.xlu0 %3446 }
0x44f2   :  { %v3449_v23 = vmul.f32 %v3447_v44, %v3444_v35 }
0x44f4   :  { %v5875_v53 = vadd.f32 %v3451_v34, %v3449_v23 }
0x44f6   :  { %3454 = vrot.lane.b32.xlu2 %v5875_v53, %s4659_s8 }
0x4546   :  { %v3705_v16 = vpop.permute.xlu2 %3704 }
0x4547   :  { %v3707_v40 = vadd.f32 %v3705_v16, %v5846_v22 }
0x4549   :  { %4463 = vtanh.f32 %v3707_v40 }
0x454f   :  { %v4464_v24 = vpop.eup %4463 }
0x4550   :  { %3711 = vrot.lane.b32.xlu1 %v4464_v24, %s4659_s8  ;;  %v3455_v1 = vpop.permute.xlu2 %3454 }
0x4551   :  { %3457 = vst.msk [vmem:[#allocation2 + $0x8] sm:$0x3] %vm309_vm6, %v3455_v1  ;;  %4165 = vmatmul.msk.f32.vlgmr.msrb.gmra.mxu2 %vm236_vm7, %v3455_v1 }
0x4552   :  { %3961 = vmatpush.msrb.mxu2 %v5785_v31 }
0x4554   :  { %3962 = vmatpush.msrb.mxu2 %v5789_v11 }
0x4556   :  { %3963 = vmatpush.msrb.mxu2 %v5791_v14 }
0x4558   :  { %3964 = vmatpush.msrb.mxu2 %v5796_v36 }
0x45c2   :  { %v3712_v32 = vpop.permute.xlu1 %3711 }
0x45c3   :  { %v3714_v41 = vmul.f32 %v3712_v32, %v3709_v13 }
0x45c5   :  { %v5888_v43 = vadd.f32 %v3717_v39, %v3714_v41 }
0x45c7   :  { %v3724_v2 = vrot.slane %v5888_v43, 2  ;;  %v3791_v7 = vrot.slane %v5888_v43, 6 }
0x45c9   :  { %3725 = vrot.lane.b32.xlu0 %v3724_v2, %s4659_s8 }
0x45d4   :  { %v3477_v31 = vpop.f32.mrf.mxu2 }
0x45d5   :  { %v3503_v19 = vadd.f32 %v3477_v31, %v5663_v62  ;;  %v3481_v15 = vrot.slane %v3477_v31, 6 }
0x45d7   :  { %v3505_v5 = vrot.slane %v3503_v19, 6  ;;  %v3483_v28 = vadd.f32 %v3481_v15, %v5855_v10 }
0x45d9   :  { %v4166_v52 = vmul.f32 -1.442695, %v3483_v28 }
0x463b   :  { %v3726_v38 = vpop.permute.xlu0 %3725 }
0x463c   :  { %4173 = vmatmul.msk.f32.vlgmr.msra.gmra.mxu2 %vm236_vm7, %v3726_v38 }
0x46bf   :  { %v3746_v11 = vpop.f32.mrf.mxu2 }
0x46c0   :  { %v3772_v14 = vadd.f32 %v3746_v11, %v5823_v59  ;;  %v3750_v6 = vrot.slane %v3746_v11, 4 }
0x46c2   :  { %v3774_v36 = vrot.slane %v3772_v14, 4  ;;  %v3752_v57 = vadd.f32 %v3750_v6, %v5846_v22 }
0x46c4   :  { %3775 = vrot.lane.b32.xlu1 %v3774_v36, %s4657_s4  ;;  %v4174_v51 = vmul.f32 -1.442695, %v3752_v57 }
0x46c6   :  { %4465 = vpow2.f32 %v4174_v51 }
0x46cc   :  { %v4466_v54 = vpop.eup %4465 }
0x46cd   :  { %v3756_v63 = vadd.f32 1.0, %v4466_v54 }
0x46cf   :  { %4467 = vrcp.f32 %v3756_v63  ;;  %v3768_v48 = vand.u32 2147483648, %v3756_v63  ;;  %vm3762_vm13 = vweird.f32 %v3756_v63  ;;  %v3766_v33 = vand.u32 2147483647, %v3756_v63 }
0x46d1   :  { %v3769_v61 = vor.u32 1.1754944e-38, %v3768_v48  ;;  %vm3767_vm15 = vcmp.eq.f32.partialorder %v3766_v33, 8.507059e+37 }
0x46d5   :  { %v4468_v25 = vpop.eup %4467 }
0x46d6   :  { %v3758_v58 = vmul.f32 %v4468_v25, %v3756_v63  ;;  %vm3763_vm12 = vweird.f32 %v4468_v25 }
0x46d7   :  { %vm3764_vm14 = vmor %vm3762_vm13, %vm3763_vm12 }
0x46d8   :  { %v3759_v56 = vsub.f32 1.0, %v3758_v58 }
0x46da   :  { %v3760_v45 = vmul.f32 %v4468_v25, %v3759_v56 }
0x46dc   :  { %v3761_v0 = vadd.f32 %v4468_v25, %v3760_v45 }
0x46de   :  { %v3765_v60 = vsel %vm3764_vm14, %v4468_v25, %v3761_v0 }
0x46df   :  { %v3770_v3 = vsel %vm3767_vm15, %v3769_v61, %v3765_v60 }
0x46e0   :  { %v3785_v29 = vsub.f32 1.0, %v3770_v3  ;;  %v3793_v30 = vmul.f32 %v3791_v7, %v3770_v3 }
0x4736   :  { %v3776_v20 = vpop.permute.xlu1 %3775 }
0x4737   :  { %v3778_v17 = vmul.f32 %v3776_v20, %v3770_v3  ;;  %v3522_v20 = vrot.slane %v5875_v53, 6 }
0x4739   :  { %3780 = vrot.lane.b32.xlu2 %v3778_v17, %s4657_s4 }
0x4741   :  { %3506 = vrot.lane.b32.xlu2 %v3505_v5, %s4657_s4 }
0x4793   :  { %v3781_v21 = vpop.permute.xlu2 %3780 }
0x4794   :  { %v3783_v27 = vadd.f32 %v3781_v21, %v5846_v22 }
0x4796   :  { %4469 = vtanh.f32 %v3783_v27 }
0x4797   :  { %4471 = vpow2.f32 %v4166_v52 }
0x479b   :  { %v3507_v1 = vpop.permute.xlu2 %3506 }
0x479c   :  { %v4470_v4 = vpop.eup %4469 }
0x479d   :  { %3787 = vrot.lane.b32.xlu0 %v4470_v4, %s4659_s8  ;;  %v4472_v49 = vpop.eup %4471 }
0x479e   :  { %v3487_v50 = vadd.f32 1.0, %v4472_v49 }
0x47a0   :  { %4473 = vrcp.f32 %v3487_v50  ;;  %v3499_v23 = vand.u32 2147483648, %v3487_v50  ;;  %vm3493_vm0 = vweird.f32 %v3487_v50  ;;  %v3497_v16 = vand.u32 2147483647, %v3487_v50 }
0x47a2   :  { %v3500_v24 = vor.u32 1.1754944e-38, %v3499_v23  ;;  %vm3498_vm5 = vcmp.eq.f32.partialorder %v3497_v16, 8.507059e+37 }
0x47a6   :  { %v4474_v37 = vpop.eup %4473 }
0x47a7   :  { %v3489_v62 = vmul.f32 %v4474_v37, %v3487_v50  ;;  %vm3494_vm11 = vweird.f32 %v4474_v37 }
0x47a8   :  { %vm3495_vm1 = vmor %vm3493_vm0, %vm3494_vm11 }
0x47a9   :  { %v3490_v26 = vsub.f32 1.0, %v3489_v62 }
0x47ab   :  { %v3491_v18 = vmul.f32 %v4474_v37, %v3490_v26 }
0x47ad   :  { %v3492_v44 = vadd.f32 %v4474_v37, %v3491_v18 }
0x47af   :  { %v3496_v40 = vsel %vm3495_vm1, %v4474_v37, %v3492_v44 }
0x47b0   :  { %v3501_v12 = vsel %vm3498_vm5, %v3500_v24, %v3496_v40 }
0x47b1   :  { %v3509_v13 = vmul.f32 %v3507_v1, %v3501_v12  ;;  %v3516_v3 = vsub.f32 1.0, %v3501_v12  ;;  %v3524_v19 = vmul.f32 %v3522_v20, %v3501_v12 }
0x480f   :  { %v3788_v55 = vpop.permute.xlu0 %3787 }
0x4810   :  { %v3790_v42 = vmul.f32 %v3788_v55, %v3785_v29 }
0x4812   :  { %v5903_v35 = vadd.f32 %v3793_v30, %v3790_v42 }
0x4814   :  { %v3800_v34 = vrot.slane %v5903_v35, 4  ;;  %v3867_v49 = vrot.slane %v5903_v35, 6 }
0x4816   :  { %3801 = vrot.lane.b32.xlu1 %v3800_v34, %s4659_s8 }
0x481e   :  { %3511 = vrot.lane.b32.xlu1 %v3509_v13, %s4657_s4 }
0x4888   :  { %v3802_v32 = vpop.permute.xlu1 %3801 }
0x4889   :  { %4175 = vmatmul.msk.f32.vlgmr.msra.gmra.mxu0 %vm236_vm7, %v3802_v32 }
0x4890   :  { %v3512_v39 = vpop.permute.xlu1 %3511 }
0x4891   :  { %v3514_v38 = vadd.f32 %v3512_v39, %v5855_v10 }
0x4893   :  { %4475 = vtanh.f32 %v3514_v38 }
0x4899   :  { %v4476_v11 = vpop.eup %4475 }
0x4906   :  { %v3822_v41 = vpop.f32.mrf.mxu0 }
0x4907   :  { %v3848_v2 = vadd.f32 %v3822_v41, %v5823_v59  ;;  %v3826_v14 = vrot.slane %v3822_v41, 2 }
0x4909   :  { %v3850_v31 = vrot.slane %v3848_v2, 2  ;;  %v3828_v36 = vadd.f32 %v3826_v14, %v5846_v22 }
0x490b   :  { %3851 = vrot.lane.b32.xlu0 %v3850_v31, %s4657_s4  ;;  %v4176_v6 = vmul.f32 -1.442695, %v3828_v36 }
0x490d   :  { %4477 = vpow2.f32 %v4176_v6 }
0x4913   :  { %3518 = vrot.lane.b32.xlu0 %v4476_v11, %s4659_s8  ;;  %v4478_v57 = vpop.eup %4477 }
0x4914   :  { %v3832_v51 = vadd.f32 1.0, %v4478_v57 }
0x4916   :  { %4479 = vrcp.f32 %v3832_v51  ;;  %v3844_v56 = vand.u32 2147483648, %v3832_v51  ;;  %vm3838_vm9 = vweird.f32 %v3832_v51  ;;  %v3842_v45 = vand.u32 2147483647, %v3832_v51 }
0x4918   :  { %v3845_v48 = vor.u32 1.1754944e-38, %v3844_v56  ;;  %vm3843_vm12 = vcmp.eq.f32.partialorder %v3842_v45, 8.507059e+37 }
0x491c   :  { %v4480_v54 = vpop.eup %4479 }
0x491d   :  { %v3834_v63 = vmul.f32 %v4480_v54, %v3832_v51  ;;  %vm3839_vm8 = vweird.f32 %v4480_v54 }
0x491e   :  { %vm3840_vm10 = vmor %vm3838_vm9, %vm3839_vm8 }
0x491f   :  { %v3835_v25 = vsub.f32 1.0, %v3834_v63 }
0x4921   :  { %v3836_v58 = vmul.f32 %v4480_v54, %v3835_v25 }
0x4923   :  { %v3837_v10 = vadd.f32 %v4480_v54, %v3836_v58 }
0x4925   :  { %v3841_v0 = vsel %vm3840_vm10, %v4480_v54, %v3837_v10 }
0x4926   :  { %v3846_v60 = vsel %vm3843_vm12, %v3845_v48, %v3841_v0 }
0x4927   :  { %v3861_v53 = vsub.f32 1.0, %v3846_v60  ;;  %v3869_v37 = vmul.f32 %v3867_v49, %v3846_v60 }
0x497d   :  { %v3852_v33 = vpop.permute.xlu0 %3851 }
0x497e   :  { %v3854_v61 = vmul.f32 %v3852_v33, %v3846_v60 }
0x4980   :  { %3856 = vrot.lane.b32.xlu2 %v3854_v61, %s4657_s4 }
0x4985   :  { %v3519_v17 = vpop.permute.xlu0 %3518 }
0x4986   :  { %v3521_v5 = vmul.f32 %v3519_v17, %v3516_v3 }
0x4988   :  { %v3525_v21 = vadd.f32 %v3524_v19, %v3521_v5 }
0x498a   :  { %3527 = vrot.lane.b32.xlu2 %v3525_v21, %s4659_s8 }
0x49da   :  { %v3857_v27 = vpop.permute.xlu2 %3856 }
0x49db   :  { %v3859_v4 = vadd.f32 %v3857_v27, %v5846_v22 }
0x49dd   :  { %4481 = vtanh.f32 %v3859_v4 }
0x49e3   :  { %v4482_v15 = vpop.eup %4481 }
0x49e4   :  { %3863 = vrot.lane.b32.xlu1 %v4482_v15, %s4659_s8  ;;  %v3528_v28 = vpop.permute.xlu2 %3527 }
0x49e5   :  { %3530 = vst.msk [vmem:[#allocation2 + $0x8] sm:$0xc] %vm383_vm2, %v3528_v28 }
0x49ec   :  { %v3532_v52 = vld [vmem:[#allocation2 + $0x8] sm:$0xf] }
0x49ed   :  { %4168 = vmatmul.msk.f32.gmra.mxu3 %vm236_vm7, %v3532_v52 }
0x4a56   :  { %v3864_v50 = vpop.permute.xlu1 %3863 }
0x4a57   :  { %v3866_v62 = vmul.f32 %v3864_v50, %v3861_v53 }
0x4a59   :  { %v5922_v26 = vadd.f32 %v3869_v37, %v3866_v62 }
0x4a5b   :  { %v3876_v22 = vrot.slane %v5922_v26, 6 }
0x4a5d   :  { %3877 = vrot.lane.b32.xlu0 %v3876_v22, %s4659_s8 }
0x4a70   :  { %v3567_v18 = vpop.f32.mrf.mxu3 }
0x4a71   :  { %v5930_v30 = vadd.f32 %v5843_v47, %v3567_v18 }
0x4acf   :  { %v3878_v29 = vpop.permute.xlu0 %3877 }
0x4ad0   :  { %4177 = vmatmul.msk.f32.vlgmr.msrb.gmra.mxu1 %vm236_vm7, %v3878_v29 }
0x4b4d   :  { %v3898_v7 = vpop.f32.mrf.mxu1 }
0x4b4e   :  { %v3921_v55 = vadd.f32 %v3898_v7, %v5823_v59  ;;  %v3901_v42 = vadd.f32 %v3898_v7, %v5930_v30 }
0x4b50   :  { %3923 = vrot.lane.b32.xlu1 %v3921_v55, %s4657_s4  ;;  %v4178_v44 = vmul.f32 -1.442695, %v3901_v42 }
0x4b52   :  { %4483 = vpow2.f32 %v4178_v44 }
0x4b58   :  { %v4484_v34 = vpop.eup %4483 }
0x4b59   :  { %v3905_v23 = vadd.f32 1.0, %v4484_v34 }
0x4b5b   :  { %4485 = vrcp.f32 %v3905_v23  ;;  %v3917_v13 = vand.u32 2147483648, %v3905_v23  ;;  %vm3911_vm14 = vweird.f32 %v3905_v23  ;;  %v3915_v32 = vand.u32 2147483647, %v3905_v23 }
0x4b5d   :  { %v3918_v47 = vor.u32 1.1754944e-38, %v3917_v13  ;;  %vm3916_vm11 = vcmp.eq.f32.partialorder %v3915_v32, 8.507059e+37 }
0x4b61   :  { %v4486_v16 = vpop.eup %4485 }
0x4b62   :  { %v3907_v40 = vmul.f32 %v4486_v16, %v3905_v23  ;;  %vm3912_vm13 = vweird.f32 %v4486_v16 }
0x4b63   :  { %vm3913_vm15 = vmor %vm3911_vm14, %vm3912_vm13 }
0x4b64   :  { %v3908_v24 = vsub.f32 1.0, %v3907_v40 }
0x4b66   :  { %v3909_v1 = vmul.f32 %v4486_v16, %v3908_v24 }
0x4b68   :  { %v3910_v12 = vadd.f32 %v4486_v16, %v3909_v1 }
0x4b6a   :  { %v3914_v39 = vsel %vm3913_vm15, %v4486_v16, %v3910_v12  ;;  %v4206_v16 = vld [vmem:[%s6015_s27] ss:$0 sm:$0xff] }
0x4b6b   :  { %v3919_v2 = vsel %vm3916_vm11, %v3918_v47, %v3914_v39 }
0x4b6c   :  { %v3933_v36 = vsub.f32 1.0, %v3919_v2  ;;  %v3940_v57 = vmul.f32 %v3919_v2, %v3876_v22  ;;  %v4023_v22 = vld [vmem:[%s6014_s26 + $0x8] sm:$0xff] }
0x4bc2   :  { %v3924_v41 = vpop.permute.xlu1 %3923 }
0x4bc3   :  { %v3926_v38 = vmul.f32 %v3924_v41, %v3919_v2 }
0x4bc5   :  { %3928 = vrot.lane.b32.xlu2 %v3926_v38, %s4657_s4 }
0x4c1f   :  { %v3929_v31 = vpop.permute.xlu2 %3928 }
0x4c20   :  { %v3931_v11 = vadd.f32 %v3929_v31, %v5930_v30 }
0x4c22   :  { %4487 = vtanh.f32 %v3931_v11 }
0x4c28   :  { %v4488_v14 = vpop.eup %4487 }
0x4c29   :  { %3935 = vrot.lane.b32.xlu0 %v4488_v14, %s4659_s8 }
0x4c9b   :  { %v3936_v6 = vpop.permute.xlu0 %3935 }
0x4c9c   :  { %v3938_v51 = vmul.f32 %v3936_v6, %v3933_v36 }
0x4c9e   :  { %v3941_v54 = vadd.f32 %v3940_v57, %v3938_v51 }
0x4ca0   :  { %3943 = vrot.lane.b32.xlu1 %v3941_v54, %s4659_s8  ;;  %v4011_v21 = vrot.slane %v3941_v54, 6 }
0x4d12   :  { %v3944_v63 = vpop.permute.xlu1 %3943 }
0x4d13   :  { %3946 = vst.msk [vmem:[#allocation2 + $0x8] sm:$0x3] %vm309_vm6, %v3944_v63  ;;  %4179 = vmatmul.msk.f32.vlgmr.msrb.gmra.mxu2 %vm236_vm7, %v3944_v63 }
0x4d96   :  { %v3966_v25 = vpop.f32.mrf.mxu2 }
0x4d97   :  { %v3970_v58 = vrot.slane %v3966_v25, 6  ;;  %v3992_v10 = vadd.f32 %v3966_v25, %v5823_v59 }
0x4d99   :  { %v3972_v56 = vadd.f32 %v3970_v58, %v5930_v30  ;;  %v3994_v45 = vrot.slane %v3992_v10, 6 }
0x4d9b   :  { %v4180_v0 = vmul.f32 -1.442695, %v3972_v56  ;;  %3995 = vrot.lane.b32.xlu2 %v3994_v45, %s4657_s4 }
0x4d9d   :  { %4489 = vpow2.f32 %v4180_v0 }
0x4da3   :  { %v4490_v48 = vpop.eup %4489  ;;  %3720 = vrot.lane.b32.xlu2 %v5888_v43, %s4659_s8 }
0x4da4   :  { %v3976_v33 = vadd.f32 1.0, %v4490_v48 }
0x4da6   :  { %4491 = vrcp.f32 %v3976_v33  ;;  %v3988_v3 = vand.u32 2147483648, %v3976_v33  ;;  %v3986_v59 = vand.u32 2147483647, %v3976_v33  ;;  %vm3982_vm0 = vweird.f32 %v3976_v33 }
0x4da8   :  { %v3989_v5 = vor.u32 1.1754944e-38, %v3988_v3  ;;  %vm3987_vm5 = vcmp.eq.f32.partialorder %v3986_v59, 8.507059e+37 }
0x4dac   :  { %v4492_v60 = vpop.eup %4491 }
0x4dad   :  { %v3978_v61 = vmul.f32 %v4492_v60, %v3976_v33  ;;  %vm3983_vm6 = vweird.f32 %v4492_v60 }
0x4dae   :  { %vm3984_vm1 = vmor %vm3982_vm0, %vm3983_vm6 }
0x4daf   :  { %v3979_v20 = vsub.f32 1.0, %v3978_v61 }
0x4db1   :  { %v3980_v17 = vmul.f32 %v4492_v60, %v3979_v20 }
0x4db3   :  { %v3981_v19 = vadd.f32 %v4492_v60, %v3980_v17 }
0x4db5   :  { %v3985_v27 = vsel %vm3984_vm1, %v4492_v60, %v3981_v19 }
0x4db6   :  { %v3990_v4 = vsel %vm3987_vm5, %v3989_v5, %v3985_v27 }
0x4db7   :  { %v4013_v15 = vmul.f32 %v4011_v21, %v3990_v4 }
0x4df5   :  { %v3996_v28 = vpop.permute.xlu2 %3995 }
0x4df6   :  { %v3998_v43 = vmul.f32 %v3996_v28, %v3990_v4 }
0x4df8   :  { %4000 = vrot.lane.b32.xlu0 %v3998_v43, %s4657_s4 }
0x4dfd   :  { %v3721_v52 = vpop.permute.xlu2 %3720 }
0x4dfe   :  { %3723 = vst.msk [vmem:[#allocation2] sm:$0xc] %vm383_vm2, %v3721_v52 }
0x4e00   :  { %3796 = vrot.lane.b32.xlu0 %v5903_v35, %s4659_s8  ;;  %v4024_v35 = vld [vmem:[%s6014_s26 + $0x10] sm:$0xff] }
0x4e08   :  { %2327 = vrot.lane.b32.xlu0 %v5473_v8, %s4659_s8  ;;  %v4025_v8 = vld [vmem:[%s6014_s26 + $0x18] sm:$0xff] }
0x4e09   :  { %4048 = vmatpush.msrb.mxu3 %v4025_v8 }
0x4e0b   :  { %4049 = vmatpush.msrb.mxu3 %v4024_v35 }
0x4e0d   :  { %4050 = vmatpush.msrb.mxu3 %v4023_v22 }
0x4e6a   :  { %v4001_v53 = vpop.permute.xlu0 %4000 }
0x4e6b   :  { %v4003_v49 = vadd.f32 %v4001_v53, %v5930_v30 }
0x4e6d   :  { %4493 = vtanh.f32 %v4003_v49 }
0x4e72   :  { %v3797_v50 = vpop.permute.xlu0 %3796 }
0x4e73   :  { %v4494_v37 = vpop.eup %4493  ;;  %3799 = vst.msk [vmem:[#allocation2] sm:$0x30] %vm460_vm3, %v3797_v50 }
0x4e74   :  { %4007 = vrot.lane.b32.xlu1 %v4494_v37, %s4659_s8 }
0x4e7a   :  { %v2328_v62 = vpop.permute.xlu0 %2327 }
0x4e7b   :  { %2330 = vst.msk [vmem:[#allocation2 + $0x8] sm:$0x30] %vm460_vm3, %v2328_v62  ;;  %vm4059_vm3 = vcmask 39936  }
0x4e7c   :  { %3872 = vrot.lane.b32.xlu1 %v5922_v26, %s4659_s8  ;;  %v4022_v26 = vld [vmem:[%s6014_s26] sm:$0xff] }
0x4e7d   :  { %4051 = vmatpush.msrb.mxu3 %v4022_v26 }
0x4e84   :  { %2403 = vrot.lane.b32.xlu1 %v5544_v46, %s4659_s8  ;;  %v4005_v46 = vsub.f32 1.0, %v3990_v4 }
0x4ee6   :  { %v4008_v29 = vpop.permute.xlu1 %4007 }
0x4ee7   :  { %v4010_v7 = vmul.f32 %v4008_v29, %v4005_v46 }
0x4ee9   :  { %v4014_v55 = vadd.f32 %v4013_v15, %v4010_v7 }
0x4eeb   :  { %4016 = vrot.lane.b32.xlu2 %v4014_v55, %s4659_s8 }
0x4eee   :  { %v3873_v18 = vpop.permute.xlu1 %3872 }
0x4eef   :  { %3875 = vst.msk [vmem:[#allocation2] sm:$0xc0] %vm537_vm4, %v3873_v18 }
0x4ef3   :  { %2547 = vrot.lane.b32.xlu2 %v5778_v9, %s4659_s8 }
0x4ef6   :  { %v2404_v30 = vpop.permute.xlu1 %2403  ;;  %v4020_v42 = vld [vmem:[#allocation2] sm:$0xff] }
0x4ef7   :  { %2406 = vst.msk [vmem:[#allocation2 + $0x8] sm:$0xc0] %vm537_vm4, %v2404_v30  ;;  %4181 = vmatmul.msk.f32.vlgmr.msrb.gmra.mxu3 %vm236_vm7, %v4020_v42  ;;  %vm4061_vm4 = vcmask 35840  }
0x4f45   :  { %v4017_v44 = vpop.permute.xlu2 %4016 }
0x4f46   :  { %4019 = vst.msk [vmem:[#allocation2 + $0x8] sm:$0xc] %vm383_vm2, %v4017_v44 }
0x4f4d   :  { %v2548_v34 = vpop.permute.xlu2 %2547  ;;  %v4021_v23 = vld [vmem:[#allocation2 + $0x8] sm:$0xf] }
0x4f4e   :  { %2550 = vst.msk [vmem:[#allocation2 + $0x10] sm:$0xc] %vm383_vm2, %v2548_v34  ;;  %4182 = vmatmul.msk.f32.gmra.mxu3 %vm236_vm7, %v4021_v23 }
0x4f7a   :  { %v4053_v9 = vpop.f32.mrf.mxu3 }
0x4f7b   :  { %v4054_v40 = vadd.f32 %v4206_v16, %v4053_v9 }
0x4f7d   :  { %4060 = vst.msk [vmem:[%s6016_s28] sm:$0xff] %vm4059_vm3, %v4054_v40 }
0x4fd1   :  { %v4056_v24 = vpop.f32.mrf.mxu3 }
0x4fd2   :  { %v4057_v1 = vadd.f32 %v4206_v16, %v4056_v24 }
0x4fd4   :  { %4062 = vst.msk [vmem:[%s6016_s28 + $0x8] sm:$0xf] %vm4061_vm4, %v4057_v1 }
0x4fd5   :  { %4067 = vsyncpa [#allocation4], 1 }
0x4fd6   :  { %4068 = vsyncpa [#allocation6], 1 }
0x4fd7   :  { %4069 = vsyncpa [#allocation9], 1 }
0x4fd8   :  { %4070 = vsyncpa [#allocation12], 1 }

</bundles_post_ra>
